<compile_context>
chip_gen: v6e
topology: v6e:2x2x1
jax: 0.10.0
libtpu: 0.0.40
codegen_flags: <defaults>
</compile_context>

<pallas_src>
import functools

import jax
import jax.numpy as jnp
from jax.experimental import pallas as pl
from jax.experimental.pallas import tpu as pltpu

NUM_CHANNELS = 16
K1 = 5            # first conv kernel size
K2 = 3            # second conv kernel size
K1_PAD = 32       # 25 conv1 taps padded to 32 (aligned contraction dim)


def _round_up(x, m):
    return ((x + m - 1) // m) * m


def _feature_detector_kernel(xflat_ref, w1_ref, b1_ref, w2_ref, mask_ref, b2_ref,
                             out_ref, im2col_ref, act1_ref, *, pw, head):
    # xflat_ref : (1, 1, Q + xtail) f32  zero-padded, flattened (H+4, W+4) images,
    #                                    one image per `stride` lanes
    # w1_ref    : (16, 32) f32  VMEM     conv1 taps (scaled by 1/max), cols >= 25 zero
    # b1_ref    : (16, 1)  f32  VMEM     conv1 bias
    # w2_ref    : (9, 16)  f32  VMEM     conv2 taps, row = (dy,dx), col = in-channel
    # mask_ref  : (1, Q)   f32  VMEM     1.0 on lanes that are real pixels, else 0.0
    # b2_ref    : (1,)     f32  SMEM     conv2 bias
    # out_ref   : (1, 1, Q) f32          conv2 + ReLU (junk on masked-off lanes)
    # im2col_ref: (32, Q)  f32  scratch  conv1 im2col (row k = lane-shifted input)
    # act1_ref  : (16, Q + 2*head) f32   conv1 activation with zero halo for conv2
    Q = out_ref.shape[2]

    # conv1 im2col: row k holds the input shifted by (dy*pw + dx) lanes.  Rows 24..31
    # are zeroed first with one 8-sublane-aligned block store (row 24 is overwritten
    # below with the real tap; rows 25..31 stay zero so they contribute nothing).
    im2col_ref[pl.ds(K1 * K1 - 1, K1_PAD - K1 * K1 + 1), :] = jnp.zeros(
        (K1_PAD - K1 * K1 + 1, Q), jnp.float32)
    for k in range(K1 * K1):
        dy, dx = divmod(k, K1)
        im2col_ref[pl.ds(k, 1), :] = xflat_ref[0, :, pl.ds(dy * pw + dx, Q)]

    # conv1 as a single MXU matmul over the 25 taps, + bias, ReLU, halo mask.
    a1 = jnp.dot(w1_ref[...], im2col_ref[...],
                 preferred_element_type=jnp.float32,
                 precision=jax.lax.Precision.HIGHEST)
    a1 = jnp.maximum(a1 + b1_ref[...], 0.0) * mask_ref[...]

    # Stash conv1 activations with a zero halo on both sides; the masked-off lanes
    # inside each image region double as conv2's 'same' zero padding.
    act1_ref[:, pl.ds(0, head)] = jnp.zeros((NUM_CHANNELS, head), jnp.float32)
    act1_ref[:, pl.ds(head + Q, head)] = jnp.zeros((NUM_CHANNELS, head), jnp.float32)
    act1_ref[:, pl.ds(head, Q)] = a1

    # conv2: 9 taps, each a (1,16)@(16,Q) MXU matmul contracting the channel axis.
    acc = jnp.full((1, Q), b2_ref[0], dtype=jnp.float32)
    for t in range(K2 * K2):
        dy, dx = divmod(t, K2)
        shift = head + (dy - 1) * pw + (dx - 1)
        acc = acc + jnp.dot(w2_ref[pl.ds(t, 1), :],
                            act1_ref[:, pl.ds(shift, Q)],
                            preferred_element_type=jnp.float32,
                            precision=jax.lax.Precision.HIGHEST)
    out_ref[0, :, :] = jnp.maximum(acc, 0.0)


def feature_detector_cnn_forward(images, w1, b1, w2, b2, number_of_patches):
    """images: (B, 1, H, W) float32 (NCHW, like the PyTorch module)."""
    B, C, H, W = images.shape
    assert C == 1
    assert H % number_of_patches == 0 and W % number_of_patches == 0

    PH, PW = H + K1 - 1, W + K1 - 1                 # conv1 'same' zero-padded extent
    stride = _round_up(PH * PW, 128)                # lanes reserved per image
    xtail = _round_up((K1 - 1) * PW + (K1 - 1), 128)  # headroom for conv1 tap shifts
    head = _round_up(PW + 1, 128)                   # headroom for conv2 negative shifts

    # Chunking: bc images per grid step (largest divisor of B that is <= 8) so the
    # matmul M/N dims are large while per-step VMEM stays small on every generation.
    bc = 1
    for d in range(1, min(B, 8) + 1):
        if B % d == 0:
            bc = d
    num_chunks = B // bc
    Q = bc * stride

    # ---- wrapper-side layout plumbing (pure data movement / exact weight folds) ----
    # normaliseInputs0to1 (global max, dim=None) is folded into the conv1 weights:
    # conv(x / m, w) == conv(x, w / m).  (All-zero input still yields NaN/Inf exactly
    # like the PyTorch reference.)
    maxv = jnp.max(images).astype(jnp.float32)
    w1m = w1.reshape(NUM_CHANNELS, K1 * K1).astype(jnp.float32) / maxv
    w1m = jnp.pad(w1m, ((0, 0), (0, K1_PAD - K1 * K1)))                 # (16, 32)
    b1c = b1.reshape(NUM_CHANNELS, 1).astype(jnp.float32)               # (16, 1)
    w2m = jnp.transpose(w2.reshape(NUM_CHANNELS, K2, K2), (1, 2, 0))
    w2m = w2m.reshape(K2 * K2, NUM_CHANNELS).astype(jnp.float32)        # (9, 16)
    b2s = b2.reshape(1).astype(jnp.float32)                             # (1,) SMEM

    xpad = jnp.pad(images[:, 0].astype(jnp.float32),
                   ((0, 0), (K1 // 2, K1 // 2), (K1 // 2, K1 // 2)))    # (B, PH, PW)
    xflat = jnp.pad(xpad.reshape(B, PH * PW), ((0, 0), (0, stride - PH * PW)))
    xflat = jnp.pad(xflat.reshape(num_chunks, 1, Q), ((0, 0), (0, 0), (0, xtail)))

    p = jnp.arange(stride)
    mask_img = ((p < H * PW) & ((p % PW) < W)).astype(jnp.float32)
    mask = jnp.tile(mask_img, bc).reshape(1, Q)

    kernel = functools.partial(_feature_detector_kernel, pw=PW, head=head)
    smem_spec = pl.BlockSpec(memory_space=pltpu.MemorySpace.SMEM)
    out = pl.pallas_call(
        kernel,
        out_shape=jax.ShapeDtypeStruct((num_chunks, 1, Q), jnp.float32),
        grid_spec=pltpu.PrefetchScalarGridSpec(
            num_scalar_prefetch=0,
            grid=(num_chunks,),
            in_specs=[
                pl.BlockSpec((1, 1, Q + xtail), lambda i: (i, 0, 0)),   # images (flat)
                pl.BlockSpec((NUM_CHANNELS, K1_PAD), lambda i: (0, 0)),  # w1 (resident)
                pl.BlockSpec((NUM_CHANNELS, 1), lambda i: (0, 0)),       # b1
                pl.BlockSpec((K2 * K2, NUM_CHANNELS), lambda i: (0, 0)),  # w2
                pl.BlockSpec((1, Q), lambda i: (0, 0)),                  # valid-lane mask
                smem_spec,                                               # b2 scalar
            ],
            out_specs=pl.BlockSpec((1, 1, Q), lambda i: (i, 0, 0)),
            scratch_shapes=[
                pltpu.VMEM((K1_PAD, Q), jnp.float32),                    # conv1 im2col
                pltpu.VMEM((NUM_CHANNELS, Q + 2 * head), jnp.float32),   # conv1 act + halo
            ],
        ),
        compiler_params=pltpu.CompilerParams(dimension_semantics=("parallel",)),
    )(xflat, w1m, b1c, w2m, mask, b2s)

    # Drop the per-row / per-image padding lanes, then createLinearPatches.
    fmap = out.reshape(B, stride)[:, :H * PW].reshape(B, H, PW)[:, :, :W]
    P = number_of_patches
    ps_h, ps_w = H // P, W // P
    patches = fmap.reshape(B, 1, P, ps_h, P, ps_w)
    patches = patches.transpose(0, 2, 4, 1, 3, 5).reshape(B, P * P, ps_h * ps_w)
    return patches


def init_params(key):
    # Deterministic synthetic init (PyTorch-conv-like uniform fan-in scaling).
    k1, k2, k3, k4 = jax.random.split(key, 4)
    fan1 = 1 * K1 * K1
    w1 = jax.random.uniform(k1, (NUM_CHANNELS, 1, K1, K1), jnp.float32, -1.0, 1.0) / jnp.sqrt(fan1)
    b1 = jax.random.uniform(k2, (NUM_CHANNELS,), jnp.float32, -1.0, 1.0) / jnp.sqrt(fan1)
    fan2 = NUM_CHANNELS * K2 * K2
    w2 = jax.random.uniform(k3, (1, NUM_CHANNELS, K2, K2), jnp.float32, -1.0, 1.0) / jnp.sqrt(fan2)
    b2 = jax.random.uniform(k4, (1,), jnp.float32, -1.0, 1.0) / jnp.sqrt(fan2)
    return w1, b1, w2, b2


def reference_forward(images, w1, b1, w2, b2, P):
    # Pure-JAX reference of the PyTorch forward (correctness check only).
    x = images / jnp.max(images)
    dn = ('NCHW', 'OIHW', 'NCHW')
    y = jax.lax.conv_general_dilated(x, w1, (1, 1), 'SAME', dimension_numbers=dn,
                                     precision=jax.lax.Precision.HIGHEST)
    y = jnp.maximum(y + b1.reshape(1, -1, 1, 1), 0.0)
    z = jax.lax.conv_general_dilated(y, w2, (1, 1), 'SAME', dimension_numbers=dn,
                                     precision=jax.lax.Precision.HIGHEST)
    z = jnp.maximum(z + b2.reshape(1, -1, 1, 1), 0.0)
    B, C, H, W = z.shape
    ps = H // P
    return z.reshape(B, C, P, ps, P, ps).transpose(0, 2, 4, 1, 3, 5).reshape(B, P * P, C * ps * ps)


if __name__ == "__main__":
    key = jax.random.PRNGKey(0)
    kimg, kparam = jax.random.split(key)

    B, H, W = 2, 16, 16
    number_of_patches = 4
    images = jax.random.uniform(kimg, (B, 1, H, W), jnp.float32, 0.0, 255.0)
    w1, b1, w2, b2 = init_params(kparam)

    out = feature_detector_cnn_forward(images, w1, b1, w2, b2, number_of_patches)
    out = jax.block_until_ready(out)

    ref = reference_forward(images, w1, b1, w2, b2, number_of_patches)
    expected_shape = (B, number_of_patches ** 2,
                      (H // number_of_patches) * (W // number_of_patches))
    assert out.shape == expected_shape, (out.shape, expected_shape)
    if not jnp.allclose(out, ref, atol=1e-3, rtol=1e-3):
        raise AssertionError("Pallas kernel output does not match JAX reference")
    print("KERNEL_OK")
</pallas_src>

<mosaic_0001>
module attributes {stable_mosaic.version = 11 : i64} {
  func.func @_feature_detector_kernel(%arg0: i32, %arg1: memref<1x1x1152xf32, #tpu.memory_space<vmem>>, %arg2: memref<16x32xf32, #tpu.memory_space<vmem>>, %arg3: memref<16x1xf32, #tpu.memory_space<vmem>>, %arg4: memref<9x16xf32, #tpu.memory_space<vmem>>, %arg5: memref<1x1024xf32, #tpu.memory_space<vmem>>, %arg6: memref<1xf32, #tpu.memory_space<smem>>, %arg7: memref<1x1x1024xf32, #tpu.memory_space<vmem>>, %arg8: memref<32x1024xf32, #tpu.memory_space<vmem>>, %arg9: memref<16x1280xf32, #tpu.memory_space<vmem>>) attributes {dimension_semantics = [#tpu.dimension_semantics<parallel>], iteration_bounds = array<i64: 1>, scalar_prefetch = 0 : i64, scratch_operands = 2 : i64, tpu.core_type = #tpu.core_type<tc>, window_params = [{transform_indices = @transform_0, window_bounds = array<i64: 1, 1, 1152>}, {pipeline_mode = #tpu.pipeline_mode<synchronous>, transform_indices = @transform_1, window_bounds = array<i64: 16, 32>}, {pipeline_mode = #tpu.pipeline_mode<synchronous>, transform_indices = @transform_2, window_bounds = array<i64: 16, 1>}, {pipeline_mode = #tpu.pipeline_mode<synchronous>, transform_indices = @transform_3, window_bounds = array<i64: 9, 16>}, {pipeline_mode = #tpu.pipeline_mode<synchronous>, transform_indices = @transform_4, window_bounds = array<i64: 1, 1024>}, {transform_indices = @transform_5, window_bounds = array<i64: 1>}, {transform_indices = @transform_6, window_bounds = array<i64: 1, 1, 1024>}]} {
    %cst = arith.constant 0.000000e+00 : f32
    %0 = vector.broadcast %cst : f32 to vector<8x1024xf32>
    %c24 = arith.constant 24 : index
    %c0 = arith.constant 0 : index
    %1 = vector.load %arg8[%c24, %c0] : memref<32x1024xf32, #tpu.memory_space<vmem>>, vector<8x1024xf32>
    tpu.vector_store %arg8[%c24, %c0], %0 {strides = array<i32>} : memref<32x1024xf32, #tpu.memory_space<vmem>>, vector<8x1024xf32>,
    %c0_0 = arith.constant 0 : index
    %c0_1 = arith.constant 0 : index
    %c0_2 = arith.constant 0 : index
    %2 = vector.load %arg1[%c0_0, %c0_1, %c0_2] : memref<1x1x1152xf32, #tpu.memory_space<vmem>>, vector<1x1x1024xf32>
    %3 = vector.shape_cast %2 : vector<1x1x1024xf32> to vector<1x1024xf32>
    %c0_3 = arith.constant 0 : index
    %c0_4 = arith.constant 0 : index
    %4 = vector.load %arg8[%c0_3, %c0_4] : memref<32x1024xf32, #tpu.memory_space<vmem>>, vector<1x1024xf32>
    tpu.vector_store %arg8[%c0_3, %c0_4], %3 {strides = array<i32>} : memref<32x1024xf32, #tpu.memory_space<vmem>>, vector<1x1024xf32>,
    %c0_5 = arith.constant 0 : index
    %c0_6 = arith.constant 0 : index
    %c1 = arith.constant 1 : index
    %5 = vector.load %arg1[%c0_5, %c0_6, %c1] : memref<1x1x1152xf32, #tpu.memory_space<vmem>>, vector<1x1x1024xf32>
    %6 = vector.shape_cast %5 : vector<1x1x1024xf32> to vector<1x1024xf32>
    %c1_7 = arith.constant 1 : index
    %c0_8 = arith.constant 0 : index
    %7 = vector.load %arg8[%c1_7, %c0_8] : memref<32x1024xf32, #tpu.memory_space<vmem>>, vector<1x1024xf32>
    tpu.vector_store %arg8[%c1_7, %c0_8], %6 {strides = array<i32>} : memref<32x1024xf32, #tpu.memory_space<vmem>>, vector<1x1024xf32>,
    %c0_9 = arith.constant 0 : index
    %c0_10 = arith.constant 0 : index
    %c2 = arith.constant 2 : index
    %8 = vector.load %arg1[%c0_9, %c0_10, %c2] : memref<1x1x1152xf32, #tpu.memory_space<vmem>>, vector<1x1x1024xf32>
    %9 = vector.shape_cast %8 : vector<1x1x1024xf32> to vector<1x1024xf32>
    %c2_11 = arith.constant 2 : index
    %c0_12 = arith.constant 0 : index
    %10 = vector.load %arg8[%c2_11, %c0_12] : memref<32x1024xf32, #tpu.memory_space<vmem>>, vector<1x1024xf32>
    tpu.vector_store %arg8[%c2_11, %c0_12], %9 {strides = array<i32>} : memref<32x1024xf32, #tpu.memory_space<vmem>>, vector<1x1024xf32>,
    %c0_13 = arith.constant 0 : index
    %c0_14 = arith.constant 0 : index
    %c3 = arith.constant 3 : index
    %11 = vector.load %arg1[%c0_13, %c0_14, %c3] : memref<1x1x1152xf32, #tpu.memory_space<vmem>>, vector<1x1x1024xf32>
    %12 = vector.shape_cast %11 : vector<1x1x1024xf32> to vector<1x1024xf32>
    %c3_15 = arith.constant 3 : index
    %c0_16 = arith.constant 0 : index
    %13 = vector.load %arg8[%c3_15, %c0_16] : memref<32x1024xf32, #tpu.memory_space<vmem>>, vector<1x1024xf32>
    tpu.vector_store %arg8[%c3_15, %c0_16], %12 {strides = array<i32>} : memref<32x1024xf32, #tpu.memory_space<vmem>>, vector<1x1024xf32>,
    %c0_17 = arith.constant 0 : index
    %c0_18 = arith.constant 0 : index
    %c4 = arith.constant 4 : index
    %14 = vector.load %arg1[%c0_17, %c0_18, %c4] : memref<1x1x1152xf32, #tpu.memory_space<vmem>>, vector<1x1x1024xf32>
    %15 = vector.shape_cast %14 : vector<1x1x1024xf32> to vector<1x1024xf32>
    %c4_19 = arith.constant 4 : index
    %c0_20 = arith.constant 0 : index
    %16 = vector.load %arg8[%c4_19, %c0_20] : memref<32x1024xf32, #tpu.memory_space<vmem>>, vector<1x1024xf32>
    tpu.vector_store %arg8[%c4_19, %c0_20], %15 {strides = array<i32>} : memref<32x1024xf32, #tpu.memory_space<vmem>>, vector<1x1024xf32>,
    %c0_21 = arith.constant 0 : index
    %c0_22 = arith.constant 0 : index
    %c20 = arith.constant 20 : index
    %17 = vector.load %arg1[%c0_21, %c0_22, %c20] : memref<1x1x1152xf32, #tpu.memory_space<vmem>>, vector<1x1x1024xf32>
    %18 = vector.shape_cast %17 : vector<1x1x1024xf32> to vector<1x1024xf32>
    %c5 = arith.constant 5 : index
    %c0_23 = arith.constant 0 : index
    %19 = vector.load %arg8[%c5, %c0_23] : memref<32x1024xf32, #tpu.memory_space<vmem>>, vector<1x1024xf32>
    tpu.vector_store %arg8[%c5, %c0_23], %18 {strides = array<i32>} : memref<32x1024xf32, #tpu.memory_space<vmem>>, vector<1x1024xf32>,
    %c0_24 = arith.constant 0 : index
    %c0_25 = arith.constant 0 : index
    %c21 = arith.constant 21 : index
    %20 = vector.load %arg1[%c0_24, %c0_25, %c21] : memref<1x1x1152xf32, #tpu.memory_space<vmem>>, vector<1x1x1024xf32>
    %21 = vector.shape_cast %20 : vector<1x1x1024xf32> to vector<1x1024xf32>
    %c6 = arith.constant 6 : index
    %c0_26 = arith.constant 0 : index
    %22 = vector.load %arg8[%c6, %c0_26] : memref<32x1024xf32, #tpu.memory_space<vmem>>, vector<1x1024xf32>
    tpu.vector_store %arg8[%c6, %c0_26], %21 {strides = array<i32>} : memref<32x1024xf32, #tpu.memory_space<vmem>>, vector<1x1024xf32>,
    %c0_27 = arith.constant 0 : index
    %c0_28 = arith.constant 0 : index
    %c22 = arith.constant 22 : index
    %23 = vector.load %arg1[%c0_27, %c0_28, %c22] : memref<1x1x1152xf32, #tpu.memory_space<vmem>>, vector<1x1x1024xf32>
    %24 = vector.shape_cast %23 : vector<1x1x1024xf32> to vector<1x1024xf32>
    %c7 = arith.constant 7 : index
    %c0_29 = arith.constant 0 : index
    %25 = vector.load %arg8[%c7, %c0_29] : memref<32x1024xf32, #tpu.memory_space<vmem>>, vector<1x1024xf32>
    tpu.vector_store %arg8[%c7, %c0_29], %24 {strides = array<i32>} : memref<32x1024xf32, #tpu.memory_space<vmem>>, vector<1x1024xf32>,
    %c0_30 = arith.constant 0 : index
    %c0_31 = arith.constant 0 : index
    %c23 = arith.constant 23 : index
    %26 = vector.load %arg1[%c0_30, %c0_31, %c23] : memref<1x1x1152xf32, #tpu.memory_space<vmem>>, vector<1x1x1024xf32>
    %27 = vector.shape_cast %26 : vector<1x1x1024xf32> to vector<1x1024xf32>
    %c8 = arith.constant 8 : index
    %c0_32 = arith.constant 0 : index
    %28 = vector.load %arg8[%c8, %c0_32] : memref<32x1024xf32, #tpu.memory_space<vmem>>, vector<1x1024xf32>
    tpu.vector_store %arg8[%c8, %c0_32], %27 {strides = array<i32>} : memref<32x1024xf32, #tpu.memory_space<vmem>>, vector<1x1024xf32>,
    %c0_33 = arith.constant 0 : index
    %c0_34 = arith.constant 0 : index
    %c24_35 = arith.constant 24 : index
    %29 = vector.load %arg1[%c0_33, %c0_34, %c24_35] : memref<1x1x1152xf32, #tpu.memory_space<vmem>>, vector<1x1x1024xf32>
    %30 = vector.shape_cast %29 : vector<1x1x1024xf32> to vector<1x1024xf32>
    %c9 = arith.constant 9 : index
    %c0_36 = arith.constant 0 : index
    %31 = vector.load %arg8[%c9, %c0_36] : memref<32x1024xf32, #tpu.memory_space<vmem>>, vector<1x1024xf32>
    tpu.vector_store %arg8[%c9, %c0_36], %30 {strides = array<i32>} : memref<32x1024xf32, #tpu.memory_space<vmem>>, vector<1x1024xf32>,
    %c0_37 = arith.constant 0 : index
    %c0_38 = arith.constant 0 : index
    %c40 = arith.constant 40 : index
    %32 = vector.load %arg1[%c0_37, %c0_38, %c40] : memref<1x1x1152xf32, #tpu.memory_space<vmem>>, vector<1x1x1024xf32>
    %33 = vector.shape_cast %32 : vector<1x1x1024xf32> to vector<1x1024xf32>
    %c10 = arith.constant 10 : index
    %c0_39 = arith.constant 0 : index
    %34 = vector.load %arg8[%c10, %c0_39] : memref<32x1024xf32, #tpu.memory_space<vmem>>, vector<1x1024xf32>
    tpu.vector_store %arg8[%c10, %c0_39], %33 {strides = array<i32>} : memref<32x1024xf32, #tpu.memory_space<vmem>>, vector<1x1024xf32>,
    %c0_40 = arith.constant 0 : index
    %c0_41 = arith.constant 0 : index
    %c41 = arith.constant 41 : index
    %35 = vector.load %arg1[%c0_40, %c0_41, %c41] : memref<1x1x1152xf32, #tpu.memory_space<vmem>>, vector<1x1x1024xf32>
    %36 = vector.shape_cast %35 : vector<1x1x1024xf32> to vector<1x1024xf32>
    %c11 = arith.constant 11 : index
    %c0_42 = arith.constant 0 : index
    %37 = vector.load %arg8[%c11, %c0_42] : memref<32x1024xf32, #tpu.memory_space<vmem>>, vector<1x1024xf32>
    tpu.vector_store %arg8[%c11, %c0_42], %36 {strides = array<i32>} : memref<32x1024xf32, #tpu.memory_space<vmem>>, vector<1x1024xf32>,
    %c0_43 = arith.constant 0 : index
    %c0_44 = arith.constant 0 : index
    %c42 = arith.constant 42 : index
    %38 = vector.load %arg1[%c0_43, %c0_44, %c42] : memref<1x1x1152xf32, #tpu.memory_space<vmem>>, vector<1x1x1024xf32>
    %39 = vector.shape_cast %38 : vector<1x1x1024xf32> to vector<1x1024xf32>
    %c12 = arith.constant 12 : index
    %c0_45 = arith.constant 0 : index
    %40 = vector.load %arg8[%c12, %c0_45] : memref<32x1024xf32, #tpu.memory_space<vmem>>, vector<1x1024xf32>
    tpu.vector_store %arg8[%c12, %c0_45], %39 {strides = array<i32>} : memref<32x1024xf32, #tpu.memory_space<vmem>>, vector<1x1024xf32>,
    %c0_46 = arith.constant 0 : index
    %c0_47 = arith.constant 0 : index
    %c43 = arith.constant 43 : index
    %41 = vector.load %arg1[%c0_46, %c0_47, %c43] : memref<1x1x1152xf32, #tpu.memory_space<vmem>>, vector<1x1x1024xf32>
    %42 = vector.shape_cast %41 : vector<1x1x1024xf32> to vector<1x1024xf32>
    %c13 = arith.constant 13 : index
    %c0_48 = arith.constant 0 : index
    %43 = vector.load %arg8[%c13, %c0_48] : memref<32x1024xf32, #tpu.memory_space<vmem>>, vector<1x1024xf32>
    tpu.vector_store %arg8[%c13, %c0_48], %42 {strides = array<i32>} : memref<32x1024xf32, #tpu.memory_space<vmem>>, vector<1x1024xf32>,
    %c0_49 = arith.constant 0 : index
    %c0_50 = arith.constant 0 : index
    %c44 = arith.constant 44 : index
    %44 = vector.load %arg1[%c0_49, %c0_50, %c44] : memref<1x1x1152xf32, #tpu.memory_space<vmem>>, vector<1x1x1024xf32>
    %45 = vector.shape_cast %44 : vector<1x1x1024xf32> to vector<1x1024xf32>
    %c14 = arith.constant 14 : index
    %c0_51 = arith.constant 0 : index
    %46 = vector.load %arg8[%c14, %c0_51] : memref<32x1024xf32, #tpu.memory_space<vmem>>, vector<1x1024xf32>
    tpu.vector_store %arg8[%c14, %c0_51], %45 {strides = array<i32>} : memref<32x1024xf32, #tpu.memory_space<vmem>>, vector<1x1024xf32>,
    %c0_52 = arith.constant 0 : index
    %c0_53 = arith.constant 0 : index
    %c60 = arith.constant 60 : index
    %47 = vector.load %arg1[%c0_52, %c0_53, %c60] : memref<1x1x1152xf32, #tpu.memory_space<vmem>>, vector<1x1x1024xf32>
    %48 = vector.shape_cast %47 : vector<1x1x1024xf32> to vector<1x1024xf32>
    %c15 = arith.constant 15 : index
    %c0_54 = arith.constant 0 : index
    %49 = vector.load %arg8[%c15, %c0_54] : memref<32x1024xf32, #tpu.memory_space<vmem>>, vector<1x1024xf32>
    tpu.vector_store %arg8[%c15, %c0_54], %48 {strides = array<i32>} : memref<32x1024xf32, #tpu.memory_space<vmem>>, vector<1x1024xf32>,
    %c0_55 = arith.constant 0 : index
    %c0_56 = arith.constant 0 : index
    %c61 = arith.constant 61 : index
    %50 = vector.load %arg1[%c0_55, %c0_56, %c61] : memref<1x1x1152xf32, #tpu.memory_space<vmem>>, vector<1x1x1024xf32>
    %51 = vector.shape_cast %50 : vector<1x1x1024xf32> to vector<1x1024xf32>
    %c16 = arith.constant 16 : index
    %c0_57 = arith.constant 0 : index
    %52 = vector.load %arg8[%c16, %c0_57] : memref<32x1024xf32, #tpu.memory_space<vmem>>, vector<1x1024xf32>
    tpu.vector_store %arg8[%c16, %c0_57], %51 {strides = array<i32>} : memref<32x1024xf32, #tpu.memory_space<vmem>>, vector<1x1024xf32>,
    %c0_58 = arith.constant 0 : index
    %c0_59 = arith.constant 0 : index
    %c62 = arith.constant 62 : index
    %53 = vector.load %arg1[%c0_58, %c0_59, %c62] : memref<1x1x1152xf32, #tpu.memory_space<vmem>>, vector<1x1x1024xf32>
    %54 = vector.shape_cast %53 : vector<1x1x1024xf32> to vector<1x1024xf32>
    %c17 = arith.constant 17 : index
    %c0_60 = arith.constant 0 : index
    %55 = vector.load %arg8[%c17, %c0_60] : memref<32x1024xf32, #tpu.memory_space<vmem>>, vector<1x1024xf32>
    tpu.vector_store %arg8[%c17, %c0_60], %54 {strides = array<i32>} : memref<32x1024xf32, #tpu.memory_space<vmem>>, vector<1x1024xf32>,
    %c0_61 = arith.constant 0 : index
    %c0_62 = arith.constant 0 : index
    %c63 = arith.constant 63 : index
    %56 = vector.load %arg1[%c0_61, %c0_62, %c63] : memref<1x1x1152xf32, #tpu.memory_space<vmem>>, vector<1x1x1024xf32>
    %57 = vector.shape_cast %56 : vector<1x1x1024xf32> to vector<1x1024xf32>
    %c18 = arith.constant 18 : index
    %c0_63 = arith.constant 0 : index
    %58 = vector.load %arg8[%c18, %c0_63] : memref<32x1024xf32, #tpu.memory_space<vmem>>, vector<1x1024xf32>
    tpu.vector_store %arg8[%c18, %c0_63], %57 {strides = array<i32>} : memref<32x1024xf32, #tpu.memory_space<vmem>>, vector<1x1024xf32>,
    %c0_64 = arith.constant 0 : index
    %c0_65 = arith.constant 0 : index
    %c64 = arith.constant 64 : index
    %59 = vector.load %arg1[%c0_64, %c0_65, %c64] : memref<1x1x1152xf32, #tpu.memory_space<vmem>>, vector<1x1x1024xf32>
    %60 = vector.shape_cast %59 : vector<1x1x1024xf32> to vector<1x1024xf32>
    %c19 = arith.constant 19 : index
    %c0_66 = arith.constant 0 : index
    %61 = vector.load %arg8[%c19, %c0_66] : memref<32x1024xf32, #tpu.memory_space<vmem>>, vector<1x1024xf32>
    tpu.vector_store %arg8[%c19, %c0_66], %60 {strides = array<i32>} : memref<32x1024xf32, #tpu.memory_space<vmem>>, vector<1x1024xf32>,
    %c0_67 = arith.constant 0 : index
    %c0_68 = arith.constant 0 : index
    %c80 = arith.constant 80 : index
    %62 = vector.load %arg1[%c0_67, %c0_68, %c80] : memref<1x1x1152xf32, #tpu.memory_space<vmem>>, vector<1x1x1024xf32>
    %63 = vector.shape_cast %62 : vector<1x1x1024xf32> to vector<1x1024xf32>
    %c20_69 = arith.constant 20 : index
    %c0_70 = arith.constant 0 : index
    %64 = vector.load %arg8[%c20_69, %c0_70] : memref<32x1024xf32, #tpu.memory_space<vmem>>, vector<1x1024xf32>
    tpu.vector_store %arg8[%c20_69, %c0_70], %63 {strides = array<i32>} : memref<32x1024xf32, #tpu.memory_space<vmem>>, vector<1x1024xf32>,
    %c0_71 = arith.constant 0 : index
    %c0_72 = arith.constant 0 : index
    %c81 = arith.constant 81 : index
    %65 = vector.load %arg1[%c0_71, %c0_72, %c81] : memref<1x1x1152xf32, #tpu.memory_space<vmem>>, vector<1x1x1024xf32>
    %66 = vector.shape_cast %65 : vector<1x1x1024xf32> to vector<1x1024xf32>
    %c21_73 = arith.constant 21 : index
    %c0_74 = arith.constant 0 : index
    %67 = vector.load %arg8[%c21_73, %c0_74] : memref<32x1024xf32, #tpu.memory_space<vmem>>, vector<1x1024xf32>
    tpu.vector_store %arg8[%c21_73, %c0_74], %66 {strides = array<i32>} : memref<32x1024xf32, #tpu.memory_space<vmem>>, vector<1x1024xf32>,
    %c0_75 = arith.constant 0 : index
    %c0_76 = arith.constant 0 : index
    %c82 = arith.constant 82 : index
    %68 = vector.load %arg1[%c0_75, %c0_76, %c82] : memref<1x1x1152xf32, #tpu.memory_space<vmem>>, vector<1x1x1024xf32>
    %69 = vector.shape_cast %68 : vector<1x1x1024xf32> to vector<1x1024xf32>
    %c22_77 = arith.constant 22 : index
    %c0_78 = arith.constant 0 : index
    %70 = vector.load %arg8[%c22_77, %c0_78] : memref<32x1024xf32, #tpu.memory_space<vmem>>, vector<1x1024xf32>
    tpu.vector_store %arg8[%c22_77, %c0_78], %69 {strides = array<i32>} : memref<32x1024xf32, #tpu.memory_space<vmem>>, vector<1x1024xf32>,
    %c0_79 = arith.constant 0 : index
    %c0_80 = arith.constant 0 : index
    %c83 = arith.constant 83 : index
    %71 = vector.load %arg1[%c0_79, %c0_80, %c83] : memref<1x1x1152xf32, #tpu.memory_space<vmem>>, vector<1x1x1024xf32>
    %72 = vector.shape_cast %71 : vector<1x1x1024xf32> to vector<1x1024xf32>
    %c23_81 = arith.constant 23 : index
    %c0_82 = arith.constant 0 : index
    %73 = vector.load %arg8[%c23_81, %c0_82] : memref<32x1024xf32, #tpu.memory_space<vmem>>, vector<1x1024xf32>
    tpu.vector_store %arg8[%c23_81, %c0_82], %72 {strides = array<i32>} : memref<32x1024xf32, #tpu.memory_space<vmem>>, vector<1x1024xf32>,
    %c0_83 = arith.constant 0 : index
    %c0_84 = arith.constant 0 : index
    %c84 = arith.constant 84 : index
    %74 = vector.load %arg1[%c0_83, %c0_84, %c84] : memref<1x1x1152xf32, #tpu.memory_space<vmem>>, vector<1x1x1024xf32>
    %75 = vector.shape_cast %74 : vector<1x1x1024xf32> to vector<1x1024xf32>
    %c24_85 = arith.constant 24 : index
    %c0_86 = arith.constant 0 : index
    %76 = vector.load %arg8[%c24_85, %c0_86] : memref<32x1024xf32, #tpu.memory_space<vmem>>, vector<1x1024xf32>
    tpu.vector_store %arg8[%c24_85, %c0_86], %75 {strides = array<i32>} : memref<32x1024xf32, #tpu.memory_space<vmem>>, vector<1x1024xf32>,
    %c0_87 = arith.constant 0 : index
    %c0_88 = arith.constant 0 : index
    %77 = vector.load %arg2[%c0_87, %c0_88] : memref<16x32xf32, #tpu.memory_space<vmem>>, vector<16x32xf32>
    %c0_89 = arith.constant 0 : index
    %c0_90 = arith.constant 0 : index
    %78 = vector.load %arg8[%c0_89, %c0_90] : memref<32x1024xf32, #tpu.memory_space<vmem>>, vector<32x1024xf32>
    %cst_91 = arith.constant dense<0.000000e+00> : vector<16x1024xf32>
    %79 = tpu.matmul %77, %78, %cst_91 {dimension_numbers = #tpu.dot_dimension_numbers<[1], [0], [0], [1], [0, 0, 1, 1], [], []>, precision = #tpu.contract_precision<fp32>} : vector<16x32xf32>, vector<32x1024xf32>, vector<16x1024xf32> -> vector<16x1024xf32>
    %c0_92 = arith.constant 0 : index
    %c0_93 = arith.constant 0 : index
    %80 = vector.load %arg3[%c0_92, %c0_93] : memref<16x1xf32, #tpu.memory_space<vmem>>, vector<16x1xf32>
    %81 = vector.broadcast %80 : vector<16x1xf32> to vector<16x1024xf32>
    %82 = arith.addf %79, %81 : vector<16x1024xf32>
    %cst_94 = arith.constant 0.000000e+00 : f32
    %83 = vector.broadcast %cst_94 : f32 to vector<16x1024xf32>
    %84 = arith.maximumf %82, %83 : vector<16x1024xf32>
    %c0_95 = arith.constant 0 : index
    %c0_96 = arith.constant 0 : index
    %85 = vector.load %arg5[%c0_95, %c0_96] : memref<1x1024xf32, #tpu.memory_space<vmem>>, vector<1x1024xf32>
    %86 = vector.broadcast %85 : vector<1x1024xf32> to vector<16x1024xf32>
    %87 = arith.mulf %84, %86 : vector<16x1024xf32>
    %cst_97 = arith.constant 0.000000e+00 : f32
    %88 = vector.broadcast %cst_97 : f32 to vector<16x128xf32>
    %c0_98 = arith.constant 0 : index
    %c0_99 = arith.constant 0 : index
    %89 = vector.load %arg9[%c0_98, %c0_99] : memref<16x1280xf32, #tpu.memory_space<vmem>>, vector<16x128xf32>
    tpu.vector_store %arg9[%c0_98, %c0_99], %88 {strides = array<i32>} : memref<16x1280xf32, #tpu.memory_space<vmem>>, vector<16x128xf32>,
    %cst_100 = arith.constant 0.000000e+00 : f32
    %90 = vector.broadcast %cst_100 : f32 to vector<16x128xf32>
    %c0_101 = arith.constant 0 : index
    %c1152 = arith.constant 1152 : index
    %91 = vector.load %arg9[%c0_101, %c1152] : memref<16x1280xf32, #tpu.memory_space<vmem>>, vector<16x128xf32>
    tpu.vector_store %arg9[%c0_101, %c1152], %90 {strides = array<i32>} : memref<16x1280xf32, #tpu.memory_space<vmem>>, vector<16x128xf32>,
    %c0_102 = arith.constant 0 : index
    %c128 = arith.constant 128 : index
    %92 = vector.load %arg9[%c0_102, %c128] : memref<16x1280xf32, #tpu.memory_space<vmem>>, vector<16x1024xf32>
    tpu.vector_store %arg9[%c0_102, %c128], %87 {strides = array<i32>} : memref<16x1280xf32, #tpu.memory_space<vmem>>, vector<16x1024xf32>,
    %c0_103 = arith.constant 0 : index
    %93 = memref.load %arg6[%c0_103] : memref<1xf32, #tpu.memory_space<smem>>
    %94 = vector.broadcast %93 : f32 to vector<1x1024xf32>
    %c0_104 = arith.constant 0 : index
    %c0_105 = arith.constant 0 : index
    %95 = vector.load %arg4[%c0_104, %c0_105] : memref<9x16xf32, #tpu.memory_space<vmem>>, vector<1x16xf32>
    %c0_106 = arith.constant 0 : index
    %c107 = arith.constant 107 : index
    %96 = vector.load %arg9[%c0_106, %c107] : memref<16x1280xf32, #tpu.memory_space<vmem>>, vector<16x1024xf32>
    %cst_107 = arith.constant dense<0.000000e+00> : vector<1x1024xf32>
    %97 = tpu.matmul %95, %96, %cst_107 {dimension_numbers = #tpu.dot_dimension_numbers<[1], [0], [0], [1], [0, 0, 1, 1], [], []>, precision = #tpu.contract_precision<fp32>} : vector<1x16xf32>, vector<16x1024xf32>, vector<1x1024xf32> -> vector<1x1024xf32>
    %98 = arith.addf %94, %97 : vector<1x1024xf32>
    %c1_108 = arith.constant 1 : index
    %c0_109 = arith.constant 0 : index
    %99 = vector.load %arg4[%c1_108, %c0_109] : memref<9x16xf32, #tpu.memory_space<vmem>>, vector<1x16xf32>
    %c0_110 = arith.constant 0 : index
    %c108 = arith.constant 108 : index
    %100 = vector.load %arg9[%c0_110, %c108] : memref<16x1280xf32, #tpu.memory_space<vmem>>, vector<16x1024xf32>
    %cst_111 = arith.constant dense<0.000000e+00> : vector<1x1024xf32>
    %101 = tpu.matmul %99, %100, %cst_111 {dimension_numbers = #tpu.dot_dimension_numbers<[1], [0], [0], [1], [0, 0, 1, 1], [], []>, precision = #tpu.contract_precision<fp32>} : vector<1x16xf32>, vector<16x1024xf32>, vector<1x1024xf32> -> vector<1x1024xf32>
    %102 = arith.addf %98, %101 : vector<1x1024xf32>
    %c2_112 = arith.constant 2 : index
    %c0_113 = arith.constant 0 : index
    %103 = vector.load %arg4[%c2_112, %c0_113] : memref<9x16xf32, #tpu.memory_space<vmem>>, vector<1x16xf32>
    %c0_114 = arith.constant 0 : index
    %c109 = arith.constant 109 : index
    %104 = vector.load %arg9[%c0_114, %c109] : memref<16x1280xf32, #tpu.memory_space<vmem>>, vector<16x1024xf32>
    %cst_115 = arith.constant dense<0.000000e+00> : vector<1x1024xf32>
    %105 = tpu.matmul %103, %104, %cst_115 {dimension_numbers = #tpu.dot_dimension_numbers<[1], [0], [0], [1], [0, 0, 1, 1], [], []>, precision = #tpu.contract_precision<fp32>} : vector<1x16xf32>, vector<16x1024xf32>, vector<1x1024xf32> -> vector<1x1024xf32>
    %106 = arith.addf %102, %105 : vector<1x1024xf32>
    %c3_116 = arith.constant 3 : index
    %c0_117 = arith.constant 0 : index
    %107 = vector.load %arg4[%c3_116, %c0_117] : memref<9x16xf32, #tpu.memory_space<vmem>>, vector<1x16xf32>
    %c0_118 = arith.constant 0 : index
    %c127 = arith.constant 127 : index
    %108 = vector.load %arg9[%c0_118, %c127] : memref<16x1280xf32, #tpu.memory_space<vmem>>, vector<16x1024xf32>
    %cst_119 = arith.constant dense<0.000000e+00> : vector<1x1024xf32>
    %109 = tpu.matmul %107, %108, %cst_119 {dimension_numbers = #tpu.dot_dimension_numbers<[1], [0], [0], [1], [0, 0, 1, 1], [], []>, precision = #tpu.contract_precision<fp32>} : vector<1x16xf32>, vector<16x1024xf32>, vector<1x1024xf32> -> vector<1x1024xf32>
    %110 = arith.addf %106, %109 : vector<1x1024xf32>
    %c4_120 = arith.constant 4 : index
    %c0_121 = arith.constant 0 : index
    %111 = vector.load %arg4[%c4_120, %c0_121] : memref<9x16xf32, #tpu.memory_space<vmem>>, vector<1x16xf32>
    %c0_122 = arith.constant 0 : index
    %c128_123 = arith.constant 128 : index
    %112 = vector.load %arg9[%c0_122, %c128_123] : memref<16x1280xf32, #tpu.memory_space<vmem>>, vector<16x1024xf32>
    %cst_124 = arith.constant dense<0.000000e+00> : vector<1x1024xf32>
    %113 = tpu.matmul %111, %112, %cst_124 {dimension_numbers = #tpu.dot_dimension_numbers<[1], [0], [0], [1], [0, 0, 1, 1], [], []>, precision = #tpu.contract_precision<fp32>} : vector<1x16xf32>, vector<16x1024xf32>, vector<1x1024xf32> -> vector<1x1024xf32>
    %114 = arith.addf %110, %113 : vector<1x1024xf32>
    %c5_125 = arith.constant 5 : index
    %c0_126 = arith.constant 0 : index
    %115 = vector.load %arg4[%c5_125, %c0_126] : memref<9x16xf32, #tpu.memory_space<vmem>>, vector<1x16xf32>
    %c0_127 = arith.constant 0 : index
    %c129 = arith.constant 129 : index
    %116 = vector.load %arg9[%c0_127, %c129] : memref<16x1280xf32, #tpu.memory_space<vmem>>, vector<16x1024xf32>
    %cst_128 = arith.constant dense<0.000000e+00> : vector<1x1024xf32>
    %117 = tpu.matmul %115, %116, %cst_128 {dimension_numbers = #tpu.dot_dimension_numbers<[1], [0], [0], [1], [0, 0, 1, 1], [], []>, precision = #tpu.contract_precision<fp32>} : vector<1x16xf32>, vector<16x1024xf32>, vector<1x1024xf32> -> vector<1x1024xf32>
    %118 = arith.addf %114, %117 : vector<1x1024xf32>
    %c6_129 = arith.constant 6 : index
    %c0_130 = arith.constant 0 : index
    %119 = vector.load %arg4[%c6_129, %c0_130] : memref<9x16xf32, #tpu.memory_space<vmem>>, vector<1x16xf32>
    %c0_131 = arith.constant 0 : index
    %c147 = arith.constant 147 : index
    %120 = vector.load %arg9[%c0_131, %c147] : memref<16x1280xf32, #tpu.memory_space<vmem>>, vector<16x1024xf32>
    %cst_132 = arith.constant dense<0.000000e+00> : vector<1x1024xf32>
    %121 = tpu.matmul %119, %120, %cst_132 {dimension_numbers = #tpu.dot_dimension_numbers<[1], [0], [0], [1], [0, 0, 1, 1], [], []>, precision = #tpu.contract_precision<fp32>} : vector<1x16xf32>, vector<16x1024xf32>, vector<1x1024xf32> -> vector<1x1024xf32>
    %122 = arith.addf %118, %121 : vector<1x1024xf32>
    %c7_133 = arith.constant 7 : index
    %c0_134 = arith.constant 0 : index
    %123 = vector.load %arg4[%c7_133, %c0_134] : memref<9x16xf32, #tpu.memory_space<vmem>>, vector<1x16xf32>
    %c0_135 = arith.constant 0 : index
    %c148 = arith.constant 148 : index
    %124 = vector.load %arg9[%c0_135, %c148] : memref<16x1280xf32, #tpu.memory_space<vmem>>, vector<16x1024xf32>
    %cst_136 = arith.constant dense<0.000000e+00> : vector<1x1024xf32>
    %125 = tpu.matmul %123, %124, %cst_136 {dimension_numbers = #tpu.dot_dimension_numbers<[1], [0], [0], [1], [0, 0, 1, 1], [], []>, precision = #tpu.contract_precision<fp32>} : vector<1x16xf32>, vector<16x1024xf32>, vector<1x1024xf32> -> vector<1x1024xf32>
    %126 = arith.addf %122, %125 : vector<1x1024xf32>
    %c8_137 = arith.constant 8 : index
    %c0_138 = arith.constant 0 : index
    %127 = vector.load %arg4[%c8_137, %c0_138] : memref<9x16xf32, #tpu.memory_space<vmem>>, vector<1x16xf32>
    %c0_139 = arith.constant 0 : index
    %c149 = arith.constant 149 : index
    %128 = vector.load %arg9[%c0_139, %c149] : memref<16x1280xf32, #tpu.memory_space<vmem>>, vector<16x1024xf32>
    %cst_140 = arith.constant dense<0.000000e+00> : vector<1x1024xf32>
    %129 = tpu.matmul %127, %128, %cst_140 {dimension_numbers = #tpu.dot_dimension_numbers<[1], [0], [0], [1], [0, 0, 1, 1], [], []>, precision = #tpu.contract_precision<fp32>} : vector<1x16xf32>, vector<16x1024xf32>, vector<1x1024xf32> -> vector<1x1024xf32>
    %130 = arith.addf %126, %129 : vector<1x1024xf32>
    %cst_141 = arith.constant 0.000000e+00 : f32
    %131 = vector.broadcast %cst_141 : f32 to vector<1x1024xf32>
    %132 = arith.maximumf %130, %131 : vector<1x1024xf32>
    %c0_142 = arith.constant 0 : index
    %c0_143 = arith.constant 0 : index
    %c0_144 = arith.constant 0 : index
    %133 = vector.load %arg7[%c0_142, %c0_143, %c0_144] : memref<1x1x1024xf32, #tpu.memory_space<vmem>>, vector<1x1x1024xf32>
    %134 = vector.shape_cast %133 : vector<1x1x1024xf32> to vector<1x1024xf32>
    %135 = vector.shape_cast %132 : vector<1x1024xf32> to vector<1x1x1024xf32>
    tpu.vector_store %arg7[%c0_142, %c0_143, %c0_144], %135 {strides = array<i32>} : memref<1x1x1024xf32, #tpu.memory_space<vmem>>, vector<1x1x1024xf32>,
    return
  }
  func.func @transform_0(%arg0: i32) -> (i32, i32, i32) {
    %c0_i32 = arith.constant 0 : i32
    %c0_i32_0 = arith.constant 0 : i32
    %c0_i32_1 = arith.constant 0 : i32
    return %arg0, %c0_i32, %c0_i32_0 : i32, i32, i32
  }
  func.func @transform_1(%arg0: i32) -> (i32, i32) {
    %c0_i32 = arith.constant 0 : i32
    %c0_i32_0 = arith.constant 0 : i32
    %c0_i32_1 = arith.constant 0 : i32
    return %c0_i32, %c0_i32_0 : i32, i32
  }
  func.func @transform_2(%arg0: i32) -> (i32, i32) {
    %c0_i32 = arith.constant 0 : i32
    %c0_i32_0 = arith.constant 0 : i32
    %c0_i32_1 = arith.constant 0 : i32
    return %c0_i32, %c0_i32_0 : i32, i32
  }
  func.func @transform_3(%arg0: i32) -> (i32, i32) {
    %c0_i32 = arith.constant 0 : i32
    %c0_i32_0 = arith.constant 0 : i32
    %c0_i32_1 = arith.constant 0 : i32
    return %c0_i32, %c0_i32_0 : i32, i32
  }
  func.func @transform_4(%arg0: i32) -> (i32, i32) {
    %c0_i32 = arith.constant 0 : i32
    %c0_i32_0 = arith.constant 0 : i32
    %c0_i32_1 = arith.constant 0 : i32
    return %c0_i32, %c0_i32_0 : i32, i32
  }
  func.func @transform_5(%arg0: i32) -> i32 {
    %c0_i32 = arith.constant 0 : i32
    %c0_i32_0 = arith.constant 0 : i32
    return %c0_i32 : i32
  }
  func.func @transform_6(%arg0: i32) -> (i32, i32, i32) {
    %c0_i32 = arith.constant 0 : i32
    %c0_i32_0 = arith.constant 0 : i32
    %c0_i32_1 = arith.constant 0 : i32
    return %arg0, %c0_i32, %c0_i32_0 : i32, i32, i32
  }
}

</mosaic_0001>

<bundles_post_ra>
// kernel: tpu_custom_call.1
= control target key start
LH: loop header
LB: loop body
LE: loop exit
PB: predicated region body
PF: predicated region fallthrough
CT: control target
= control target key end

     0   :  { %12 = vsyncpa [#allocation6], 0  ;;  %s25492_s0 = inlined_call_operand.hbm [shape: f32[1,1,1152], index: 0, kind: input, shape index: {}]   ;;  %s25493_s1 = inlined_call_operand.vmem [shape: f32[16,32], index: 1, kind: input, shape index: {}]   ;;  %s25494_s2 = inlined_call_operand.vmem [shape: f32[16,1], index: 2, kind: input, shape index: {}]   ;;  %s25495_s3 = inlined_call_operand.hbm [shape: f32[9,16], index: 3, kind: input, shape index: {}]   ;;  %s25496_s4 = inlined_call_operand.vmem [shape: f32[1,1024], index: 4, kind: input, shape index: {}]   ;;  %s25497_s5 = inlined_call_operand.<no memory space> [shape: f32[1], index: 5, kind: input, shape index: {}]   ;;  %s25498_s6 = inlined_call_operand.hbm [shape: f32[1,1,1024], index: 6, kind: output, shape index: {}]  }
   0x1   :  { %13 = vsyncpa [#allocation9], 0 }
   0x2   :  { %14 = vsyncpa [#allocation7], 0  ;;  %s21582_s21 = smov [#allocation5]   ;;  %s21583_s23 = smov [#allocation8]  }
   0x3   :  { %s21_s22 = sshll.u32 %s21582_s21, 4  ;;  %s34_s24 = sshll.u32 %s21583_s23, 4  ;;  %s22_s22 = int_to_ptr.vmem [resolvable:$true] %s21_s22  ;;  %s35_s24 = int_to_ptr.vmem [resolvable:$true] %s34_s24 }
   0x4   :  { %s21524_s25 = scalar_lea.vmem %s22_s22, 144  ;;  %s21528_s26 = scalar_lea.vmem %s22_s22, 160 }
   0x5   :  { %p21525_p0 = scmp.ne.s32.totalorder %s22_s22, %s21524_s25  ;;  %p21529_p1 = scmp.lt.s32.totalorder %s22_s22, %s22_s22 }
   0x6   :  { %p21530_p2 = scmp.lt.s32.totalorder %s21528_s26, %s21524_s25 }
   0x8   :  { %p21531_p3 = por %p21530_p2, %p21529_p1 }
   0xa   :  { %p21532_p4 = pnand %p21531_p3, %p21525_p0 }
   0xc   :  { %21535 = shalt.err (!%p21532_p4)
}
   0xd   :  { %24 = dma.hbm_to_vmem [thread:$0]  %s25492_s0, 144, %s22_s22, [#allocation6]  }
   0xe   :  { %s21544_s29 = scalar_lea.vmem %s35_s24, 256  ;;  %p21549_p6 = scmp.lt.s32.totalorder %s35_s24, %s35_s24 }
   0xf   :  { %p21545_p5 = scmp.ne.s32.totalorder %s35_s24, %s21544_s29  ;;  %p21550_p7 = scmp.lt.s32.totalorder %s21544_s29, %s21544_s29 }
  0x11   :  { %p21551_p8 = por %p21550_p7, %p21549_p6 }
  0x13   :  { %p21552_p9 = pnand %p21551_p8, %p21545_p5 }
  0x15   :  { %21555 = shalt.err (!%p21552_p9)
}
  0x16   :  { %s21584_s30 = smov 128   ;;  %s21585_s7 = smov 8  }
  0x17   :  { %40 = dma.hbm_to_vmem [thread:$0]  %s25495_s3, 256, %s35_s24, [#allocation9], %s21584_s30, %s21584_s30, %s21585_s7  }
  0x18   :  { %21576 = dma.done.wait [#allocation6], 144  }
  0x19   :  { %21577 = vsyncadd [#allocation6], 4294967152 }
  0x1a   :  { %21578 = dma.done.wait [#allocation9], 256  }
  0x1b   :  { %21579 = vsyncadd [#allocation9], 4294967040  ;;  %v25500_v0 = vmov 0.0   ;;  %v21670_v1 = vld [vmem:[#allocation5] sm:$0xff]  ;;  %s21587_s0 = smov 44   ;;  %s21588_s3 = smov 67  }
  0x1c   :  { %51 = vst [vmem:[#allocation2 + $0xc0] sm:$0xff] %v25500_v0  ;;  %52 = vst [vmem:[#allocation2 + $0xc8] sm:$0xff] %v25500_v0  ;;  %596 = vmatprep.mubr.f32.mxu0 %v25500_v0  ;;  %723 = vmatprep.mubr.f32.mxu1 %v25500_v0  ;;  %v455_v2 = vld [vmem:[#allocation5 + $0x8] sm:$0x1]  ;;  %s21589_s10 = smov 66   ;;  %s21590_s11 = smov 65  }
  0x1d   :  { %53 = vst [vmem:[#allocation2 + $0xd0] sm:$0xff] %v25500_v0  ;;  %54 = vst [vmem:[#allocation2 + $0xd8] sm:$0xff] %v25500_v0  ;;  %458 = vrot.lane.b32.xlu0 %v21670_v1, %s21587_s0  ;;  %322 = vrot.lane.b32.xlu1 %v21670_v1, %s21588_s3  ;;  %v319_v3 = vld [vmem:[#allocation5 + $0x8] sm:$0x1]  ;;  %s21591_s12 = smov 64   ;;  %s21592_s13 = smov 48  }
  0x1e   :  { %55 = vst [vmem:[#allocation2 + $0xe0] sm:$0xff] %v25500_v0  ;;  %56 = vst [vmem:[#allocation2 + $0xe8] sm:$0xff] %v25500_v0  ;;  %v336_v4 = vld [vmem:[#allocation5 + $0x8] sm:$0x1]  ;;  %s21593_s14 = smov 47   ;;  %s21594_s15 = smov 46  }
  0x1f   :  { %57 = vst [vmem:[#allocation2 + $0xf0] sm:$0xff] %v25500_v0  ;;  %58 = vst [vmem:[#allocation2 + $0xf8] sm:$0xff] %v25500_v0  ;;  %v353_v5 = vld [vmem:[#allocation5 + $0x8] sm:$0x1]  ;;  %s21595_s16 = smov 45   ;;  %s21596_s17 = smov 105  }
  0x20   :  { %60 = vst [vmem:[#allocation2] ss:$8 sm:$0xf] %v21670_v1  ;;  %61 = vst [vmem:[#allocation2] ss:$8 sm:$0xf0] %v21670_v1 }
  0x21   :  { %460 = vrot.lane.b32.xlu0 %v455_v2, %s21587_s0  ;;  %324 = vrot.lane.b32.xlu1 %v319_v3, %s21588_s3  ;;  %v370_v6 = vld [vmem:[#allocation5 + $0x8] sm:$0x1]  ;;  %s21597_s18 = smov 104   ;;  %s21598_s19 = smov 88   ;;  %vm72_vm0 = vcmask 1046528   ;;  %vm465_vm1 = vcmask 359424  }
  0x22   :  { %v387_v7 = vld [vmem:[#allocation5 + $0x8] sm:$0x1]  ;;  %s21599_s20 = smov 87   ;;  %s21600_s21 = smov 86   ;;  %vm329_vm2 = vcmask 547840   ;;  %vm346_vm3 = vcmask 539648  }
  0x23   :  { %v404_v8 = vld [vmem:[#allocation5 + $0x8] sm:$0x1]  ;;  %s21601_s22 = smov 85   ;;  %s21602_s23 = smov 84   ;;  %vm363_vm4 = vcmask 531456   ;;  %vm380_vm5 = vcmask 523264  }
  0x24   :  { %v421_v9 = vld [vmem:[#allocation5 + $0x8] sm:$0x1]  ;;  %s21603_s24 = smov 68   ;;  %s21604_s25 = smov 127   ;;  %vm397_vm6 = vcmask 392192   ;;  %vm414_vm7 = vcmask 384000  }
  0x25   :  { %339 = vrot.lane.b32.xlu0 %v21670_v1, %s21589_s10  ;;  %341 = vrot.lane.b32.xlu1 %v336_v4, %s21589_s10  ;;  %v438_v10 = vld [vmem:[#allocation5 + $0x8] sm:$0x1]  ;;  %s21605_s26 = smov 126   ;;  %s21606_s27 = smov 125   ;;  %vm431_vm8 = vcmask 375808   ;;  %vm448_vm9 = vcmask 367616  }
  0x26   :  { %v183_v11 = vld [vmem:[#allocation5 + $0x8] sm:$0x1]  ;;  %s21607_s28 = smov 124   ;;  %s21608_s29 = smov 108   ;;  %vm193_vm10 = vcmask 859136   ;;  %vm210_vm11 = vcmask 850944  }
  0x27   :  { %v200_v12 = vld [vmem:[#allocation5 + $0x8] sm:$0x1]  ;;  %s21609_s30 = smov 107   ;;  %s21610_s7 = smov 106   ;;  %vm227_vm12 = vcmask 719872   ;;  %vm244_vm13 = vcmask 711680  }
  0x28   :  { %v217_v13 = vld [vmem:[#allocation5 + $0x8] sm:$0x1]  ;;  %vm261_vm14 = vcmask 703488   ;;  %vm278_vm15 = vcmask 695296  }
  0x29   :  { %356 = vrot.lane.b32.xlu0 %v21670_v1, %s21590_s11  ;;  %358 = vrot.lane.b32.xlu1 %v353_v5, %s21590_s11  ;;  %v234_v14 = vld [vmem:[#allocation5 + $0x8] sm:$0x1] }
  0x2a   :  { %v251_v15 = vld [vmem:[#allocation5 + $0x8] sm:$0x1] }
  0x2b   :  { %v268_v16 = vld [vmem:[#allocation5 + $0x8] sm:$0x1] }
  0x2c   :  { %v285_v17 = vld [vmem:[#allocation5 + $0x8] sm:$0x1] }
  0x2d   :  { %373 = vrot.lane.b32.xlu0 %v21670_v1, %s21591_s12  ;;  %375 = vrot.lane.b32.xlu1 %v370_v6, %s21591_s12  ;;  %v302_v18 = vld [vmem:[#allocation5 + $0x8] sm:$0x1] }
  0x2e   :  { %v63_v19 = vld [vmem:[#allocation5 + $0x8] sm:$0x1] }
  0x2f   :  { %v81_v20 = vld [vmem:[#allocation5 + $0x8] sm:$0x1] }
  0x30   :  { %v98_v21 = vld [vmem:[#allocation5 + $0x8] sm:$0x1] }
  0x31   :  { %390 = vrot.lane.b32.xlu0 %v21670_v1, %s21592_s13  ;;  %392 = vrot.lane.b32.xlu1 %v387_v7, %s21592_s13  ;;  %v115_v22 = vld [vmem:[#allocation5 + $0x8] sm:$0x1] }
  0x32   :  { %v132_v23 = vld [vmem:[#allocation5 + $0x8] sm:$0x1] }
  0x33   :  { %v149_v24 = vld [vmem:[#allocation5 + $0x8] sm:$0x1] }
  0x34   :  { %v166_v25 = vld [vmem:[#allocation5 + $0x8] sm:$0x1] }
  0x35   :  { %407 = vrot.lane.b32.xlu0 %v21670_v1, %s21593_s14  ;;  %409 = vrot.lane.b32.xlu1 %v404_v8, %s21593_s14 }
  0x39   :  { %424 = vrot.lane.b32.xlu0 %v21670_v1, %s21594_s15  ;;  %426 = vrot.lane.b32.xlu1 %v421_v9, %s21594_s15  ;;  %s21614_s15 = smov 19  }
  0x3d   :  { %441 = vrot.lane.b32.xlu0 %v21670_v1, %s21595_s16  ;;  %443 = vrot.lane.b32.xlu1 %v438_v10, %s21595_s16  ;;  %s21615_s16 = smov 1  }
  0x41   :  { %188 = vrot.lane.b32.xlu1 %v183_v11, %s21596_s17  ;;  %186 = vrot.lane.b32.xlu0 %v21670_v1, %s21596_s17  ;;  %s21616_s17 = smov 109  }
  0x45   :  { %205 = vrot.lane.b32.xlu1 %v200_v12, %s21597_s18  ;;  %203 = vrot.lane.b32.xlu0 %v21670_v1, %s21597_s18 }
  0x49   :  { %222 = vrot.lane.b32.xlu1 %v217_v13, %s21598_s19  ;;  %220 = vrot.lane.b32.xlu0 %v21670_v1, %s21598_s19 }
  0x4d   :  { %239 = vrot.lane.b32.xlu1 %v234_v14, %s21599_s20  ;;  %237 = vrot.lane.b32.xlu0 %v21670_v1, %s21599_s20 }
  0x51   :  { %256 = vrot.lane.b32.xlu1 %v251_v15, %s21600_s21  ;;  %254 = vrot.lane.b32.xlu0 %v21670_v1, %s21600_s21 }
  0x55   :  { %273 = vrot.lane.b32.xlu1 %v268_v16, %s21601_s22  ;;  %271 = vrot.lane.b32.xlu0 %v21670_v1, %s21601_s22 }
  0x59   :  { %290 = vrot.lane.b32.xlu1 %v285_v17, %s21602_s23  ;;  %288 = vrot.lane.b32.xlu0 %v21670_v1, %s21602_s23 }
  0x5d   :  { %307 = vrot.lane.b32.xlu1 %v302_v18, %s21603_s24  ;;  %305 = vrot.lane.b32.xlu0 %v21670_v1, %s21603_s24 }
  0x61   :  { %68 = vrot.lane.b32.xlu1 %v63_v19, %s21604_s25  ;;  %66 = vrot.lane.b32.xlu0 %v21670_v1, %s21604_s25 }
  0x65   :  { %86 = vrot.lane.b32.xlu1 %v81_v20, %s21605_s26  ;;  %84 = vrot.lane.b32.xlu0 %v21670_v1, %s21605_s26 }
  0x69   :  { %103 = vrot.lane.b32.xlu1 %v98_v21, %s21606_s27  ;;  %101 = vrot.lane.b32.xlu0 %v21670_v1, %s21606_s27 }
  0x6d   :  { %120 = vrot.lane.b32.xlu1 %v115_v22, %s21607_s28  ;;  %118 = vrot.lane.b32.xlu0 %v21670_v1, %s21607_s28 }
  0x71   :  { %137 = vrot.lane.b32.xlu1 %v132_v23, %s21608_s29  ;;  %135 = vrot.lane.b32.xlu0 %v21670_v1, %s21608_s29 }
  0x75   :  { %154 = vrot.lane.b32.xlu1 %v149_v24, %s21609_s30  ;;  %152 = vrot.lane.b32.xlu0 %v21670_v1, %s21609_s30 }
  0x79   :  { %171 = vrot.lane.b32.xlu1 %v166_v25, %s21610_s7  ;;  %169 = vrot.lane.b32.xlu0 %v21670_v1, %s21610_s7 }
  0x8f   :  { %v459_v26 = vpop.permute.xlu0 %458  ;;  %v323_v27 = vpop.permute.xlu1 %322 }
  0x90   :  { %v462_v30 = vrot.slane %v459_v26, 1  ;;  %v326_v31 = vrot.slane %v323_v27, 1 }
  0x93   :  { %v461_v28 = vpop.permute.xlu0 %460  ;;  %v325_v29 = vpop.permute.xlu1 %324 }
  0x94   :  { %v463_v32 = vrot.slane %v461_v28, 1  ;;  %v327_v33 = vrot.slane %v325_v29, 1 }
  0x96   :  { %v464_v34 = vsel %vm72_vm0, %v462_v30, %v463_v32  ;;  %v328_v35 = vsel %vm72_vm0, %v326_v31, %v327_v33 }
  0x97   :  { %v466_v36 = vsel %vm465_vm1, %v459_v26, %v464_v34  ;;  %v330_v37 = vsel %vm329_vm2, %v323_v27, %v328_v35  ;;  %v340_v38 = vpop.permute.xlu0 %339  ;;  %v342_v39 = vpop.permute.xlu1 %341  ;;  %vm295_vm1 = vcmask 687104   ;;  %vm312_vm2 = vcmask 556032  }
  0x98   :  { %469 = vst [vmem:[#allocation2 + $0xc0] ss:$8 sm:$0xf] %v466_v36  ;;  %470 = vst [vmem:[#allocation2 + $0xc0] ss:$8 sm:$0xf0] %v466_v36 }
  0x99   :  { %333 = vst [vmem:[#allocation2 + $0x80] ss:$8 sm:$0xf] %v330_v37  ;;  %334 = vst [vmem:[#allocation2 + $0x80] ss:$8 sm:$0xf0] %v330_v37 }
  0x9a   :  { %v343_v40 = vrot.slane %v340_v38, 1  ;;  %v344_v41 = vrot.slane %v342_v39, 1 }
  0x9b   :  { %v357_v44 = vpop.permute.xlu0 %356  ;;  %v359_v45 = vpop.permute.xlu1 %358 }
  0x9c   :  { %v345_v42 = vsel %vm72_vm0, %v343_v40, %v344_v41  ;;  %v360_v46 = vrot.slane %v357_v44, 1  ;;  %v361_v47 = vrot.slane %v359_v45, 1 }
  0x9d   :  { %v347_v43 = vsel %vm346_vm3, %v340_v38, %v345_v42  ;;  %vm74_vm3 = vcmask 1039360  }
  0x9e   :  { %350 = vst [vmem:[#allocation2 + $0x81] ss:$8 sm:$0xf] %v347_v43  ;;  %351 = vst [vmem:[#allocation2 + $0x81] ss:$8 sm:$0xf0] %v347_v43  ;;  %v362_v48 = vsel %vm72_vm0, %v360_v46, %v361_v47 }
  0x9f   :  { %v364_v49 = vsel %vm363_vm4, %v357_v44, %v362_v48  ;;  %v374_v50 = vpop.permute.xlu0 %373  ;;  %v376_v51 = vpop.permute.xlu1 %375  ;;  %v498_v52 = vld [vmem:[#allocation2 + $0xc8] sm:$0xff]  ;;  %v497_v53 = vld [vmem:[#allocation2 + $0xc0] sm:$0xff]  ;;  %vm91_vm4 = vcmask 1031168  }
  0xa0   :  { %367 = vst [vmem:[#allocation2 + $0x82] ss:$8 sm:$0xf] %v364_v49  ;;  %368 = vst [vmem:[#allocation2 + $0x82] ss:$8 sm:$0xf0] %v364_v49 }
  0xa1   :  { %v377_v54 = vrot.slane %v374_v50, 1  ;;  %v378_v55 = vrot.slane %v376_v51, 1  ;;  %v21708_v56 = vand.u32 4294901760, %v498_v52  ;;  %v21710_v57 = vand.u32 4294901760, %v497_v53 }
  0xa3   :  { %v379_v58 = vsel %vm72_vm0, %v377_v54, %v378_v55  ;;  %549 = vmatprep.subr.mxu0 %v21708_v56  ;;  %v21715_v59 = vsub.f32 %v498_v52, %v21708_v56  ;;  %v21718_v60 = vsub.f32 %v497_v53, %v21710_v57  ;;  %v391_v62 = vpop.permute.xlu0 %390  ;;  %v393_v63 = vpop.permute.xlu1 %392 }
  0xa4   :  { %v381_v61 = vsel %vm380_vm5, %v374_v50, %v379_v58  ;;  %551 = vmatpush1.msra.mxu0 %v21710_v57  ;;  %v394_v1 = vrot.slane %v391_v62, 1  ;;  %v395_v2 = vrot.slane %v393_v63, 1  ;;  %vm108_vm5 = vcmask 1022976  }
  0xa5   :  { %384 = vst [vmem:[#allocation2 + $0x83] ss:$8 sm:$0xf] %v381_v61  ;;  %385 = vst [vmem:[#allocation2 + $0x83] ss:$8 sm:$0xf0] %v381_v61 }
  0xa6   :  { %v645_v3 = vand.u32 4294901760, %v21715_v59  ;;  %v651_v4 = vand.u32 4294901760, %v21718_v60  ;;  %v396_v5 = vsel %vm72_vm0, %v394_v1, %v395_v2 }
  0xa7   :  { %v398_v8 = vsel %vm397_vm6, %v391_v62, %v396_v5  ;;  %v408_v9 = vpop.permute.xlu0 %407  ;;  %v410_v10 = vpop.permute.xlu1 %409  ;;  %vm125_vm6 = vcmask 1014784  }
  0xa8   :  { %v646_v6 = vsub.f32 %v21715_v59, %v645_v3  ;;  %v652_v7 = vsub.f32 %v21718_v60, %v651_v4  ;;  %401 = vst [vmem:[#allocation2 + $0x84] ss:$8 sm:$0xf] %v398_v8  ;;  %402 = vst [vmem:[#allocation2 + $0x84] ss:$8 sm:$0xf0] %v398_v8 }
  0xa9   :  { %v411_v11 = vrot.slane %v408_v9, 1  ;;  %v412_v12 = vrot.slane %v410_v10, 1 }
  0xaa   :  { %v647_v13 = vand.u32 4294901760, %v646_v6  ;;  %v653_v14 = vand.u32 4294901760, %v652_v7 }
  0xab   :  { %v413_v15 = vsel %vm72_vm0, %v411_v11, %v412_v12  ;;  %v425_v17 = vpop.permute.xlu0 %424  ;;  %v427_v18 = vpop.permute.xlu1 %426 }
  0xac   :  { %648 = vmatprep.subr.mxu1 %v647_v13  ;;  %v415_v16 = vsel %vm414_vm7, %v408_v9, %v413_v15  ;;  %v428_v19 = vrot.slane %v425_v17, 1  ;;  %v429_v20 = vrot.slane %v427_v18, 1  ;;  %vm517_vm7 = vcmask 261120  }
  0xad   :  { %654 = vmatpush1.msra.mxu1 %v653_v14  ;;  %418 = vst [vmem:[#allocation2 + $0x85] ss:$8 sm:$0xf] %v415_v16  ;;  %419 = vst [vmem:[#allocation2 + $0x85] ss:$8 sm:$0xf0] %v415_v16 }
  0xae   :  { %v430_v21 = vsel %vm72_vm0, %v428_v19, %v429_v20 }
  0xaf   :  { %v432_v22 = vsel %vm431_vm8, %v425_v17, %v430_v21  ;;  %v442_v23 = vpop.permute.xlu0 %441  ;;  %v444_v24 = vpop.permute.xlu1 %443  ;;  %vm142_vm8 = vcmask 883712  }
  0xb0   :  { %435 = vst [vmem:[#allocation2 + $0x86] ss:$8 sm:$0xf] %v432_v22  ;;  %436 = vst [vmem:[#allocation2 + $0x86] ss:$8 sm:$0xf0] %v432_v22 }
  0xb1   :  { %v445_v25 = vrot.slane %v442_v23, 1  ;;  %v446_v26 = vrot.slane %v444_v24, 1 }
  0xb3   :  { %v447_v27 = vsel %vm72_vm0, %v445_v25, %v446_v26  ;;  %v189_v29 = vpop.permute.xlu1 %188  ;;  %v187_v30 = vpop.permute.xlu0 %186 }
  0xb4   :  { %v449_v28 = vsel %vm448_vm9, %v442_v23, %v447_v27  ;;  %v191_v31 = vrot.slane %v189_v29, 1  ;;  %v190_v32 = vrot.slane %v187_v30, 1  ;;  %vm159_vm9 = vcmask 875520  }
  0xb5   :  { %452 = vst [vmem:[#allocation2 + $0x87] ss:$8 sm:$0xf] %v449_v28  ;;  %453 = vst [vmem:[#allocation2 + $0x87] ss:$8 sm:$0xf0] %v449_v28 }
  0xb6   :  { %v192_v33 = vsel %vm72_vm0, %v190_v32, %v191_v31 }
  0xb7   :  { %v194_v34 = vsel %vm193_vm10, %v187_v30, %v192_v33  ;;  %v206_v35 = vpop.permute.xlu1 %205  ;;  %v204_v36 = vpop.permute.xlu0 %203  ;;  %vm176_vm10 = vcmask 867328  }
  0xb8   :  { %197 = vst [vmem:[#allocation2 + $0x40] ss:$8 sm:$0xf] %v194_v34  ;;  %198 = vst [vmem:[#allocation2 + $0x40] ss:$8 sm:$0xf0] %v194_v34 }
  0xb9   :  { %v208_v37 = vrot.slane %v206_v35, 1  ;;  %v207_v38 = vrot.slane %v204_v36, 1 }
  0xbb   :  { %v209_v39 = vsel %vm72_vm0, %v207_v38, %v208_v37  ;;  %v223_v41 = vpop.permute.xlu1 %222  ;;  %v221_v42 = vpop.permute.xlu0 %220 }
  0xbc   :  { %v211_v40 = vsel %vm210_vm11, %v204_v36, %v209_v39  ;;  %v490_v43 = vld [vmem:[#allocation2 + $0x88] sm:$0xff]  ;;  %v489_v44 = vld [vmem:[#allocation2 + $0x80] sm:$0xff]  ;;  %v225_v45 = vrot.slane %v223_v41, 1  ;;  %v224_v46 = vrot.slane %v221_v42, 1  ;;  %vm3061_vm11 = vcmask 171008  }
  0xbd   :  { %214 = vst [vmem:[#allocation2 + $0x41] ss:$8 sm:$0xf] %v211_v40  ;;  %215 = vst [vmem:[#allocation2 + $0x41] ss:$8 sm:$0xf0] %v211_v40 }
  0xbe   :  { %v21735_v47 = vand.u32 4294901760, %v490_v43  ;;  %v21737_v48 = vand.u32 4294901760, %v489_v44  ;;  %v226_v49 = vsel %vm72_vm0, %v224_v46, %v225_v45 }
  0xbf   :  { %v228_v52 = vsel %vm227_vm12, %v221_v42, %v226_v49  ;;  %v240_v53 = vpop.permute.xlu1 %239  ;;  %v238_v54 = vpop.permute.xlu0 %237  ;;  %vm5107_vm12 = vcmask 162816  }
  0xc0   :  { %553 = vmatprep.subr.mxu0 %v21735_v47  ;;  %v21742_v50 = vsub.f32 %v490_v43, %v21735_v47  ;;  %v21745_v51 = vsub.f32 %v489_v44, %v21737_v48  ;;  %231 = vst [vmem:[#allocation2 + $0x42] ss:$8 sm:$0xf] %v228_v52  ;;  %232 = vst [vmem:[#allocation2 + $0x42] ss:$8 sm:$0xf0] %v228_v52 }
  0xc1   :  { %555 = vmatpush1.msra.mxu0 %v21737_v48  ;;  %v242_v55 = vrot.slane %v240_v53, 1  ;;  %v241_v58 = vrot.slane %v238_v54, 1 }
  0xc2   :  { %v657_v61 = vand.u32 4294901760, %v21742_v50  ;;  %v663_v62 = vand.u32 4294901760, %v21745_v51 }
  0xc3   :  { %v243_v63 = vsel %vm72_vm0, %v241_v58, %v242_v55  ;;  %v257_v6 = vpop.permute.xlu1 %256  ;;  %v255_v7 = vpop.permute.xlu0 %254 }
  0xc4   :  { %v658_v1 = vsub.f32 %v21742_v50, %v657_v61  ;;  %v664_v2 = vsub.f32 %v21745_v51, %v663_v62  ;;  %v245_v5 = vsel %vm244_vm13, %v238_v54, %v243_v63  ;;  %v259_v8 = vrot.slane %v257_v6, 1 }
  0xc5   :  { %248 = vst [vmem:[#allocation2 + $0x43] ss:$8 sm:$0xf] %v245_v5  ;;  %249 = vst [vmem:[#allocation2 + $0x43] ss:$8 sm:$0xf0] %v245_v5 }
  0xc6   :  { %v258_v9 = vrot.slane %v255_v7, 1  ;;  %v659_v10 = vand.u32 4294901760, %v658_v1  ;;  %v665_v11 = vand.u32 4294901760, %v664_v2  ;;  %vm7152_vm13 = vcmask 154624  }
  0xc7   :  { %v274_v14 = vpop.permute.xlu1 %273  ;;  %v272_v15 = vpop.permute.xlu0 %271 }
  0xc8   :  { %v260_v12 = vsel %vm72_vm0, %v258_v9, %v259_v8  ;;  %660 = vmatprep.subr.mxu1 %v659_v10  ;;  %v276_v16 = vrot.slane %v274_v14, 1  ;;  %v275_v17 = vrot.slane %v272_v15, 1  ;;  %v471_v14 = vld [vmem:[%s25493_s1] sm:$0xff] }
  0xc9   :  { %v262_v13 = vsel %vm261_vm14, %v255_v7, %v260_v12  ;;  %666 = vmatpush1.msra.mxu1 %v665_v11  ;;  %vm9197_vm14 = vcmask 7168  }
  0xca   :  { %265 = vst [vmem:[#allocation2 + $0x44] ss:$8 sm:$0xf] %v262_v13  ;;  %266 = vst [vmem:[#allocation2 + $0x44] ss:$8 sm:$0xf0] %v262_v13  ;;  %v277_v18 = vsel %vm72_vm0, %v275_v17, %v276_v16 }
  0xcb   :  { %v279_v19 = vsel %vm278_vm15, %v272_v15, %v277_v18  ;;  %v291_v20 = vpop.permute.xlu1 %290  ;;  %v289_v21 = vpop.permute.xlu0 %288  ;;  %vm15298_vm15 = vcmask 891904  }
  0xcc   :  { %282 = vst [vmem:[#allocation2 + $0x45] ss:$8 sm:$0xf] %v279_v19  ;;  %283 = vst [vmem:[#allocation2 + $0x45] ss:$8 sm:$0xf0] %v279_v19 }
  0xcd   :  { %v293_v22 = vrot.slane %v291_v20, 1  ;;  %v292_v23 = vrot.slane %v289_v21, 1 }
  0xcf   :  { %v294_v24 = vsel %vm72_vm0, %v292_v23, %v293_v22  ;;  %v308_v26 = vpop.permute.xlu1 %307  ;;  %v306_v27 = vpop.permute.xlu0 %305  ;;  %v519_v22 = vsel %vm517_vm7, %v471_v14, 0 }
  0xd0   :  { %v296_v25 = vsel %vm295_vm1, %v289_v21, %v294_v24  ;;  %v310_v28 = vrot.slane %v308_v26, 1  ;;  %v309_v29 = vrot.slane %v306_v27, 1  ;;  %v472_v24 = vld [vmem:[%s25493_s1 + $0x8] sm:$0xff] }
  0xd1   :  { %299 = vst [vmem:[#allocation2 + $0x46] ss:$8 sm:$0xf] %v296_v25  ;;  %300 = vst [vmem:[#allocation2 + $0x46] ss:$8 sm:$0xf0] %v296_v25 }
  0xd2   :  { %v311_v30 = vsel %vm72_vm0, %v309_v29, %v310_v28  ;;  %v21611_v28 = vmov 0   ;;  %v505_v29 = vld [vmem:[%s25494_s2] sm:$0xff] }
  0xd3   :  { %v313_v31 = vsel %vm312_vm2, %v306_v27, %v311_v30  ;;  %v69_v32 = vpop.permute.xlu1 %68  ;;  %v67_v33 = vpop.permute.xlu0 %66  ;;  %21515 = vset.pattern.permute.xlu1 %v21611_v28  ;;  %21514 = vset.pattern.permute.xlu0 %v21611_v28 }
  0xd4   :  { %316 = vst [vmem:[#allocation2 + $0x47] ss:$8 sm:$0xf] %v313_v31  ;;  %317 = vst [vmem:[#allocation2 + $0x47] ss:$8 sm:$0xf0] %v313_v31  ;;  %509 = vperm.xlu1 %21515, %v505_v29  }
  0xd5   :  { %v71_v34 = vrot.slane %v69_v32, 1  ;;  %v70_v35 = vrot.slane %v67_v33, 1  ;;  %v21798_v32 = vand.u32 4294901760, %v519_v22 }
  0xd7   :  { %v73_v36 = vsel %vm72_vm0, %v70_v35, %v71_v34  ;;  %v87_v38 = vpop.permute.xlu1 %86  ;;  %v85_v39 = vpop.permute.xlu0 %84 }
  0xd8   :  { %v75_v37 = vsel %vm74_vm3, %v67_v33, %v73_v36  ;;  %v89_v40 = vrot.slane %v87_v38, 1  ;;  %v88_v41 = vrot.slane %v85_v39, 1  ;;  %v522_v33 = vsel %vm517_vm7, %v472_v24, 0 }
  0xd9   :  { %78 = vst [vmem:[#allocation2 + $0x1] ss:$8 sm:$0xf] %v75_v37  ;;  %79 = vst [vmem:[#allocation2 + $0x1] ss:$8 sm:$0xf0] %v75_v37 }
  0xda   :  { %v90_v42 = vsel %vm72_vm0, %v88_v41, %v89_v40  ;;  %v21804_v40 = vsub.f32 %v519_v22, %v21798_v32  ;;  %v21806_v41 = vand.u32 4294901760, %v522_v33 }
  0xdb   :  { %v92_v43 = vsel %vm91_vm4, %v85_v39, %v90_v42  ;;  %v104_v44 = vpop.permute.xlu1 %103  ;;  %v102_v45 = vpop.permute.xlu0 %101  ;;  %v482_v46 = vld [vmem:[#allocation2 + $0x48] sm:$0xff]  ;;  %v481_v49 = vld [vmem:[#allocation2 + $0x40] sm:$0xff] }
  0xdc   :  { %95 = vst [vmem:[#allocation2 + $0x2] ss:$8 sm:$0xf] %v92_v43  ;;  %96 = vst [vmem:[#allocation2 + $0x2] ss:$8 sm:$0xf0] %v92_v43 }
  0xdd   :  { %v106_v52 = vrot.slane %v104_v44, 1  ;;  %v105_v53 = vrot.slane %v102_v45, 1  ;;  %v21764_v54 = vand.u32 4294901760, %v482_v46  ;;  %v21766_v55 = vand.u32 4294901760, %v481_v49  ;;  %v506_v42 = vld [vmem:[%s25494_s2 + $0x8] sm:$0xff]  ;;  %s21612_s2 = smov 21  }
  0xde   :  { %514 = vperm.xlu0 %21514, %v506_v42   ;;  %3043 = vrot.lane.b32.xlu1 %v25500_v0, %s21612_s2 }
  0xdf   :  { %v107_v58 = vsel %vm72_vm0, %v105_v53, %v106_v52  ;;  %557 = vmatprep.subr.mxu0 %v21764_v54  ;;  %v21771_v63 = vsub.f32 %v482_v46, %v21764_v54  ;;  %v21774_v1 = vsub.f32 %v481_v49, %v21766_v55  ;;  %v121_v5 = vpop.permute.xlu1 %120  ;;  %v119_v6 = vpop.permute.xlu0 %118  ;;  %v21816_v46 = vsub.f32 %v522_v33, %v21806_v41 }
  0xe0   :  { %v109_v2 = vsel %vm108_vm5, %v102_v45, %v107_v58  ;;  %559 = vmatpush1.msra.mxu0 %v21766_v55  ;;  %v123_v7 = vrot.slane %v121_v5, 1  ;;  %v122_v8 = vrot.slane %v119_v6, 1  ;;  %v21813_v45 = vand.u32 4294901760, %v21804_v40 }
  0xe1   :  { %112 = vst [vmem:[#allocation2 + $0x3] ss:$8 sm:$0xf] %v109_v2  ;;  %113 = vst [vmem:[#allocation2 + $0x3] ss:$8 sm:$0xf0] %v109_v2 }
  0xe2   :  { %v669_v9 = vand.u32 4294901760, %v21771_v63  ;;  %v675_v10 = vand.u32 4294901760, %v21774_v1  ;;  %v124_v11 = vsel %vm72_vm0, %v122_v8, %v123_v7  ;;  %v600_v49 = vsub.f32 %v21804_v40, %v21813_v45 }
  0xe3   :  { %v126_v15 = vsel %vm125_vm6, %v119_v6, %v124_v11  ;;  %v138_v16 = vpop.permute.xlu1 %137  ;;  %v136_v17 = vpop.permute.xlu0 %135  ;;  %v21821_v52 = vand.u32 4294901760, %v21816_v46 }
  0xe4   :  { %v670_v12 = vsub.f32 %v21771_v63, %v669_v9  ;;  %v676_v13 = vsub.f32 %v21774_v1, %v675_v10  ;;  %129 = vst [vmem:[#allocation2 + $0x4] ss:$8 sm:$0xf] %v126_v15  ;;  %130 = vst [vmem:[#allocation2 + $0x4] ss:$8 sm:$0xf0] %v126_v15 }
  0xe5   :  { %v140_v18 = vrot.slane %v138_v16, 1  ;;  %v139_v19 = vrot.slane %v136_v17, 1  ;;  %v21827_v6 = vand.u32 4294901760, %v600_v49  ;;  %v611_v7 = vsub.f32 %v21816_v46, %v21821_v52 }
  0xe6   :  { %v671_v20 = vand.u32 4294901760, %v670_v12  ;;  %v677_v21 = vand.u32 4294901760, %v676_v13 }
  0xe7   :  { %v141_v23 = vsel %vm72_vm0, %v139_v19, %v140_v18  ;;  %v155_v26 = vpop.permute.xlu1 %154  ;;  %v153_v27 = vpop.permute.xlu0 %152  ;;  %v21837_v12 = vand.u32 4294901760, %v611_v7  ;;  %v500_v19 = vld [vmem:[#allocation2 + $0xd8] sm:$0xff] }
  0xe8   :  { %672 = vmatprep.subr.mxu1 %v671_v20  ;;  %v143_v25 = vsel %vm142_vm8, %v136_v17, %v141_v23  ;;  %v157_v30 = vrot.slane %v155_v26, 1  ;;  %v156_v31 = vrot.slane %v153_v27, 1 }
  0xe9   :  { %678 = vmatpush1.msra.mxu1 %v677_v21  ;;  %146 = vst [vmem:[#allocation2 + $0x5] ss:$8 sm:$0xf] %v143_v25  ;;  %147 = vst [vmem:[#allocation2 + $0x5] ss:$8 sm:$0xf0] %v143_v25 }
  0xea   :  { %v158_v34 = vsel %vm72_vm0, %v156_v31, %v157_v30 }
  0xeb   :  { %v160_v35 = vsel %vm159_vm9, %v153_v27, %v158_v34  ;;  %v172_v36 = vpop.permute.xlu1 %171  ;;  %v170_v37 = vpop.permute.xlu0 %169 }
  0xec   :  { %163 = vst [vmem:[#allocation2 + $0x6] ss:$8 sm:$0xf] %v160_v35  ;;  %164 = vst [vmem:[#allocation2 + $0x6] ss:$8 sm:$0xf0] %v160_v35 }
  0xed   :  { %v174_v38 = vrot.slane %v172_v36, 1  ;;  %v173_v39 = vrot.slane %v170_v37, 1 }
  0xef   :  { %v175_v43 = vsel %vm72_vm0, %v173_v39, %v174_v38  ;;  %vm3094_vm0 = vcmask 130048  }
  0xf0   :  { %v177_v44 = vsel %vm176_vm10, %v170_v37, %v175_v43 }
  0xf1   :  { %180 = vst [vmem:[#allocation2 + $0x7] ss:$8 sm:$0xf] %v177_v44  ;;  %181 = vst [vmem:[#allocation2 + $0x7] ss:$8 sm:$0xf0] %v177_v44 }
  0xf8   :  { %v474_v53 = vld [vmem:[#allocation2 + $0x8] sm:$0xff]  ;;  %v473_v58 = vld [vmem:[#allocation2] sm:$0xff]  ;;  %v475_v21 = vld [vmem:[#allocation2 + $0x10] sm:$0xff] }
  0xf9   :  { %v21823_v2 = vand.u32 4294901760, %v474_v53  ;;  %v21825_v5 = vand.u32 4294901760, %v473_v58 }
  0xfb   :  { %561 = vmatprep.subr.mxu0 %v21823_v2  ;;  %v680_v8 = vsub.f32 %v474_v53, %v21823_v2  ;;  %v686_v11 = vsub.f32 %v473_v58, %v21825_v5 }
  0xfc   :  { %563 = vmatpush1.msra.mxu0 %v21825_v5 }
  0xfd   :  { %602 = vmatmul.mubr.f32.vlgmr.msra.gmra.mxu0 %v21827_v6  ;;  %764 = vmatprep.subr.mxu0 %v21715_v59  ;;  %v681_v13 = vand.u32 4294901760, %v680_v8  ;;  %v687_v14 = vand.u32 4294901760, %v686_v11  ;;  %v499_v59 = vld [vmem:[#allocation2 + $0xd0] sm:$0xff] }
  0xfe   :  { %767 = vmatpush1.msra.mxu0 %v21718_v60  ;;  %607 = vmatprep.mubr.f32.mxu0 %v25500_v0  ;;  %v492_v60 = vld [vmem:[#allocation2 + $0x98] sm:$0xff] }
  0xff   :  { %770 = vmatprep.subr.mxu0 %v21742_v50  ;;  %v682_v15 = vsub.f32 %v680_v8, %v681_v13  ;;  %v688_v16 = vsub.f32 %v686_v11, %v687_v14  ;;  %v491_v50 = vld [vmem:[#allocation2 + $0x90] sm:$0xff] }
 0x100   :  { %773 = vmatpush1.msra.mxu0 %v21745_v51  ;;  %v21876_v51 = vand.u32 4294901760, %v492_v60 }
 0x101   :  { %613 = vmatmul.mubr.f32.gmra.mxu0 %v21837_v12  ;;  %776 = vmatprep.subr.mxu0 %v21771_v63  ;;  %v683_v17 = vand.u32 4294901760, %v682_v15  ;;  %v689_v18 = vand.u32 4294901760, %v688_v16  ;;  %v483_v63 = vld [vmem:[#allocation2 + $0x50] sm:$0xff] }
 0x102   :  { %779 = vmatpush1.msra.mxu0 %v21774_v1  ;;  %818 = vmatprep.mubr.f32.mxu0 %v25500_v0  ;;  %v21896_v22 = vsub.f32 %v492_v60, %v21876_v51  ;;  %v21900_v23 = vand.u32 4294901760, %v483_v63  ;;  %v485_v60 = vld [vmem:[#allocation2 + $0x60] sm:$0xff] }
 0x103   :  { %684 = vmatprep.subr.mxu1 %v683_v17  ;;  %782 = vmatprep.subr.mxu0 %v680_v8  ;;  %v493_v17 = vld [vmem:[#allocation2 + $0xa0] sm:$0xff] }
 0x104   :  { %690 = vmatpush1.msra.mxu1 %v689_v18  ;;  %785 = vmatpush1.msra.mxu0 %v686_v11  ;;  %v21924_v28 = vsub.f32 %v483_v63, %v21900_v23  ;;  %v502_v11 = vld [vmem:[#allocation2 + $0xe8] sm:$0xff] }
 0x105   :  { %725 = vmatmul.mubr.f32.vlgmr.msra.gmra.mxu1 %v21798_v32  ;;  %821 = vmatmul.mubr.f32.vlgmr.msra.gmra.mxu0 %v21804_v40  ;;  %v21998_v15 = vand.u32 4294901760, %v502_v11  ;;  %v478_v63 = vld [vmem:[#allocation2 + $0x28] sm:$0xff] }
 0x106   :  { %860 = vmatprep.subr.mxu1 %v21708_v56  ;;  %953 = vmatprep.subr.mxu0 %v645_v3  ;;  %v21868_v3 = vand.u32 4294901760, %v500_v19 }
 0x107   :  { %862 = vmatpush1.msra.mxu1 %v21710_v57  ;;  %957 = vmatpush1.msra.mxu0 %v651_v4  ;;  %v21873_v4 = vand.u32 4294901760, %v499_v59 }
 0x108   :  { %864 = vmatprep.subr.mxu1 %v21735_v47  ;;  %961 = vmatprep.subr.mxu0 %v657_v61  ;;  %v484_v61 = vld [vmem:[#allocation2 + $0x58] sm:$0xff]  ;;  %v21884_v1 = vsub.f32 %v500_v19, %v21868_v3  ;;  %v486_v19 = vld [vmem:[#allocation2 + $0x68] sm:$0xff] }
 0x109   :  { %730 = vmatprep.mubr.f32.mxu1 %v25500_v0  ;;  %826 = vmatprep.mubr.f32.mxu0 %v25500_v0  ;;  %v21893_v20 = vand.u32 4294901760, %v484_v61 }
 0x10a   :  { %866 = vmatpush1.msra.mxu1 %v21737_v48  ;;  %965 = vmatpush1.msra.mxu0 %v663_v62  ;;  %v21881_v62 = vand.u32 4294901760, %v491_v50  ;;  %v1237_v25 = vand.u32 4294901760, %v21884_v1 }
 0x10b   :  { %732 = vmatmul.mubr.f32.gmra.mxu1 %v21806_v41  ;;  %829 = vmatmul.mubr.f32.gmra.mxu0 %v21816_v46  ;;  %v21919_v27 = vsub.f32 %v484_v61, %v21893_v20 }
 0x10c   :  { %868 = vmatprep.subr.mxu1 %v21764_v54  ;;  %969 = vmatprep.subr.mxu0 %v669_v9  ;;  %v21889_v9 = vsub.f32 %v499_v59, %v21873_v4  ;;  %v22009_v59 = vand.u32 4294901760, %v493_v17 }
 0x10d   :  { %870 = vmatpush1.msra.mxu1 %v21766_v55  ;;  %973 = vmatpush1.msra.mxu0 %v675_v10  ;;  %v476_v10 = vld [vmem:[#allocation2 + $0x18] sm:$0xff]  ;;  %v1261_v34 = vand.u32 4294901760, %v21919_v27 }
 0x10e   :  { %872 = vmatprep.subr.mxu1 %v21823_v2  ;;  %977 = vmatprep.subr.mxu0 %v681_v13  ;;  %v21907_v24 = vand.u32 4294901760, %v476_v10  ;;  %v1243_v26 = vand.u32 4294901760, %v21889_v9  ;;  %v501_v13 = vld [vmem:[#allocation2 + $0xe0] sm:$0xff] }
 0x10f   :  { %874 = vmatpush1.msra.mxu1 %v21825_v5  ;;  %907 = vmatprep.mubr.f32.mxu1 %v25500_v0  ;;  %v1262_v43 = vsub.f32 %v21919_v27, %v1261_v34  ;;  %v22001_v16 = vand.u32 4294901760, %v501_v13 }
 0x110   :  { %981 = vmatpush1.msra.mxu0 %v687_v14  ;;  %1014 = vmatprep.mubr.f32.mxu0 %v25500_v0  ;;  %v21933_v30 = vsub.f32 %v476_v10, %v21907_v24  ;;  %v494_v14 = vld [vmem:[#allocation2 + $0xa8] sm:$0xff] }
 0x111   :  { %911 = vmatmul.mubr.f32.vlgmr.msra.gmra.mxu1 %v21813_v45  ;;  %1016 = vmatmul.mubr.f32.vlgmr.msra.gmra.mxu0 %v21798_v32  ;;  %v22004_v18 = vand.u32 4294901760, %v494_v14  ;;  %v22017_v61 = vsub.f32 %v501_v13, %v22001_v16 }
 0x112   :  { %1054 = vmatprep.subr.mxu1 %v21708_v56  ;;  %1141 = vmatprep.subr.mxu0 %v21868_v3  ;;  %v21905_v56 = vsub.f32 %v491_v50, %v21881_v62  ;;  %v1273_v37 = vand.u32 4294901760, %v21933_v30  ;;  %v22012_v50 = vsub.f32 %v502_v11, %v21998_v15  ;;  %v488_v11 = vld [vmem:[#allocation2 + $0x78] sm:$0xff] }
 0x113   :  { %1056 = vmatpush1.msra.mxu1 %v21710_v57  ;;  %1143 = vmatpush1.msra.mxu0 %v21873_v4  ;;  %v21912_v57 = vand.u32 4294901760, %v475_v21  ;;  %v22024_v10 = vsub.f32 %v494_v14, %v22004_v18  ;;  %v487_v14 = vld [vmem:[#allocation2 + $0x70] sm:$0xff] }
 0x114   :  { %1058 = vmatprep.subr.mxu1 %v21735_v47  ;;  %1145 = vmatprep.subr.mxu0 %v21876_v51  ;;  %v1249_v47 = vand.u32 4294901760, %v21896_v22  ;;  %v1255_v29 = vand.u32 4294901760, %v21905_v56  ;;  %v1274_v53 = vsub.f32 %v21933_v30, %v1273_v37 }
 0x115   :  { %916 = vmatprep.mubr.f32.mxu1 %v25500_v0  ;;  %1021 = vmatprep.mubr.f32.mxu0 %v25500_v0  ;;  %v21938_v31 = vsub.f32 %v475_v21, %v21912_v57  ;;  %v22028_v21 = vand.u32 4294901760, %v485_v60 }
 0x116   :  { %1060 = vmatpush1.msra.mxu1 %v21737_v48  ;;  %1147 = vmatpush1.msra.mxu0 %v21881_v62  ;;  %v1238_v48 = vsub.f32 %v21884_v1, %v1237_v25  ;;  %v1250_v33 = vsub.f32 %v21896_v22, %v1249_v47  ;;  %v1256_v36 = vsub.f32 %v21905_v56, %v1255_v29  ;;  %v1275_v7 = vand.u32 4294901760, %v1274_v53  ;;  %v503_v53 = vld [vmem:[#allocation2 + $0xf0] sm:$0xff] }
 0x117   :  { %920 = vmatmul.mubr.f32.gmra.mxu1 %v21821_v52  ;;  %1023 = vmatmul.mubr.f32.gmra.mxu0 %v21806_v41  ;;  %v1279_v39 = vand.u32 4294901760, %v21938_v31 }
 0x118   :  { %1062 = vmatprep.subr.mxu1 %v21764_v54  ;;  %1149 = vmatprep.subr.mxu0 %v21893_v20  ;;  %v1244_v54 = vsub.f32 %v21889_v9, %v1243_v26  ;;  %v1239_v35 = vand.u32 4294901760, %v1238_v48  ;;  %v1251_v42 = vand.u32 4294901760, %v1250_v33  ;;  %v1257_v49 = vand.u32 4294901760, %v1256_v36 }
 0x119   :  { %1064 = vmatpush1.msra.mxu1 %v21766_v55  ;;  %1151 = vmatpush1.msra.mxu0 %v21900_v23  ;;  %v1267_v55 = vand.u32 4294901760, %v21924_v28  ;;  %v1280_v58 = vsub.f32 %v21938_v31, %v1279_v39 }
 0x11a   :  { %1066 = vmatprep.subr.mxu1 %v21823_v2  ;;  %1153 = vmatprep.subr.mxu0 %v21907_v24  ;;  %v1245_v38 = vand.u32 4294901760, %v1244_v54  ;;  %v1263_v2 = vand.u32 4294901760, %v1262_v43 }
 0x11b   :  { %1068 = vmatpush1.msra.mxu1 %v21825_v5  ;;  %1101 = vmatprep.mubr.f32.mxu1 %v25500_v0  ;;  %v1268_v44 = vsub.f32 %v21924_v28, %v1267_v55  ;;  %v1281_v8 = vand.u32 4294901760, %v1280_v58  ;;  %v496_v58 = vld [vmem:[#allocation2 + $0xb8] sm:$0xff] }
 0x11c   :  { %1155 = vmatpush1.msra.mxu0 %v21912_v57  ;;  %1188 = vmatprep.mubr.f32.mxu0 %v25500_v0 }
 0x11d   :  { %1103 = vmatmul.mubr.f32.vlgmr.msra.gmra.mxu1 %v21798_v32  ;;  %1194 = vmatmul.mubr.f32.vlgmr.msra.gmra.mxu0 %v21827_v6  ;;  %v1269_v5 = vand.u32 4294901760, %v1268_v44 }
 0x11e   :  { %1240 = vmatprep.subr.mxu1 %v1239_v35  ;;  %1356 = vmatprep.subr.mxu0 %v21884_v1  ;;  %v22021_v1 = vand.u32 4294901760, %v486_v19 }
 0x11f   :  { %1246 = vmatpush1.msra.mxu1 %v1245_v38  ;;  %1359 = vmatpush1.msra.mxu0 %v21889_v9  ;;  %v477_v9 = vld [vmem:[#allocation2 + $0x20] sm:$0xff] }
 0x120   :  { %1252 = vmatprep.subr.mxu1 %v1251_v42  ;;  %1362 = vmatprep.subr.mxu0 %v21896_v22  ;;  %v22035_v22 = vand.u32 4294901760, %v478_v63 }
 0x121   :  { %1108 = vmatprep.mubr.f32.mxu1 %v25500_v0  ;;  %1199 = vmatprep.mubr.f32.mxu0 %v25500_v0 }
 0x122   :  { %1258 = vmatpush1.msra.mxu1 %v1257_v49  ;;  %1365 = vmatpush1.msra.mxu0 %v21905_v56  ;;  %v1829_v56 = vand.u32 4294901760, %v22012_v50  ;;  %v504_v49 = vld [vmem:[#allocation2 + $0xf8] sm:$0xff] }
 0x123   :  { %1110 = vmatmul.mubr.f32.gmra.mxu1 %v21806_v41  ;;  %1205 = vmatmul.mubr.f32.gmra.mxu0 %v21837_v12 }
 0x124   :  { %1264 = vmatprep.subr.mxu1 %v1263_v2  ;;  %1368 = vmatprep.subr.mxu0 %v21919_v27  ;;  %v22126_v2 = vand.u32 4294901760, %v504_v49 }
 0x125   :  { %1270 = vmatpush1.msra.mxu1 %v1269_v5  ;;  %1371 = vmatpush1.msra.mxu0 %v21924_v28  ;;  %v22061_v28 = vsub.f32 %v478_v63, %v22035_v22  ;;  %v22129_v5 = vand.u32 4294901760, %v503_v53 }
 0x126   :  { %1276 = vmatprep.subr.mxu1 %v1275_v7  ;;  %1374 = vmatprep.subr.mxu0 %v21933_v30  ;;  %v495_v7 = vld [vmem:[#allocation2 + $0xb0] sm:$0xff] }
 0x127   :  { %1282 = vmatpush1.msra.mxu1 %v1281_v8  ;;  %1315 = vmatprep.mubr.f32.mxu1 %v25500_v0  ;;  %v1865_v54 = vand.u32 4294901760, %v22061_v28  ;;  %v22132_v8 = vand.u32 4294901760, %v496_v58  ;;  %v22137_v13 = vand.u32 4294901760, %v495_v7 }
 0x128   :  { %1377 = vmatpush1.msra.mxu0 %v21938_v31  ;;  %1410 = vmatprep.mubr.f32.mxu0 %v25500_v0 }
 0x129   :  { %1317 = vmatmul.mubr.f32.vlgmr.msra.gmra.mxu1 %v21798_v32  ;;  %1413 = vmatmul.mubr.f32.vlgmr.msra.gmra.mxu0 %v21804_v40  ;;  %v22152_v63 = vsub.f32 %v496_v58, %v22132_v8  ;;  %v2910_v58 = vlaneseq }
 0x12a   :  { %1452 = vmatprep.subr.mxu1 %v21868_v3  ;;  %1545 = vmatprep.subr.mxu0 %v1237_v25  ;;  %v1835_v25 = vand.u32 4294901760, %v22017_v61 }
 0x12b   :  { %1454 = vmatpush1.msra.mxu1 %v21873_v4  ;;  %1549 = vmatpush1.msra.mxu0 %v1243_v26  ;;  %v22047_v26 = vsub.f32 %v486_v19, %v22021_v1  ;;  %v22145_v19 = vsub.f32 %v503_v53, %v22129_v5 }
 0x12c   :  { %1456 = vmatprep.subr.mxu1 %v21876_v51  ;;  %1553 = vmatprep.subr.mxu0 %v1249_v47  ;;  %v22052_v47 = vsub.f32 %v485_v60, %v22028_v21  ;;  %v480_v60 = vld [vmem:[#allocation2 + $0x38] sm:$0xff] }
 0x12d   :  { %1322 = vmatprep.mubr.f32.mxu1 %v25500_v0  ;;  %1418 = vmatprep.mubr.f32.mxu0 %v25500_v0  ;;  %v1853_v30 = vand.u32 4294901760, %v22047_v26 }
 0x12e   :  { %1458 = vmatpush1.msra.mxu1 %v21881_v62  ;;  %1557 = vmatpush1.msra.mxu0 %v1255_v29 }
 0x12f   :  { %1324 = vmatmul.mubr.f32.gmra.mxu1 %v21806_v41  ;;  %1421 = vmatmul.mubr.f32.gmra.mxu0 %v21816_v46 }
 0x130   :  { %1460 = vmatprep.subr.mxu1 %v21893_v20  ;;  %1561 = vmatprep.subr.mxu0 %v1261_v34 }
 0x131   :  { %1462 = vmatpush1.msra.mxu1 %v21900_v23  ;;  %1565 = vmatpush1.msra.mxu0 %v1267_v55  ;;  %v1854_v55 = vsub.f32 %v22047_v26, %v1853_v30 }
 0x132   :  { %1464 = vmatprep.subr.mxu1 %v21907_v24  ;;  %1569 = vmatprep.subr.mxu0 %v1273_v37  ;;  %v1866_v37 = vsub.f32 %v22061_v28, %v1865_v54 }
 0x133   :  { %1466 = vmatpush1.msra.mxu1 %v21912_v57  ;;  %1499 = vmatprep.mubr.f32.mxu1 %v25500_v0 }
 0x134   :  { %1573 = vmatpush1.msra.mxu0 %v1279_v39  ;;  %1606 = vmatprep.mubr.f32.mxu0 %v25500_v0  ;;  %v1855_v39 = vand.u32 4294901760, %v1854_v55  ;;  %v1867_v43 = vand.u32 4294901760, %v1866_v37 }
 0x135   :  { %1503 = vmatmul.mubr.f32.vlgmr.msra.gmra.mxu1 %v21813_v45  ;;  %1608 = vmatmul.mubr.f32.vlgmr.msra.gmra.mxu0 %v21798_v32 }
 0x136   :  { %1646 = vmatprep.subr.mxu1 %v21868_v3  ;;  %1733 = vmatprep.subr.mxu0 %v21998_v15  ;;  %v22033_v3 = vsub.f32 %v493_v17, %v22009_v59  ;;  %v22140_v17 = vsub.f32 %v504_v49, %v22126_v2 }
 0x137   :  { %1648 = vmatpush1.msra.mxu1 %v21873_v4  ;;  %1735 = vmatpush1.msra.mxu0 %v22001_v16  ;;  %v22040_v4 = vand.u32 4294901760, %v477_v9 }
 0x138   :  { %1650 = vmatprep.subr.mxu1 %v21876_v51  ;;  %1737 = vmatprep.subr.mxu0 %v22004_v18  ;;  %v1841_v51 = vand.u32 4294901760, %v22024_v10  ;;  %v1847_v27 = vand.u32 4294901760, %v22033_v3 }
 0x139   :  { %1508 = vmatprep.mubr.f32.mxu1 %v25500_v0  ;;  %1613 = vmatprep.mubr.f32.mxu0 %v25500_v0  ;;  %v22066_v48 = vsub.f32 %v477_v9, %v22040_v4  ;;  %v22156_v9 = vand.u32 4294901760, %v487_v14 }
 0x13a   :  { %1652 = vmatpush1.msra.mxu1 %v21881_v62  ;;  %1739 = vmatpush1.msra.mxu0 %v22009_v59  ;;  %v1830_v62 = vsub.f32 %v22012_v50, %v1829_v56  ;;  %v1842_v29 = vsub.f32 %v22024_v10, %v1841_v51 }
 0x13b   :  { %1512 = vmatmul.mubr.f32.gmra.mxu1 %v21821_v52  ;;  %1615 = vmatmul.mubr.f32.gmra.mxu0 %v21806_v41  ;;  %v1871_v33 = vand.u32 4294901760, %v22066_v48 }
 0x13c   :  { %1654 = vmatprep.subr.mxu1 %v21893_v20  ;;  %1741 = vmatprep.subr.mxu0 %v22021_v1  ;;  %v1836_v20 = vsub.f32 %v22017_v61, %v1835_v25  ;;  %v1831_v31 = vand.u32 4294901760, %v1830_v62  ;;  %v1843_v34 = vand.u32 4294901760, %v1842_v29 }
 0x13d   :  { %1656 = vmatpush1.msra.mxu1 %v21900_v23  ;;  %1743 = vmatpush1.msra.mxu0 %v22028_v21  ;;  %v1859_v23 = vand.u32 4294901760, %v22052_v47  ;;  %v1872_v38 = vsub.f32 %v22066_v48, %v1871_v33 }
 0x13e   :  { %1658 = vmatprep.subr.mxu1 %v21907_v24  ;;  %1745 = vmatprep.subr.mxu0 %v22035_v22  ;;  %v1848_v24 = vsub.f32 %v22033_v3, %v1847_v27 }
 0x13f   :  { %1660 = vmatpush1.msra.mxu1 %v21912_v57  ;;  %1693 = vmatprep.mubr.f32.mxu1 %v25500_v0  ;;  %v1837_v57 = vand.u32 4294901760, %v1836_v20  ;;  %v1860_v35 = vsub.f32 %v22052_v47, %v1859_v23  ;;  %v1873_v44 = vand.u32 4294901760, %v1872_v38 }
 0x140   :  { %1747 = vmatpush1.msra.mxu0 %v22040_v4  ;;  %1780 = vmatprep.mubr.f32.mxu0 %v25500_v0  ;;  %v1849_v36 = vand.u32 4294901760, %v1848_v24 }
 0x141   :  { %1695 = vmatmul.mubr.f32.vlgmr.msra.gmra.mxu1 %v21798_v32  ;;  %1786 = vmatmul.mubr.f32.vlgmr.msra.gmra.mxu0 %v21827_v6  ;;  %v1861_v42 = vand.u32 4294901760, %v1860_v35 }
 0x142   :  { %1832 = vmatprep.subr.mxu1 %v1831_v31  ;;  %1948 = vmatprep.subr.mxu0 %v22012_v50  ;;  %v22149_v50 = vand.u32 4294901760, %v488_v11 }
 0x143   :  { %1838 = vmatpush1.msra.mxu1 %v1837_v57  ;;  %1951 = vmatpush1.msra.mxu0 %v22017_v61  ;;  %v479_v61 = vld [vmem:[#allocation2 + $0x30] sm:$0xff] }
 0x144   :  { %1844 = vmatprep.subr.mxu1 %v1843_v34  ;;  %1954 = vmatprep.subr.mxu0 %v22024_v10  ;;  %v22163_v10 = vand.u32 4294901760, %v480_v60 }
 0x145   :  { %1700 = vmatprep.mubr.f32.mxu1 %v25500_v0  ;;  %1791 = vmatprep.mubr.f32.mxu0 %v25500_v0 }
 0x146   :  { %1850 = vmatpush1.msra.mxu1 %v1849_v36  ;;  %1957 = vmatpush1.msra.mxu0 %v22033_v3  ;;  %v2421_v3 = vand.u32 4294901760, %v22140_v17 }
 0x147   :  { %1702 = vmatmul.mubr.f32.gmra.mxu1 %v21806_v41  ;;  %1797 = vmatmul.mubr.f32.gmra.mxu0 %v21837_v12 }
 0x148   :  { %1856 = vmatprep.subr.mxu1 %v1855_v39  ;;  %1960 = vmatprep.subr.mxu0 %v22047_v26 }
 0x149   :  { %1862 = vmatpush1.msra.mxu1 %v1861_v42  ;;  %1963 = vmatpush1.msra.mxu0 %v22052_v47  ;;  %v22189_v47 = vsub.f32 %v480_v60, %v22163_v10 }
 0x14a   :  { %1868 = vmatprep.subr.mxu1 %v1867_v43  ;;  %1966 = vmatprep.subr.mxu0 %v22061_v28 }
 0x14b   :  { %1874 = vmatpush1.msra.mxu1 %v1873_v44  ;;  %1907 = vmatprep.mubr.f32.mxu1 %v25500_v0  ;;  %v2457_v20 = vand.u32 4294901760, %v22189_v47 }
 0x14c   :  { %1969 = vmatpush1.msra.mxu0 %v22066_v48  ;;  %2002 = vmatprep.mubr.f32.mxu0 %v25500_v0 }
 0x14d   :  { %1909 = vmatmul.mubr.f32.vlgmr.msra.gmra.mxu1 %v21798_v32  ;;  %2005 = vmatmul.mubr.f32.vlgmr.msra.gmra.mxu0 %v21804_v40 }
 0x14e   :  { %2044 = vmatprep.subr.mxu1 %v21998_v15  ;;  %2137 = vmatprep.subr.mxu0 %v1829_v56  ;;  %v2427_v56 = vand.u32 4294901760, %v22145_v19 }
 0x14f   :  { %2046 = vmatpush1.msra.mxu1 %v22001_v16  ;;  %2141 = vmatpush1.msra.mxu0 %v1835_v25  ;;  %v22175_v25 = vsub.f32 %v488_v11, %v22149_v50  ;;  %v22281_v38 = vpop.permute.xlu1 %509  ;;  %v22287_v11 = vshrl.u32 %v2910_v58, 7 }
 0x150   :  { %2048 = vmatprep.subr.mxu1 %v22004_v18  ;;  %2145 = vmatprep.subr.mxu0 %v1841_v51  ;;  %v22180_v51 = vsub.f32 %v487_v14, %v22156_v9 }
 0x151   :  { %1914 = vmatprep.mubr.f32.mxu1 %v25500_v0  ;;  %2010 = vmatprep.mubr.f32.mxu0 %v25500_v0  ;;  %v2445_v28 = vand.u32 4294901760, %v22175_v25  ;;  %25507 = vst [vmem:[#allocation14_spill] sm:$0xff] %v22287_v11 }
 0x152   :  { %2050 = vmatpush1.msra.mxu1 %v22009_v59  ;;  %2149 = vmatpush1.msra.mxu0 %v1847_v27 }
 0x153   :  { %1916 = vmatmul.mubr.f32.gmra.mxu1 %v21806_v41  ;;  %2013 = vmatmul.mubr.f32.gmra.mxu0 %v21816_v46 }
 0x154   :  { %2052 = vmatprep.subr.mxu1 %v22021_v1  ;;  %2153 = vmatprep.subr.mxu0 %v1853_v30 }
 0x155   :  { %2054 = vmatpush1.msra.mxu1 %v22028_v21  ;;  %2157 = vmatpush1.msra.mxu0 %v1859_v23  ;;  %v2446_v23 = vsub.f32 %v22175_v25, %v2445_v28 }
 0x156   :  { %2056 = vmatprep.subr.mxu1 %v22035_v22  ;;  %2161 = vmatprep.subr.mxu0 %v1865_v54 }
 0x157   :  { %2058 = vmatpush1.msra.mxu1 %v22040_v4  ;;  %2091 = vmatprep.mubr.f32.mxu1 %v25500_v0  ;;  %v2447_v57 = vand.u32 4294901760, %v2446_v23 }
 0x158   :  { %2165 = vmatpush1.msra.mxu0 %v1871_v33  ;;  %2198 = vmatprep.mubr.f32.mxu0 %v25500_v0 }
 0x159   :  { %2095 = vmatmul.mubr.f32.vlgmr.msra.gmra.mxu1 %v21813_v45  ;;  %2200 = vmatmul.mubr.f32.vlgmr.msra.gmra.mxu0 %v21798_v32  ;;  %v22284_v49 = vpop.permute.xlu0 %514 }
 0x15a   :  { %2238 = vmatprep.subr.mxu1 %v21998_v15  ;;  %2325 = vmatprep.subr.mxu0 %v22126_v2  ;;  %v22161_v15 = vsub.f32 %v495_v7, %v22137_v13 }
 0x15b   :  { %2240 = vmatpush1.msra.mxu1 %v22001_v16  ;;  %2327 = vmatpush1.msra.mxu0 %v22129_v5  ;;  %v22168_v16 = vand.u32 4294901760, %v479_v61 }
 0x15c   :  { %2242 = vmatprep.subr.mxu1 %v22004_v18  ;;  %2329 = vmatprep.subr.mxu0 %v22132_v8  ;;  %v2433_v18 = vand.u32 4294901760, %v22152_v63  ;;  %v2439_v26 = vand.u32 4294901760, %v22161_v15 }
 0x15d   :  { %2100 = vmatprep.mubr.f32.mxu1 %v25500_v0  ;;  %2205 = vmatprep.mubr.f32.mxu0 %v25500_v0  ;;  %v22194_v62 = vsub.f32 %v479_v61, %v22168_v16 }
 0x15e   :  { %2244 = vmatpush1.msra.mxu1 %v22009_v59  ;;  %2331 = vmatpush1.msra.mxu0 %v22137_v13  ;;  %v2422_v59 = vsub.f32 %v22140_v17, %v2421_v3  ;;  %v2434_v27 = vsub.f32 %v22152_v63, %v2433_v18 }
 0x15f   :  { %2104 = vmatmul.mubr.f32.gmra.mxu1 %v21821_v52  ;;  %2207 = vmatmul.mubr.f32.gmra.mxu0 %v21806_v41  ;;  %v2463_v29 = vand.u32 4294901760, %v22194_v62 }
 0x160   :  { %2246 = vmatprep.subr.mxu1 %v22021_v1  ;;  %2333 = vmatprep.subr.mxu0 %v22149_v50  ;;  %v2428_v1 = vsub.f32 %v22145_v19, %v2427_v56  ;;  %v2423_v48 = vand.u32 4294901760, %v2422_v59  ;;  %v2435_v30 = vand.u32 4294901760, %v2434_v27 }
 0x161   :  { %2248 = vmatpush1.msra.mxu1 %v22028_v21  ;;  %2335 = vmatpush1.msra.mxu0 %v22156_v9  ;;  %v2451_v21 = vand.u32 4294901760, %v22180_v51  ;;  %v2464_v54 = vsub.f32 %v22194_v62, %v2463_v29 }
 0x162   :  { %2250 = vmatprep.subr.mxu1 %v22035_v22  ;;  %2337 = vmatprep.subr.mxu0 %v22163_v10  ;;  %v2440_v22 = vsub.f32 %v22161_v15, %v2439_v26 }
 0x163   :  { %2252 = vmatpush1.msra.mxu1 %v22040_v4  ;;  %2285 = vmatprep.mubr.f32.mxu1 %v25500_v0  ;;  %v2429_v4 = vand.u32 4294901760, %v2428_v1  ;;  %v2452_v31 = vsub.f32 %v22180_v51, %v2451_v21  ;;  %v2465_v55 = vand.u32 4294901760, %v2464_v54 }
 0x164   :  { %2339 = vmatpush1.msra.mxu0 %v22168_v16  ;;  %2372 = vmatprep.mubr.f32.mxu0 %v25500_v0  ;;  %v2441_v24 = vand.u32 4294901760, %v2440_v22 }
 0x165   :  { %2287 = vmatmul.mubr.f32.vlgmr.msra.gmra.mxu1 %v21798_v32  ;;  %2378 = vmatmul.mubr.f32.vlgmr.msra.gmra.mxu0 %v21827_v6  ;;  %v2458_v6 = vsub.f32 %v22189_v47, %v2457_v20  ;;  %v2453_v33 = vand.u32 4294901760, %v2452_v31 }
 0x166   :  { %2424 = vmatprep.subr.mxu1 %v2423_v48  ;;  %2540 = vmatprep.subr.mxu0 %v22140_v17 }
 0x167   :  { %2430 = vmatpush1.msra.mxu1 %v2429_v4  ;;  %2543 = vmatpush1.msra.mxu0 %v22145_v19  ;;  %v2459_v34 = vand.u32 4294901760, %v2458_v6  ;;  %v2916_v6 = vsub.s32 1, %v22287_v11 }
 0x168   :  { %2436 = vmatprep.subr.mxu1 %v2435_v30  ;;  %2546 = vmatprep.subr.mxu0 %v22152_v63 }
 0x169   :  { %2292 = vmatprep.mubr.f32.mxu1 %v25500_v0  ;;  %2383 = vmatprep.mubr.f32.mxu0 %v25500_v0 }
 0x16a   :  { %2442 = vmatpush1.msra.mxu1 %v2441_v24  ;;  %2549 = vmatpush1.msra.mxu0 %v22161_v15 }
 0x16b   :  { %2294 = vmatmul.mubr.f32.gmra.mxu1 %v21806_v41  ;;  %2389 = vmatmul.mubr.f32.gmra.mxu0 %v21837_v12 }
 0x16c   :  { %2448 = vmatprep.subr.mxu1 %v2447_v57  ;;  %2552 = vmatprep.subr.mxu0 %v22175_v25 }
 0x16d   :  { %2454 = vmatpush1.msra.mxu1 %v2453_v33  ;;  %2555 = vmatpush1.msra.mxu0 %v22180_v51 }
 0x16e   :  { %2460 = vmatprep.subr.mxu1 %v2459_v34  ;;  %2558 = vmatprep.subr.mxu0 %v22189_v47 }
 0x16f   :  { %2466 = vmatpush1.msra.mxu1 %v2465_v55  ;;  %2499 = vmatprep.mubr.f32.mxu1 %v25500_v0 }
 0x170   :  { %2561 = vmatpush1.msra.mxu0 %v22194_v62  ;;  %2501 = vmatmul.mubr.f32.vlgmr.msra.gmra.mxu1 %v21798_v32 }
 0x171   :  { %2594 = vmatprep.mubr.f32.mxu0 %v25500_v0  ;;  %2636 = vmatprep.subr.mxu1 %v22126_v2 }
 0x172   :  { %2729 = vmatprep.subr.mxu0 %v2421_v3  ;;  %2597 = vmatmul.mubr.f32.vlgmr.msra.gmra.mxu0 %v21804_v40 }
 0x173   :  { %2638 = vmatpush1.msra.mxu1 %v22129_v5  ;;  %2733 = vmatpush1.msra.mxu0 %v2427_v56 }
 0x174   :  { %2640 = vmatprep.subr.mxu1 %v22132_v8  ;;  %2737 = vmatprep.subr.mxu0 %v2433_v18 }
 0x175   :  { %2506 = vmatprep.mubr.f32.mxu1 %v25500_v0  ;;  %2642 = vmatpush1.msra.mxu1 %v22137_v13 }
 0x176   :  { %2741 = vmatpush1.msra.mxu0 %v2439_v26  ;;  %2508 = vmatmul.mubr.f32.gmra.mxu1 %v21806_v41 }
 0x177   :  { %2644 = vmatprep.subr.mxu1 %v22149_v50  ;;  %2745 = vmatprep.subr.mxu0 %v2445_v28 }
 0x178   :  { %2602 = vmatprep.mubr.f32.mxu0 %v25500_v0  ;;  %2646 = vmatpush1.msra.mxu1 %v22156_v9 }
 0x179   :  { %2749 = vmatpush1.msra.mxu0 %v2451_v21  ;;  %2648 = vmatprep.subr.mxu1 %v22163_v10 }
 0x17a   :  { %2605 = vmatmul.mubr.f32.gmra.mxu0 %v21816_v46  ;;  %2753 = vmatprep.subr.mxu0 %v2457_v20 }
 0x17b   :  { %2650 = vmatpush1.msra.mxu1 %v22168_v16  ;;  %2683 = vmatprep.mubr.f32.mxu1 %v25500_v0 }
 0x17c   :  { %2757 = vmatpush1.msra.mxu0 %v2463_v29  ;;  %2687 = vmatmul.mubr.f32.vlgmr.msra.gmra.mxu1 %v21813_v45 }
 0x17d   :  { %2830 = vmatprep.subr.mxu1 %v22126_v2  ;;  %2790 = vmatprep.mubr.f32.mxu0 %v25500_v0 }
 0x17e   :  { %2832 = vmatpush1.msra.mxu1 %v22129_v5  ;;  %2792 = vmatmul.mubr.f32.vlgmr.msra.gmra.mxu0 %v21798_v32 }
 0x17f   :  { %2834 = vmatprep.subr.mxu1 %v22132_v8  ;;  %2692 = vmatprep.mubr.f32.mxu1 %v25500_v0 }
 0x180   :  { %2836 = vmatpush1.msra.mxu1 %v22137_v13  ;;  %2797 = vmatprep.mubr.f32.mxu0 %v25500_v0 }
 0x181   :  { %2696 = vmatmul.mubr.f32.gmra.mxu1 %v21821_v52  ;;  %2838 = vmatprep.subr.mxu1 %v22149_v50 }
 0x182   :  { %2840 = vmatpush1.msra.mxu1 %v22156_v9  ;;  %2799 = vmatmul.mubr.f32.gmra.mxu0 %v21806_v41 }
 0x183   :  { %2842 = vmatprep.subr.mxu1 %v22163_v10  ;;  %2877 = vmatprep.mubr.f32.mxu1 %v25500_v0  ;;  %v2912_v10 = vsub.s32 0, %v22287_v11 }
 0x184   :  { %2844 = vmatpush1.msra.mxu1 %v22168_v16  ;;  %3166 = vmatprep.mubr.f32.mxu0 %v25500_v0  ;;  %v22295_v16 = vld [vmem:[%s25496_s4] sm:$0xff]  ;;  %s21613_s4 = smov 20  }
 0x185   :  { %2879 = vmatmul.mubr.f32.vlgmr.msra.gmra.mxu1 %v21798_v32  ;;  %v2913_v59 = vrot.slane %v22295_v16, %v2912_v10 }
 0x186   :  { %2884 = vmatprep.mubr.f32.mxu1 %v25500_v0 }
 0x189   :  { %2886 = vmatmul.mubr.f32.gmra.mxu1 %v21806_v41 }
 0x18a   :  { %3262 = vmatprep.mubr.f32.mxu1 %v25500_v0 }
 0x1bd   :  { %v603_v40 = vpop.f32.mrf.mxu0 }
 0x1be   :  { %v604_v44 = vadd.f32 %v603_v40, %v22281_v38 }
 0x1bf   :  { %v605_v45 = vpop.f32.mrf.mxu0 }
 0x1c0   :  { %v606_v14 = vadd.f32 %v605_v45, %v22281_v38  ;;  %v2917_v45 = vrot.slane %v22295_v16, %v2916_v6 }
 0x1c1   :  { %v614_v46 = vpop.f32.mrf.mxu0 }
 0x1c2   :  { %v615_v8 = vadd.f32 %v614_v46, %v22284_v49 }
 0x1c3   :  { %v616_v52 = vpop.f32.mrf.mxu0 }
 0x1c4   :  { %v617_v61 = vadd.f32 %v616_v52, %v22284_v49 }
 0x1c5   :  { %v726_v12 = vpop.f32.mrf.mxu1  ;;  %v822_v35 = vpop.f32.mrf.mxu0 }
 0x1c6   :  { %v727_v2 = vadd.f32 %v726_v12, %v604_v44 }
 0x1c7   :  { %v728_v36 = vpop.f32.mrf.mxu1  ;;  %v824_v37 = vpop.f32.mrf.mxu0 }
 0x1c8   :  { %v823_v13 = vadd.f32 %v822_v35, %v727_v2  ;;  %v729_v60 = vadd.f32 %v728_v36, %v606_v14 }
 0x1ca   :  { %v825_v56 = vadd.f32 %v824_v37, %v729_v60 }
 0x1cb   :  { %v733_v39 = vpop.f32.mrf.mxu1  ;;  %v830_v32 = vpop.f32.mrf.mxu0 }
 0x1cc   :  { %v734_v50 = vadd.f32 %v733_v39, %v615_v8 }
 0x1cd   :  { %v735_v42 = vpop.f32.mrf.mxu1  ;;  %v832_v43 = vpop.f32.mrf.mxu0 }
 0x1ce   :  { %v736_v3 = vadd.f32 %v735_v42, %v617_v61  ;;  %v831_v18 = vadd.f32 %v830_v32, %v734_v50 }
 0x1d0   :  { %v833_v47 = vadd.f32 %v832_v43, %v736_v3 }
 0x1d1   :  { %v912_v41 = vpop.f32.mrf.mxu1  ;;  %v1017_v53 = vpop.f32.mrf.mxu0 }
 0x1d2   :  { %v913_v63 = vadd.f32 %v912_v41, %v823_v13 }
 0x1d3   :  { %v914_v5 = vpop.f32.mrf.mxu1  ;;  %v1019_v7 = vpop.f32.mrf.mxu0 }
 0x1d4   :  { %v1018_v25 = vadd.f32 %v1017_v53, %v913_v63  ;;  %v915_v62 = vadd.f32 %v914_v5, %v825_v56 }
 0x1d6   :  { %v1020_v20 = vadd.f32 %v1019_v7, %v915_v62 }
 0x1d7   :  { %v921_v17 = vpop.f32.mrf.mxu1  ;;  %v1024_v19 = vpop.f32.mrf.mxu0 }
 0x1d8   :  { %v922_v1 = vadd.f32 %v921_v17, %v831_v18 }
 0x1d9   :  { %v923_v9 = vpop.f32.mrf.mxu1  ;;  %v1026_v15 = vpop.f32.mrf.mxu0 }
 0x1da   :  { %v924_v48 = vadd.f32 %v923_v9, %v833_v47  ;;  %v1025_v4 = vadd.f32 %v1024_v19, %v922_v1 }
 0x1dc   :  { %v1027_v31 = vadd.f32 %v1026_v15, %v924_v48  ;;  %v2920_v48 = vsub.s32 2, %v22287_v11 }
 0x1dd   :  { %v1104_v51 = vpop.f32.mrf.mxu1  ;;  %v1195_v26 = vpop.f32.mrf.mxu0 }
 0x1de   :  { %v1105_v27 = vadd.f32 %v1104_v51, %v1018_v25  ;;  %v1196_v7 = vadd.f32 %v1195_v26, %v22281_v38 }
 0x1df   :  { %v1106_v28 = vpop.f32.mrf.mxu1  ;;  %v1197_v21 = vpop.f32.mrf.mxu0 }
 0x1e0   :  { %v2892_v22 = vmax.f32 %v1105_v27, 0.0  ;;  %v1107_v24 = vadd.f32 %v1106_v28, %v1020_v20  ;;  %v1198_v17 = vadd.f32 %v1197_v21, %v22281_v38 }
 0x1e2   :  { %v22298_v29 = vmul.f32 %v2913_v59, %v2892_v22  ;;  %v2893_v40 = vmax.f32 %v1107_v24, 0.0  ;;  %v2924_v22 = vsub.s32 3, %v22287_v11 }
 0x1e3   :  { %v1111_v30 = vpop.f32.mrf.mxu1  ;;  %v1206_v23 = vpop.f32.mrf.mxu0 }
 0x1e4   :  { %v1112_v54 = vadd.f32 %v1111_v30, %v1025_v4  ;;  %3027 = vrot.lane.b32.xlu0 %v22298_v29, %s21612_s2  ;;  %v22310_v32 = vmul.f32 %v2917_v45, %v2893_v40  ;;  %v1207_v8 = vadd.f32 %v1206_v23, %v22284_v49 }
 0x1e5   :  { %v1113_v57 = vpop.f32.mrf.mxu1  ;;  %v1208_v33 = vpop.f32.mrf.mxu0 }
 0x1e6   :  { %v2900_v34 = vmax.f32 %v1112_v54, 0.0  ;;  %v1114_v55 = vadd.f32 %v1113_v57, %v1027_v31  ;;  %v1209_v19 = vadd.f32 %v1208_v33, %v22284_v49  ;;  %v2921_v57 = vrot.slane %v22295_v16, %v2920_v48 }
 0x1e8   :  { %v22304_v46 = vmul.f32 %v2913_v59, %v2900_v34  ;;  %v2901_v52 = vmax.f32 %v1114_v55, 0.0 }
 0x1e9   :  { %v1318_v12 = vpop.f32.mrf.mxu1  ;;  %v1414_v35 = vpop.f32.mrf.mxu0 }
 0x1ea   :  { %v22306_v36 = vmul.f32 %v2917_v45, %v2901_v52  ;;  %3045 = vrot.lane.b32.xlu1 %v22304_v46, %s21612_s2  ;;  %v1319_v60 = vadd.f32 %v1318_v12, %v1196_v7  ;;  %v2925_v45 = vrot.slane %v22295_v16, %v2924_v22 }
 0x1eb   :  { %v1320_v37 = vpop.f32.mrf.mxu1  ;;  %v1416_v39 = vpop.f32.mrf.mxu0 }
 0x1ec   :  { %3047 = vrot.lane.b32.xlu0 %v22306_v36, %s21612_s2  ;;  %v1321_v9 = vadd.f32 %v1320_v37, %v1198_v17  ;;  %v1415_v10 = vadd.f32 %v1414_v35, %v1319_v60 }
 0x1ee   :  { %3029 = vrot.lane.b32.xlu1 %v22310_v32, %s21612_s2  ;;  %v1417_v25 = vadd.f32 %v1416_v39, %v1321_v9 }
 0x1ef   :  { %v1325_v42 = vpop.f32.mrf.mxu1  ;;  %v1422_v43 = vpop.f32.mrf.mxu0 }
 0x1f0   :  { %3025 = vrot.lane.b32.xlu0 %v25500_v0, %s21612_s2  ;;  %v1326_v50 = vadd.f32 %v1325_v42, %v1207_v8 }
 0x1f1   :  { %v1327_v44 = vpop.f32.mrf.mxu1  ;;  %v1424_v41 = vpop.f32.mrf.mxu0 }
 0x1f2   :  { %v1328_v15 = vadd.f32 %v1327_v44, %v1209_v19  ;;  %v1423_v3 = vadd.f32 %v1422_v43, %v1326_v50 }
 0x1f4   :  { %v1425_v51 = vadd.f32 %v1424_v41, %v1328_v15 }
 0x1f5   :  { %v1504_v53 = vpop.f32.mrf.mxu1  ;;  %v1609_v58 = vpop.f32.mrf.mxu0 }
 0x1f6   :  { %v1505_v59 = vadd.f32 %v1504_v53, %v1415_v10 }
 0x1f7   :  { %v1506_v2 = vpop.f32.mrf.mxu1  ;;  %v1611_v5 = vpop.f32.mrf.mxu0 }
 0x1f8   :  { %v1507_v1 = vadd.f32 %v1506_v2, %v1417_v25  ;;  %v1610_v28 = vadd.f32 %v1609_v58, %v1505_v59 }
 0x1fa   :  { %v1612_v30 = vadd.f32 %v1611_v5, %v1507_v1 }
 0x1fb   :  { %v1513_v13 = vpop.f32.mrf.mxu1  ;;  %v1616_v14 = vpop.f32.mrf.mxu0 }
 0x1fc   :  { %v1514_v26 = vadd.f32 %v1513_v13, %v1423_v3 }
 0x1fd   :  { %v1515_v61 = vpop.f32.mrf.mxu1  ;;  %v1618_v63 = vpop.f32.mrf.mxu0 }
 0x1fe   :  { %v1516_v27 = vadd.f32 %v1515_v61, %v1425_v51  ;;  %v1617_v21 = vadd.f32 %v1616_v14, %v1514_v26 }
 0x200   :  { %v1619_v23 = vadd.f32 %v1618_v63, %v1516_v27 }
 0x201   :  { %v1696_v56 = vpop.f32.mrf.mxu1  ;;  %v1787_v18 = vpop.f32.mrf.mxu0 }
 0x202   :  { %v1697_v31 = vadd.f32 %v1696_v56, %v1610_v28  ;;  %v1788_v19 = vadd.f32 %v1787_v18, %v22281_v38 }
 0x203   :  { %v1698_v47 = vpop.f32.mrf.mxu1  ;;  %v1789_v62 = vpop.f32.mrf.mxu0 }
 0x204   :  { %v1699_v33 = vadd.f32 %v1698_v47, %v1612_v30  ;;  %v2894_v40 = vmax.f32 %v1697_v31, 0.0  ;;  %v1790_v63 = vadd.f32 %v1789_v62, %v22281_v38  ;;  %v2932_v31 = vsub.s32 5, %v22287_v11 }
 0x206   :  { %v2895_v39 = vmax.f32 %v1699_v33, 0.0  ;;  %v22332_v41 = vmul.f32 %v2921_v57, %v2894_v40 }
 0x207   :  { %v1703_v20 = vpop.f32.mrf.mxu1  ;;  %v1798_v4 = vpop.f32.mrf.mxu0 }
 0x208   :  { %v1704_v24 = vadd.f32 %v1703_v20, %v1617_v21  ;;  %v22336_v53 = vmul.f32 %v2925_v45, %v2895_v39  ;;  %v1799_v60 = vadd.f32 %v1798_v4, %v22284_v49  ;;  %v2933_v39 = vrot.slane %v22295_v16, %v2932_v31 }
 0x209   :  { %v1705_v6 = vpop.f32.mrf.mxu1  ;;  %v1800_v54 = vpop.f32.mrf.mxu0 }
 0x20a   :  { %v2902_v34 = vmax.f32 %v1704_v24, 0.0  ;;  %v1706_v55 = vadd.f32 %v1705_v6, %v1619_v23  ;;  %v1801_v9 = vadd.f32 %v1800_v54, %v22284_v49  ;;  %v2928_v23 = vsub.s32 4, %v22287_v11 }
 0x20c   :  { %v22326_v52 = vmul.f32 %v2921_v57, %v2902_v34  ;;  %v2903_v12 = vmax.f32 %v1706_v55, 0.0  ;;  %v2929_v40 = vrot.slane %v22295_v16, %v2928_v23 }
 0x20d   :  { %v1910_v35 = vpop.f32.mrf.mxu1  ;;  %v2006_v37 = vpop.f32.mrf.mxu0 }
 0x20e   :  { %v22328_v42 = vmul.f32 %v2925_v45, %v2903_v12  ;;  %3049 = vrot.lane.b32.xlu1 %v22326_v52, %s21612_s2  ;;  %v1911_v15 = vadd.f32 %v1910_v35, %v1788_v19 }
 0x20f   :  { %v1912_v43 = vpop.f32.mrf.mxu1  ;;  %v2008_v44 = vpop.f32.mrf.mxu0 }
 0x210   :  { %3051 = vrot.lane.b32.xlu0 %v22328_v42, %s21612_s2  ;;  %v1913_v25 = vadd.f32 %v1912_v43, %v1790_v63  ;;  %v2007_v59 = vadd.f32 %v2006_v37, %v1911_v15 }
 0x212   :  { %3031 = vrot.lane.b32.xlu1 %v22332_v41, %s21612_s2  ;;  %v2009_v27 = vadd.f32 %v2008_v44, %v1913_v25 }
 0x213   :  { %v1917_v58 = vpop.f32.mrf.mxu1  ;;  %v2014_v2 = vpop.f32.mrf.mxu0 }
 0x214   :  { %3033 = vrot.lane.b32.xlu0 %v22336_v53, %s21612_s2  ;;  %v1918_v10 = vadd.f32 %v1917_v58, %v1799_v60 }
 0x215   :  { %v1919_v5 = vpop.f32.mrf.mxu1  ;;  %v2016_v7 = vpop.f32.mrf.mxu0 }
 0x216   :  { %v1920_v51 = vadd.f32 %v1919_v5, %v1801_v9  ;;  %v2015_v26 = vadd.f32 %v2014_v2, %v1918_v10 }
 0x218   :  { %v2017_v18 = vadd.f32 %v2016_v7, %v1920_v51 }
 0x219   :  { %v2096_v8 = vpop.f32.mrf.mxu1  ;;  %v2201_v13 = vpop.f32.mrf.mxu0 }
 0x21a   :  { %v2097_v28 = vadd.f32 %v2096_v8, %v2007_v59 }
 0x21b   :  { %v2098_v14 = vpop.f32.mrf.mxu1  ;;  %v2203_v17 = vpop.f32.mrf.mxu0 }
 0x21c   :  { %v2099_v22 = vadd.f32 %v2098_v14, %v2009_v27  ;;  %v2202_v4 = vadd.f32 %v2201_v13, %v2097_v28 }
 0x21e   :  { %v2204_v6 = vadd.f32 %v2203_v17, %v2099_v22 }
 0x21f   :  { %v2105_v50 = vpop.f32.mrf.mxu1  ;;  %v2208_v61 = vpop.f32.mrf.mxu0 }
 0x220   :  { %v2106_v21 = vadd.f32 %v2105_v50, %v2015_v26 }
 0x221   :  { %v2107_v3 = vpop.f32.mrf.mxu1  ;;  %v2210_v56 = vpop.f32.mrf.mxu0 }
 0x222   :  { %v2108_v20 = vadd.f32 %v2107_v3, %v2017_v18  ;;  %v2209_v30 = vadd.f32 %v2208_v61, %v2106_v21 }
 0x224   :  { %v2211_v54 = vadd.f32 %v2210_v56, %v2108_v20 }
 0x225   :  { %v2288_v47 = vpop.f32.mrf.mxu1  ;;  %v2379_v1 = vpop.f32.mrf.mxu0 }
 0x226   :  { %v2289_v57 = vadd.f32 %v2288_v47, %v2202_v4  ;;  %v2380_v63 = vadd.f32 %v2379_v1, %v22281_v38 }
 0x227   :  { %v2290_v48 = vpop.f32.mrf.mxu1  ;;  %v2381_v62 = vpop.f32.mrf.mxu0 }
 0x228   :  { %v2291_v45 = vadd.f32 %v2290_v48, %v2204_v6  ;;  %v2896_v37 = vmax.f32 %v2289_v57, 0.0  ;;  %v2382_v3 = vadd.f32 %v2381_v62, %v22281_v38  ;;  %v2936_v57 = vsub.s32 6, %v22287_v11 }
 0x22a   :  { %v2897_v5 = vmax.f32 %v2291_v45, 0.0  ;;  %v22356_v14 = vmul.f32 %v2929_v40, %v2896_v37  ;;  %v2937_v37 = vrot.slane %v22295_v16, %v2936_v57 }
 0x22b   :  { %v2295_v24 = vpop.f32.mrf.mxu1  ;;  %v2390_v34 = vpop.f32.mrf.mxu0 }
 0x22c   :  { %v2296_v33 = vadd.f32 %v2295_v24, %v2209_v30  ;;  %v22360_v17 = vmul.f32 %v2933_v39, %v2897_v5  ;;  %v2391_v9 = vadd.f32 %v2390_v34, %v22284_v49 }
 0x22d   :  { %v2297_v55 = vpop.f32.mrf.mxu1  ;;  %v2392_v58 = vpop.f32.mrf.mxu0 }
 0x22e   :  { %v2904_v12 = vmax.f32 %v2296_v33, 0.0  ;;  %v2298_v35 = vadd.f32 %v2297_v55, %v2211_v54  ;;  %v2393_v56 = vadd.f32 %v2392_v58, %v22284_v49  ;;  %v2940_v33 = vsub.s32 7, %v22287_v11 }
 0x230   :  { %v22350_v43 = vmul.f32 %v2929_v40, %v2904_v12  ;;  %v2905_v44 = vmax.f32 %v2298_v35, 0.0  ;;  %v2502_v2 = vpop.f32.mrf.mxu1 }
 0x231   :  { %v2503_v25 = vadd.f32 %v2502_v2, %v2380_v63  ;;  %v2988_v2 = vld [vmem:[#allocation8] sm:$0x1] }
 0x232   :  { %v22352_v7 = vmul.f32 %v2933_v39, %v2905_v44  ;;  %v2504_v8 = vpop.f32.mrf.mxu1  ;;  %v2598_v13 = vpop.f32.mrf.mxu0  ;;  %3053 = vrot.lane.b32.xlu1 %v22350_v43, %s21612_s2 }
 0x233   :  { %v2505_v47 = vadd.f32 %v2504_v8, %v2382_v3  ;;  %v2599_v21 = vadd.f32 %v2598_v13, %v2503_v25  ;;  %v2941_v8 = vrot.slane %v22295_v16, %v2940_v33  ;;  %v3044_v16 = vpop.permute.xlu1 %3043 }
 0x234   :  { %3055 = vrot.lane.b32.xlu0 %v22352_v7, %s21612_s2  ;;  %v2600_v60 = vpop.f32.mrf.mxu0 }
 0x235   :  { %v2601_v20 = vadd.f32 %v2600_v60, %v2505_v47 }
 0x236   :  { %v2509_v19 = vpop.f32.mrf.mxu1  ;;  %3035 = vrot.lane.b32.xlu1 %v22356_v14, %s21612_s2 }
 0x237   :  { %v2510_v51 = vadd.f32 %v2509_v19, %v2391_v9 }
 0x238   :  { %v2511_v50 = vpop.f32.mrf.mxu1  ;;  %3037 = vrot.lane.b32.xlu0 %v22360_v17, %s21612_s2 }
 0x239   :  { %v2512_v27 = vadd.f32 %v2511_v50, %v2393_v56 }
 0x23a   :  { %v2606_v61 = vpop.f32.mrf.mxu0 }
 0x23b   :  { %v2607_v48 = vadd.f32 %v2606_v61, %v2510_v51  ;;  %v3096_v61 = vsel %vm3094_vm0, %v2988_v2, 0 }
 0x23c   :  { %v2608_v15 = vpop.f32.mrf.mxu0  ;;  %v2688_v10 = vpop.f32.mrf.mxu1  ;;  %v22385_v9 = vand.u32 4294901760, %v3096_v61 }
 0x23d   :  { %v2609_v4 = vadd.f32 %v2608_v15, %v2512_v27  ;;  %v2689_v30 = vadd.f32 %v2688_v10, %v2599_v21 }
 0x23e   :  { %v2690_v59 = vpop.f32.mrf.mxu1  ;;  %v2793_v26 = vpop.f32.mrf.mxu0  ;;  %v22394_v10 = vsub.f32 %v3096_v61, %v22385_v9 }
 0x23f   :  { %v2691_v38 = vadd.f32 %v2690_v59, %v2601_v20  ;;  %v2794_v6 = vadd.f32 %v2793_v26, %v2689_v30 }
 0x240   :  { %v2795_v18 = vpop.f32.mrf.mxu0  ;;  %v22401_v56 = vand.u32 4294901760, %v22394_v10 }
 0x241   :  { %v2697_v28 = vpop.f32.mrf.mxu1  ;;  %v2796_v55 = vadd.f32 %v2795_v18, %v2691_v38 }
 0x242   :  { %v2800_v1 = vpop.f32.mrf.mxu0  ;;  %v2698_v23 = vadd.f32 %v2697_v28, %v2607_v48  ;;  %v3170_v27 = vsub.f32 %v22394_v10, %v22401_v56 }
 0x243   :  { %v2699_v22 = vpop.f32.mrf.mxu1 }
 0x244   :  { %v2700_v62 = vadd.f32 %v2699_v22, %v2609_v4  ;;  %v2802_v49 = vpop.f32.mrf.mxu0  ;;  %v2801_v54 = vadd.f32 %v2800_v1, %v2698_v23  ;;  %v22427_v23 = vand.u32 4294901760, %v3170_v27 }
 0x245   :  { %v2880_v31 = vpop.f32.mrf.mxu1 }
 0x246   :  { %v2803_v40 = vadd.f32 %v2802_v49, %v2700_v62  ;;  %v2881_v45 = vadd.f32 %v2880_v31, %v2794_v6 }
 0x247   :  { %v2882_v24 = vpop.f32.mrf.mxu1 }
 0x248   :  { %v2883_v39 = vadd.f32 %v2882_v24, %v2796_v55  ;;  %v2898_v5 = vmax.f32 %v2881_v45, 0.0 }
 0x249   :  { %v2887_v34 = vpop.f32.mrf.mxu1 }
 0x24a   :  { %v2888_v12 = vadd.f32 %v2887_v34, %v2801_v54  ;;  %v2899_v60 = vmax.f32 %v2883_v39, 0.0  ;;  %v22381_v63 = vmul.f32 %v2937_v37, %v2898_v5 }
 0x24b   :  { %v2889_v35 = vpop.f32.mrf.mxu1 }
 0x24c   :  { %v2906_v44 = vmax.f32 %v2888_v12, 0.0  ;;  %v2890_v58 = vadd.f32 %v2889_v35, %v2803_v40  ;;  %v22387_v15 = vmul.f32 %v2941_v8, %v2899_v60 }
 0x24e   :  { %v22374_v13 = vmul.f32 %v2937_v37, %v2906_v44  ;;  %v2907_v19 = vmax.f32 %v2890_v58, 0.0 }
 0x250   :  { %v22376_v50 = vmul.f32 %v2941_v8, %v2907_v19  ;;  %3057 = vrot.lane.b32.xlu1 %v22374_v13, %s21612_s2 }
 0x252   :  { %3059 = vrot.lane.b32.xlu0 %v22376_v50, %s21612_s2 }
 0x254   :  { %3039 = vrot.lane.b32.xlu1 %v22381_v63, %s21612_s2 }
 0x256   :  { %3041 = vrot.lane.b32.xlu0 %v22387_v15, %s21612_s2  ;;  %v3028_v3 = vpop.permute.xlu0 %3027 }
 0x258   :  { %5091 = vrot.lane.b32.xlu1 %v22304_v46, %s21613_s4 }
 0x25a   :  { %5093 = vrot.lane.b32.xlu0 %v22306_v36, %s21613_s4 }
 0x25c   :  { %5089 = vrot.lane.b32.xlu1 %v25500_v0, %s21613_s4  ;;  %v3046_v25 = vpop.permute.xlu1 %3045 }
 0x25d   :  { %v3070_v51 = vsel %vm3061_vm11, %v3044_v16, %v3046_v25 }
 0x25e   :  { %5073 = vrot.lane.b32.xlu0 %v22298_v29, %s21613_s4  ;;  %v22408_v59 = vand.u32 4294901760, %v3070_v51  ;;  %v22410_v26 = vpop.permute.xlu0 %3047 }
 0x25f   :  { %v3071_v47 = vsel %vm3061_vm11, %v3046_v25, %v22410_v26 }
 0x260   :  { %5075 = vrot.lane.b32.xlu1 %v22310_v32, %s21613_s4  ;;  %v3213_v18 = vsub.f32 %v3070_v51, %v22408_v59  ;;  %v3126_v28 = vand.u32 4294901760, %v3071_v47  ;;  %v22419_v21 = vpop.permute.xlu1 %3029 }
 0x261   :  { %v3063_v48 = vsel %vm3061_vm11, %v3028_v3, %v22419_v21 }
 0x262   :  { %5071 = vrot.lane.b32.xlu0 %v25500_v0, %s21613_s4  ;;  %v3214_v22 = vand.u32 4294901760, %v3213_v18  ;;  %v3130_v1 = vand.u32 4294901760, %v3063_v48  ;;  %3127 = vmatprep.subr.mxu0 %v3126_v28  ;;  %v3026_v20 = vpop.permute.xlu0 %3025  ;;  %v3207_v4 = vsub.f32 %v3071_v47, %v3126_v28 }
 0x263   :  { %v3062_v30 = vsel %vm3061_vm11, %v3026_v20, %v3028_v3  ;;  %3129 = vmatpush1.msra.mxu0 %v22408_v59 }
 0x264   :  { %5095 = vrot.lane.b32.xlu1 %v22326_v52, %s21613_s4  ;;  %v3132_v31 = vand.u32 4294901760, %v3062_v30  ;;  %3131 = vmatprep.subr.mxu0 %v3130_v1  ;;  %v3219_v38 = vsub.f32 %v3063_v48, %v3130_v1  ;;  %v3208_v62 = vand.u32 4294901760, %v3207_v4  ;;  %v3215_v49 = vsub.f32 %v3213_v18, %v3214_v22 }
 0x266   :  { %5097 = vrot.lane.b32.xlu0 %v22328_v42, %s21613_s4  ;;  %v3225_v24 = vsub.f32 %v3062_v30, %v3132_v31  ;;  %3133 = vmatpush1.msra.mxu0 %v3132_v31  ;;  %v3209_v6 = vsub.f32 %v3207_v4, %v3208_v62  ;;  %v3220_v54 = vand.u32 4294901760, %v3219_v38  ;;  %v3216_v55 = vand.u32 4294901760, %v3215_v49 }
 0x267   :  { %3300 = vmatprep.subr.mxu0 %v3207_v4  ;;  %3172 = vmatmul.mubr.f32.vlgmr.msra.gmra.mxu0 %v22427_v23 }
 0x268   :  { %5077 = vrot.lane.b32.xlu1 %v22332_v41, %s21613_s4  ;;  %v3226_v57 = vand.u32 4294901760, %v3225_v24  ;;  %3303 = vmatpush1.msra.mxu0 %v3213_v18  ;;  %v3210_v33 = vand.u32 4294901760, %v3209_v6  ;;  %v3221_v34 = vsub.f32 %v3219_v38, %v3220_v54 }
 0x269   :  { %3306 = vmatprep.subr.mxu0 %v3219_v38  ;;  %3342 = vmatprep.mubr.f32.mxu0 %v25500_v0 }
 0x26a   :  { %5079 = vrot.lane.b32.xlu0 %v22336_v53, %s21613_s4  ;;  %v3227_v40 = vsub.f32 %v3225_v24, %v3226_v57  ;;  %3211 = vmatprep.subr.mxu1 %v3210_v33  ;;  %v3222_v45 = vand.u32 4294901760, %v3221_v34 }
 0x26b   :  { %3309 = vmatpush1.msra.mxu0 %v3225_v24  ;;  %3217 = vmatpush1.msra.mxu1 %v3216_v55 }
 0x26c   :  { %5099 = vrot.lane.b32.xlu1 %v22350_v43, %s21613_s4  ;;  %3460 = vmatprep.subr.mxu0 %v3208_v62  ;;  %v3228_v12 = vand.u32 4294901760, %v3227_v40 }
 0x26d   :  { %3223 = vmatprep.subr.mxu1 %v3222_v45  ;;  %3345 = vmatmul.mubr.f32.vlgmr.msra.gmra.mxu0 %v22394_v10 }
 0x26e   :  { %5101 = vrot.lane.b32.xlu0 %v22352_v7, %s21613_s4  ;;  %3464 = vmatpush1.msra.mxu0 %v3214_v22 }
 0x26f   :  { %3468 = vmatprep.subr.mxu0 %v3220_v54  ;;  %3229 = vmatpush1.msra.mxu1 %v3228_v12 }
 0x270   :  { %5081 = vrot.lane.b32.xlu1 %v22356_v14, %s21613_s4  ;;  %3472 = vmatpush1.msra.mxu0 %v3226_v57 }
 0x271   :  { %3380 = vmatprep.subr.mxu1 %v3126_v28  ;;  %3264 = vmatmul.mubr.f32.vlgmr.msra.gmra.mxu1 %v22385_v9 }
 0x272   :  { %5083 = vrot.lane.b32.xlu0 %v22360_v17, %s21613_s4  ;;  %3382 = vmatpush1.msra.mxu1 %v22408_v59 }
 0x273   :  { %3384 = vmatprep.subr.mxu1 %v3130_v1  ;;  %3419 = vmatprep.mubr.f32.mxu1 %v25500_v0 }
 0x274   :  { %5103 = vrot.lane.b32.xlu1 %v22374_v13, %s21613_s4  ;;  %3386 = vmatpush1.msra.mxu1 %v3132_v31 }
 0x275   :  { %3542 = vmatprep.subr.mxu1 %v3126_v28  ;;  %3423 = vmatmul.mubr.f32.vlgmr.msra.gmra.mxu1 %v22401_v56 }
 0x276   :  { %5105 = vrot.lane.b32.xlu0 %v22376_v50, %s21613_s4  ;;  %3544 = vmatpush1.msra.mxu1 %v22408_v59 }
 0x277   :  { %3546 = vmatprep.subr.mxu1 %v3130_v1  ;;  %3505 = vmatprep.mubr.f32.mxu0 %v25500_v0 }
 0x278   :  { %5085 = vrot.lane.b32.xlu1 %v22381_v63, %s21613_s4  ;;  %3548 = vmatpush1.msra.mxu1 %v3132_v31 }
 0x279   :  { %3507 = vmatmul.mubr.f32.vlgmr.msra.gmra.mxu0 %v22385_v9  ;;  %3581 = vmatprep.mubr.f32.mxu1 %v25500_v0 }
 0x27a   :  { %5087 = vrot.lane.b32.xlu0 %v22387_v15, %s21613_s4  ;;  %3657 = vmatprep.mubr.f32.mxu0 %v25500_v0 }
 0x27b   :  { %3583 = vmatmul.mubr.f32.vlgmr.msra.gmra.mxu1 %v22385_v9 }
 0x27c   :  { %7136 = vrot.lane.b32.xlu1 %v22304_v46, %s21614_s15  ;;  %3753 = vmatprep.mubr.f32.mxu1 %v25500_v0 }
 0x27e   :  { %7138 = vrot.lane.b32.xlu0 %v22306_v36, %s21614_s15 }
 0x280   :  { %7134 = vrot.lane.b32.xlu1 %v25500_v0, %s21614_s15  ;;  %v3050_v35 = vpop.permute.xlu1 %3049 }
 0x281   :  { %v3072_v37 = vsel %vm3061_vm11, %v22410_v26, %v3050_v35 }
 0x282   :  { %7118 = vrot.lane.b32.xlu0 %v22298_v29, %s21614_s15  ;;  %v22477_v39 = vand.u32 4294901760, %v3072_v37  ;;  %v22479_v44 = vpop.permute.xlu0 %3051 }
 0x283   :  { %v3073_v58 = vsel %vm3061_vm11, %v3050_v35, %v22479_v44 }
 0x284   :  { %7120 = vrot.lane.b32.xlu1 %v22310_v32, %s21614_s15  ;;  %v3704_v2 = vsub.f32 %v3072_v37, %v22477_v39  ;;  %v3617_v5 = vand.u32 4294901760, %v3073_v58  ;;  %v3032_v8 = vpop.permute.xlu1 %3031 }
 0x285   :  { %v3064_v19 = vsel %vm3061_vm11, %v22419_v21, %v3032_v8 }
 0x286   :  { %7116 = vrot.lane.b32.xlu0 %v25500_v0, %s21614_s15  ;;  %v3705_v60 = vand.u32 4294901760, %v3704_v2  ;;  %v3623_v61 = vand.u32 4294901760, %v3064_v19  ;;  %3618 = vmatprep.subr.mxu0 %v3617_v5  ;;  %v22490_v16 = vpop.permute.xlu0 %3033  ;;  %v3698_v3 = vsub.f32 %v3073_v58, %v3617_v5 }
 0x287   :  { %v3065_v25 = vsel %vm3061_vm11, %v3032_v8, %v22490_v16  ;;  %3620 = vmatpush1.msra.mxu0 %v22477_v39 }
 0x288   :  { %7140 = vrot.lane.b32.xlu1 %v22326_v52, %s21614_s15  ;;  %v3716_v51 = vsub.f32 %v3064_v19, %v3623_v61  ;;  %v3621_v59 = vand.u32 4294901760, %v3065_v25  ;;  %v3699_v26 = vand.u32 4294901760, %v3698_v3  ;;  %v3706_v18 = vsub.f32 %v3704_v2, %v3705_v60 }
 0x28a   :  { %7142 = vrot.lane.b32.xlu0 %v22328_v42, %s21614_s15  ;;  %3622 = vmatprep.subr.mxu0 %v3621_v59  ;;  %v3700_v47 = vsub.f32 %v3698_v3, %v3699_v26  ;;  %v3710_v27 = vsub.f32 %v3065_v25, %v3621_v59  ;;  %v3717_v28 = vand.u32 4294901760, %v3716_v51  ;;  %v3707_v22 = vand.u32 4294901760, %v3706_v18 }
 0x28b   :  { %3624 = vmatpush1.msra.mxu0 %v3623_v61 }
 0x28c   :  { %7122 = vrot.lane.b32.xlu1 %v22332_v41, %s21614_s15  ;;  %3791 = vmatprep.subr.mxu0 %v3698_v3  ;;  %v3701_v21 = vand.u32 4294901760, %v3700_v47  ;;  %v3711_v48 = vand.u32 4294901760, %v3710_v27  ;;  %v3718_v20 = vsub.f32 %v3716_v51, %v3717_v28 }
 0x28d   :  { %3663 = vmatmul.mubr.f32.vlgmr.msra.gmra.mxu0 %v22427_v23 }
 0x28e   :  { %7124 = vrot.lane.b32.xlu0 %v22336_v53, %s21614_s15  ;;  %3794 = vmatpush1.msra.mxu0 %v3704_v2  ;;  %v3712_v1 = vsub.f32 %v3710_v27, %v3711_v48  ;;  %v3719_v30 = vand.u32 4294901760, %v3718_v20 }
 0x28f   :  { %3702 = vmatprep.subr.mxu1 %v3701_v21  ;;  %3797 = vmatprep.subr.mxu0 %v3710_v27 }
 0x290   :  { %7144 = vrot.lane.b32.xlu1 %v22350_v43, %s21614_s15  ;;  %3708 = vmatpush1.msra.mxu1 %v3707_v22  ;;  %v3713_v4 = vand.u32 4294901760, %v3712_v1 }
 0x291   :  { %3800 = vmatpush1.msra.mxu0 %v3716_v51  ;;  %3833 = vmatprep.mubr.f32.mxu0 %v25500_v0 }
 0x292   :  { %7146 = vrot.lane.b32.xlu0 %v22352_v7, %s21614_s15  ;;  %3951 = vmatprep.subr.mxu0 %v3699_v26 }
 0x293   :  { %3836 = vmatmul.mubr.f32.vlgmr.msra.gmra.mxu0 %v22394_v10  ;;  %3714 = vmatprep.subr.mxu1 %v3713_v4 }
 0x294   :  { %7126 = vrot.lane.b32.xlu1 %v22356_v14, %s21614_s15  ;;  %3955 = vmatpush1.msra.mxu0 %v3705_v60 }
 0x295   :  { %3959 = vmatprep.subr.mxu0 %v3711_v48  ;;  %3720 = vmatpush1.msra.mxu1 %v3719_v30  ;;  %v5070_v30 = vld [vmem:[#allocation8 + $0x1] sm:$0x1] }
 0x296   :  { %7128 = vrot.lane.b32.xlu0 %v22360_v17, %s21614_s15  ;;  %3963 = vmatpush1.msra.mxu0 %v3717_v28 }
 0x297   :  { %3871 = vmatprep.subr.mxu1 %v3617_v5  ;;  %3755 = vmatmul.mubr.f32.vlgmr.msra.gmra.mxu1 %v22385_v9 }
 0x298   :  { %7148 = vrot.lane.b32.xlu1 %v22374_v13, %s21614_s15  ;;  %3873 = vmatpush1.msra.mxu1 %v22477_v39 }
 0x299   :  { %3875 = vmatprep.subr.mxu1 %v3621_v59  ;;  %3910 = vmatprep.mubr.f32.mxu1 %v25500_v0 }
 0x29a   :  { %7150 = vrot.lane.b32.xlu0 %v22376_v50, %s21614_s15  ;;  %3877 = vmatpush1.msra.mxu1 %v3623_v61 }
 0x29b   :  { %4033 = vmatprep.subr.mxu1 %v3617_v5  ;;  %3914 = vmatmul.mubr.f32.vlgmr.msra.gmra.mxu1 %v22401_v56 }
 0x29c   :  { %7130 = vrot.lane.b32.xlu1 %v22381_v63, %s21614_s15  ;;  %4035 = vmatpush1.msra.mxu1 %v22477_v39 }
 0x29d   :  { %4037 = vmatprep.subr.mxu1 %v3621_v59  ;;  %3996 = vmatprep.mubr.f32.mxu0 %v25500_v0 }
 0x29e   :  { %7132 = vrot.lane.b32.xlu0 %v22387_v15, %s21614_s15  ;;  %4039 = vmatpush1.msra.mxu1 %v3623_v61 }
 0x29f   :  { %3998 = vmatmul.mubr.f32.vlgmr.msra.gmra.mxu0 %v22385_v9  ;;  %4072 = vmatprep.mubr.f32.mxu1 %v25500_v0 }
 0x2a0   :  { %9181 = vrot.lane.b32.xlu1 %v22304_v46, %s21615_s16  ;;  %4148 = vmatprep.mubr.f32.mxu0 %v25500_v0 }
 0x2a1   :  { %4074 = vmatmul.mubr.f32.vlgmr.msra.gmra.mxu1 %v22385_v9 }
 0x2a2   :  { %9183 = vrot.lane.b32.xlu0 %v22306_v36, %s21615_s16  ;;  %4244 = vmatprep.mubr.f32.mxu1 %v25500_v0 }
 0x2a4   :  { %9179 = vrot.lane.b32.xlu1 %v25500_v0, %s21615_s16  ;;  %v3054_v31 = vpop.permute.xlu1 %3053 }
 0x2a5   :  { %v3074_v38 = vsel %vm3061_vm11, %v22479_v44, %v3054_v31 }
 0x2a6   :  { %9163 = vrot.lane.b32.xlu0 %v22298_v29, %s21615_s16  ;;  %v22543_v62 = vand.u32 4294901760, %v3074_v38  ;;  %v22545_v49 = vpop.permute.xlu0 %3055 }
 0x2a7   :  { %v3075_v24 = vsel %vm3061_vm11, %v3054_v31, %v22545_v49 }
 0x2a8   :  { %9165 = vrot.lane.b32.xlu1 %v22310_v32, %s21615_s16  ;;  %v4195_v6 = vsub.f32 %v3074_v38, %v22543_v62  ;;  %v4108_v54 = vand.u32 4294901760, %v3075_v24  ;;  %v3036_v57 = vpop.permute.xlu1 %3035 }
 0x2a9   :  { %v3066_v33 = vsel %vm3061_vm11, %v22490_v16, %v3036_v57 }
 0x2aa   :  { %v4196_v34 = vand.u32 4294901760, %v4195_v6  ;;  %9161 = vrot.lane.b32.xlu0 %v25500_v0, %s21615_s16  ;;  %v4114_v55 = vand.u32 4294901760, %v3066_v33  ;;  %4109 = vmatprep.subr.mxu0 %v4108_v54  ;;  %v22556_v40 = vpop.permute.xlu0 %3037  ;;  %v4189_v45 = vsub.f32 %v3075_v24, %v4108_v54 }
 0x2ab   :  { %v3067_v12 = vsel %vm3061_vm11, %v3036_v57, %v22556_v40  ;;  %4111 = vmatpush1.msra.mxu0 %v22543_v62 }
 0x2ac   :  { %9185 = vrot.lane.b32.xlu1 %v22326_v52, %s21615_s16  ;;  %v4207_v35 = vsub.f32 %v3066_v33, %v4114_v55  ;;  %v4112_v37 = vand.u32 4294901760, %v3067_v12  ;;  %v4190_v39 = vand.u32 4294901760, %v4189_v45  ;;  %v4197_v2 = vsub.f32 %v4195_v6, %v4196_v34 }
 0x2ae   :  { %9187 = vrot.lane.b32.xlu0 %v22328_v42, %s21615_s16  ;;  %4113 = vmatprep.subr.mxu0 %v4112_v37  ;;  %v4191_v44 = vsub.f32 %v4189_v45, %v4190_v39  ;;  %v4201_v58 = vsub.f32 %v3067_v12, %v4112_v37  ;;  %v4208_v5 = vand.u32 4294901760, %v4207_v35  ;;  %v4198_v60 = vand.u32 4294901760, %v4197_v2 }
 0x2af   :  { %4115 = vmatpush1.msra.mxu0 %v4114_v55 }
 0x2b0   :  { %9167 = vrot.lane.b32.xlu1 %v22332_v41, %s21615_s16  ;;  %4282 = vmatprep.subr.mxu0 %v4189_v45  ;;  %v4192_v8 = vand.u32 4294901760, %v4191_v44  ;;  %v4202_v19 = vand.u32 4294901760, %v4201_v58  ;;  %v4209_v16 = vsub.f32 %v4207_v35, %v4208_v5 }
 0x2b1   :  { %4154 = vmatmul.mubr.f32.vlgmr.msra.gmra.mxu0 %v22427_v23 }
 0x2b2   :  { %9169 = vrot.lane.b32.xlu0 %v22336_v53, %s21615_s16  ;;  %4285 = vmatpush1.msra.mxu0 %v4195_v6  ;;  %v4203_v61 = vsub.f32 %v4201_v58, %v4202_v19  ;;  %v4210_v25 = vand.u32 4294901760, %v4209_v16  ;;  %v5141_v6 = vsel %vm3094_vm0, %v5070_v30, 0 }
 0x2b3   :  { %4193 = vmatprep.subr.mxu1 %v4192_v8  ;;  %4288 = vmatprep.subr.mxu0 %v4201_v58 }
 0x2b4   :  { %9189 = vrot.lane.b32.xlu1 %v22350_v43, %s21615_s16  ;;  %4199 = vmatpush1.msra.mxu1 %v4198_v60  ;;  %v4204_v3 = vand.u32 4294901760, %v4203_v61 }
 0x2b5   :  { %4291 = vmatpush1.msra.mxu0 %v4207_v35  ;;  %4324 = vmatprep.mubr.f32.mxu0 %v25500_v0  ;;  %v22636_v35 = vand.u32 4294901760, %v5141_v6 }
 0x2b6   :  { %9191 = vrot.lane.b32.xlu0 %v22352_v7, %s21615_s16  ;;  %4442 = vmatprep.subr.mxu0 %v4190_v39 }
 0x2b7   :  { %4327 = vmatmul.mubr.f32.vlgmr.msra.gmra.mxu0 %v22394_v10  ;;  %4205 = vmatprep.subr.mxu1 %v4204_v3 }
 0x2b8   :  { %9171 = vrot.lane.b32.xlu1 %v22356_v14, %s21615_s16  ;;  %4446 = vmatpush1.msra.mxu0 %v4196_v34 }
 0x2b9   :  { %4450 = vmatprep.subr.mxu0 %v4202_v19  ;;  %4211 = vmatpush1.msra.mxu1 %v4210_v25 }
 0x2ba   :  { %9173 = vrot.lane.b32.xlu0 %v22360_v17, %s21615_s16  ;;  %4454 = vmatpush1.msra.mxu0 %v4208_v5 }
 0x2bb   :  { %4362 = vmatprep.subr.mxu1 %v4108_v54  ;;  %4246 = vmatmul.mubr.f32.vlgmr.msra.gmra.mxu1 %v22385_v9 }
 0x2bc   :  { %9193 = vrot.lane.b32.xlu1 %v22374_v13, %s21615_s16  ;;  %4364 = vmatpush1.msra.mxu1 %v22543_v62 }
 0x2bd   :  { %4366 = vmatprep.subr.mxu1 %v4112_v37  ;;  %4401 = vmatprep.mubr.f32.mxu1 %v25500_v0 }
 0x2be   :  { %9195 = vrot.lane.b32.xlu0 %v22376_v50, %s21615_s16  ;;  %4368 = vmatpush1.msra.mxu1 %v4114_v55 }
 0x2bf   :  { %4524 = vmatprep.subr.mxu1 %v4108_v54  ;;  %4405 = vmatmul.mubr.f32.vlgmr.msra.gmra.mxu1 %v22401_v56 }
 0x2c0   :  { %9175 = vrot.lane.b32.xlu1 %v22381_v63, %s21615_s16  ;;  %4526 = vmatpush1.msra.mxu1 %v22543_v62 }
 0x2c1   :  { %4528 = vmatprep.subr.mxu1 %v4112_v37  ;;  %4487 = vmatprep.mubr.f32.mxu0 %v25500_v0 }
 0x2c2   :  { %v3058_v51 = vpop.permute.xlu1 %3057  ;;  %9177 = vrot.lane.b32.xlu0 %v22387_v15, %s21615_s16  ;;  %4530 = vmatpush1.msra.mxu1 %v4114_v55 }
 0x2c3   :  { %v3076_v59 = vsel %vm3061_vm11, %v22545_v49, %v3058_v51  ;;  %4489 = vmatmul.mubr.f32.vlgmr.msra.gmra.mxu0 %v22385_v9  ;;  %4563 = vmatprep.mubr.f32.mxu1 %v25500_v0 }
 0x2c4   :  { %v22598_v26 = vand.u32 4294901760, %v3076_v59  ;;  %13238 = vrot.lane.b32.xlu1 %v22306_v36, %s21604_s25  ;;  %v3060_v47 = vpop.permute.xlu0 %3059  ;;  %4639 = vmatprep.mubr.f32.mxu0 %v25500_v0 }
 0x2c5   :  { %v3077_v27 = vsel %vm3061_vm11, %v3058_v51, %v3060_v47  ;;  %4565 = vmatmul.mubr.f32.vlgmr.msra.gmra.mxu1 %v22385_v9 }
 0x2c6   :  { %v4686_v18 = vsub.f32 %v3076_v59, %v22598_v26  ;;  %v22606_v28 = vand.u32 4294901760, %v3077_v27  ;;  %v3040_v21 = vpop.permute.xlu1 %3039  ;;  %13240 = vrot.lane.b32.xlu0 %v22326_v52, %s21604_s25  ;;  %4735 = vmatprep.mubr.f32.mxu1 %v25500_v0 }
 0x2c7   :  { %v3068_v48 = vsel %vm3061_vm11, %v22556_v40, %v3040_v21 }
 0x2c8   :  { %v4687_v22 = vand.u32 4294901760, %v4686_v18  ;;  %v4680_v1 = vsub.f32 %v3077_v27, %v22606_v28  ;;  %v22614_v20 = vand.u32 4294901760, %v3068_v48  ;;  %13236 = vrot.lane.b32.xlu1 %v22304_v46, %s21604_s25  ;;  %4600 = vmatprep.subr.mxu0 %v22606_v28  ;;  %v3042_v4 = vpop.permute.xlu0 %3041 }
 0x2c9   :  { %v3069_v31 = vsel %vm3061_vm11, %v3040_v21, %v3042_v4  ;;  %4602 = vmatpush1.msra.mxu0 %v22598_v26 }
 0x2ca   :  { %v4698_v38 = vsub.f32 %v3068_v48, %v22614_v20  ;;  %v22622_v62 = vand.u32 4294901760, %v3069_v31  ;;  %v5092_v49 = vpop.permute.xlu1 %5091  ;;  %13220 = vrot.lane.b32.xlu0 %v22310_v32, %s21604_s25  ;;  %v4681_v24 = vand.u32 4294901760, %v4680_v1  ;;  %v4688_v34 = vsub.f32 %v4686_v18, %v4687_v22 }
 0x2cc   :  { %v4692_v54 = vsub.f32 %v3069_v31, %v22622_v62  ;;  %13222 = vrot.lane.b32.xlu1 %v22332_v41, %s21604_s25  ;;  %4604 = vmatprep.subr.mxu0 %v22622_v62  ;;  %v22631_v57 = vpop.permute.xlu0 %5093  ;;  %v4682_v33 = vsub.f32 %v4680_v1, %v4681_v24  ;;  %v4699_v55 = vand.u32 4294901760, %v4698_v38  ;;  %v4689_v39 = vand.u32 4294901760, %v4688_v34 }
 0x2cd   :  { %4606 = vmatpush1.msra.mxu0 %v22614_v20  ;;  %v5117_v2 = vsel %vm5107_vm12, %v5092_v49, %v22631_v57 }
 0x2ce   :  { %v5090_v40 = vpop.permute.xlu1 %5089  ;;  %13218 = vrot.lane.b32.xlu0 %v22298_v29, %s21604_s25  ;;  %4773 = vmatprep.subr.mxu0 %v4680_v1  ;;  %v4683_v45 = vand.u32 4294901760, %v4682_v33  ;;  %v4693_v12 = vand.u32 4294901760, %v4692_v54  ;;  %v4700_v58 = vsub.f32 %v4698_v38, %v4699_v55  ;;  %v22653_v61 = vand.u32 4294901760, %v5117_v2 }
 0x2cf   :  { %4645 = vmatmul.mubr.f32.vlgmr.msra.gmra.mxu0 %v22427_v23  ;;  %v22646_v23 = vsub.f32 %v5141_v6, %v22636_v35  ;;  %v5116_v19 = vsel %vm5107_vm12, %v5090_v40, %v5092_v49 }
 0x2d0   :  { %4776 = vmatpush1.msra.mxu0 %v4686_v18  ;;  %13242 = vrot.lane.b32.xlu1 %v22328_v42, %s21604_s25  ;;  %v5074_v37 = vpop.permute.xlu0 %5073  ;;  %v4694_v44 = vsub.f32 %v4692_v54, %v4693_v12  ;;  %v4701_v25 = vand.u32 4294901760, %v4700_v58  ;;  %v22660_v51 = vand.u32 4294901760, %v5116_v19  ;;  %v5252_v27 = vsub.f32 %v5117_v2, %v22653_v61 }
 0x2d1   :  { %4684 = vmatprep.subr.mxu1 %v4683_v45  ;;  %4779 = vmatprep.subr.mxu0 %v4692_v54  ;;  %v22663_v59 = vand.u32 4294901760, %v22646_v23 }
 0x2d2   :  { %4690 = vmatpush1.msra.mxu1 %v4689_v39  ;;  %4782 = vmatpush1.msra.mxu0 %v4698_v38  ;;  %v22643_v5 = vpop.permute.xlu1 %5075  ;;  %v4695_v8 = vand.u32 4294901760, %v4694_v44  ;;  %v5258_v18 = vsub.f32 %v5116_v19, %v22660_v51  ;;  %v5253_v1 = vand.u32 4294901760, %v5252_v27 }
 0x2d3   :  { %13244 = vrot.lane.b32.xlu0 %v22350_v43, %s21604_s25  ;;  %4815 = vmatprep.mubr.f32.mxu0 %v25500_v0  ;;  %v5109_v16 = vsel %vm5107_vm12, %v5074_v37, %v22643_v5  ;;  %v5215_v21 = vsub.f32 %v22646_v23, %v22663_v59 }
 0x2d4   :  { %4933 = vmatprep.subr.mxu0 %v4681_v24  ;;  %4818 = vmatmul.mubr.f32.vlgmr.msra.gmra.mxu0 %v22394_v10  ;;  %v5072_v60 = vpop.permute.xlu0 %5071  ;;  %v22667_v47 = vand.u32 4294901760, %v5109_v16  ;;  %v5259_v4 = vand.u32 4294901760, %v5258_v18  ;;  %v5254_v24 = vsub.f32 %v5252_v27, %v5253_v1 }
 0x2d5   :  { %4937 = vmatpush1.msra.mxu0 %v4687_v22  ;;  %13224 = vrot.lane.b32.xlu1 %v22336_v53, %s21604_s25  ;;  %v5108_v3 = vsel %vm5107_vm12, %v5072_v60, %v5074_v37  ;;  %v22691_v30 = vand.u32 4294901760, %v5215_v21 }
 0x2d6   :  { %4696 = vmatprep.subr.mxu1 %v4695_v8  ;;  %4941 = vmatprep.subr.mxu0 %v4693_v12  ;;  %v22665_v10 = vand.u32 4294901760, %v5108_v3  ;;  %v5264_v22 = vsub.f32 %v5109_v16, %v22667_v47  ;;  %v5260_v6 = vsub.f32 %v5258_v18, %v5259_v4  ;;  %v5096_v54 = vpop.permute.xlu1 %5095 }
 0x2d7   :  { %4702 = vmatpush1.msra.mxu1 %v4701_v25  ;;  %4945 = vmatpush1.msra.mxu0 %v4699_v55 }
 0x2d8   :  { %13226 = vrot.lane.b32.xlu0 %v22356_v14, %s21604_s25  ;;  %4737 = vmatmul.mubr.f32.vlgmr.msra.gmra.mxu1 %v22385_v9  ;;  %v5270_v48 = vsub.f32 %v5108_v3, %v22665_v10  ;;  %v5265_v38 = vand.u32 4294901760, %v5264_v22  ;;  %v22698_v49 = vpop.permute.xlu0 %5097 }
 0x2d9   :  { %4853 = vmatprep.subr.mxu1 %v22606_v28  ;;  %4978 = vmatprep.mubr.f32.mxu0 %v25500_v0  ;;  %v5119_v34 = vsel %vm5107_vm12, %v5096_v54, %v22698_v49 }
 0x2da   :  { %5172 = vmatprep.subr.mxu0 %v22653_v61  ;;  %4855 = vmatpush1.msra.mxu1 %v22598_v26  ;;  %v5271_v31 = vand.u32 4294901760, %v5270_v48  ;;  %v5078_v40 = vpop.permute.xlu1 %5077 }
 0x2db   :  { %4980 = vmatmul.mubr.f32.vlgmr.msra.gmra.mxu0 %v22385_v9  ;;  %13246 = vrot.lane.b32.xlu1 %v22352_v7, %s21604_s25 }
 0x2dc   :  { %5174 = vmatpush1.msra.mxu0 %v22660_v51  ;;  %4857 = vmatprep.subr.mxu1 %v22622_v62  ;;  %v5272_v33 = vsub.f32 %v5270_v48, %v5271_v31  ;;  %v22712_v55 = vpop.permute.xlu0 %5079 }
 0x2dd   :  { %5176 = vmatprep.subr.mxu0 %v22667_v47  ;;  %4859 = vmatpush1.msra.mxu1 %v22614_v20  ;;  %v5111_v12 = vsel %vm5107_vm12, %v5078_v40, %v22712_v55 }
 0x2de   :  { %4892 = vmatprep.mubr.f32.mxu1 %v25500_v0  ;;  %5178 = vmatpush1.msra.mxu0 %v22665_v10  ;;  %v22729_v39 = vand.u32 4294901760, %v5111_v12 }
 0x2df   :  { %13248 = vrot.lane.b32.xlu0 %v22374_v13, %s21604_s25  ;;  %4896 = vmatmul.mubr.f32.vlgmr.msra.gmra.mxu1 %v22401_v56  ;;  %v5266_v56 = vsub.f32 %v5264_v22, %v5265_v38 }
 0x2e0   :  { %5015 = vmatprep.subr.mxu1 %v22606_v28  ;;  %5211 = vmatprep.mubr.f32.mxu0 %v25500_v0  ;;  %v5261_v28 = vand.u32 4294901760, %v5260_v6  ;;  %v22758_v25 = vpop.permute.xlu0 %5101 }
 0x2e1   :  { %5345 = vmatprep.subr.mxu0 %v5252_v27  ;;  %5017 = vmatpush1.msra.mxu1 %v22598_v26  ;;  %v5255_v26 = vand.u32 4294901760, %v5254_v24  ;;  %v5267_v45 = vand.u32 4294901760, %v5266_v56 }
 0x2e2   :  { %5217 = vmatmul.mubr.f32.vlgmr.msra.gmra.mxu0 %v22691_v30  ;;  %13228 = vrot.lane.b32.xlu1 %v22360_v17, %s21604_s25 }
 0x2e3   :  { %5348 = vmatpush1.msra.mxu0 %v5258_v18  ;;  %5019 = vmatprep.subr.mxu1 %v22622_v62  ;;  %v5118_v62 = vsel %vm5107_vm12, %v22631_v57, %v5096_v54  ;;  %v5110_v57 = vsel %vm5107_vm12, %v22643_v5, %v5078_v40  ;;  %v5755_v5 = vsub.f32 %v5111_v12, %v22729_v39  ;;  %v5100_v18 = vpop.permute.xlu1 %5099 }
 0x2e4   :  { %5351 = vmatprep.subr.mxu0 %v5264_v22  ;;  %5021 = vmatpush1.msra.mxu1 %v22614_v20  ;;  %v5273_v20 = vand.u32 4294901760, %v5272_v33  ;;  %v22724_v37 = vand.u32 4294901760, %v5118_v62  ;;  %v22734_v44 = vand.u32 4294901760, %v5110_v57 }
 0x2e5   :  { %5054 = vmatprep.mubr.f32.mxu1 %v25500_v0  ;;  %5354 = vmatpush1.msra.mxu0 %v5270_v48  ;;  %v5756_v16 = vand.u32 4294901760, %v5755_v5 }
 0x2e6   :  { %13230 = vrot.lane.b32.xlu0 %v22381_v63, %s21604_s25  ;;  %5056 = vmatmul.mubr.f32.vlgmr.msra.gmra.mxu1 %v22385_v9  ;;  %v22720_v9 = vand.u32 4294901760, %v5119_v34  ;;  %v5749_v2 = vsub.f32 %v5118_v62, %v22724_v37  ;;  %v5761_v8 = vsub.f32 %v5110_v57, %v22734_v44 }
 0x2e7   :  { %5256 = vmatprep.subr.mxu1 %v5255_v26  ;;  %5387 = vmatprep.mubr.f32.mxu0 %v25500_v0 }
 0x2e8   :  { %5505 = vmatprep.subr.mxu0 %v5253_v1  ;;  %5262 = vmatpush1.msra.mxu1 %v5261_v28  ;;  %v5743_v58 = vsub.f32 %v5119_v34, %v22720_v9  ;;  %v5750_v60 = vand.u32 4294901760, %v5749_v2  ;;  %v5762_v3 = vand.u32 4294901760, %v5761_v8  ;;  %v5121_v1 = vsel %vm5107_vm12, %v5100_v18, %v22758_v25 }
 0x2e9   :  { %5390 = vmatmul.mubr.f32.vlgmr.msra.gmra.mxu0 %v22646_v23  ;;  %13250 = vrot.lane.b32.xlu1 %v22376_v50, %s21604_s25  ;;  %v22780_v24 = vand.u32 4294901760, %v5121_v1 }
 0x2ea   :  { %5509 = vmatpush1.msra.mxu0 %v5259_v4  ;;  %5268 = vmatprep.subr.mxu1 %v5267_v45  ;;  %v5744_v19 = vand.u32 4294901760, %v5743_v58  ;;  %v5751_v21 = vsub.f32 %v5749_v2, %v5750_v60  ;;  %v5763_v48 = vsub.f32 %v5761_v8, %v5762_v3  ;;  %v22772_v4 = vpop.permute.xlu0 %5083 }
 0x2eb   :  { %5513 = vmatprep.subr.mxu0 %v5265_v38  ;;  %5274 = vmatpush1.msra.mxu1 %v5273_v20  ;;  %v6234_v26 = vsub.f32 %v5121_v1, %v22780_v24 }
 0x2ec   :  { %5307 = vmatprep.mubr.f32.mxu1 %v25500_v0  ;;  %5517 = vmatpush1.msra.mxu0 %v5271_v31  ;;  %v5745_v27 = vsub.f32 %v5743_v58, %v5744_v19  ;;  %v5752_v22 = vand.u32 4294901760, %v5751_v21  ;;  %v5764_v38 = vand.u32 4294901760, %v5763_v48 }
 0x2ed   :  { %13252 = vrot.lane.b32.xlu0 %v25500_v0, %s21604_s25  ;;  %5309 = vmatmul.mubr.f32.vlgmr.msra.gmra.mxu1 %v22636_v35  ;;  %v6235_v20 = vand.u32 4294901760, %v6234_v26 }
 0x2ee   :  { %5425 = vmatprep.subr.mxu1 %v22653_v61  ;;  %5550 = vmatprep.mubr.f32.mxu0 %v25500_v0  ;;  %v5106_v12 = vpop.permute.xlu0 %5105 }
 0x2ef   :  { %5663 = vmatprep.subr.mxu0 %v22720_v9  ;;  %5427 = vmatpush1.msra.mxu1 %v22660_v51  ;;  %v6236_v57 = vsub.f32 %v6234_v26, %v6235_v20 }
 0x2f0   :  { %5552 = vmatmul.mubr.f32.vlgmr.msra.gmra.mxu0 %v22636_v35  ;;  %13232 = vrot.lane.b32.xlu1 %v22387_v15, %s21604_s25 }
 0x2f1   :  { %5665 = vmatpush1.msra.mxu0 %v22724_v37  ;;  %5429 = vmatprep.subr.mxu1 %v22667_v47 }
 0x2f2   :  { %5667 = vmatprep.subr.mxu0 %v22729_v39  ;;  %5431 = vmatpush1.msra.mxu1 %v22665_v10 }
 0x2f3   :  { %5464 = vmatprep.mubr.f32.mxu1 %v25500_v0  ;;  %5669 = vmatpush1.msra.mxu0 %v22734_v44 }
 0x2f4   :  { %13234 = vrot.lane.b32.xlu0 %v25500_v0, %s21604_s25  ;;  %5468 = vmatmul.mubr.f32.vlgmr.msra.gmra.mxu1 %v22663_v59 }
 0x2f5   :  { %5587 = vmatprep.subr.mxu1 %v22653_v61  ;;  %5702 = vmatprep.mubr.f32.mxu0 %v25500_v0  ;;  %v5757_v61 = vsub.f32 %v5755_v5, %v5756_v16 }
 0x2f6   :  { %5836 = vmatprep.subr.mxu0 %v5743_v58  ;;  %5589 = vmatpush1.msra.mxu1 %v22660_v51  ;;  %v5746_v51 = vand.u32 4294901760, %v5745_v27 }
 0x2f7   :  { %5708 = vmatmul.mubr.f32.vlgmr.msra.gmra.mxu0 %v22691_v30  ;;  %15282 = vrot.lane.b32.xlu1 %v22306_v36, %s21616_s17  ;;  %v5758_v31 = vand.u32 4294901760, %v5757_v61 }
 0x2f8   :  { %5839 = vmatpush1.msra.mxu0 %v5749_v2  ;;  %5591 = vmatprep.subr.mxu1 %v22667_v47  ;;  %v5082_v47 = vpop.permute.xlu1 %5081 }
 0x2f9   :  { %5842 = vmatprep.subr.mxu0 %v5755_v5  ;;  %5593 = vmatpush1.msra.mxu1 %v22665_v10  ;;  %v5120_v10 = vsel %vm5107_vm12, %v22698_v49, %v5100_v18  ;;  %v5113_v6 = vsel %vm5107_vm12, %v5082_v47, %v22772_v4  ;;  %v5112_v49 = vsel %vm5107_vm12, %v22712_v55, %v5082_v47  ;;  %v6237_v5 = vand.u32 4294901760, %v6236_v57 }
 0x2fa   :  { %5626 = vmatprep.mubr.f32.mxu1 %v25500_v0  ;;  %5845 = vmatpush1.msra.mxu0 %v5761_v8  ;;  %v22784_v54 = vand.u32 4294901760, %v5120_v10  ;;  %v22789_v33 = vand.u32 4294901760, %v5113_v6  ;;  %v22794_v56 = vand.u32 4294901760, %v5112_v49 }
 0x2fb   :  { %15284 = vrot.lane.b32.xlu0 %v22326_v52, %s21616_s17  ;;  %5628 = vmatmul.mubr.f32.vlgmr.msra.gmra.mxu1 %v22636_v35 }
 0x2fc   :  { %5747 = vmatprep.subr.mxu1 %v5746_v51  ;;  %5878 = vmatprep.mubr.f32.mxu0 %v25500_v0  ;;  %v6240_v28 = vsub.f32 %v5120_v10, %v22784_v54  ;;  %v6246_v34 = vsub.f32 %v5113_v6, %v22789_v33  ;;  %v6252_v55 = vsub.f32 %v5112_v49, %v22794_v56  ;;  %v5104_v58 = vpop.permute.xlu1 %5103 }
 0x2fd   :  { %5996 = vmatprep.subr.mxu0 %v5744_v19  ;;  %5753 = vmatpush1.msra.mxu1 %v5752_v22  ;;  %v5123_v19 = vsel %vm5107_vm12, %v5104_v58, %v5106_v12 }
 0x2fe   :  { %5881 = vmatmul.mubr.f32.vlgmr.msra.gmra.mxu0 %v22646_v23  ;;  %15280 = vrot.lane.b32.xlu1 %v22304_v46, %s21616_s17  ;;  %v6241_v62 = vand.u32 4294901760, %v6240_v28  ;;  %v6247_v40 = vand.u32 4294901760, %v6246_v34  ;;  %v6253_v45 = vand.u32 4294901760, %v6252_v55  ;;  %v22835_v27 = vand.u32 4294901760, %v5123_v19 }
 0x2ff   :  { %6000 = vmatpush1.msra.mxu0 %v5750_v60  ;;  %5759 = vmatprep.subr.mxu1 %v5758_v31  ;;  %v5088_v60 = vpop.permute.xlu0 %5087 }
 0x300   :  { %6004 = vmatprep.subr.mxu0 %v5756_v16  ;;  %5765 = vmatpush1.msra.mxu1 %v5764_v38  ;;  %v6242_v2 = vsub.f32 %v6240_v28, %v6241_v62  ;;  %v6725_v51 = vsub.f32 %v5123_v19, %v22835_v27  ;;  %v7115_v38 = vld [vmem:[#allocation8 + $0x2] sm:$0x1] }
 0x301   :  { %5798 = vmatprep.mubr.f32.mxu1 %v25500_v0  ;;  %6008 = vmatpush1.msra.mxu0 %v5762_v3 }
 0x302   :  { %15264 = vrot.lane.b32.xlu0 %v22310_v32, %s21616_s17  ;;  %5800 = vmatmul.mubr.f32.vlgmr.msra.gmra.mxu1 %v22636_v35  ;;  %v6243_v8 = vand.u32 4294901760, %v6242_v2  ;;  %v6726_v31 = vand.u32 4294901760, %v6725_v51 }
 0x303   :  { %5916 = vmatprep.subr.mxu1 %v22720_v9  ;;  %6041 = vmatprep.mubr.f32.mxu0 %v25500_v0  ;;  %v22862_v10 = vpop.permute.xlu0 %7138 }
 0x304   :  { %6154 = vmatprep.subr.mxu0 %v22780_v24  ;;  %5918 = vmatpush1.msra.mxu1 %v22724_v37 }
 0x305   :  { %6043 = vmatmul.mubr.f32.vlgmr.msra.gmra.mxu0 %v22636_v35  ;;  %15266 = vrot.lane.b32.xlu1 %v22332_v41, %s21616_s17 }
 0x306   :  { %6156 = vmatpush1.msra.mxu0 %v22784_v54  ;;  %5920 = vmatprep.subr.mxu1 %v22729_v39 }
 0x307   :  { %6158 = vmatprep.subr.mxu0 %v22789_v33  ;;  %5922 = vmatpush1.msra.mxu1 %v22734_v44 }
 0x308   :  { %5955 = vmatprep.mubr.f32.mxu1 %v25500_v0  ;;  %6160 = vmatpush1.msra.mxu0 %v22794_v56 }
 0x309   :  { %15262 = vrot.lane.b32.xlu0 %v22298_v29, %s21616_s17  ;;  %5959 = vmatmul.mubr.f32.vlgmr.msra.gmra.mxu1 %v22663_v59 }
 0x30a   :  { %6078 = vmatprep.subr.mxu1 %v22720_v9  ;;  %6193 = vmatprep.mubr.f32.mxu0 %v25500_v0  ;;  %v6248_v9 = vsub.f32 %v6246_v34, %v6247_v40 }
 0x30b   :  { %6327 = vmatprep.subr.mxu0 %v6234_v26  ;;  %6080 = vmatpush1.msra.mxu1 %v22724_v37  ;;  %v6254_v37 = vsub.f32 %v6252_v55, %v6253_v45  ;;  %v7186_v26 = vsel %vm3094_vm0, %v7115_v38, 0 }
 0x30c   :  { %6199 = vmatmul.mubr.f32.vlgmr.msra.gmra.mxu0 %v22691_v30  ;;  %15286 = vrot.lane.b32.xlu1 %v22328_v42, %s21616_s17  ;;  %v6249_v16 = vand.u32 4294901760, %v6248_v9 }
 0x30d   :  { %6330 = vmatpush1.msra.mxu0 %v6240_v28  ;;  %6082 = vmatprep.subr.mxu1 %v22729_v39  ;;  %v5122_v39 = vsel %vm5107_vm12, %v22758_v25, %v5104_v58  ;;  %v6255_v3 = vand.u32 4294901760, %v6254_v37 }
 0x30e   :  { %6333 = vmatprep.subr.mxu0 %v6246_v34  ;;  %6084 = vmatpush1.msra.mxu1 %v22734_v44  ;;  %v5086_v44 = vpop.permute.xlu1 %5085  ;;  %v22838_v21 = vand.u32 4294901760, %v5122_v39 }
 0x30f   :  { %6117 = vmatprep.mubr.f32.mxu1 %v25500_v0  ;;  %6336 = vmatpush1.msra.mxu0 %v6252_v55  ;;  %v5115_v18 = vsel %vm5107_vm12, %v5086_v44, %v5088_v60  ;;  %v5114_v25 = vsel %vm5107_vm12, %v22772_v4, %v5086_v44  ;;  %v6727_v55 = vsub.f32 %v6725_v51, %v6726_v31 }
 0x310   :  { %15288 = vrot.lane.b32.xlu0 %v22350_v43, %s21616_s17  ;;  %6119 = vmatmul.mubr.f32.vlgmr.msra.gmra.mxu1 %v22636_v35  ;;  %v22843_v61 = vand.u32 4294901760, %v5115_v18  ;;  %v22849_v48 = vand.u32 4294901760, %v5114_v25  ;;  %v22854_v22 = vsub.f32 %v5122_v39, %v22838_v21 }
 0x311   :  { %6238 = vmatprep.subr.mxu1 %v6237_v5  ;;  %6369 = vmatprep.mubr.f32.mxu0 %v25500_v0 }
 0x312   :  { %6487 = vmatprep.subr.mxu0 %v6235_v20  ;;  %6244 = vmatpush1.msra.mxu1 %v6243_v8  ;;  %v7137_v1 = vpop.permute.xlu1 %7136  ;;  %v6737_v4 = vsub.f32 %v5115_v18, %v22843_v61  ;;  %v6743_v47 = vsub.f32 %v5114_v25, %v22849_v48  ;;  %v6732_v6 = vand.u32 4294901760, %v22854_v22  ;;  %v7119_v20 = vpop.permute.xlu0 %7118 }
 0x313   :  { %6372 = vmatmul.mubr.f32.vlgmr.msra.gmra.mxu0 %v22646_v23  ;;  %15268 = vrot.lane.b32.xlu1 %v22336_v53, %s21616_s17 }
 0x314   :  { %6491 = vmatpush1.msra.mxu0 %v6241_v62  ;;  %6250 = vmatprep.subr.mxu1 %v6249_v16  ;;  %v6738_v49 = vand.u32 4294901760, %v6737_v4  ;;  %v6744_v28 = vand.u32 4294901760, %v6743_v47  ;;  %v6733_v62 = vsub.f32 %v22854_v22, %v6732_v6 }
 0x315   :  { %6495 = vmatprep.subr.mxu0 %v6247_v40  ;;  %6256 = vmatpush1.msra.mxu1 %v6255_v3 }
 0x316   :  { %6289 = vmatprep.mubr.f32.mxu1 %v25500_v0  ;;  %6499 = vmatpush1.msra.mxu0 %v6253_v45  ;;  %v7135_v34 = vpop.permute.xlu1 %7134  ;;  %v6745_v40 = vsub.f32 %v6743_v47, %v6744_v28  ;;  %v6734_v45 = vand.u32 4294901760, %v6733_v62  ;;  %v7117_v58 = vpop.permute.xlu0 %7116 }
 0x317   :  { %15270 = vrot.lane.b32.xlu0 %v22356_v14, %s21616_s17  ;;  %6291 = vmatmul.mubr.f32.vlgmr.msra.gmra.mxu1 %v22636_v35  ;;  %v7161_v57 = vsel %vm7152_vm13, %v7135_v34, %v7137_v1  ;;  %v7153_v19 = vsel %vm7152_vm13, %v7117_v58, %v7119_v20 }
 0x318   :  { %6407 = vmatprep.subr.mxu1 %v22780_v24  ;;  %6532 = vmatprep.mubr.f32.mxu0 %v25500_v0  ;;  %v6746_v9 = vand.u32 4294901760, %v6745_v40  ;;  %v22908_v8 = vand.u32 4294901760, %v7161_v57  ;;  %v22920_v39 = vand.u32 4294901760, %v7153_v19 }
 0x319   :  { %6645 = vmatprep.subr.mxu0 %v22835_v27  ;;  %6409 = vmatpush1.msra.mxu1 %v22784_v54 }
 0x31a   :  { %6534 = vmatmul.mubr.f32.vlgmr.msra.gmra.mxu0 %v22636_v35  ;;  %15290 = vrot.lane.b32.xlu1 %v22352_v7, %s21616_s17  ;;  %v22894_v12 = vpop.permute.xlu1 %7120  ;;  %v7303_v16 = vsub.f32 %v7161_v57, %v22908_v8  ;;  %v7315_v25 = vsub.f32 %v7153_v19, %v22920_v39 }
 0x31b   :  { %6647 = vmatpush1.msra.mxu0 %v22838_v21  ;;  %6411 = vmatprep.subr.mxu1 %v22789_v33  ;;  %v7154_v37 = vsel %vm7152_vm13, %v7119_v20, %v22894_v12 }
 0x31c   :  { %6649 = vmatprep.subr.mxu0 %v22843_v61  ;;  %6413 = vmatpush1.msra.mxu1 %v22794_v56 }
 0x31d   :  { %6446 = vmatprep.mubr.f32.mxu1 %v25500_v0  ;;  %6651 = vmatpush1.msra.mxu0 %v22849_v48 }
 0x31e   :  { %15292 = vrot.lane.b32.xlu0 %v22374_v13, %s21616_s17  ;;  %6450 = vmatmul.mubr.f32.vlgmr.msra.gmra.mxu1 %v22663_v59 }
 0x31f   :  { %6569 = vmatprep.subr.mxu1 %v22780_v24  ;;  %6684 = vmatprep.mubr.f32.mxu0 %v25500_v0  ;;  %v22885_v24 = vand.u32 4294901760, %v7186_v26 }
 0x320   :  { %6818 = vmatprep.subr.mxu0 %v6725_v51  ;;  %6571 = vmatpush1.msra.mxu1 %v22784_v54  ;;  %v6739_v54 = vsub.f32 %v6737_v4, %v6738_v49 }
 0x321   :  { %6690 = vmatmul.mubr.f32.vlgmr.msra.gmra.mxu0 %v22691_v30  ;;  %15272 = vrot.lane.b32.xlu1 %v22360_v17, %s21616_s17  ;;  %v6728_v30 = vand.u32 4294901760, %v6727_v55 }
 0x322   :  { %6821 = vmatpush1.msra.mxu0 %v22854_v22  ;;  %6573 = vmatprep.subr.mxu1 %v22789_v33  ;;  %v7162_v33 = vsel %vm7152_vm13, %v7137_v1, %v22862_v10  ;;  %v6740_v2 = vand.u32 4294901760, %v6739_v54  ;;  %v7304_v22 = vand.u32 4294901760, %v7303_v16 }
 0x323   :  { %6824 = vmatprep.subr.mxu0 %v6737_v4  ;;  %6575 = vmatpush1.msra.mxu1 %v22794_v56  ;;  %v22898_v56 = vsub.f32 %v7186_v26, %v22885_v24  ;;  %v22904_v5 = vand.u32 4294901760, %v7162_v33 }
 0x324   :  { %6608 = vmatprep.mubr.f32.mxu1 %v25500_v0  ;;  %6827 = vmatpush1.msra.mxu0 %v6743_v47  ;;  %v7316_v47 = vand.u32 4294901760, %v7315_v25 }
 0x325   :  { %15274 = vrot.lane.b32.xlu0 %v22381_v63, %s21616_s17  ;;  %6610 = vmatmul.mubr.f32.vlgmr.msra.gmra.mxu1 %v22636_v35  ;;  %v22912_v60 = vand.u32 4294901760, %v22898_v56  ;;  %v7297_v44 = vsub.f32 %v7162_v33, %v22904_v5 }
 0x326   :  { %6729 = vmatprep.subr.mxu1 %v6728_v30  ;;  %6860 = vmatprep.mubr.f32.mxu0 %v25500_v0 }
 0x327   :  { %6978 = vmatprep.subr.mxu0 %v6726_v31  ;;  %6735 = vmatpush1.msra.mxu1 %v6734_v45  ;;  %v7260_v3 = vsub.f32 %v22898_v56, %v22912_v60  ;;  %v7298_v51 = vand.u32 4294901760, %v7297_v44  ;;  %v22948_v31 = vpop.permute.xlu0 %7142 }
 0x328   :  { %6863 = vmatmul.mubr.f32.vlgmr.msra.gmra.mxu0 %v22646_v23  ;;  %15294 = vrot.lane.b32.xlu1 %v22376_v50, %s21616_s17  ;;  %v22915_v23 = vand.u32 4294901760, %v7154_v37 }
 0x329   :  { %6982 = vmatpush1.msra.mxu0 %v6732_v6  ;;  %6741 = vmatprep.subr.mxu1 %v6740_v2  ;;  %v22941_v1 = vand.u32 4294901760, %v7260_v3  ;;  %v7299_v38 = vsub.f32 %v7297_v44, %v7298_v51  ;;  %v7305_v6 = vsub.f32 %v7303_v16, %v7304_v22 }
 0x32a   :  { %6986 = vmatprep.subr.mxu0 %v6738_v49  ;;  %6747 = vmatpush1.msra.mxu1 %v6746_v9  ;;  %v7309_v18 = vsub.f32 %v7154_v37, %v22915_v23  ;;  %v7141_v49 = vpop.permute.xlu1 %7140 }
 0x32b   :  { %6780 = vmatprep.mubr.f32.mxu1 %v25500_v0  ;;  %6990 = vmatpush1.msra.mxu0 %v6744_v28  ;;  %v7306_v26 = vand.u32 4294901760, %v7305_v6  ;;  %v7164_v28 = vsel %vm7152_vm13, %v7141_v49, %v22948_v31  ;;  %v22962_v34 = vpop.permute.xlu0 %7124 }
 0x32c   :  { %15296 = vrot.lane.b32.xlu0 %v25500_v0, %s21616_s17  ;;  %6782 = vmatmul.mubr.f32.vlgmr.msra.gmra.mxu1 %v22636_v35  ;;  %v7310_v4 = vand.u32 4294901760, %v7309_v18  ;;  %v22970_v20 = vand.u32 4294901760, %v7164_v28 }
 0x32d   :  { %6898 = vmatprep.subr.mxu1 %v22835_v27  ;;  %7023 = vmatprep.mubr.f32.mxu0 %v25500_v0 }
 0x32e   :  { %7217 = vmatprep.subr.mxu0 %v22904_v5  ;;  %6900 = vmatpush1.msra.mxu1 %v22838_v21  ;;  %v7788_v45 = vsub.f32 %v7164_v28, %v22970_v20 }
 0x32f   :  { %7025 = vmatmul.mubr.f32.vlgmr.msra.gmra.mxu0 %v22636_v35  ;;  %15276 = vrot.lane.b32.xlu1 %v22387_v15, %s21616_s17  ;;  %v23008_v19 = vpop.permute.xlu0 %7146 }
 0x330   :  { %7219 = vmatpush1.msra.mxu0 %v22908_v8  ;;  %6902 = vmatprep.subr.mxu1 %v22843_v61  ;;  %v7789_v58 = vand.u32 4294901760, %v7788_v45 }
 0x331   :  { %7221 = vmatprep.subr.mxu0 %v22915_v23  ;;  %6904 = vmatpush1.msra.mxu1 %v22849_v48 }
 0x332   :  { %6937 = vmatprep.mubr.f32.mxu1 %v25500_v0  ;;  %7223 = vmatpush1.msra.mxu0 %v22920_v39 }
 0x333   :  { %15278 = vrot.lane.b32.xlu0 %v25500_v0, %s21616_s17  ;;  %6941 = vmatmul.mubr.f32.vlgmr.msra.gmra.mxu1 %v22663_v59  ;;  %v7311_v59 = vsub.f32 %v7309_v18, %v7310_v4 }
 0x334   :  { %7060 = vmatprep.subr.mxu1 %v22835_v27  ;;  %7256 = vmatprep.mubr.f32.mxu0 %v25500_v0  ;;  %v7317_v27 = vsub.f32 %v7315_v25, %v7316_v47 }
 0x335   :  { %7390 = vmatprep.subr.mxu0 %v7297_v44  ;;  %7062 = vmatpush1.msra.mxu1 %v22838_v21  ;;  %v7300_v21 = vand.u32 4294901760, %v7299_v38  ;;  %v7312_v55 = vand.u32 4294901760, %v7311_v59  ;;  %v7790_v44 = vsub.f32 %v7788_v45, %v7789_v58 }
 0x336   :  { %7262 = vmatmul.mubr.f32.vlgmr.msra.gmra.mxu0 %v22941_v1  ;;  %17327 = vrot.lane.b32.xlu1 %v22306_v36, %s21608_s29 }
 0x337   :  { %7393 = vmatpush1.msra.mxu0 %v7303_v16  ;;  %7064 = vmatprep.subr.mxu1 %v22843_v61  ;;  %v7163_v61 = vsel %vm7152_vm13, %v22862_v10, %v7141_v49 }
 0x338   :  { %7396 = vmatprep.subr.mxu0 %v7309_v18  ;;  %7066 = vmatpush1.msra.mxu1 %v22849_v48  ;;  %v7123_v48 = vpop.permute.xlu1 %7122  ;;  %v22974_v54 = vand.u32 4294901760, %v7163_v61  ;;  %v7791_v18 = vand.u32 4294901760, %v7790_v44 }
 0x339   :  { %7099 = vmatprep.mubr.f32.mxu1 %v25500_v0  ;;  %7399 = vmatpush1.msra.mxu0 %v7315_v25  ;;  %v7156_v62 = vsel %vm7152_vm13, %v7123_v48, %v22962_v34  ;;  %v7155_v10 = vsel %vm7152_vm13, %v22894_v12, %v7123_v48 }
 0x33a   :  { %17329 = vrot.lane.b32.xlu0 %v22326_v52, %s21608_s29  ;;  %7101 = vmatmul.mubr.f32.vlgmr.msra.gmra.mxu1 %v22636_v35  ;;  %v7318_v35 = vand.u32 4294901760, %v7317_v27  ;;  %v22979_v30 = vand.u32 4294901760, %v7156_v62  ;;  %v22984_v40 = vand.u32 4294901760, %v7155_v10  ;;  %v7794_v33 = vsub.f32 %v7163_v61, %v22974_v54 }
 0x33b   :  { %7301 = vmatprep.subr.mxu1 %v7300_v21  ;;  %7432 = vmatprep.mubr.f32.mxu0 %v25500_v0 }
 0x33c   :  { %7550 = vmatprep.subr.mxu0 %v7298_v51  ;;  %7307 = vmatpush1.msra.mxu1 %v7306_v26  ;;  %v7800_v12 = vsub.f32 %v7156_v62, %v22979_v30  ;;  %v7806_v57 = vsub.f32 %v7155_v10, %v22984_v40  ;;  %v7795_v2 = vand.u32 4294901760, %v7794_v33  ;;  %v7145_v16 = vpop.permute.xlu1 %7144  ;;  %v3265_v62 = vpop.f32.mrf.mxu1 }
 0x33d   :  { %7435 = vmatmul.mubr.f32.vlgmr.msra.gmra.mxu0 %v22898_v56  ;;  %17325 = vrot.lane.b32.xlu1 %v22304_v46, %s21608_s29  ;;  %v7166_v51 = vsel %vm7152_vm13, %v7145_v16, %v23008_v19 }
 0x33e   :  { %7554 = vmatpush1.msra.mxu0 %v7304_v22  ;;  %7313 = vmatprep.subr.mxu1 %v7312_v55  ;;  %v7801_v9 = vand.u32 4294901760, %v7800_v12  ;;  %v7807_v37 = vand.u32 4294901760, %v7806_v57  ;;  %v7796_v3 = vsub.f32 %v7794_v33, %v7795_v2  ;;  %v23022_v22 = vpop.permute.xlu0 %7128  ;;  %v23030_v38 = vand.u32 4294901760, %v7166_v51 }
 0x33f   :  { %7558 = vmatprep.subr.mxu0 %v7310_v4  ;;  %7319 = vmatpush1.msra.mxu1 %v7318_v35 }
 0x340   :  { %7352 = vmatprep.mubr.f32.mxu1 %v25500_v0  ;;  %7562 = vmatpush1.msra.mxu0 %v7316_v47  ;;  %v7797_v25 = vand.u32 4294901760, %v7796_v3  ;;  %v8279_v27 = vsub.f32 %v7166_v51, %v23030_v38 }
 0x341   :  { %17309 = vrot.lane.b32.xlu0 %v22310_v32, %s21608_s29  ;;  %7354 = vmatmul.mubr.f32.vlgmr.msra.gmra.mxu1 %v22885_v24 }
 0x342   :  { %7470 = vmatprep.subr.mxu1 %v22904_v5  ;;  %7595 = vmatprep.mubr.f32.mxu0 %v25500_v0  ;;  %v8280_v48 = vand.u32 4294901760, %v8279_v27 }
 0x343   :  { %7708 = vmatprep.subr.mxu0 %v22970_v20  ;;  %7472 = vmatpush1.msra.mxu1 %v22908_v8 }
 0x344   :  { %7597 = vmatmul.mubr.f32.vlgmr.msra.gmra.mxu0 %v22885_v24  ;;  %17311 = vrot.lane.b32.xlu1 %v22332_v41, %s21608_s29 }
 0x345   :  { %7710 = vmatpush1.msra.mxu0 %v22974_v54  ;;  %7474 = vmatprep.subr.mxu1 %v22915_v23 }
 0x346   :  { %7712 = vmatprep.subr.mxu0 %v22979_v30  ;;  %7476 = vmatpush1.msra.mxu1 %v22920_v39 }
 0x347   :  { %7509 = vmatprep.mubr.f32.mxu1 %v25500_v0  ;;  %7714 = vmatpush1.msra.mxu0 %v22984_v40 }
 0x348   :  { %17307 = vrot.lane.b32.xlu0 %v22298_v29, %s21608_s29  ;;  %7513 = vmatmul.mubr.f32.vlgmr.msra.gmra.mxu1 %v22912_v60 }
 0x349   :  { %7632 = vmatprep.subr.mxu1 %v22904_v5  ;;  %7747 = vmatprep.mubr.f32.mxu0 %v25500_v0  ;;  %v7802_v5 = vsub.f32 %v7800_v12, %v7801_v9 }
 0x34a   :  { %7881 = vmatprep.subr.mxu0 %v7788_v45  ;;  %7634 = vmatpush1.msra.mxu1 %v22908_v8  ;;  %v7808_v8 = vsub.f32 %v7806_v57, %v7807_v37 }
 0x34b   :  { %7753 = vmatmul.mubr.f32.vlgmr.msra.gmra.mxu0 %v22941_v1  ;;  %17331 = vrot.lane.b32.xlu1 %v22328_v42, %s21608_s29  ;;  %v7803_v4 = vand.u32 4294901760, %v7802_v5 }
 0x34c   :  { %7884 = vmatpush1.msra.mxu0 %v7794_v33  ;;  %7636 = vmatprep.subr.mxu1 %v22915_v23  ;;  %v7165_v23 = vsel %vm7152_vm13, %v22948_v31, %v7145_v16  ;;  %v7809_v47 = vand.u32 4294901760, %v7808_v8 }
 0x34d   :  { %7887 = vmatprep.subr.mxu0 %v7800_v12  ;;  %7638 = vmatpush1.msra.mxu1 %v22920_v39  ;;  %v7127_v39 = vpop.permute.xlu1 %7126  ;;  %v23034_v49 = vand.u32 4294901760, %v7165_v23 }
 0x34e   :  { %7671 = vmatprep.mubr.f32.mxu1 %v25500_v0  ;;  %7890 = vmatpush1.msra.mxu0 %v7806_v57  ;;  %v7158_v6 = vsel %vm7152_vm13, %v7127_v39, %v23022_v22  ;;  %v7157_v31 = vsel %vm7152_vm13, %v22962_v34, %v7127_v39  ;;  %v3173_v34 = vpop.f32.mrf.mxu0  ;;  %v7151_v57 = vpop.permute.xlu0 %7150 }
 0x34f   :  { %17333 = vrot.lane.b32.xlu0 %v22350_v43, %s21608_s29  ;;  %7673 = vmatmul.mubr.f32.vlgmr.msra.gmra.mxu1 %v22885_v24  ;;  %v23039_v59 = vand.u32 4294901760, %v7158_v6  ;;  %v23045_v21 = vand.u32 4294901760, %v7157_v31  ;;  %v23050_v26 = vsub.f32 %v7165_v23, %v23034_v49  ;;  %v3266_v45 = vadd.f32 %v3265_v62, %v3173_v34 }
 0x350   :  { %7792 = vmatprep.subr.mxu1 %v7791_v18  ;;  %7923 = vmatprep.mubr.f32.mxu0 %v25500_v0  ;;  %v23073_v35 = vpop.f32.mrf.mxu0 }
 0x351   :  { %8041 = vmatprep.subr.mxu0 %v7789_v58  ;;  %7798 = vmatpush1.msra.mxu1 %v7797_v25  ;;  %v23058_v28 = vsub.f32 %v7158_v6, %v23039_v59  ;;  %v23063_v61 = vsub.f32 %v7157_v31, %v23045_v21  ;;  %v8286_v55 = vand.u32 4294901760, %v23050_v26  ;;  %25508 = vst [vmem:[#allocation15_spill] sm:$0xff] %v23073_v35  ;;  %v7149_v12 = vpop.permute.xlu1 %7148 }
 0x352   :  { %7926 = vmatmul.mubr.f32.vlgmr.msra.gmra.mxu0 %v22898_v56  ;;  %17313 = vrot.lane.b32.xlu1 %v22336_v53, %s21608_s29  ;;  %v8281_v58 = vsub.f32 %v8279_v27, %v8280_v48  ;;  %v7133_v8 = vpop.permute.xlu0 %7132  ;;  %v7167_v25 = vsel %vm7152_vm13, %v23008_v19, %v7149_v12 }
 0x353   :  { %8045 = vmatpush1.msra.mxu0 %v7795_v2  ;;  %7804 = vmatprep.subr.mxu1 %v7803_v4  ;;  %v8292_v10 = vand.u32 4294901760, %v23058_v28  ;;  %v8298_v33 = vand.u32 4294901760, %v23063_v61  ;;  %v8287_v2 = vsub.f32 %v23050_v26, %v8286_v55 }
 0x354   :  { %8049 = vmatprep.subr.mxu0 %v7801_v9  ;;  %7810 = vmatpush1.msra.mxu1 %v7809_v47  ;;  %v3346_v9 = vpop.f32.mrf.mxu0  ;;  %v8282_v16 = vand.u32 4294901760, %v8281_v58 }
 0x355   :  { %7843 = vmatprep.mubr.f32.mxu1 %v25500_v0  ;;  %8053 = vmatpush1.msra.mxu0 %v7807_v37  ;;  %v3347_v37 = vadd.f32 %v3346_v9, %v3266_v45  ;;  %v8299_v44 = vsub.f32 %v23063_v61, %v8298_v33  ;;  %v7131_v51 = vpop.permute.xlu1 %7130 }
 0x356   :  { %17315 = vrot.lane.b32.xlu0 %v22356_v14, %s21608_s29  ;;  %7845 = vmatmul.mubr.f32.vlgmr.msra.gmra.mxu1 %v22885_v24  ;;  %v23094_v3 = vpop.f32.mrf.mxu0  ;;  %v7160_v31 = vsel %vm7152_vm13, %v7131_v51, %v7133_v8 }
 0x357   :  { %7961 = vmatprep.subr.mxu1 %v22970_v20  ;;  %8086 = vmatprep.mubr.f32.mxu0 %v25500_v0  ;;  %25510 = vst [vmem:[#allocation17_spill] sm:$0xff] %v23094_v3  ;;  %v8300_v4 = vand.u32 4294901760, %v8299_v44 }
 0x358   :  { %8199 = vmatprep.subr.mxu0 %v23030_v38  ;;  %7963 = vmatpush1.msra.mxu1 %v22974_v54  ;;  %v3508_v47 = vpop.f32.mrf.mxu0 }
 0x359   :  { %8088 = vmatmul.mubr.f32.vlgmr.msra.gmra.mxu0 %v22885_v24  ;;  %17335 = vrot.lane.b32.xlu1 %v22352_v7, %s21608_s29 }
 0x35a   :  { %8201 = vmatpush1.msra.mxu0 %v23034_v49  ;;  %7965 = vmatprep.subr.mxu1 %v22979_v30 }
 0x35b   :  { %8203 = vmatprep.subr.mxu0 %v23039_v59  ;;  %7967 = vmatpush1.msra.mxu1 %v22984_v40 }
 0x35c   :  { %8000 = vmatprep.mubr.f32.mxu1 %v25500_v0  ;;  %8205 = vmatpush1.msra.mxu0 %v23045_v21 }
 0x35d   :  { %17337 = vrot.lane.b32.xlu0 %v22374_v13, %s21608_s29  ;;  %8004 = vmatmul.mubr.f32.vlgmr.msra.gmra.mxu1 %v22912_v60 }
 0x35e   :  { %8123 = vmatprep.subr.mxu1 %v22970_v20  ;;  %8238 = vmatprep.mubr.f32.mxu0 %v25500_v0  ;;  %v23084_v20 = vpop.f32.mrf.mxu1 }
 0x35f   :  { %8372 = vmatprep.subr.mxu0 %v8279_v27  ;;  %8125 = vmatpush1.msra.mxu1 %v22974_v54  ;;  %25509 = vst [vmem:[#allocation16_spill] sm:$0xff] %v23084_v20  ;;  %v8293_v54 = vsub.f32 %v23058_v28, %v8292_v10  ;;  %v23111_v27 = vand.u32 4294901760, %v7167_v25 }
 0x360   :  { %8244 = vmatmul.mubr.f32.vlgmr.msra.gmra.mxu0 %v22941_v1  ;;  %17317 = vrot.lane.b32.xlu1 %v22360_v17, %s21608_s29  ;;  %v3424_v5 = vpop.f32.mrf.mxu1 }
 0x361   :  { %8375 = vmatpush1.msra.mxu0 %v23050_v26  ;;  %8127 = vmatprep.subr.mxu1 %v22979_v30  ;;  %v8288_v30 = vand.u32 4294901760, %v8287_v2  ;;  %v3425_v18 = vadd.f32 %v3424_v5, %v3347_v37  ;;  %v8294_v23 = vand.u32 4294901760, %v8293_v54  ;;  %v7159_v26 = vsel %vm7152_vm13, %v23022_v22, %v7131_v51  ;;  %v9160_v54 = vld [vmem:[#allocation8 + $0x3] sm:$0x1] }
 0x362   :  { %8378 = vmatprep.subr.mxu0 %v23058_v28  ;;  %8129 = vmatpush1.msra.mxu1 %v22984_v40  ;;  %v7168_v40 = vsel %vm7152_vm13, %v7149_v12, %v7151_v57  ;;  %v23103_v39 = vpop.f32.mrf.mxu1  ;;  %v23115_v28 = vpop.f32.mrf.mxu0  ;;  %v23128_v22 = vand.u32 4294901760, %v7159_v26  ;;  %v23135_v45 = vsub.f32 %v7167_v25, %v23111_v27 }
 0x363   :  { %8162 = vmatprep.mubr.f32.mxu1 %v25500_v0  ;;  %8381 = vmatpush1.msra.mxu0 %v23063_v61  ;;  %25511 = vst [vmem:[#allocation18_spill] sm:$0xff] %v23103_v39  ;;  %v23108_v6 = vand.u32 4294901760, %v7168_v40  ;;  %v3509_v19 = vadd.f32 %v3508_v47, %v3425_v18  ;;  %25512 = vst [vmem:[#allocation19_spill] sm:$0xff] %v23115_v28  ;;  %v23118_v61 = vand.u32 4294901760, %v7160_v31  ;;  %v23139_v12 = vpop.permute.xlu0 %9183 }
 0x364   :  { %17319 = vrot.lane.b32.xlu0 %v22381_v63, %s21608_s29  ;;  %8164 = vmatmul.mubr.f32.vlgmr.msra.gmra.mxu1 %v22885_v24  ;;  %v3584_v34 = vpop.f32.mrf.mxu1  ;;  %v23152_v9 = vsub.f32 %v7159_v26, %v23128_v22 }
 0x365   :  { %8283 = vmatprep.subr.mxu1 %v8282_v16  ;;  %8414 = vmatprep.mubr.f32.mxu0 %v25500_v0  ;;  %v23145_v57 = vsub.f32 %v7160_v31, %v23118_v61  ;;  %v8777_v16 = vand.u32 4294901760, %v23135_v45 }
 0x366   :  { %8532 = vmatprep.subr.mxu0 %v8280_v48  ;;  %8289 = vmatpush1.msra.mxu1 %v8288_v30  ;;  %v23123_v48 = vadd.f32 %v3584_v34, %v3509_v19  ;;  %v23132_v62 = vpop.f32.mrf.mxu1  ;;  %v8789_v25 = vand.u32 4294901760, %v23152_v9 }
 0x367   :  { %8417 = vmatmul.mubr.f32.vlgmr.msra.gmra.mxu0 %v22898_v56  ;;  %17339 = vrot.lane.b32.xlu1 %v22376_v50, %s21608_s29  ;;  %25513 = vst [vmem:[#allocation20_spill] sm:$0xff] %v23132_v62  ;;  %v8783_v18 = vand.u32 4294901760, %v23145_v57  ;;  %v8778_v47 = vsub.f32 %v23135_v45, %v8777_v16 }
 0x368   :  { %8536 = vmatpush1.msra.mxu0 %v8286_v55  ;;  %8295 = vmatprep.subr.mxu1 %v8294_v23  ;;  %v23126_v55 = vsub.f32 %v7168_v40, %v23108_v6  ;;  %v3756_v2 = vpop.f32.mrf.mxu1  ;;  %v9231_v40 = vsel %vm3094_vm0, %v9160_v54, 0  ;;  %v9164_v23 = vpop.permute.xlu0 %9163 }
 0x369   :  { %8540 = vmatprep.subr.mxu0 %v8292_v10  ;;  %8301 = vmatpush1.msra.mxu1 %v8300_v4  ;;  %v3664_v10 = vpop.f32.mrf.mxu0  ;;  %v23181_v19 = vand.u32 4294901760, %v9231_v40 }
 0x36a   :  { %8334 = vmatprep.mubr.f32.mxu1 %v25500_v0  ;;  %8544 = vmatpush1.msra.mxu0 %v8298_v33  ;;  %v9182_v33 = vpop.permute.xlu1 %9181  ;;  %v8771_v37 = vand.u32 4294901760, %v23126_v55  ;;  %v3757_v44 = vadd.f32 %v3756_v2, %v3664_v10  ;;  %v23163_v5 = vpop.f32.mrf.mxu1  ;;  %v8779_v10 = vand.u32 4294901760, %v8778_v47 }
 0x36b   :  { %17341 = vrot.lane.b32.xlu0 %v25500_v0, %s21608_s29  ;;  %8336 = vmatmul.mubr.f32.vlgmr.msra.gmra.mxu1 %v22885_v24  ;;  %v23149_v58 = vpop.f32.mrf.mxu0  ;;  %v23200_v2 = vsub.f32 %v9231_v40, %v23181_v19 }
 0x36c   :  { %8452 = vmatprep.subr.mxu1 %v23030_v38  ;;  %8577 = vmatprep.mubr.f32.mxu0 %v25500_v0  ;;  %v8772_v4 = vsub.f32 %v23126_v55, %v8771_v37  ;;  %v3915_v31 = vpop.f32.mrf.mxu1  ;;  %v9162_v54 = vpop.permute.xlu0 %9161 }
 0x36d   :  { %8690 = vmatprep.subr.mxu0 %v23108_v6  ;;  %8454 = vmatpush1.msra.mxu1 %v23034_v49  ;;  %v3837_v30 = vpop.f32.mrf.mxu0 }
 0x36e   :  { %8579 = vmatmul.mubr.f32.vlgmr.msra.gmra.mxu0 %v22885_v24  ;;  %17321 = vrot.lane.b32.xlu1 %v22387_v15, %s21608_s29  ;;  %v3838_v8 = vadd.f32 %v3837_v30, %v3757_v44  ;;  %v9180_v51 = vpop.permute.xlu1 %9179  ;;  %v8773_v34 = vand.u32 4294901760, %v8772_v4 }
 0x36f   :  { %8692 = vmatpush1.msra.mxu0 %v23111_v27  ;;  %8456 = vmatprep.subr.mxu1 %v23039_v59 }
 0x370   :  { %8694 = vmatprep.subr.mxu0 %v23118_v61  ;;  %8458 = vmatpush1.msra.mxu1 %v23045_v21  ;;  %v3916_v26 = vadd.f32 %v3915_v31, %v3838_v8 }
 0x371   :  { %8491 = vmatprep.mubr.f32.mxu1 %v25500_v0  ;;  %8696 = vmatpush1.msra.mxu0 %v23128_v22 }
 0x372   :  { %17323 = vrot.lane.b32.xlu0 %v25500_v0, %s21608_s29  ;;  %8495 = vmatmul.mubr.f32.vlgmr.msra.gmra.mxu1 %v22912_v60 }
 0x373   :  { %8614 = vmatprep.subr.mxu1 %v23030_v38  ;;  %8729 = vmatprep.mubr.f32.mxu0 %v25500_v0  ;;  %v23177_v38 = vpop.f32.mrf.mxu0 }
 0x374   :  { %8863 = vmatprep.subr.mxu0 %v23126_v55  ;;  %8616 = vmatpush1.msra.mxu1 %v23034_v49  ;;  %v8790_v49 = vsub.f32 %v23152_v9, %v8789_v25  ;;  %v23189_v55 = vpop.f32.mrf.mxu1 }
 0x375   :  { %8735 = vmatmul.mubr.f32.vlgmr.msra.gmra.mxu0 %v22941_v1  ;;  %19371 = vrot.lane.b32.xlu1 %v22306_v36, %s21609_s30  ;;  %v8784_v1 = vsub.f32 %v23145_v57, %v8783_v18 }
 0x376   :  { %8866 = vmatpush1.msra.mxu0 %v23135_v45  ;;  %8618 = vmatprep.subr.mxu1 %v23039_v59  ;;  %v3999_v59 = vpop.f32.mrf.mxu0  ;;  %v8791_v8 = vand.u32 4294901760, %v8790_v49  ;;  %v4075_v4 = vpop.f32.mrf.mxu1 }
 0x377   :  { %8869 = vmatprep.subr.mxu0 %v23145_v57  ;;  %8620 = vmatpush1.msra.mxu1 %v23045_v21  ;;  %v4000_v45 = vadd.f32 %v3999_v59, %v3916_v26  ;;  %v9207_v21 = vsel %vm9197_vm14, %v9182_v33, %v23139_v12  ;;  %v23196_v57 = vpop.permute.xlu1 %9165  ;;  %v8785_v44 = vand.u32 4294901760, %v8784_v1 }
 0x378   :  { %8653 = vmatprep.mubr.f32.mxu1 %v25500_v0  ;;  %8872 = vmatpush1.msra.mxu0 %v23152_v9  ;;  %v9206_v9 = vsel %vm9197_vm14, %v9180_v51, %v9182_v33  ;;  %v23203_v30 = vpop.f32.mrf.mxu0  ;;  %v23208_v47 = vand.u32 4294901760, %v9207_v21  ;;  %v9199_v40 = vsel %vm9197_vm14, %v9164_v23, %v23196_v57  ;;  %v9198_v51 = vsel %vm9197_vm14, %v9162_v54, %v9164_v23  ;;  %v23220_v31 = vpop.f32.mrf.mxu1 }
 0x379   :  { %19373 = vrot.lane.b32.xlu0 %v22326_v52, %s21609_s30  ;;  %8655 = vmatmul.mubr.f32.vlgmr.msra.gmra.mxu1 %v22885_v24  ;;  %v23212_v33 = vadd.f32 %v4075_v4, %v4000_v45  ;;  %v23223_v1 = vand.u32 4294901760, %v9199_v40 }
 0x37a   :  { %8774 = vmatprep.subr.mxu1 %v8773_v34  ;;  %8905 = vmatprep.mubr.f32.mxu0 %v25500_v0  ;;  %v4155_v26 = vpop.f32.mrf.mxu0 }
 0x37b   :  { %9023 = vmatprep.subr.mxu0 %v8771_v37  ;;  %8780 = vmatpush1.msra.mxu1 %v8779_v10  ;;  %v23214_v37 = vand.u32 4294901760, %v9206_v9  ;;  %v23248_v10 = vsub.f32 %v9199_v40, %v23223_v1 }
 0x37c   :  { %8908 = vmatmul.mubr.f32.vlgmr.msra.gmra.mxu0 %v22898_v56  ;;  %19369 = vrot.lane.b32.xlu1 %v22304_v46, %s21609_s30  ;;  %v23218_v56 = vand.u32 4294901760, %v23200_v2  ;;  %v23235_v23 = vpop.f32.mrf.mxu0 }
 0x37d   :  { %9027 = vmatpush1.msra.mxu0 %v8777_v16  ;;  %8786 = vmatprep.subr.mxu1 %v8785_v44  ;;  %v23229_v16 = vsub.f32 %v9207_v21, %v23208_v47  ;;  %v23238_v49 = vsub.f32 %v9206_v9, %v23214_v37 }
 0x37e   :  { %9031 = vmatprep.subr.mxu0 %v8783_v18  ;;  %8792 = vmatpush1.msra.mxu1 %v8791_v8  ;;  %v23231_v18 = vand.u32 4294901760, %v9198_v51  ;;  %v9305_v34 = vsub.f32 %v23200_v2, %v23218_v56  ;;  %v4328_v21 = vpop.f32.mrf.mxu0 }
 0x37f   :  { %8825 = vmatprep.mubr.f32.mxu1 %v25500_v0  ;;  %9035 = vmatpush1.msra.mxu0 %v8789_v25  ;;  %v4247_v25 = vpop.f32.mrf.mxu1  ;;  %v9343_v54 = vand.u32 4294901760, %v23229_v16  ;;  %v9349_v8 = vand.u32 4294901760, %v23238_v49 }
 0x380   :  { %19353 = vrot.lane.b32.xlu0 %v22310_v32, %s21609_s30  ;;  %8827 = vmatmul.mubr.f32.vlgmr.msra.gmra.mxu1 %v22885_v24  ;;  %v4248_v59 = vadd.f32 %v4247_v25, %v4155_v26  ;;  %v23255_v9 = vsub.f32 %v9198_v51, %v23231_v18  ;;  %v23263_v4 = vand.u32 4294901760, %v9305_v34  ;;  %v23268_v40 = vpop.f32.mrf.mxu0  ;;  %v9355_v26 = vand.u32 4294901760, %v23248_v10  ;;  %v23274_v34 = vpop.permute.xlu0 %9187 }
 0x381   :  { %8943 = vmatprep.subr.mxu1 %v23108_v6  ;;  %9068 = vmatprep.mubr.f32.mxu0 %v25500_v0  ;;  %v23252_v45 = vpop.f32.mrf.mxu1  ;;  %25514 = vst [vmem:[#allocation21_spill] sm:$0xff] %v23268_v40  ;;  %v9350_v11 = vsub.f32 %v23238_v49, %v9349_v8 }
 0x382   :  { %9262 = vmatprep.subr.mxu0 %v23208_v47  ;;  %8945 = vmatpush1.msra.mxu1 %v23111_v27  ;;  %v4329_v44 = vadd.f32 %v4328_v21, %v4248_v59  ;;  %v9361_v59 = vand.u32 4294901760, %v23255_v9  ;;  %v9186_v21 = vpop.permute.xlu1 %9185 }
 0x383   :  { %9070 = vmatmul.mubr.f32.vlgmr.msra.gmra.mxu0 %v22885_v24  ;;  %19355 = vrot.lane.b32.xlu1 %v22332_v41, %s21609_s30  ;;  %v4406_v51 = vpop.f32.mrf.mxu1 }
 0x384   :  { %9264 = vmatpush1.msra.mxu0 %v23214_v37  ;;  %8947 = vmatprep.subr.mxu1 %v23118_v61  ;;  %v4407_v25 = vadd.f32 %v4406_v51, %v4329_v44  ;;  %v4490_v44 = vpop.f32.mrf.mxu0 }
 0x385   :  { %9266 = vmatprep.subr.mxu0 %v23223_v1  ;;  %8949 = vmatpush1.msra.mxu1 %v23128_v22 }
 0x386   :  { %8982 = vmatprep.mubr.f32.mxu1 %v25500_v0  ;;  %9268 = vmatpush1.msra.mxu0 %v23231_v18  ;;  %v4491_v51 = vadd.f32 %v4490_v44, %v4407_v25  ;;  %v9168_v25 = vpop.permute.xlu1 %9167 }
 0x387   :  { %19351 = vrot.lane.b32.xlu0 %v22298_v29, %s21609_s30  ;;  %8986 = vmatmul.mubr.f32.vlgmr.msra.gmra.mxu1 %v22912_v60  ;;  %v9344_v60 = vsub.f32 %v23229_v16, %v9343_v54 }
 0x388   :  { %9105 = vmatprep.subr.mxu1 %v23108_v6  ;;  %9301 = vmatprep.mubr.f32.mxu0 %v25500_v0  ;;  %v23283_v6 = vpop.f32.mrf.mxu1 }
 0x389   :  { %9435 = vmatprep.subr.mxu0 %v23229_v16  ;;  %9107 = vmatpush1.msra.mxu1 %v23111_v27  ;;  %25515 = vst [vmem:[#allocation22_spill] sm:$0xff] %v23283_v6  ;;  %v9356_v27 = vsub.f32 %v23248_v10, %v9355_v26  ;;  %v9362_v16 = vsub.f32 %v23255_v9, %v9361_v59  ;;  %v9345_v62 = vand.u32 4294901760, %v9344_v60 }
 0x38a   :  { %9307 = vmatmul.mubr.f32.vlgmr.msra.gmra.mxu0 %v23263_v4  ;;  %19375 = vrot.lane.b32.xlu1 %v22328_v42, %s21609_s30  ;;  %v4566_v28 = vpop.f32.mrf.mxu1 }
 0x38b   :  { %9438 = vmatpush1.msra.mxu0 %v23238_v49  ;;  %9109 = vmatprep.subr.mxu1 %v23118_v61  ;;  %v9351_v61 = vand.u32 4294901760, %v9350_v11  ;;  %v23296_v49 = vadd.f32 %v4566_v28, %v4491_v51  ;;  %v9357_v60 = vand.u32 4294901760, %v9356_v27  ;;  %v9363_v11 = vand.u32 4294901760, %v9362_v16 }
 0x38c   :  { %9441 = vmatprep.subr.mxu0 %v23248_v10  ;;  %9111 = vmatpush1.msra.mxu1 %v23128_v22  ;;  %v9209_v22 = vsel %vm9197_vm14, %v9186_v21, %v23274_v34  ;;  %v23300_v10 = vpop.permute.xlu0 %9169 }
 0x38d   :  { %9144 = vmatprep.mubr.f32.mxu1 %v25500_v0  ;;  %9444 = vmatpush1.msra.mxu0 %v23255_v9  ;;  %v9208_v9 = vsel %vm9197_vm14, %v23139_v12, %v9186_v21  ;;  %v23310_v28 = vand.u32 4294901760, %v9209_v22 }
 0x38e   :  { %19377 = vrot.lane.b32.xlu0 %v22350_v43, %s21609_s30  ;;  %9146 = vmatmul.mubr.f32.vlgmr.msra.gmra.mxu1 %v22885_v24  ;;  %v23308_v24 = vpop.f32.mrf.mxu0  ;;  %v23314_v12 = vand.u32 4294901760, %v9208_v9 }
 0x38f   :  { %9346 = vmatprep.subr.mxu1 %v9345_v62  ;;  %9477 = vmatprep.mubr.f32.mxu0 %v25500_v0  ;;  %25516 = vst [vmem:[#allocation23_spill] sm:$0xff] %v23308_v24  ;;  %v9201_v62 = vsel %vm9197_vm14, %v9168_v25, %v23300_v10 }
 0x390   :  { %9595 = vmatprep.subr.mxu0 %v9343_v54  ;;  %9352 = vmatpush1.msra.mxu1 %v9351_v61  ;;  %v9200_v54 = vsel %vm9197_vm14, %v23196_v57, %v9168_v25  ;;  %v4646_v21 = vpop.f32.mrf.mxu0  ;;  %v23319_v44 = vand.u32 4294901760, %v9201_v62  ;;  %v23331_v57 = vpop.f32.mrf.mxu1 }
 0x391   :  { %9480 = vmatmul.mubr.f32.vlgmr.msra.gmra.mxu0 %v23200_v2  ;;  %19357 = vrot.lane.b32.xlu1 %v22336_v53, %s21609_s30  ;;  %v23327_v51 = vand.u32 4294901760, %v9200_v54  ;;  %25517 = vst [vmem:[#allocation24_spill] sm:$0xff] %v23331_v57 }
 0x392   :  { %9599 = vmatpush1.msra.mxu0 %v9349_v8  ;;  %9358 = vmatprep.subr.mxu1 %v9357_v60  ;;  %v23325_v8 = vsub.f32 %v9209_v22, %v23310_v28  ;;  %v23344_v16 = vsub.f32 %v9201_v62, %v23319_v44 }
 0x393   :  { %9603 = vmatprep.subr.mxu0 %v9355_v26  ;;  %9364 = vmatpush1.msra.mxu1 %v9363_v11  ;;  %v23333_v26 = vpop.f32.mrf.mxu0  ;;  %v23355_v11 = vpop.permute.xlu0 %9191 }
 0x394   :  { %9397 = vmatprep.mubr.f32.mxu1 %v25500_v0  ;;  %9607 = vmatpush1.msra.mxu0 %v9361_v59  ;;  %25518 = vst [vmem:[#allocation25_spill] sm:$0xff] %v23333_v26  ;;  %v23336_v59 = vsub.f32 %v9208_v9, %v23314_v12  ;;  %v23349_v9 = vsub.f32 %v9200_v54, %v23327_v51  ;;  %v9834_v25 = vand.u32 4294901760, %v23325_v8  ;;  %v9846_v39 = vand.u32 4294901760, %v23344_v16 }
 0x395   :  { %19359 = vrot.lane.b32.xlu0 %v22356_v14, %s21609_s30  ;;  %9399 = vmatmul.mubr.f32.vlgmr.msra.gmra.mxu1 %v23181_v19  ;;  %v4819_v22 = vpop.f32.mrf.mxu0 }
 0x396   :  { %9515 = vmatprep.subr.mxu1 %v23208_v47  ;;  %9640 = vmatprep.mubr.f32.mxu0 %v25500_v0  ;;  %v9840_v60 = vand.u32 4294901760, %v23336_v59  ;;  %v9852_v3 = vand.u32 4294901760, %v23349_v9  ;;  %v9835_v20 = vsub.f32 %v23325_v8, %v9834_v25 }
 0x397   :  { %9753 = vmatprep.subr.mxu0 %v23310_v28  ;;  %9517 = vmatpush1.msra.mxu1 %v23214_v37 }
 0x398   :  { %9642 = vmatmul.mubr.f32.vlgmr.msra.gmra.mxu0 %v23181_v19  ;;  %19379 = vrot.lane.b32.xlu1 %v22352_v7, %s21609_s30  ;;  %v4738_v27 = vpop.f32.mrf.mxu1  ;;  %v9841_v35 = vsub.f32 %v23336_v59, %v9840_v60  ;;  %v9836_v57 = vand.u32 4294901760, %v9835_v20 }
 0x399   :  { %9755 = vmatpush1.msra.mxu0 %v23314_v12  ;;  %9519 = vmatprep.subr.mxu1 %v23223_v1  ;;  %v4739_v61 = vadd.f32 %v4738_v27, %v4646_v21  ;;  %v23364_v21 = vpop.f32.mrf.mxu0  ;;  %v9190_v27 = vpop.permute.xlu1 %9189 }
 0x39a   :  { %9757 = vmatprep.subr.mxu0 %v23319_v44  ;;  %9521 = vmatpush1.msra.mxu1 %v23231_v18  ;;  %v23359_v62 = vpop.f32.mrf.mxu1  ;;  %25520 = vst [vmem:[#allocation27_spill] sm:$0xff] %v23364_v21  ;;  %v25521_v21 = vmov 0.0  }
 0x39b   :  { %9554 = vmatprep.mubr.f32.mxu1 %v25500_v0  ;;  %9759 = vmatpush1.msra.mxu0 %v23327_v51  ;;  %25519 = vst [vmem:[#allocation26_spill] sm:$0xff] %v23359_v62  ;;  %v4820_v54 = vadd.f32 %v4819_v22, %v4739_v61  ;;  %v4981_v61 = vpop.f32.mrf.mxu0 }
 0x39c   :  { %19381 = vrot.lane.b32.xlu0 %v22374_v13, %s21609_s30  ;;  %9558 = vmatmul.mubr.f32.vlgmr.msra.gmra.mxu1 %v23218_v56 }
 0x39d   :  { %9677 = vmatprep.subr.mxu1 %v23208_v47  ;;  %9792 = vmatprep.mubr.f32.mxu0 %v25500_v0  ;;  %v23379_v0 = vpop.permute.xlu0 %9173 }
 0x39e   :  { %9926 = vmatprep.subr.mxu0 %v23325_v8  ;;  %9679 = vmatpush1.msra.mxu1 %v23214_v37  ;;  %v9847_v37 = vsub.f32 %v23344_v16, %v9846_v39  ;;  %v9853_v8 = vsub.f32 %v23349_v9, %v9852_v3 }
 0x39f   :  { %9798 = vmatmul.mubr.f32.vlgmr.msra.gmra.mxu0 %v23263_v4  ;;  %19361 = vrot.lane.b32.xlu1 %v22360_v17, %s21609_s30  ;;  %v4897_v47 = vpop.f32.mrf.mxu1 }
 0x3a0   :  { %9929 = vmatpush1.msra.mxu0 %v23336_v59  ;;  %9681 = vmatprep.subr.mxu1 %v23223_v1  ;;  %v4898_v22 = vadd.f32 %v4897_v47, %v4820_v54  ;;  %v23389_v59 = vpop.f32.mrf.mxu0  ;;  %v9211_v1 = vsel %vm9197_vm14, %v9190_v27, %v23355_v11  ;;  %v9172_v54 = vpop.permute.xlu1 %9171  ;;  %v9210_v47 = vsel %vm9197_vm14, %v23274_v34, %v9190_v27 }
 0x3a1   :  { %9932 = vmatprep.subr.mxu0 %v23344_v16  ;;  %9683 = vmatpush1.msra.mxu1 %v23231_v18  ;;  %v23387_v62 = vpop.f32.mrf.mxu1  ;;  %25523 = vst [vmem:[#allocation29_spill] sm:$0xff] %v23389_v59  ;;  %v9842_v18 = vand.u32 4294901760, %v9841_v35  ;;  %v9203_v20 = vsel %vm9197_vm14, %v9172_v54, %v23379_v0  ;;  %v9202_v26 = vsel %vm9197_vm14, %v23300_v10, %v9172_v54  ;;  %v9854_v35 = vand.u32 4294901760, %v9853_v8 }
 0x3a2   :  { %9716 = vmatprep.mubr.f32.mxu1 %v25521_v21  ;;  %9935 = vmatpush1.msra.mxu0 %v23349_v9  ;;  %25522 = vst [vmem:[#allocation28_spill] sm:$0xff] %v23387_v62  ;;  %v4982_v16 = vadd.f32 %v4981_v61, %v4898_v22  ;;  %v9848_v9 = vand.u32 4294901760, %v9847_v37  ;;  %v5218_v59 = vpop.f32.mrf.mxu0  ;;  %v23401_v62 = vand.u32 4294901760, %v9211_v1  ;;  %v23412_v27 = vand.u32 4294901760, %v9203_v20 }
 0x3a3   :  { %19363 = vrot.lane.b32.xlu0 %v22381_v63, %s21609_s30  ;;  %9718 = vmatmul.mubr.f32.vlgmr.msra.gmra.mxu1 %v23181_v19  ;;  %v23414_v61 = vand.u32 4294901760, %v9202_v26 }
 0x3a4   :  { %9837 = vmatprep.subr.mxu1 %v9836_v57  ;;  %9968 = vmatprep.mubr.f32.mxu0 %v25521_v21  ;;  %v23408_v57 = vand.u32 4294901760, %v9210_v47  ;;  %v23419_v22 = vpop.f32.mrf.mxu0  ;;  %v23422_v37 = vsub.f32 %v9211_v1, %v23401_v62  ;;  %v9196_v1 = vpop.permute.xlu0 %9195 }
 0x3a5   :  { %10086 = vmatprep.subr.mxu0 %v9834_v25  ;;  %9843 = vmatpush1.msra.mxu1 %v9842_v18  ;;  %25525 = vst [vmem:[#allocation31_spill] sm:$0xff] %v23419_v22  ;;  %v23438_v8 = vsub.f32 %v9202_v26, %v23414_v61  ;;  %v9194_v26 = vpop.permute.xlu1 %9193 }
 0x3a6   :  { %9971 = vmatmul.mubr.f32.vlgmr.msra.gmra.mxu0 %v23200_v2  ;;  %19383 = vrot.lane.b32.xlu1 %v22376_v50, %s21609_s30  ;;  %v5057_v34 = vpop.f32.mrf.mxu1  ;;  %v10325_v18 = vand.u32 4294901760, %v23422_v37  ;;  %v9213_v24 = vsel %vm9197_vm14, %v9194_v26, %v9196_v1 }
 0x3a7   :  { %10090 = vmatpush1.msra.mxu0 %v9840_v60  ;;  %9849 = vmatprep.subr.mxu1 %v9848_v9  ;;  %v23410_v25 = vadd.f32 %v5057_v34, %v4982_v16  ;;  %v23433_v60 = vsub.f32 %v9203_v20, %v23412_v27 }
 0x3a8   :  { %10094 = vmatprep.subr.mxu0 %v9846_v39  ;;  %9855 = vmatpush1.msra.mxu1 %v9854_v35  ;;  %v23417_v10 = vpop.f32.mrf.mxu1  ;;  %v23428_v39 = vsub.f32 %v9210_v47, %v23408_v57 }
 0x3a9   :  { %9888 = vmatprep.mubr.f32.mxu1 %v25521_v21  ;;  %10098 = vmatpush1.msra.mxu0 %v9852_v3  ;;  %25524 = vst [vmem:[#allocation30_spill] sm:$0xff] %v23417_v10  ;;  %v5391_v3 = vpop.f32.mrf.mxu0  ;;  %v10337_v9 = vand.u32 4294901760, %v23433_v60  ;;  %v9178_v10 = vpop.permute.xlu0 %9177 }
 0x3aa   :  { %19385 = vrot.lane.b32.xlu0 %v25521_v21, %s21609_s30  ;;  %9890 = vmatmul.mubr.f32.vlgmr.msra.gmra.mxu1 %v23181_v19  ;;  %v10331_v20 = vand.u32 4294901760, %v23428_v39  ;;  %v9176_v6 = vpop.permute.xlu1 %9175 }
 0x3ab   :  { %10006 = vmatprep.subr.mxu1 %v23310_v28  ;;  %10131 = vmatprep.mubr.f32.mxu0 %v25521_v21  ;;  %v23446_v47 = vpop.f32.mrf.mxu0 }
 0x3ac   :  { %10244 = vmatprep.subr.mxu0 %v23401_v62  ;;  %10008 = vmatpush1.msra.mxu1 %v23314_v12  ;;  %25526 = vst [vmem:[#allocation32_spill] sm:$0xff] %v23446_v47  ;;  %v10326_v47 = vsub.f32 %v23422_v37, %v10325_v18  ;;  %v10332_v22 = vsub.f32 %v23428_v39, %v10331_v20 }
 0x3ad   :  { %10133 = vmatmul.mubr.f32.vlgmr.msra.gmra.mxu0 %v23181_v19  ;;  %19365 = vrot.lane.b32.xlu1 %v22387_v15, %s21609_s30  ;;  %v5310_v54 = vpop.f32.mrf.mxu1 }
 0x3ae   :  { %10246 = vmatpush1.msra.mxu0 %v23408_v57  ;;  %10010 = vmatprep.subr.mxu1 %v23319_v44  ;;  %v5311_v16 = vadd.f32 %v5310_v54, %v5218_v59  ;;  %v10343_v59 = vand.u32 4294901760, %v23438_v8  ;;  %v10333_v1 = vand.u32 4294901760, %v10332_v22  ;;  %v23494_v22 = vstv %s25497_s5  ;;  %s21618_s5 = smov [#allocation10]  }
 0x3af   :  { %10248 = vmatprep.subr.mxu0 %v23412_v27  ;;  %10012 = vmatpush1.msra.mxu1 %v23327_v51  ;;  %v23454_v34 = vpop.f32.mrf.mxu1  ;;  %25530 = vst [vmem:[#allocation36_spill] sm:$0xff] %v23494_v22  ;;  %s21467_s20 = sshll.u32 %s21618_s5, 4  ;;  %s21468_s20 = int_to_ptr.vmem [resolvable:$true] %s21467_s20 }
 0x3b0   :  { %10045 = vmatprep.mubr.f32.mxu1 %v25521_v21  ;;  %10250 = vmatpush1.msra.mxu0 %v23414_v61  ;;  %v5392_v35 = vadd.f32 %v5391_v3, %v5311_v16  ;;  %25527 = vst [vmem:[#allocation33_spill] sm:$0xff] %v23454_v34  ;;  %v5553_v54 = vpop.f32.mrf.mxu0  ;;  %v10338_v3 = vsub.f32 %v23433_v60, %v10337_v9  ;;  %s21556_s21 = scalar_lea.vmem %s21468_s20, 128  ;;  %p21561_p11 = scmp.lt.s32.totalorder %s21468_s20, %s21468_s20 }
 0x3b1   :  { %19367 = vrot.lane.b32.xlu0 %v25521_v21, %s21609_s30  ;;  %10049 = vmatmul.mubr.f32.vlgmr.msra.gmra.mxu1 %v23218_v56  ;;  %p21557_p10 = scmp.ne.s32.totalorder %s21468_s20, %s21556_s21  ;;  %p21562_p12 = scmp.lt.s32.totalorder %s21556_s21, %s21556_s21 }
 0x3b2   :  { %10168 = vmatprep.subr.mxu1 %v23310_v28  ;;  %10283 = vmatprep.mubr.f32.mxu0 %v25521_v21  ;;  %v23469_v34 = vpop.f32.mrf.mxu0  ;;  %v10344_v28 = vsub.f32 %v23438_v8, %v10343_v59 }
 0x3b3   :  { %10417 = vmatprep.subr.mxu0 %v23422_v37  ;;  %10170 = vmatpush1.msra.mxu1 %v23314_v12  ;;  %25528 = vst [vmem:[#allocation34_spill] sm:$0xff] %v23469_v34  ;;  %v9212_v12 = vsel %vm9197_vm14, %v23355_v11, %v9194_v26  ;;  %v9205_v34 = vsel %vm9197_vm14, %v9176_v6, %v9178_v10  ;;  %p21563_p13 = por %p21562_p12, %p21561_p11 }
 0x3b4   :  { %10289 = vmatmul.mubr.f32.vlgmr.msra.gmra.mxu0 %v23263_v4  ;;  %10172 = vmatprep.subr.mxu1 %v23319_v44  ;;  %v5469_v16 = vpop.f32.mrf.mxu1  ;;  %v10327_v44 = vand.u32 4294901760, %v10326_v47  ;;  %v9204_v11 = vsel %vm9197_vm14, %v23379_v0, %v9176_v6  ;;  %v23489_v47 = vand.u32 4294901760, %v9212_v12  ;;  %v10345_v10 = vand.u32 4294901760, %v10344_v28 }
 0x3b5   :  { %10420 = vmatpush1.msra.mxu0 %v23428_v39  ;;  %10174 = vmatpush1.msra.mxu1 %v23327_v51  ;;  %v5470_v37 = vadd.f32 %v5469_v16, %v5392_v35  ;;  %v23484_v35 = vand.u32 4294901760, %v9213_v24  ;;  %v23501_v6 = vand.u32 4294901760, %v9204_v11  ;;  %p21564_p0 = pnand %p21563_p13, %p21557_p10 }
 0x3b6   :  { %10423 = vmatprep.subr.mxu0 %v23433_v60  ;;  %10207 = vmatprep.mubr.f32.mxu1 %v25521_v21  ;;  %v23482_v39 = vpop.f32.mrf.mxu1  ;;  %v10339_v60 = vand.u32 4294901760, %v10338_v3  ;;  %v23510_v16 = vsub.f32 %v9212_v12, %v23489_v47 }
 0x3b7   :  { %10426 = vmatpush1.msra.mxu0 %v23438_v8  ;;  %10209 = vmatmul.mubr.f32.vlgmr.msra.gmra.mxu1 %v23181_v19  ;;  %v5554_v40 = vadd.f32 %v5553_v54, %v5470_v37  ;;  %25529 = vst [vmem:[#allocation35_spill] sm:$0xff] %v23482_v39  ;;  %v5709_v51 = vpop.f32.mrf.mxu0  ;;  %v23496_v8 = vand.u32 4294901760, %v9205_v34  ;;  %v5062_v54 = vadd.f32 %v23123_v48, %v23494_v22 }
 0x3b8   :  { %10328 = vmatprep.subr.mxu1 %v10327_v44  ;;  %10459 = vmatprep.mubr.f32.mxu0 %v25521_v21 }
 0x3b9   :  { %10577 = vmatprep.subr.mxu0 %v10325_v18  ;;  %10334 = vmatpush1.msra.mxu1 %v10333_v1  ;;  %v23499_v0 = vpop.f32.mrf.mxu0  ;;  %v23504_v18 = vsub.f32 %v9213_v24, %v23484_v35  ;;  %v11205_v24 = vld [vmem:[#allocation8 + $0x4] sm:$0x1] }
 0x3ba   :  { %10462 = vmatmul.mubr.f32.vlgmr.msra.gmra.mxu0 %v23200_v2  ;;  %10340 = vmatprep.subr.mxu1 %v10339_v60  ;;  %v11207_v37 = vsel %vm3094_vm0, %v11205_v24, 0 }
 0x3bb   :  { %10581 = vmatpush1.msra.mxu0 %v10331_v20  ;;  %10346 = vmatpush1.msra.mxu1 %v10345_v10  ;;  %v5629_v26 = vpop.f32.mrf.mxu1  ;;  %v23514_v20 = vsub.f32 %v9205_v34, %v23496_v8  ;;  %v10816_v34 = vand.u32 4294901760, %v23504_v18 }
 0x3bc   :  { %10585 = vmatprep.subr.mxu0 %v10337_v9  ;;  %10379 = vmatprep.mubr.f32.mxu1 %v25521_v21  ;;  %v5630_v3 = vadd.f32 %v5629_v26, %v5554_v40  ;;  %v23523_v40 = vsub.f32 %v9204_v11, %v23501_v6  ;;  %v23545_v26 = vand.u32 4294901760, %v11207_v37 }
 0x3bd   :  { %10589 = vmatpush1.msra.mxu0 %v10343_v59  ;;  %10381 = vmatmul.mubr.f32.vlgmr.msra.gmra.mxu1 %v23181_v19  ;;  %v23520_v28 = vpop.f32.mrf.mxu1  ;;  %v10822_v59 = vand.u32 4294901760, %v23510_v16  ;;  %v10828_v44 = vand.u32 4294901760, %v23514_v20  ;;  %v10817_v10 = vsub.f32 %v23504_v18, %v10816_v34 }
 0x3be   :  { %10497 = vmatprep.subr.mxu1 %v23401_v62  ;;  %10622 = vmatprep.mubr.f32.mxu0 %v25521_v21  ;;  %v23518_v9 = vadd.f32 %v5630_v3, %v5062_v54  ;;  %25531 = vst [vmem:[#allocation37_spill] sm:$0xff] %v23520_v28  ;;  %v5882_v48 = vpop.f32.mrf.mxu0  ;;  %v10834_v11 = vand.u32 4294901760, %v23523_v40 }
 0x3bf   :  { %10735 = vmatprep.subr.mxu0 %v23484_v35  ;;  %10499 = vmatpush1.msra.mxu1 %v23408_v57  ;;  %v10823_v54 = vsub.f32 %v23510_v16, %v10822_v59 }
 0x3c0   :  { %10624 = vmatmul.mubr.f32.vlgmr.msra.gmra.mxu0 %v23181_v19  ;;  %10501 = vmatprep.subr.mxu1 %v23412_v27  ;;  %v23534_v12 = vpop.f32.mrf.mxu0 }
 0x3c1   :  { %10737 = vmatpush1.msra.mxu0 %v23489_v47  ;;  %10503 = vmatpush1.msra.mxu1 %v23414_v61 }
 0x3c2   :  { %10739 = vmatprep.subr.mxu0 %v23496_v8  ;;  %10536 = vmatprep.mubr.f32.mxu1 %v25521_v21  ;;  %v5801_v1 = vpop.f32.mrf.mxu1 }
 0x3c3   :  { %10741 = vmatpush1.msra.mxu0 %v23501_v6  ;;  %10540 = vmatmul.mubr.f32.vlgmr.msra.gmra.mxu1 %v23218_v56  ;;  %v5802_v60 = vadd.f32 %v5801_v1, %v5709_v51  ;;  %v10835_v1 = vsub.f32 %v23523_v40, %v10834_v11 }
 0x3c4   :  { %10659 = vmatprep.subr.mxu1 %v23401_v62  ;;  %10774 = vmatprep.mubr.f32.mxu0 %v25521_v21  ;;  %v23550_v3 = vpop.f32.mrf.mxu1  ;;  %v10829_v62 = vsub.f32 %v23514_v20, %v10828_v44 }
 0x3c5   :  { %10908 = vmatprep.subr.mxu0 %v23504_v18  ;;  %10661 = vmatpush1.msra.mxu1 %v23408_v57  ;;  %v6044_v24 = vpop.f32.mrf.mxu0  ;;  %v5883_v51 = vadd.f32 %v5882_v48, %v5802_v60  ;;  %v10818_v57 = vand.u32 4294901760, %v10817_v10  ;;  %v23561_v18 = vsub.f32 %v11207_v37, %v23545_v26  ;;  %v10836_v37 = vand.u32 4294901760, %v10835_v1 }
 0x3c6   :  { %10780 = vmatmul.mubr.f32.vlgmr.msra.gmra.mxu0 %v23263_v4  ;;  %10663 = vmatprep.subr.mxu1 %v23412_v27  ;;  %v10824_v27 = vand.u32 4294901760, %v10823_v54  ;;  %v23572_v60 = vand.u32 4294901760, %v22304_v46 }
 0x3c7   :  { %10911 = vmatpush1.msra.mxu0 %v23510_v16  ;;  %10665 = vmatpush1.msra.mxu1 %v23414_v61  ;;  %v23563_v4 = vpop.f32.mrf.mxu0  ;;  %v10830_v61 = vand.u32 4294901760, %v10829_v62  ;;  %v23569_v16 = vand.u32 4294901760, %v22306_v36  ;;  %v23579_v10 = vand.u32 4294901760, %v23561_v18 }
 0x3c8   :  { %10914 = vmatprep.subr.mxu0 %v23514_v20  ;;  %10698 = vmatprep.mubr.f32.mxu1 %v25521_v21  ;;  %v23592_v1 = vsub.f32 %v22304_v46, %v23572_v60 }
 0x3c9   :  { %10917 = vmatpush1.msra.mxu0 %v23523_v40  ;;  %10700 = vmatmul.mubr.f32.vlgmr.msra.gmra.mxu1 %v23181_v19  ;;  %v5960_v48 = vpop.f32.mrf.mxu1  ;;  %v23576_v40 = vand.u32 4294901760, %v22310_v32 }
 0x3ca   :  { %10819 = vmatprep.subr.mxu1 %v10818_v57  ;;  %10950 = vmatprep.mubr.f32.mxu0 %v25521_v21  ;;  %v5961_v20 = vadd.f32 %v5960_v48, %v5883_v51 }
 0x3cb   :  { %11068 = vmatprep.subr.mxu0 %v10816_v34  ;;  %10825 = vmatpush1.msra.mxu1 %v10824_v27  ;;  %v23581_v54 = vpop.f32.mrf.mxu1  ;;  %v23584_v34 = vand.u32 4294901760, %v22298_v29  ;;  %v5064_v27 = vadd.f32 %v23212_v33, %v23494_v22 }
 0x3cc   :  { %10953 = vmatmul.mubr.f32.vlgmr.msra.gmra.mxu0 %v23200_v2  ;;  %10831 = vmatprep.subr.mxu1 %v10830_v61  ;;  %v6200_v62 = vpop.f32.mrf.mxu0  ;;  %v6045_v51 = vadd.f32 %v6044_v24, %v5961_v20  ;;  %v11318_v2 = vsub.f32 %v22306_v36, %v23569_v16 }
 0x3cd   :  { %11072 = vmatpush1.msra.mxu0 %v10822_v59  ;;  %10837 = vmatpush1.msra.mxu1 %v10836_v37  ;;  %v11281_v59 = vsub.f32 %v23561_v18, %v23579_v10  ;;  %v23608_v46 = vsub.f32 %v22298_v29, %v23584_v34 }
 0x3ce   :  { %11076 = vmatprep.subr.mxu0 %v10828_v44  ;;  %10870 = vmatprep.mubr.f32.mxu1 %v25521_v21  ;;  %v23594_v57 = vpop.f32.mrf.mxu0  ;;  %v23602_v44 = vsub.f32 %v22310_v32, %v23576_v40  ;;  %v11319_v24 = vand.u32 4294901760, %v11318_v2  ;;  %v11325_v32 = vand.u32 4294901760, %v23592_v1 }
 0x3cf   :  { %11080 = vmatpush1.msra.mxu0 %v10834_v11  ;;  %10872 = vmatmul.mubr.f32.vlgmr.msra.gmra.mxu1 %v23181_v19  ;;  %25532 = vst [vmem:[#allocation38_spill] sm:$0xff] %v23594_v57  ;;  %v23621_v29 = vand.u32 4294901760, %v11281_v59  ;;  %v11337_v33 = vand.u32 4294901760, %v23608_v46 }
 0x3d0   :  { %10988 = vmatprep.subr.mxu1 %v23484_v35  ;;  %11113 = vmatprep.mubr.f32.mxu0 %v25521_v21  ;;  %v6120_v36 = vpop.f32.mrf.mxu1  ;;  %v11331_v20 = vand.u32 4294901760, %v23602_v44  ;;  %v11326_v59 = vsub.f32 %v23592_v1, %v11325_v32 }
 0x3d1   :  { %11238 = vmatprep.subr.mxu0 %v23569_v16  ;;  %10990 = vmatpush1.msra.mxu1 %v23489_v47  ;;  %v6121_v11 = vadd.f32 %v6120_v36, %v6045_v51  ;;  %v11320_v51 = vsub.f32 %v11318_v2, %v11319_v24 }
 0x3d2   :  { %11115 = vmatmul.mubr.f32.vlgmr.msra.gmra.mxu0 %v23181_v19  ;;  %10992 = vmatprep.subr.mxu1 %v23496_v8  ;;  %v23617_v48 = vpop.f32.mrf.mxu1 }
 0x3d3   :  { %11240 = vmatpush1.msra.mxu0 %v23572_v60  ;;  %10994 = vmatpush1.msra.mxu1 %v23501_v6  ;;  %25533 = vst [vmem:[#allocation39_spill] sm:$0xff] %v23617_v48  ;;  %v6373_v61 = vpop.f32.mrf.mxu0  ;;  %v23624_v37 = vadd.f32 %v6121_v11, %v5064_v27 }
 0x3d4   :  { %11242 = vmatprep.subr.mxu0 %v23576_v40  ;;  %11027 = vmatprep.mubr.f32.mxu1 %v25521_v21 }
 0x3d5   :  { %11244 = vmatpush1.msra.mxu0 %v23584_v34  ;;  %11031 = vmatmul.mubr.f32.vlgmr.msra.gmra.mxu1 %v23218_v56  ;;  %v23631_v36 = vpop.f32.mrf.mxu0  ;;  %v11332_v56 = vsub.f32 %v23602_v44, %v11331_v20 }
 0x3d6   :  { %11150 = vmatprep.subr.mxu1 %v23484_v35  ;;  %11277 = vmatprep.mubr.f32.mxu0 %v25521_v21  ;;  %25534 = vst [vmem:[#allocation40_spill] sm:$0xff] %v23631_v36  ;;  %v11338_v35 = vsub.f32 %v23608_v46, %v11337_v33 }
 0x3d7   :  { %11411 = vmatprep.subr.mxu0 %v11318_v2  ;;  %11152 = vmatpush1.msra.mxu1 %v23489_v47  ;;  %v6292_v11 = vpop.f32.mrf.mxu1  ;;  %v11321_v47 = vand.u32 4294901760, %v11320_v51  ;;  %v23652_v51 = vand.u32 4294901760, %v22326_v52 }
 0x3d8   :  { %11283 = vmatmul.mubr.f32.vlgmr.msra.gmra.mxu0 %v23621_v29  ;;  %11154 = vmatprep.subr.mxu1 %v23496_v8  ;;  %v6293_v27 = vadd.f32 %v6292_v11, %v6200_v62  ;;  %v11327_v8 = vand.u32 4294901760, %v11326_v59 }
 0x3d9   :  { %11414 = vmatpush1.msra.mxu0 %v23592_v1  ;;  %11156 = vmatpush1.msra.mxu1 %v23501_v6  ;;  %v23643_v2 = vpop.f32.mrf.mxu1  ;;  %v11333_v6 = vand.u32 4294901760, %v11332_v56  ;;  %v23649_v1 = vand.u32 4294901760, %v22328_v42  ;;  %v23669_v56 = vsub.f32 %v22326_v52, %v23652_v51 }
 0x3da   :  { %11417 = vmatprep.subr.mxu0 %v23602_v44  ;;  %11189 = vmatprep.mubr.f32.mxu1 %v25521_v21  ;;  %25535 = vst [vmem:[#allocation41_spill] sm:$0xff] %v23643_v2  ;;  %v6535_v28 = vpop.f32.mrf.mxu0  ;;  %v6374_v62 = vadd.f32 %v6373_v61, %v6293_v27  ;;  %v11339_v44 = vand.u32 4294901760, %v11338_v35  ;;  %v23661_v61 = vand.u32 4294901760, %v22332_v41 }
 0x3db   :  { %11420 = vmatpush1.msra.mxu0 %v23608_v46  ;;  %11191 = vmatmul.mubr.f32.vlgmr.msra.gmra.mxu1 %v23181_v19  ;;  %v23658_v19 = vand.u32 4294901760, %v22336_v53  ;;  %v11809_v59 = vsub.f32 %v22328_v42, %v23649_v1 }
 0x3dc   :  { %11322 = vmatprep.subr.mxu1 %v11321_v47  ;;  %11453 = vmatprep.mubr.f32.mxu0 %v25521_v21  ;;  %v23654_v11 = vpop.f32.mrf.mxu0  ;;  %v11827_v42 = vsub.f32 %v22332_v41, %v23661_v61  ;;  %v5066_v41 = vadd.f32 %v23296_v49, %v23494_v22 }
 0x3dd   :  { %11571 = vmatprep.subr.mxu0 %v11319_v24  ;;  %11328 = vmatpush1.msra.mxu1 %v11327_v8  ;;  %25536 = vst [vmem:[#allocation42_spill] sm:$0xff] %v23654_v11  ;;  %v11810_v52 = vand.u32 4294901760, %v11809_v59 }
 0x3de   :  { %11456 = vmatmul.mubr.f32.vlgmr.msra.gmra.mxu0 %v23561_v18  ;;  %11334 = vmatprep.subr.mxu1 %v11333_v6  ;;  %v6451_v46 = vpop.f32.mrf.mxu1 }
 0x3df   :  { %11575 = vmatpush1.msra.mxu0 %v11325_v32  ;;  %11340 = vmatpush1.msra.mxu1 %v11339_v44  ;;  %v6452_v24 = vadd.f32 %v6451_v46, %v6374_v62  ;;  %v11828_v62 = vand.u32 4294901760, %v11827_v42  ;;  %v11811_v6 = vsub.f32 %v11809_v59, %v11810_v52 }
 0x3e0   :  { %11579 = vmatprep.subr.mxu0 %v11331_v20  ;;  %11373 = vmatprep.mubr.f32.mxu1 %v25521_v21  ;;  %v23671_v27 = vpop.f32.mrf.mxu1  ;;  %v11821_v20 = vsub.f32 %v22336_v53, %v23658_v19  ;;  %v11816_v53 = vand.u32 4294901760, %v23669_v56 }
 0x3e1   :  { %11583 = vmatpush1.msra.mxu0 %v11337_v33  ;;  %11375 = vmatmul.mubr.f32.vlgmr.msra.gmra.mxu1 %v23545_v26  ;;  %25537 = vst [vmem:[#allocation43_spill] sm:$0xff] %v23671_v27  ;;  %v6691_v32 = vpop.f32.mrf.mxu0  ;;  %v6536_v35 = vadd.f32 %v6535_v28, %v6452_v24 }
 0x3e2   :  { %11491 = vmatprep.subr.mxu1 %v23569_v16  ;;  %11616 = vmatprep.mubr.f32.mxu0 %v25521_v21  ;;  %v11822_v47 = vand.u32 4294901760, %v11821_v20  ;;  %v11817_v49 = vsub.f32 %v23669_v56, %v11816_v53 }
 0x3e3   :  { %11729 = vmatprep.subr.mxu0 %v23649_v1  ;;  %11493 = vmatpush1.msra.mxu1 %v23572_v60  ;;  %v23683_v33 = vpop.f32.mrf.mxu0 }
 0x3e4   :  { %11618 = vmatmul.mubr.f32.vlgmr.msra.gmra.mxu0 %v23545_v26  ;;  %11495 = vmatprep.subr.mxu1 %v23576_v40  ;;  %25538 = vst [vmem:[#allocation44_spill] sm:$0xff] %v23683_v33 }
 0x3e5   :  { %11731 = vmatpush1.msra.mxu0 %v23652_v51  ;;  %11497 = vmatpush1.msra.mxu1 %v23584_v34  ;;  %v6611_v28 = vpop.f32.mrf.mxu1 }
 0x3e6   :  { %11733 = vmatprep.subr.mxu0 %v23658_v19  ;;  %11530 = vmatprep.mubr.f32.mxu1 %v25521_v21  ;;  %v6612_v8 = vadd.f32 %v6611_v28, %v6536_v35  ;;  %v11823_v35 = vsub.f32 %v11821_v20, %v11822_v47 }
 0x3e7   :  { %11735 = vmatpush1.msra.mxu0 %v23661_v61  ;;  %11534 = vmatmul.mubr.f32.vlgmr.msra.gmra.mxu1 %v23579_v10  ;;  %v23698_v46 = vpop.f32.mrf.mxu1 }
 0x3e8   :  { %11653 = vmatprep.subr.mxu1 %v23569_v16  ;;  %11768 = vmatprep.mubr.f32.mxu0 %v25521_v21  ;;  %v23696_v44 = vadd.f32 %v6612_v8, %v5066_v41  ;;  %25539 = vst [vmem:[#allocation45_spill] sm:$0xff] %v23698_v46  ;;  %v6864_v24 = vpop.f32.mrf.mxu0  ;;  %v11829_v16 = vsub.f32 %v11827_v42, %v11828_v62 }
 0x3e9   :  { %11902 = vmatprep.subr.mxu0 %v11809_v59  ;;  %11655 = vmatpush1.msra.mxu1 %v23572_v60  ;;  %v11812_v59 = vand.u32 4294901760, %v11811_v6  ;;  %v11818_v60 = vand.u32 4294901760, %v11817_v49  ;;  %v23724_v49 = vand.u32 4294901760, %v22356_v14 }
 0x3ea   :  { %11774 = vmatmul.mubr.f32.vlgmr.msra.gmra.mxu0 %v23621_v29  ;;  %11657 = vmatprep.subr.mxu1 %v23576_v40  ;;  %v23706_v28 = vpop.f32.mrf.mxu0  ;;  %v11824_v40 = vand.u32 4294901760, %v11823_v35 }
 0x3eb   :  { %11905 = vmatpush1.msra.mxu0 %v23669_v56  ;;  %11659 = vmatpush1.msra.mxu1 %v23584_v34  ;;  %25540 = vst [vmem:[#allocation46_spill] sm:$0xff] %v23706_v28  ;;  %v23712_v56 = vand.u32 4294901760, %v22352_v7  ;;  %v11830_v34 = vand.u32 4294901760, %v11829_v16 }
 0x3ec   :  { %11908 = vmatprep.subr.mxu0 %v11821_v20  ;;  %11692 = vmatprep.mubr.f32.mxu1 %v25521_v21  ;;  %v6783_v41 = vpop.f32.mrf.mxu1  ;;  %v23715_v20 = vand.u32 4294901760, %v22350_v43 }
 0x3ed   :  { %11911 = vmatpush1.msra.mxu0 %v11827_v42  ;;  %11694 = vmatmul.mubr.f32.vlgmr.msra.gmra.mxu1 %v23545_v26  ;;  %v6784_v8 = vadd.f32 %v6783_v41, %v6691_v32  ;;  %v23721_v32 = vand.u32 4294901760, %v22360_v17 }
 0x3ee   :  { %11813 = vmatprep.subr.mxu1 %v11812_v59  ;;  %11944 = vmatprep.mubr.f32.mxu0 %v25521_v21  ;;  %v23717_v39 = vpop.f32.mrf.mxu1  ;;  %v23734_v35 = vsub.f32 %v22350_v43, %v23715_v20 }
 0x3ef   :  { %12062 = vmatprep.subr.mxu0 %v11810_v52  ;;  %11819 = vmatpush1.msra.mxu1 %v11818_v60  ;;  %v6865_v6 = vadd.f32 %v6864_v24, %v6784_v8  ;;  %25541 = vst [vmem:[#allocation47_spill] sm:$0xff] %v23717_v39  ;;  %v7026_v42 = vpop.f32.mrf.mxu0  ;;  %v12300_v52 = vsub.f32 %v22352_v7, %v23712_v56 }
 0x3f0   :  { %11947 = vmatmul.mubr.f32.vlgmr.msra.gmra.mxu0 %v23561_v18  ;;  %11825 = vmatprep.subr.mxu1 %v11824_v40  ;;  %v23746_v7 = vsub.f32 %v22356_v14, %v23724_v49 }
 0x3f1   :  { %12066 = vmatpush1.msra.mxu0 %v11816_v53  ;;  %11831 = vmatpush1.msra.mxu1 %v11830_v34  ;;  %v23729_v24 = vpop.f32.mrf.mxu0  ;;  %v12301_v43 = vand.u32 4294901760, %v12300_v52 }
 0x3f2   :  { %12070 = vmatprep.subr.mxu0 %v11822_v47  ;;  %11864 = vmatprep.mubr.f32.mxu1 %v25521_v21  ;;  %25542 = vst [vmem:[#allocation48_spill] sm:$0xff] %v23729_v24  ;;  %v23740_v47 = vsub.f32 %v22360_v17, %v23721_v32  ;;  %v12307_v17 = vand.u32 4294901760, %v23734_v35  ;;  %v12319_v60 = vand.u32 4294901760, %v23746_v7 }
 0x3f3   :  { %12074 = vmatpush1.msra.mxu0 %v11828_v62  ;;  %11866 = vmatmul.mubr.f32.vlgmr.msra.gmra.mxu1 %v23545_v26  ;;  %v6942_v53 = vpop.f32.mrf.mxu1  ;;  %v12302_v40 = vsub.f32 %v12300_v52, %v12301_v43 }
 0x3f4   :  { %11982 = vmatprep.subr.mxu1 %v23649_v1  ;;  %12107 = vmatprep.mubr.f32.mxu0 %v25521_v21  ;;  %v6943_v16 = vadd.f32 %v6942_v53, %v6865_v6  ;;  %v12313_v14 = vand.u32 4294901760, %v23740_v47  ;;  %v12308_v6 = vsub.f32 %v23734_v35, %v12307_v17 }
 0x3f5   :  { %12220 = vmatprep.subr.mxu0 %v23712_v56  ;;  %11984 = vmatpush1.msra.mxu1 %v23652_v51  ;;  %v23750_v59 = vpop.f32.mrf.mxu1 }
 0x3f6   :  { %12109 = vmatmul.mubr.f32.vlgmr.msra.gmra.mxu0 %v23545_v26  ;;  %11986 = vmatprep.subr.mxu1 %v23658_v19  ;;  %v7027_v62 = vadd.f32 %v7026_v42, %v6943_v16  ;;  %25543 = vst [vmem:[#allocation49_spill] sm:$0xff] %v23750_v59  ;;  %v7263_v41 = vpop.f32.mrf.mxu0  ;;  %v5068_v42 = vadd.f32 %v23410_v25, %v23494_v22  ;;  %v12303_v25 = vand.u32 4294901760, %v12302_v40 }
 0x3f7   :  { %12222 = vmatpush1.msra.mxu0 %v23715_v20  ;;  %11988 = vmatpush1.msra.mxu1 %v23661_v61  ;;  %v12314_v16 = vsub.f32 %v23740_v47, %v12313_v14 }
 0x3f8   :  { %12224 = vmatprep.subr.mxu0 %v23721_v32  ;;  %12021 = vmatprep.mubr.f32.mxu1 %v25521_v21  ;;  %v23761_v8 = vpop.f32.mrf.mxu0 }
 0x3f9   :  { %12226 = vmatpush1.msra.mxu0 %v23724_v49  ;;  %12025 = vmatmul.mubr.f32.vlgmr.msra.gmra.mxu1 %v23579_v10  ;;  %25544 = vst [vmem:[#allocation50_spill] sm:$0xff] %v23761_v8 }
 0x3fa   :  { %12144 = vmatprep.subr.mxu1 %v23649_v1  ;;  %12259 = vmatprep.mubr.f32.mxu0 %v25521_v21  ;;  %v7102_v34 = vpop.f32.mrf.mxu1  ;;  %v12320_v1 = vsub.f32 %v23746_v7, %v12319_v60 }
 0x3fb   :  { %12393 = vmatprep.subr.mxu0 %v12300_v52  ;;  %12146 = vmatpush1.msra.mxu1 %v23652_v51  ;;  %v7103_v53 = vadd.f32 %v7102_v34, %v7027_v62  ;;  %v23790_v34 = vand.u32 4294901760, %v22374_v13 }
 0x3fc   :  { %12265 = vmatmul.mubr.f32.vlgmr.msra.gmra.mxu0 %v23621_v29  ;;  %12148 = vmatprep.subr.mxu1 %v23658_v19  ;;  %v23777_v51 = vpop.f32.mrf.mxu1  ;;  %v12309_v19 = vand.u32 4294901760, %v12308_v6  ;;  %v23796_v6 = vand.u32 4294901760, %v22387_v15 }
 0x3fd   :  { %12396 = vmatpush1.msra.mxu0 %v23734_v35  ;;  %12150 = vmatpush1.msra.mxu1 %v23661_v61  ;;  %v23775_v52 = vadd.f32 %v7103_v53, %v5068_v42  ;;  %25545 = vst [vmem:[#allocation51_spill] sm:$0xff] %v23777_v51  ;;  %v7436_v8 = vpop.f32.mrf.mxu0  ;;  %v12315_v61 = vand.u32 4294901760, %v12314_v16  ;;  %v23785_v35 = vand.u32 4294901760, %v22376_v50  ;;  %v23798_v53 = vpop.permute.xlu0 %13240 }
 0x3fe   :  { %12399 = vmatprep.subr.mxu0 %v23740_v47  ;;  %12183 = vmatprep.mubr.f32.mxu1 %v25521_v21  ;;  %v12321_v47 = vand.u32 4294901760, %v12320_v1 }
 0x3ff   :  { %12402 = vmatpush1.msra.mxu0 %v23746_v7  ;;  %12185 = vmatmul.mubr.f32.vlgmr.msra.gmra.mxu1 %v23545_v26  ;;  %v23787_v62 = vpop.f32.mrf.mxu0  ;;  %v23792_v7 = vpop.permute.xlu1 %13238  ;;  %v23806_v16 = vsub.f32 %v22376_v50, %v23785_v35  ;;  %v13181_v50 = vld [vmem:[#allocation8 + $0x5] sm:$0x1] }
 0x400   :  { %12304 = vmatprep.subr.mxu1 %v12303_v25  ;;  %12435 = vmatprep.mubr.f32.mxu0 %v25521_v21  ;;  %25546 = vst [vmem:[#allocation52_spill] sm:$0xff] %v23787_v62 }
 0x401   :  { %12553 = vmatprep.subr.mxu0 %v12301_v43  ;;  %12310 = vmatpush1.msra.mxu1 %v12309_v19  ;;  %v7355_v40 = vpop.f32.mrf.mxu1  ;;  %v23801_v43 = vand.u32 4294901760, %v22381_v63  ;;  %v12792_v19 = vand.u32 4294901760, %v23806_v16 }
 0x402   :  { %12438 = vmatmul.mubr.f32.vlgmr.msra.gmra.mxu0 %v23561_v18  ;;  %12316 = vmatprep.subr.mxu1 %v12315_v61  ;;  %v7356_v42 = vadd.f32 %v7355_v40, %v7263_v41  ;;  %v23813_v41 = vsub.f32 %v22374_v13, %v23790_v34  ;;  %v13221_v61 = vpop.permute.xlu0 %13220 }
 0x403   :  { %12557 = vmatpush1.msra.mxu0 %v12307_v17  ;;  %12322 = vmatpush1.msra.mxu1 %v12321_v47  ;;  %v23808_v1 = vpop.f32.mrf.mxu1 }
 0x404   :  { %12561 = vmatprep.subr.mxu0 %v12313_v14  ;;  %12355 = vmatprep.mubr.f32.mxu1 %v25521_v21  ;;  %25547 = vst [vmem:[#allocation53_spill] sm:$0xff] %v23808_v1  ;;  %v7598_v25 = vpop.f32.mrf.mxu0  ;;  %v7437_v17 = vadd.f32 %v7436_v8, %v7356_v42  ;;  %v23819_v14 = vsub.f32 %v22387_v15, %v23796_v6  ;;  %v13237_v8 = vpop.permute.xlu1 %13236  ;;  %v12798_v47 = vand.u32 4294901760, %v23813_v41 }
 0x405   :  { %12565 = vmatpush1.msra.mxu0 %v12319_v60  ;;  %12357 = vmatmul.mubr.f32.vlgmr.msra.gmra.mxu1 %v23545_v26  ;;  %v23825_v60 = vsub.f32 %v22381_v63, %v23801_v43  ;;  %v13287_v63 = vsel %vm3094_vm0, %v13181_v50, 0 }
 0x406   :  { %12473 = vmatprep.subr.mxu1 %v23712_v56  ;;  %12598 = vmatprep.mubr.f32.mxu0 %v25521_v21  ;;  %v23827_v13 = vpop.f32.mrf.mxu0  ;;  %v12804_v42 = vand.u32 4294901760, %v23819_v14  ;;  %v23847_v50 = vand.u32 4294901760, %v13287_v63  ;;  %v12799_v51 = vsub.f32 %v23813_v41, %v12798_v47 }
 0x407   :  { %12711 = vmatprep.subr.mxu0 %v23785_v35  ;;  %12475 = vmatpush1.msra.mxu1 %v23715_v20  ;;  %25548 = vst [vmem:[#allocation54_spill] sm:$0xff] %v23827_v13  ;;  %v12810_v13 = vand.u32 4294901760, %v23825_v60 }
 0x408   :  { %12600 = vmatmul.mubr.f32.vlgmr.msra.gmra.mxu0 %v23545_v26  ;;  %12477 = vmatprep.subr.mxu1 %v23721_v32  ;;  %v7514_v15 = vpop.f32.mrf.mxu1  ;;  %v23852_v24 = vpop.permute.xlu1 %13222  ;;  %v23870_v59 = vsub.f32 %v13287_v63, %v23847_v50 }
 0x409   :  { %12713 = vmatpush1.msra.mxu0 %v23790_v34  ;;  %12479 = vmatpush1.msra.mxu1 %v23724_v49  ;;  %v7515_v40 = vadd.f32 %v7514_v15, %v7437_v17  ;;  %v12793_v17 = vsub.f32 %v23806_v16, %v12792_v19 }
 0x40a   :  { %12715 = vmatprep.subr.mxu0 %v23796_v6  ;;  %12512 = vmatprep.mubr.f32.mxu1 %v25521_v21  ;;  %v23842_v62 = vpop.f32.mrf.mxu1 }
 0x40b   :  { %12717 = vmatpush1.msra.mxu0 %v23801_v43  ;;  %12516 = vmatmul.mubr.f32.vlgmr.msra.gmra.mxu1 %v23579_v10  ;;  %25549 = vst [vmem:[#allocation55_spill] sm:$0xff] %v23842_v62  ;;  %v7754_v1 = vpop.f32.mrf.mxu0  ;;  %v7599_v15 = vadd.f32 %v7598_v25, %v7515_v40  ;;  %v13263_v25 = vsel %vm74_vm3, %v23792_v7, %v23798_v53  ;;  %v13219_v40 = vpop.permute.xlu0 %13218 }
 0x40c   :  { %12635 = vmatprep.subr.mxu1 %v23712_v56  ;;  %12750 = vmatprep.mubr.f32.mxu0 %v25521_v21  ;;  %v12805_v56 = vsub.f32 %v23819_v14, %v12804_v42  ;;  %v23876_v39 = vand.u32 4294901760, %v13263_v25 }
 0x40d   :  { %12884 = vmatprep.subr.mxu0 %v23806_v16  ;;  %12637 = vmatpush1.msra.mxu1 %v23715_v20  ;;  %v23857_v62 = vpop.f32.mrf.mxu0  ;;  %v12811_v20 = vsub.f32 %v23825_v60, %v12810_v13 }
 0x40e   :  { %12756 = vmatmul.mubr.f32.vlgmr.msra.gmra.mxu0 %v23621_v29  ;;  %12639 = vmatprep.subr.mxu1 %v23721_v32  ;;  %v13262_v29 = vsel %vm74_vm3, %v13237_v8, %v23792_v7  ;;  %v12794_v32 = vand.u32 4294901760, %v12793_v17  ;;  %v13254_v7 = vsel %vm74_vm3, %v13219_v40, %v13221_v61 }
 0x40f   :  { %12887 = vmatpush1.msra.mxu0 %v23813_v41  ;;  %12641 = vmatpush1.msra.mxu1 %v23724_v49  ;;  %v7674_v16 = vpop.f32.mrf.mxu1  ;;  %v13255_v41 = vsel %vm74_vm3, %v13221_v61, %v23852_v24  ;;  %v12800_v49 = vand.u32 4294901760, %v12799_v51  ;;  %v23882_v17 = vand.u32 4294901760, %v13262_v29  ;;  %v23891_v61 = vand.u32 4294901760, %v23870_v59 }
 0x410   :  { %12890 = vmatprep.subr.mxu0 %v23819_v14  ;;  %12674 = vmatprep.mubr.f32.mxu1 %v25521_v21  ;;  %v7675_v28 = vadd.f32 %v7674_v16, %v7599_v15  ;;  %v12806_v14 = vand.u32 4294901760, %v12805_v56  ;;  %v12812_v15 = vand.u32 4294901760, %v12811_v20  ;;  %v23887_v51 = vand.u32 4294901760, %v13255_v41 }
 0x411   :  { %12893 = vmatpush1.msra.mxu0 %v23825_v60  ;;  %12676 = vmatmul.mubr.f32.vlgmr.msra.gmra.mxu1 %v23545_v26  ;;  %v23880_v8 = vpop.f32.mrf.mxu1  ;;  %v23893_v56 = vand.u32 4294901760, %v13254_v7 }
 0x412   :  { %12795 = vmatprep.subr.mxu1 %v12794_v32  ;;  %12926 = vmatprep.mubr.f32.mxu0 %v25521_v21  ;;  %25550 = vst [vmem:[#allocation56_spill] sm:$0xff] %v23880_v8  ;;  %v7927_v63 = vpop.f32.mrf.mxu0  ;;  %v23885_v60 = vadd.f32 %v7675_v28, %v23518_v9  ;;  %v23902_v28 = vsub.f32 %v13262_v29, %v23882_v17 }
 0x413   :  { %13044 = vmatprep.subr.mxu0 %v12792_v19  ;;  %12801 = vmatpush1.msra.mxu1 %v12800_v49  ;;  %v23898_v19 = vsub.f32 %v13263_v25, %v23876_v39  ;;  %v23906_v20 = vsub.f32 %v13255_v41, %v23887_v51  ;;  %v23915_v25 = vsub.f32 %v13254_v7, %v23893_v56  ;;  %v13243_v41 = vpop.permute.xlu1 %13242 }
 0x414   :  { %12929 = vmatmul.mubr.f32.vlgmr.msra.gmra.mxu0 %v23561_v18  ;;  %12807 = vmatprep.subr.mxu1 %v12806_v14  ;;  %v23895_v40 = vpop.f32.mrf.mxu0  ;;  %v13405_v32 = vand.u32 4294901760, %v23902_v28 }
 0x415   :  { %13048 = vmatpush1.msra.mxu0 %v12798_v47  ;;  %12813 = vmatpush1.msra.mxu1 %v12812_v15  ;;  %v23908_v47 = vpop.permute.xlu0 %13244  ;;  %v13399_v16 = vand.u32 4294901760, %v23898_v19  ;;  %v13411_v7 = vand.u32 4294901760, %v23906_v20  ;;  %v13417_v15 = vand.u32 4294901760, %v23915_v25 }
 0x416   :  { %13052 = vmatprep.subr.mxu0 %v12804_v42  ;;  %12846 = vmatprep.mubr.f32.mxu1 %v25521_v21  ;;  %v7846_v9 = vpop.f32.mrf.mxu1  ;;  %v13361_v42 = vsub.f32 %v23870_v59, %v23891_v61 }
 0x417   :  { %13056 = vmatpush1.msra.mxu0 %v12810_v13  ;;  %12848 = vmatmul.mubr.f32.vlgmr.msra.gmra.mxu1 %v23545_v26  ;;  %v7847_v18 = vadd.f32 %v7846_v9, %v7754_v1  ;;  %v13400_v9 = vsub.f32 %v23898_v19, %v13399_v16  ;;  %v13418_v46 = vsub.f32 %v23915_v25, %v13417_v15 }
 0x418   :  { %12964 = vmatprep.subr.mxu1 %v23785_v35  ;;  %13089 = vmatprep.mubr.f32.mxu0 %v25521_v21  ;;  %v23919_v1 = vpop.f32.mrf.mxu1  ;;  %v23929_v49 = vand.u32 4294901760, %v13361_v42  ;;  %v13406_v42 = vsub.f32 %v23902_v28, %v13405_v32 }
 0x419   :  { %13318 = vmatprep.subr.mxu0 %v23876_v39  ;;  %12966 = vmatpush1.msra.mxu1 %v23790_v34  ;;  %v8089_v13 = vpop.f32.mrf.mxu0  ;;  %v7928_v29 = vadd.f32 %v7927_v63, %v7847_v18  ;;  %v23941_v8 = vpop.permute.xlu0 %13226 }
 0x41a   :  { %13091 = vmatmul.mubr.f32.vlgmr.msra.gmra.mxu0 %v23545_v26  ;;  %12968 = vmatprep.subr.mxu1 %v23796_v6  ;;  %v13407_v27 = vand.u32 4294901760, %v13406_v42 }
 0x41b   :  { %13320 = vmatpush1.msra.mxu0 %v23882_v17  ;;  %12970 = vmatpush1.msra.mxu1 %v23801_v43  ;;  %v23932_v14 = vpop.f32.mrf.mxu0 }
 0x41c   :  { %13322 = vmatprep.subr.mxu0 %v23887_v51  ;;  %13003 = vmatprep.mubr.f32.mxu1 %v25521_v21  ;;  %25551 = vst [vmem:[#allocation57_spill] sm:$0xff] %v23932_v14 }
 0x41d   :  { %13324 = vmatpush1.msra.mxu0 %v23893_v56  ;;  %13007 = vmatmul.mubr.f32.vlgmr.msra.gmra.mxu1 %v23579_v10  ;;  %v8005_v63 = vpop.f32.mrf.mxu1  ;;  %v13412_v10 = vsub.f32 %v23906_v20, %v13411_v7 }
 0x41e   :  { %13126 = vmatprep.subr.mxu1 %v23785_v35  ;;  %13357 = vmatprep.mubr.f32.mxu0 %v25521_v21  ;;  %v8006_v18 = vadd.f32 %v8005_v63, %v7928_v29  ;;  %v13265_v29 = vsel %vm74_vm3, %v13243_v41, %v23908_v47  ;;  %v13225_v63 = vpop.permute.xlu1 %13224 }
 0x41f   :  { %13491 = vmatprep.subr.mxu0 %v23898_v19  ;;  %13128 = vmatpush1.msra.mxu1 %v23790_v34  ;;  %v23948_v35 = vpop.f32.mrf.mxu1  ;;  %v13264_v19 = vsel %vm74_vm3, %v23798_v53, %v13243_v41  ;;  %v13257_v11 = vsel %vm74_vm3, %v13225_v63, %v23941_v8  ;;  %v13256_v53 = vsel %vm74_vm3, %v23852_v24, %v13225_v63 }
 0x420   :  { %13363 = vmatmul.mubr.f32.vlgmr.msra.gmra.mxu0 %v23929_v49  ;;  %13130 = vmatprep.subr.mxu1 %v23796_v6  ;;  %v8245_v33 = vpop.f32.mrf.mxu0  ;;  %v8090_v34 = vadd.f32 %v8089_v13, %v8006_v18  ;;  %v13401_v6 = vand.u32 4294901760, %v13400_v9  ;;  %v23970_v41 = vand.u32 4294901760, %v13264_v19  ;;  %v23975_v18 = vand.u32 4294901760, %v13256_v53 }
 0x421   :  { %13494 = vmatpush1.msra.mxu0 %v23902_v28  ;;  %13132 = vmatpush1.msra.mxu1 %v23801_v43  ;;  %v23965_v43 = vand.u32 4294901760, %v13265_v29 }
 0x422   :  { %13497 = vmatprep.subr.mxu0 %v23906_v20  ;;  %13165 = vmatprep.mubr.f32.mxu1 %v25521_v21  ;;  %v23963_v28 = vpop.f32.mrf.mxu0  ;;  %v13413_v20 = vand.u32 4294901760, %v13412_v10 }
 0x423   :  { %13500 = vmatpush1.msra.mxu0 %v23915_v25  ;;  %13167 = vmatmul.mubr.f32.vlgmr.msra.gmra.mxu1 %v23545_v26  ;;  %25552 = vst [vmem:[#allocation58_spill] sm:$0xff] %v23963_v28  ;;  %v13419_v25 = vand.u32 4294901760, %v13418_v46  ;;  %v23972_v26 = vand.u32 4294901760, %v13257_v11 }
 0x424   :  { %13402 = vmatprep.subr.mxu1 %v13401_v6  ;;  %13533 = vmatprep.mubr.f32.mxu0 %v25521_v21  ;;  %v8165_v13 = vpop.f32.mrf.mxu1 }
 0x425   :  { %13651 = vmatprep.subr.mxu0 %v13399_v16  ;;  %13408 = vmatpush1.msra.mxu1 %v13407_v27  ;;  %v8166_v9 = vadd.f32 %v8165_v13, %v8090_v34  ;;  %v23983_v16 = vsub.f32 %v13265_v29, %v23965_v43  ;;  %v23987_v27 = vsub.f32 %v13264_v19, %v23970_v41  ;;  %v13247_v34 = vpop.permute.xlu1 %13246 }
 0x426   :  { %13536 = vmatmul.mubr.f32.vlgmr.msra.gmra.mxu0 %v23870_v59  ;;  %13414 = vmatprep.subr.mxu1 %v13413_v20  ;;  %v23980_v42 = vpop.f32.mrf.mxu1  ;;  %v23991_v46 = vsub.f32 %v13257_v11, %v23972_v26 }
 0x427   :  { %13655 = vmatpush1.msra.mxu0 %v13405_v32  ;;  %13420 = vmatpush1.msra.mxu1 %v13419_v25  ;;  %v23978_v24 = vadd.f32 %v8166_v9, %v23624_v37  ;;  %25553 = vst [vmem:[#allocation59_spill] sm:$0xff] %v23980_v42  ;;  %v8418_v10 = vpop.f32.mrf.mxu0  ;;  %v23998_v32 = vsub.f32 %v13256_v53, %v23975_v18  ;;  %v13890_v11 = vand.u32 4294901760, %v23983_v16  ;;  %v13896_v63 = vand.u32 4294901760, %v23987_v27 }
 0x428   :  { %13659 = vmatprep.subr.mxu0 %v13411_v7  ;;  %13453 = vmatprep.mubr.f32.mxu1 %v25521_v21  ;;  %v13902_v19 = vand.u32 4294901760, %v23991_v46 }
 0x429   :  { %13663 = vmatpush1.msra.mxu0 %v13417_v15  ;;  %13455 = vmatmul.mubr.f32.vlgmr.msra.gmra.mxu1 %v23847_v50  ;;  %v23995_v37 = vpop.f32.mrf.mxu0  ;;  %v24002_v15 = vpop.permute.xlu0 %13248  ;;  %v13908_v13 = vand.u32 4294901760, %v23998_v32  ;;  %v13897_v25 = vsub.f32 %v23987_v27, %v13896_v63 }
 0x42a   :  { %13571 = vmatprep.subr.mxu1 %v23876_v39  ;;  %13696 = vmatprep.mubr.f32.mxu0 %v25521_v21  ;;  %25554 = vst [vmem:[#allocation60_spill] sm:$0xff] %v23995_v37  ;;  %v13267_v37 = vsel %vm74_vm3, %v13247_v34, %v24002_v15 }
 0x42b   :  { %13809 = vmatprep.subr.mxu0 %v23965_v43  ;;  %13573 = vmatpush1.msra.mxu1 %v23882_v17  ;;  %v8337_v7 = vpop.f32.mrf.mxu1  ;;  %v13898_v28 = vand.u32 4294901760, %v13897_v25 }
 0x42c   :  { %13698 = vmatmul.mubr.f32.vlgmr.msra.gmra.mxu0 %v23847_v50  ;;  %13575 = vmatprep.subr.mxu1 %v23887_v51  ;;  %v8338_v29 = vadd.f32 %v8337_v7, %v8245_v33  ;;  %v13891_v33 = vsub.f32 %v23983_v16, %v13890_v11 }
 0x42d   :  { %13811 = vmatpush1.msra.mxu0 %v23970_v41  ;;  %13577 = vmatpush1.msra.mxu1 %v23893_v56  ;;  %v24013_v53 = vpop.f32.mrf.mxu1 }
 0x42e   :  { %13813 = vmatprep.subr.mxu0 %v23972_v26  ;;  %13610 = vmatprep.mubr.f32.mxu1 %v25521_v21  ;;  %v8419_v6 = vadd.f32 %v8418_v10, %v8338_v29  ;;  %25555 = vst [vmem:[#allocation61_spill] sm:$0xff] %v24013_v53  ;;  %v8580_v20 = vpop.f32.mrf.mxu0  ;;  %v24026_v10 = vpop.permute.xlu0 %13230  ;;  %v13909_v29 = vsub.f32 %v23998_v32, %v13908_v13 }
 0x42f   :  { %13815 = vmatpush1.msra.mxu0 %v23975_v18  ;;  %13614 = vmatmul.mubr.f32.vlgmr.msra.gmra.mxu1 %v23891_v61  ;;  %v13229_v53 = vpop.permute.xlu1 %13228 }
 0x430   :  { %13733 = vmatprep.subr.mxu1 %v23876_v39  ;;  %13848 = vmatprep.mubr.f32.mxu0 %v25521_v21  ;;  %v24024_v9 = vpop.f32.mrf.mxu0  ;;  %v13903_v39 = vsub.f32 %v23991_v46, %v13902_v19 }
 0x431   :  { %13982 = vmatprep.subr.mxu0 %v23983_v16  ;;  %13735 = vmatpush1.msra.mxu1 %v23882_v17  ;;  %25556 = vst [vmem:[#allocation62_spill] sm:$0xff] %v24024_v9  ;;  %v13266_v16 = vsel %vm74_vm3, %v23908_v47, %v13247_v34  ;;  %v13259_v9 = vsel %vm74_vm3, %v13229_v53, %v24026_v10 }
 0x432   :  { %13854 = vmatmul.mubr.f32.vlgmr.msra.gmra.mxu0 %v23929_v49  ;;  %13737 = vmatprep.subr.mxu1 %v23887_v51  ;;  %v8496_v7 = vpop.f32.mrf.mxu1  ;;  %v13892_v51 = vand.u32 4294901760, %v13891_v33  ;;  %v13258_v47 = vsel %vm74_vm3, %v23941_v8, %v13229_v53  ;;  %v24051_v34 = vand.u32 4294901760, %v13266_v16  ;;  %v24053_v33 = vand.u32 4294901760, %v13259_v9 }
 0x433   :  { %13985 = vmatpush1.msra.mxu0 %v23987_v27  ;;  %13739 = vmatpush1.msra.mxu1 %v23893_v56  ;;  %v8497_v17 = vadd.f32 %v8496_v7, %v8419_v6  ;;  %v24046_v6 = vand.u32 4294901760, %v13267_v37  ;;  %v24058_v25 = vand.u32 4294901760, %v13258_v47  ;;  %v13253_v7 = vpop.permute.xlu0 %13252 }
 0x434   :  { %13988 = vmatprep.subr.mxu0 %v23991_v46  ;;  %13772 = vmatprep.mubr.f32.mxu1 %v25521_v21  ;;  %v24044_v42 = vpop.f32.mrf.mxu1  ;;  %v13904_v46 = vand.u32 4294901760, %v13903_v39  ;;  %v13251_v39 = vpop.permute.xlu1 %13250 }
 0x435   :  { %13991 = vmatpush1.msra.mxu0 %v23998_v32  ;;  %13774 = vmatmul.mubr.f32.vlgmr.msra.gmra.mxu1 %v23847_v50  ;;  %v8581_v27 = vadd.f32 %v8580_v20, %v8497_v17  ;;  %25557 = vst [vmem:[#allocation63_spill] sm:$0xff] %v24044_v42  ;;  %v8736_v56 = vpop.f32.mrf.mxu0  ;;  %v13910_v32 = vand.u32 4294901760, %v13909_v29  ;;  %v24061_v53 = vsub.f32 %v13267_v37, %v24046_v6 }
 0x436   :  { %13893 = vmatprep.subr.mxu1 %v13892_v51  ;;  %14024 = vmatprep.mubr.f32.mxu0 %v25521_v21  ;;  %v24069_v29 = vsub.f32 %v13259_v9, %v24053_v33  ;;  %v24079_v17 = vsub.f32 %v13258_v47, %v24058_v25 }
 0x437   :  { %14142 = vmatprep.subr.mxu0 %v13890_v11  ;;  %13899 = vmatpush1.msra.mxu1 %v13898_v28  ;;  %v24056_v20 = vpop.f32.mrf.mxu0  ;;  %v24065_v11 = vsub.f32 %v13266_v16, %v24051_v34 }
 0x438   :  { %14027 = vmatmul.mubr.f32.vlgmr.msra.gmra.mxu0 %v23870_v59  ;;  %13905 = vmatprep.subr.mxu1 %v13904_v46  ;;  %25558 = vst [vmem:[#allocation64_spill] sm:$0xff] %v24056_v20  ;;  %v14393_v16 = vand.u32 4294901760, %v24069_v29  ;;  %v13233_v46 = vpop.permute.xlu1 %13232 }
 0x439   :  { %14146 = vmatpush1.msra.mxu0 %v13896_v63  ;;  %13911 = vmatpush1.msra.mxu1 %v13910_v32  ;;  %v8656_v8 = vpop.f32.mrf.mxu1  ;;  %v14387_v9 = vand.u32 4294901760, %v24065_v11  ;;  %v13235_v32 = vpop.permute.xlu0 %13234 }
 0x43a   :  { %14150 = vmatprep.subr.mxu0 %v13902_v19  ;;  %13944 = vmatprep.mubr.f32.mxu1 %v25521_v21  ;;  %v8657_v28 = vadd.f32 %v8656_v8, %v8581_v27  ;;  %v14399_v27 = vand.u32 4294901760, %v24079_v17 }
 0x43b   :  { %14154 = vmatpush1.msra.mxu0 %v13908_v13  ;;  %13946 = vmatmul.mubr.f32.vlgmr.msra.gmra.mxu1 %v23847_v50  ;;  %v24076_v63 = vpop.f32.mrf.mxu1  ;;  %v14381_v13 = vand.u32 4294901760, %v24061_v53 }
 0x43c   :  { %14062 = vmatprep.subr.mxu1 %v23965_v43  ;;  %14187 = vmatprep.mubr.f32.mxu0 %v25521_v21  ;;  %v24074_v37 = vadd.f32 %v8657_v28, %v23696_v44  ;;  %25559 = vst [vmem:[#allocation65_spill] sm:$0xff] %v24076_v63  ;;  %v8909_v19 = vpop.f32.mrf.mxu0  ;;  %v14388_v28 = vsub.f32 %v24065_v11, %v14387_v9 }
 0x43d   :  { %14300 = vmatprep.subr.mxu0 %v24046_v6  ;;  %14064 = vmatpush1.msra.mxu1 %v23970_v41  ;;  %v14382_v8 = vsub.f32 %v24061_v53, %v14381_v13 }
 0x43e   :  { %14189 = vmatmul.mubr.f32.vlgmr.msra.gmra.mxu0 %v23847_v50  ;;  %14066 = vmatprep.subr.mxu1 %v23972_v26  ;;  %v24089_v44 = vpop.f32.mrf.mxu0 }
 0x43f   :  { %14302 = vmatpush1.msra.mxu0 %v24051_v34  ;;  %14068 = vmatpush1.msra.mxu1 %v23975_v18  ;;  %25560 = vst [vmem:[#allocation66_spill] sm:$0xff] %v24089_v44 }
 0x440   :  { %14304 = vmatprep.subr.mxu0 %v24053_v33  ;;  %14101 = vmatprep.mubr.f32.mxu1 %v25521_v21  ;;  %v8828_v51 = vpop.f32.mrf.mxu1 }
 0x441   :  { %14306 = vmatpush1.msra.mxu0 %v24058_v25  ;;  %14105 = vmatmul.mubr.f32.vlgmr.msra.gmra.mxu1 %v23891_v61  ;;  %v8829_v47 = vadd.f32 %v8828_v51, %v8736_v56  ;;  %v14400_v56 = vsub.f32 %v24079_v17, %v14399_v27  ;;  %v13269_v51 = vsel %vm74_vm3, %v13251_v39, %v13253_v7  ;;  %v14389_v7 = vand.u32 4294901760, %v14388_v28 }
 0x442   :  { %14224 = vmatprep.subr.mxu1 %v23965_v43  ;;  %14339 = vmatprep.mubr.f32.mxu0 %v25521_v21  ;;  %v24103_v20 = vpop.f32.mrf.mxu1  ;;  %v14394_v43 = vsub.f32 %v24069_v29, %v14393_v16 }
 0x443   :  { %14473 = vmatprep.subr.mxu0 %v24061_v53  ;;  %14226 = vmatpush1.msra.mxu1 %v23970_v41  ;;  %v8910_v44 = vadd.f32 %v8909_v19, %v8829_v47  ;;  %25561 = vst [vmem:[#allocation67_spill] sm:$0xff] %v24103_v20  ;;  %v9071_v63 = vpop.f32.mrf.mxu0  ;;  %v13268_v41 = vsel %vm74_vm3, %v24002_v15, %v13251_v39  ;;  %v14383_v53 = vand.u32 4294901760, %v14382_v8  ;;  %v24121_v47 = vand.u32 4294901760, %v13269_v51  ;;  %v24128_v8 = vpop.permute.xlu1 %15282 }
 0x444   :  { %14345 = vmatmul.mubr.f32.vlgmr.msra.gmra.mxu0 %v23929_v49  ;;  %14228 = vmatprep.subr.mxu1 %v23972_v26  ;;  %v13261_v26 = vsel %vm74_vm3, %v13233_v46, %v13235_v32  ;;  %v14395_v15 = vand.u32 4294901760, %v14394_v43  ;;  %v24130_v32 = vpop.permute.xlu0 %15284 }
 0x445   :  { %14476 = vmatpush1.msra.mxu0 %v24065_v11  ;;  %14230 = vmatpush1.msra.mxu1 %v23975_v18  ;;  %v24116_v19 = vpop.f32.mrf.mxu0  ;;  %v13260_v18 = vsel %vm74_vm3, %v24026_v10, %v13233_v46  ;;  %v24132_v28 = vand.u32 4294901760, %v13261_v26 }
 0x446   :  { %14479 = vmatprep.subr.mxu0 %v24069_v29  ;;  %14263 = vmatprep.mubr.f32.mxu1 %v25521_v21  ;;  %25562 = vst [vmem:[#allocation68_spill] sm:$0xff] %v24116_v19  ;;  %v24126_v29 = vand.u32 4294901760, %v13268_v41  ;;  %v24137_v43 = vand.u32 4294901760, %v13260_v18 }
 0x447   :  { %14482 = vmatpush1.msra.mxu0 %v24079_v17  ;;  %14265 = vmatmul.mubr.f32.vlgmr.msra.gmra.mxu1 %v23847_v50  ;;  %v8987_v11 = vpop.f32.mrf.mxu1  ;;  %v14401_v17 = vand.u32 4294901760, %v14400_v56  ;;  %v24150_v56 = vsub.f32 %v13261_v26, %v24132_v28 }
 0x448   :  { %14384 = vmatprep.subr.mxu1 %v14383_v53  ;;  %14515 = vmatprep.mubr.f32.mxu0 %v25521_v21  ;;  %v8988_v39 = vadd.f32 %v8987_v11, %v8910_v44  ;;  %v24140_v44 = vsub.f32 %v13269_v51, %v24121_v47 }
 0x449   :  { %14633 = vmatprep.subr.mxu0 %v14381_v13  ;;  %14390 = vmatpush1.msra.mxu1 %v14389_v7  ;;  %v24135_v46 = vpop.f32.mrf.mxu1  ;;  %v24144_v13 = vsub.f32 %v13268_v41, %v24126_v29  ;;  %v15281_v41 = vpop.permute.xlu1 %15280 }
 0x44a   :  { %14518 = vmatmul.mubr.f32.vlgmr.msra.gmra.mxu0 %v23870_v59  ;;  %14396 = vmatprep.subr.mxu1 %v14395_v15  ;;  %v9072_v10 = vadd.f32 %v9071_v63, %v8988_v39  ;;  %25563 = vst [vmem:[#allocation69_spill] sm:$0xff] %v24135_v46  ;;  %v9308_v53 = vpop.f32.mrf.mxu0  ;;  %v15265_v7 = vpop.permute.xlu0 %15264  ;;  %v14872_v26 = vand.u32 4294901760, %v24140_v44 }
 0x44b   :  { %14637 = vmatpush1.msra.mxu0 %v14387_v9  ;;  %14402 = vmatpush1.msra.mxu1 %v14401_v17  ;;  %v15261_v9 = vld [vmem:[#allocation8 + $0x6] sm:$0x1]  ;;  %v14878_v11 = vand.u32 4294901760, %v24144_v13 }
 0x44c   :  { %14641 = vmatprep.subr.mxu0 %v14393_v16  ;;  %14435 = vmatprep.mubr.f32.mxu1 %v25521_v21  ;;  %v24147_v63 = vpop.f32.mrf.mxu0  ;;  %v24155_v16 = vsub.f32 %v13260_v18, %v24137_v43  ;;  %v15332_v18 = vsel %vm3094_vm0, %v15261_v9, 0 }
 0x44d   :  { %14645 = vmatpush1.msra.mxu0 %v14399_v27  ;;  %14437 = vmatmul.mubr.f32.vlgmr.msra.gmra.mxu1 %v23847_v50  ;;  %25564 = vst [vmem:[#allocation70_spill] sm:$0xff] %v24147_v63  ;;  %v24180_v9 = vand.u32 4294901760, %v15332_v18  ;;  %v14879_v63 = vsub.f32 %v24144_v13, %v14878_v11  ;;  %v24187_v19 = vpop.permute.xlu1 %15266 }
 0x44e   :  { %14553 = vmatprep.subr.mxu1 %v24046_v6  ;;  %14678 = vmatprep.mubr.f32.mxu0 %v25521_v21  ;;  %v9147_v51 = vpop.f32.mrf.mxu1  ;;  %v15263_v42 = vpop.permute.xlu0 %15262 }
 0x44f   :  { %14791 = vmatprep.subr.mxu0 %v24121_v47  ;;  %14555 = vmatpush1.msra.mxu1 %v24051_v34  ;;  %v9148_v27 = vadd.f32 %v9147_v51, %v9072_v10  ;;  %v14884_v10 = vand.u32 4294901760, %v24150_v56  ;;  %v14890_v51 = vand.u32 4294901760, %v24155_v16 }
 0x450   :  { %14680 = vmatmul.mubr.f32.vlgmr.msra.gmra.mxu0 %v23847_v50  ;;  %14557 = vmatprep.subr.mxu1 %v24053_v33  ;;  %v24169_v39 = vpop.f32.mrf.mxu1 }
 0x451   :  { %14793 = vmatpush1.msra.mxu0 %v24126_v29  ;;  %14559 = vmatpush1.msra.mxu1 %v24058_v25  ;;  %v24167_v15 = vadd.f32 %v9148_v27, %v23775_v52  ;;  %25565 = vst [vmem:[#allocation71_spill] sm:$0xff] %v24169_v39  ;;  %v9481_v17 = vpop.f32.mrf.mxu0  ;;  %v14873_v52 = vsub.f32 %v24140_v44, %v14872_v26 }
 0x452   :  { %14795 = vmatprep.subr.mxu0 %v24132_v28  ;;  %14592 = vmatprep.mubr.f32.mxu1 %v25521_v21  ;;  %v14891_v20 = vsub.f32 %v24155_v16, %v14890_v51 }
 0x453   :  { %14797 = vmatpush1.msra.mxu0 %v24137_v43  ;;  %14596 = vmatmul.mubr.f32.vlgmr.msra.gmra.mxu1 %v23891_v61  ;;  %v24182_v27 = vpop.f32.mrf.mxu0 }
 0x454   :  { %14715 = vmatprep.subr.mxu1 %v24046_v6  ;;  %14830 = vmatprep.mubr.f32.mxu0 %v25521_v21  ;;  %25566 = vst [vmem:[#allocation72_spill] sm:$0xff] %v24182_v27  ;;  %v14885_v6 = vsub.f32 %v24150_v56, %v14884_v10  ;;  %v15308_v27 = vsel %vm15298_vm15, %v24128_v8, %v24130_v32 }
 0x455   :  { %14964 = vmatprep.subr.mxu0 %v24140_v44  ;;  %14717 = vmatpush1.msra.mxu1 %v24051_v34  ;;  %v9400_v39 = vpop.f32.mrf.mxu1  ;;  %v15307_v34 = vsel %vm15298_vm15, %v15281_v41, %v24128_v8  ;;  %v24211_v8 = vand.u32 4294901760, %v15308_v27 }
 0x456   :  { %14836 = vmatmul.mubr.f32.vlgmr.msra.gmra.mxu0 %v23929_v49  ;;  %14719 = vmatprep.subr.mxu1 %v24053_v33  ;;  %v9401_v46 = vadd.f32 %v9400_v39, %v9308_v53  ;;  %v14874_v49 = vand.u32 4294901760, %v14873_v52  ;;  %v24203_v33 = vsub.f32 %v15332_v18, %v24180_v9  ;;  %v14886_v41 = vand.u32 4294901760, %v14885_v6 }
 0x457   :  { %14967 = vmatpush1.msra.mxu0 %v24144_v13  ;;  %14721 = vmatpush1.msra.mxu1 %v24058_v25  ;;  %v24205_v44 = vpop.f32.mrf.mxu1  ;;  %v15300_v13 = vsel %vm15298_vm15, %v15265_v7, %v24187_v19  ;;  %v14880_v25 = vand.u32 4294901760, %v14879_v63  ;;  %v14892_v18 = vand.u32 4294901760, %v14891_v20 }
 0x458   :  { %14970 = vmatprep.subr.mxu0 %v24150_v56  ;;  %14754 = vmatprep.mubr.f32.mxu1 %v25521_v21  ;;  %v9482_v53 = vadd.f32 %v9481_v17, %v9401_v46  ;;  %25567 = vst [vmem:[#allocation73_spill] sm:$0xff] %v24205_v44  ;;  %v9643_v39 = vpop.f32.mrf.mxu0  ;;  %v15299_v56 = vsel %vm15298_vm15, %v15263_v42, %v15265_v7  ;;  %v24215_v46 = vand.u32 4294901760, %v15307_v34  ;;  %v24219_v52 = vand.u32 4294901760, %v15300_v13 }
 0x459   :  { %14973 = vmatpush1.msra.mxu0 %v24155_v16  ;;  %14756 = vmatmul.mubr.f32.vlgmr.msra.gmra.mxu1 %v23847_v50  ;;  %v24223_v63 = vand.u32 4294901760, %v24203_v33  ;;  %v24225_v16 = vand.u32 4294901760, %v15299_v56 }
 0x45a   :  { %14875 = vmatprep.subr.mxu1 %v14874_v49  ;;  %15006 = vmatprep.mubr.f32.mxu0 %v25521_v21  ;;  %v24217_v17 = vpop.f32.mrf.mxu0  ;;  %v24232_v20 = vsub.f32 %v15307_v34, %v24215_v46 }
 0x45b   :  { %15124 = vmatprep.subr.mxu0 %v14872_v26  ;;  %14881 = vmatpush1.msra.mxu1 %v14880_v25  ;;  %25568 = vst [vmem:[#allocation74_spill] sm:$0xff] %v24217_v17  ;;  %v24228_v26 = vsub.f32 %v15308_v27, %v24211_v8  ;;  %v24245_v27 = vsub.f32 %v15299_v56, %v24225_v16 }
 0x45c   :  { %15009 = vmatmul.mubr.f32.vlgmr.msra.gmra.mxu0 %v23870_v59  ;;  %14887 = vmatprep.subr.mxu1 %v14886_v41  ;;  %v9559_v42 = vpop.f32.mrf.mxu1 }
 0x45d   :  { %15128 = vmatpush1.msra.mxu0 %v14878_v11  ;;  %14893 = vmatpush1.msra.mxu1 %v14892_v18  ;;  %v9560_v7 = vadd.f32 %v9559_v42, %v9482_v53  ;;  %v24238_v11 = vsub.f32 %v15300_v13, %v24219_v52  ;;  %v15444_v34 = vand.u32 4294901760, %v24228_v26  ;;  %v15287_v13 = vpop.permute.xlu1 %15286  ;;  %v15462_v42 = vand.u32 4294901760, %v24245_v27 }
 0x45e   :  { %15132 = vmatprep.subr.mxu0 %v14884_v10  ;;  %14926 = vmatprep.mubr.f32.mxu1 %v25521_v21  ;;  %v24235_v6 = vpop.f32.mrf.mxu1  ;;  %v15406_v10 = vsub.f32 %v24203_v33, %v24223_v63 }
 0x45f   :  { %15136 = vmatpush1.msra.mxu0 %v14890_v51  ;;  %14928 = vmatmul.mubr.f32.vlgmr.msra.gmra.mxu1 %v23847_v50  ;;  %v9644_v59 = vadd.f32 %v9643_v39, %v9560_v7  ;;  %25569 = vst [vmem:[#allocation75_spill] sm:$0xff] %v24235_v6  ;;  %v9799_v49 = vpop.f32.mrf.mxu0  ;;  %v24249_v51 = vpop.permute.xlu0 %15288  ;;  %v15450_v39 = vand.u32 4294901760, %v24232_v20  ;;  %v15456_v41 = vand.u32 4294901760, %v24238_v11  ;;  %v15445_v7 = vsub.f32 %v24228_v26, %v15444_v34 }
 0x460   :  { %15044 = vmatprep.subr.mxu1 %v24121_v47  ;;  %15169 = vmatprep.mubr.f32.mxu0 %v25521_v21  ;;  %v24261_v56 = vand.u32 4294901760, %v15406_v10 }
 0x461   :  { %15363 = vmatprep.subr.mxu0 %v24211_v8  ;;  %15046 = vmatpush1.msra.mxu1 %v24126_v29  ;;  %v24254_v53 = vpop.f32.mrf.mxu0 }
 0x462   :  { %15171 = vmatmul.mubr.f32.vlgmr.msra.gmra.mxu0 %v23847_v50  ;;  %15048 = vmatprep.subr.mxu1 %v24132_v28 }
 0x463   :  { %15365 = vmatpush1.msra.mxu0 %v24215_v46  ;;  %15050 = vmatpush1.msra.mxu1 %v24137_v43  ;;  %v9719_v25 = vpop.f32.mrf.mxu1 }
 0x464   :  { %15367 = vmatprep.subr.mxu0 %v24219_v52  ;;  %15083 = vmatprep.mubr.f32.mxu1 %v25521_v21  ;;  %v9720_v18 = vadd.f32 %v9719_v25, %v9644_v59  ;;  %v15451_v59 = vsub.f32 %v24232_v20, %v15450_v39  ;;  %v24278_v25 = vpop.permute.xlu0 %15270 }
 0x465   :  { %15369 = vmatpush1.msra.mxu0 %v24225_v16  ;;  %15087 = vmatmul.mubr.f32.vlgmr.msra.gmra.mxu1 %v23891_v61  ;;  %v24273_v10 = vpop.f32.mrf.mxu1  ;;  %v15457_v61 = vsub.f32 %v24238_v11, %v15456_v41 }
 0x466   :  { %15206 = vmatprep.subr.mxu1 %v24121_v47  ;;  %15402 = vmatprep.mubr.f32.mxu0 %v25521_v21  ;;  %v24271_v17 = vadd.f32 %v9720_v18, %v23885_v60  ;;  %25570 = vst [vmem:[#allocation76_spill] sm:$0xff] %v24273_v10  ;;  %v9972_v6 = vpop.f32.mrf.mxu0  ;;  %v15463_v60 = vsub.f32 %v24245_v27, %v15462_v42  ;;  %v15269_v18 = vpop.permute.xlu1 %15268 }
 0x467   :  { %15536 = vmatprep.subr.mxu0 %v24228_v26  ;;  %15208 = vmatpush1.msra.mxu1 %v24126_v29  ;;  %v15310_v47 = vsel %vm15298_vm15, %v15287_v13, %v24249_v51  ;;  %v15309_v29 = vsel %vm15298_vm15, %v24130_v32, %v15287_v13  ;;  %v15302_v44 = vsel %vm15298_vm15, %v15269_v18, %v24278_v25 }
 0x468   :  { %15408 = vmatmul.mubr.f32.vlgmr.msra.gmra.mxu0 %v24261_v56  ;;  %15210 = vmatprep.subr.mxu1 %v24132_v28  ;;  %v24288_v26 = vpop.f32.mrf.mxu0  ;;  %v15446_v28 = vand.u32 4294901760, %v15445_v7  ;;  %v24298_v36 = vand.u32 4294901760, %v15310_v47  ;;  %v15301_v32 = vsel %vm15298_vm15, %v24187_v19, %v15269_v18  ;;  %v24303_v13 = vand.u32 4294901760, %v15309_v29 }
 0x469   :  { %15539 = vmatpush1.msra.mxu0 %v24232_v20  ;;  %15212 = vmatpush1.msra.mxu1 %v24137_v43  ;;  %v15452_v20 = vand.u32 4294901760, %v15451_v59  ;;  %v15464_v7 = vand.u32 4294901760, %v15463_v60  ;;  %v24307_v59 = vand.u32 4294901760, %v15302_v44 }
 0x46a   :  { %15542 = vmatprep.subr.mxu0 %v24238_v11  ;;  %15245 = vmatprep.mubr.f32.mxu1 %v25521_v21  ;;  %v9891_v10 = vpop.f32.mrf.mxu1  ;;  %v15458_v11 = vand.u32 4294901760, %v15457_v61  ;;  %v24313_v19 = vsub.f32 %v15310_v47, %v24298_v36 }
 0x46b   :  { %15545 = vmatpush1.msra.mxu0 %v24245_v27  ;;  %15247 = vmatmul.mubr.f32.vlgmr.msra.gmra.mxu1 %v23847_v50  ;;  %v9892_v43 = vadd.f32 %v9891_v10, %v9799_v49  ;;  %v24310_v49 = vand.u32 4294901760, %v15301_v32  ;;  %v24323_v61 = vsub.f32 %v15302_v44, %v24307_v59 }
 0x46c   :  { %15447 = vmatprep.subr.mxu1 %v15446_v28  ;;  %15578 = vmatprep.mubr.f32.mxu0 %v25521_v21  ;;  %v24305_v27 = vpop.f32.mrf.mxu1  ;;  %v15935_v44 = vand.u32 4294901760, %v24313_v19 }
 0x46d   :  { %15696 = vmatprep.subr.mxu0 %v15444_v34  ;;  %15453 = vmatpush1.msra.mxu1 %v15452_v20  ;;  %v9973_v22 = vadd.f32 %v9972_v6, %v9892_v43  ;;  %v10134_v50 = vpop.f32.mrf.mxu0  ;;  %v24319_v6 = vsub.f32 %v15309_v29, %v24303_v13  ;;  %v15291_v29 = vpop.permute.xlu1 %15290  ;;  %v15947_v28 = vand.u32 4294901760, %v24323_v61 }
 0x46e   :  { %15581 = vmatmul.mubr.f32.vlgmr.msra.gmra.mxu0 %v24203_v33  ;;  %15459 = vmatprep.subr.mxu1 %v15458_v11  ;;  %v15936_v11 = vsub.f32 %v24313_v19, %v15935_v44 }
 0x46f   :  { %15700 = vmatpush1.msra.mxu0 %v15450_v39  ;;  %15465 = vmatpush1.msra.mxu1 %v15464_v7  ;;  %v24316_v34 = vpop.f32.mrf.mxu0 }
 0x470   :  { %15704 = vmatprep.subr.mxu0 %v15456_v41  ;;  %15498 = vmatprep.mubr.f32.mxu1 %v25521_v21  ;;  %25571 = vst [vmem:[#allocation77_spill] sm:$0xff] %v24316_v34  ;;  %v24328_v41 = vsub.f32 %v15301_v32, %v24310_v49 }
 0x471   :  { %15708 = vmatpush1.msra.mxu0 %v15462_v42  ;;  %15500 = vmatmul.mubr.f32.vlgmr.msra.gmra.mxu1 %v24180_v9  ;;  %v10050_v10 = vpop.f32.mrf.mxu1  ;;  %v24334_v42 = vpop.permute.xlu0 %15292 }
 0x472   :  { %15616 = vmatprep.subr.mxu1 %v24211_v8  ;;  %15741 = vmatprep.mubr.f32.mxu0 %v25521_v21  ;;  %v10051_v39 = vadd.f32 %v10050_v10, %v9973_v22  ;;  %v15941_v22 = vand.u32 4294901760, %v24319_v6  ;;  %v15953_v43 = vand.u32 4294901760, %v24328_v41 }
 0x473   :  { %15854 = vmatprep.subr.mxu0 %v24298_v36  ;;  %15618 = vmatpush1.msra.mxu1 %v24215_v46  ;;  %v24332_v60 = vpop.f32.mrf.mxu1 }
 0x474   :  { %25572 = vst [vmem:[#allocation78_spill] sm:$0xff] %v24332_v60  ;;  %15743 = vmatmul.mubr.f32.vlgmr.msra.gmra.mxu0 %v24180_v9  ;;  %15620 = vmatprep.subr.mxu1 %v24219_v52  ;;  %v10135_v47 = vadd.f32 %v10134_v50, %v10051_v39  ;;  %v10290_v18 = vpop.f32.mrf.mxu0  ;;  %v15942_v50 = vsub.f32 %v24319_v6, %v15941_v22 }
 0x475   :  { %15856 = vmatpush1.msra.mxu0 %v24303_v13  ;;  %15622 = vmatpush1.msra.mxu1 %v24225_v16  ;;  %v24358_v39 = vpop.permute.xlu0 %15274 }
 0x476   :  { %15858 = vmatprep.subr.mxu0 %v24307_v59  ;;  %15655 = vmatprep.mubr.f32.mxu1 %v25521_v21  ;;  %v24345_v20 = vpop.f32.mrf.mxu0 }
 0x477   :  { %25573 = vst [vmem:[#allocation79_spill] sm:$0xff] %v24345_v20  ;;  %15860 = vmatpush1.msra.mxu0 %v24310_v49  ;;  %15659 = vmatmul.mubr.f32.vlgmr.msra.gmra.mxu1 %v24223_v63  ;;  %v10210_v32 = vpop.f32.mrf.mxu1 }
 0x478   :  { %15778 = vmatprep.subr.mxu1 %v24211_v8  ;;  %15893 = vmatprep.mubr.f32.mxu0 %v25521_v21  ;;  %v10211_v7 = vadd.f32 %v10210_v32, %v10135_v47  ;;  %v15948_v8 = vsub.f32 %v24323_v61, %v15947_v28  ;;  %v15954_v32 = vsub.f32 %v24328_v41, %v15953_v43 }
 0x479   :  { %16027 = vmatprep.subr.mxu0 %v24313_v19  ;;  %15780 = vmatpush1.msra.mxu1 %v24215_v46  ;;  %v24356_v10 = vpop.f32.mrf.mxu1  ;;  %v15312_v19 = vsel %vm15298_vm15, %v15291_v29, %v24334_v42  ;;  %v15273_v46 = vpop.permute.xlu1 %15272 }
 0x47a   :  { %25574 = vst [vmem:[#allocation80_spill] sm:$0xff] %v24356_v10  ;;  %15899 = vmatmul.mubr.f32.vlgmr.msra.gmra.mxu0 %v24261_v56  ;;  %15782 = vmatprep.subr.mxu1 %v24219_v52  ;;  %v24364_v20 = vadd.f32 %v10211_v7, %v23978_v24  ;;  %v10463_v47 = vpop.f32.mrf.mxu0  ;;  %v15311_v10 = vsel %vm15298_vm15, %v24249_v51, %v15291_v29  ;;  %v15937_v24 = vand.u32 4294901760, %v15936_v11 }
 0x47b   :  { %16030 = vmatpush1.msra.mxu0 %v24319_v6  ;;  %15784 = vmatpush1.msra.mxu1 %v24225_v16  ;;  %v15304_v7 = vsel %vm15298_vm15, %v15273_v46, %v24358_v39  ;;  %v15943_v6 = vand.u32 4294901760, %v15942_v50  ;;  %v24381_v16 = vand.u32 4294901760, %v15312_v19  ;;  %v15303_v51 = vsel %vm15298_vm15, %v24278_v25, %v15273_v46 }
 0x47c   :  { %16033 = vmatprep.subr.mxu0 %v24323_v61  ;;  %15817 = vmatprep.mubr.f32.mxu1 %v25521_v21  ;;  %v24375_v52 = vpop.f32.mrf.mxu0  ;;  %v15949_v61 = vand.u32 4294901760, %v15948_v8  ;;  %v24386_v11 = vand.u32 4294901760, %v15311_v10  ;;  %v24390_v14 = vand.u32 4294901760, %v15304_v7  ;;  %v24393_v25 = vand.u32 4294901760, %v15303_v51 }
 0x47d   :  { %25575 = vst [vmem:[#allocation81_spill] sm:$0xff] %v24375_v52  ;;  %16036 = vmatpush1.msra.mxu0 %v24328_v41  ;;  %15819 = vmatmul.mubr.f32.vlgmr.msra.gmra.mxu1 %v24180_v9  ;;  %v10382_v34 = vpop.f32.mrf.mxu1  ;;  %v15955_v52 = vand.u32 4294901760, %v15954_v32  ;;  %v15295_v32 = vpop.permute.xlu1 %15294 }
 0x47e   :  { %15938 = vmatprep.subr.mxu1 %v15937_v24  ;;  %16069 = vmatprep.mubr.f32.mxu0 %v25521_v21  ;;  %v10383_v29 = vadd.f32 %v10382_v34, %v10290_v18  ;;  %v24396_v34 = vsub.f32 %v15312_v19, %v24381_v16  ;;  %v24402_v18 = vsub.f32 %v15311_v10, %v24386_v11  ;;  %v15297_v10 = vpop.permute.xlu0 %15296 }
 0x47f   :  { %16187 = vmatprep.subr.mxu0 %v15935_v44  ;;  %15944 = vmatpush1.msra.mxu1 %v15943_v6  ;;  %v24388_v41 = vpop.f32.mrf.mxu1 }
 0x480   :  { %25576 = vst [vmem:[#allocation82_spill] sm:$0xff] %v24388_v41  ;;  %16072 = vmatmul.mubr.f32.vlgmr.msra.gmra.mxu0 %v24203_v33  ;;  %15950 = vmatprep.subr.mxu1 %v15949_v61  ;;  %v10464_v50 = vadd.f32 %v10463_v47, %v10383_v29  ;;  %v10625_v2 = vpop.f32.mrf.mxu0  ;;  %v24406_v47 = vsub.f32 %v15304_v7, %v24390_v14  ;;  %v16426_v19 = vand.u32 4294901760, %v24396_v34 }
 0x481   :  { %16191 = vmatpush1.msra.mxu0 %v15941_v22  ;;  %15956 = vmatpush1.msra.mxu1 %v15955_v52  ;;  %v16432_v52 = vand.u32 4294901760, %v24402_v18 }
 0x482   :  { %16195 = vmatprep.subr.mxu0 %v15947_v28  ;;  %15989 = vmatprep.mubr.f32.mxu1 %v25521_v21  ;;  %v24399_v44 = vpop.f32.mrf.mxu0  ;;  %v24411_v28 = vsub.f32 %v15303_v51, %v24393_v25  ;;  %v16438_v7 = vand.u32 4294901760, %v24406_v47  ;;  %v16427_v61 = vsub.f32 %v24396_v34, %v16426_v19 }
 0x483   :  { %25577 = vst [vmem:[#allocation83_spill] sm:$0xff] %v24399_v44  ;;  %16199 = vmatpush1.msra.mxu0 %v15953_v43  ;;  %15991 = vmatmul.mubr.f32.vlgmr.msra.gmra.mxu1 %v24180_v9  ;;  %v10541_v8 = vpop.f32.mrf.mxu1 }
 0x484   :  { %16107 = vmatprep.subr.mxu1 %v24298_v36  ;;  %16232 = vmatprep.mubr.f32.mxu0 %v25521_v21  ;;  %v10542_v22 = vadd.f32 %v10541_v8, %v10464_v50  ;;  %v16444_v51 = vand.u32 4294901760, %v24411_v28  ;;  %v16433_v50 = vsub.f32 %v24402_v18, %v16432_v52  ;;  %v15277_v8 = vpop.permute.xlu1 %15276 }
 0x485   :  { %16345 = vmatprep.subr.mxu0 %v24381_v16  ;;  %16109 = vmatpush1.msra.mxu1 %v24303_v13  ;;  %v24415_v43 = vpop.f32.mrf.mxu1 }
 0x486   :  { %25578 = vst [vmem:[#allocation84_spill] sm:$0xff] %v24415_v43  ;;  %16234 = vmatmul.mubr.f32.vlgmr.msra.gmra.mxu0 %v24180_v9  ;;  %16111 = vmatprep.subr.mxu1 %v24307_v59  ;;  %v10626_v46 = vadd.f32 %v10625_v2, %v10542_v22  ;;  %v10781_v24 = vpop.f32.mrf.mxu0  ;;  %v15314_v43 = vsel %vm15298_vm15, %v15295_v32, %v15297_v10  ;;  %v16434_v10 = vand.u32 4294901760, %v16433_v50 }
 0x487   :  { %16347 = vmatpush1.msra.mxu0 %v24386_v11  ;;  %16113 = vmatpush1.msra.mxu1 %v24310_v49 }
 0x488   :  { %16349 = vmatprep.subr.mxu0 %v24390_v14  ;;  %16146 = vmatprep.mubr.f32.mxu1 %v25521_v21  ;;  %v24426_v6 = vpop.f32.mrf.mxu0  ;;  %v24469_v50 = vpop.permute.xlu1 %17327 }
 0x489   :  { %25579 = vst [vmem:[#allocation85_spill] sm:$0xff] %v24426_v6  ;;  %16351 = vmatpush1.msra.mxu0 %v24393_v25  ;;  %16150 = vmatmul.mubr.f32.vlgmr.msra.gmra.mxu1 %v24223_v63  ;;  %v10701_v2 = vpop.f32.mrf.mxu1  ;;  %v15279_v6 = vpop.permute.xlu0 %15278 }
 0x48a   :  { %16269 = vmatprep.subr.mxu1 %v24298_v36  ;;  %16384 = vmatprep.mubr.f32.mxu0 %v25521_v21  ;;  %v10702_v29 = vadd.f32 %v10701_v2, %v10626_v46  ;;  %v16439_v36 = vsub.f32 %v24406_v47, %v16438_v7  ;;  %v16445_v2 = vsub.f32 %v24411_v28, %v16444_v51 }
 0x48b   :  { %16518 = vmatprep.subr.mxu0 %v24396_v34  ;;  %16271 = vmatpush1.msra.mxu1 %v24303_v13  ;;  %v24437_v22 = vpop.f32.mrf.mxu1  ;;  %v15313_v13 = vsel %vm15298_vm15, %v24334_v42, %v15295_v32 }
 0x48c   :  { %25580 = vst [vmem:[#allocation86_spill] sm:$0xff] %v24437_v22  ;;  %16390 = vmatmul.mubr.f32.vlgmr.msra.gmra.mxu0 %v24261_v56  ;;  %16273 = vmatprep.subr.mxu1 %v24307_v59  ;;  %v24443_v44 = vadd.f32 %v10702_v29, %v24074_v37  ;;  %v10954_v46 = vpop.f32.mrf.mxu0  ;;  %v16428_v59 = vand.u32 4294901760, %v16427_v61  ;;  %v15306_v37 = vsel %vm15298_vm15, %v15277_v8, %v15279_v6  ;;  %v24458_v29 = vand.u32 4294901760, %v15314_v43 }
 0x48d   :  { %16521 = vmatpush1.msra.mxu0 %v24402_v18  ;;  %16275 = vmatpush1.msra.mxu1 %v24310_v49  ;;  %v15305_v49 = vsel %vm15298_vm15, %v24358_v39, %v15277_v8  ;;  %v16440_v42 = vand.u32 4294901760, %v16439_v36  ;;  %v24463_v32 = vand.u32 4294901760, %v15313_v13  ;;  %v16446_v6 = vand.u32 4294901760, %v16445_v2  ;;  %v24474_v36 = vpop.permute.xlu0 %17329 }
 0x48e   :  { %16524 = vmatprep.subr.mxu0 %v24406_v47  ;;  %16308 = vmatprep.mubr.f32.mxu1 %v25521_v21  ;;  %v24453_v34 = vpop.f32.mrf.mxu0  ;;  %v24467_v61 = vand.u32 4294901760, %v15306_v37 }
 0x48f   :  { %25581 = vst [vmem:[#allocation87_spill] sm:$0xff] %v24453_v34  ;;  %16527 = vmatpush1.msra.mxu0 %v24411_v28  ;;  %16310 = vmatmul.mubr.f32.vlgmr.msra.gmra.mxu1 %v24180_v9  ;;  %v10873_v18 = vpop.f32.mrf.mxu1  ;;  %v24483_v2 = vsub.f32 %v15313_v13, %v24463_v32  ;;  %v17326_v13 = vpop.permute.xlu1 %17325 }
 0x490   :  { %16429 = vmatprep.subr.mxu1 %v16428_v59  ;;  %16560 = vmatprep.mubr.f32.mxu0 %v25521_v21  ;;  %v10874_v47 = vadd.f32 %v10873_v18, %v10781_v24  ;;  %v24472_v59 = vand.u32 4294901760, %v15305_v49 }
 0x491   :  { %16678 = vmatprep.subr.mxu0 %v16426_v19  ;;  %16435 = vmatpush1.msra.mxu1 %v16434_v10  ;;  %v24465_v28 = vpop.f32.mrf.mxu1  ;;  %v24477_v19 = vsub.f32 %v15314_v43, %v24458_v29  ;;  %v24487_v10 = vsub.f32 %v15306_v37, %v24467_v61  ;;  %v17306_v43 = vld [vmem:[#allocation8 + $0x7] sm:$0x1] }
 0x492   :  { %25582 = vst [vmem:[#allocation88_spill] sm:$0xff] %v24465_v28  ;;  %16563 = vmatmul.mubr.f32.vlgmr.msra.gmra.mxu0 %v24203_v33  ;;  %16441 = vmatprep.subr.mxu1 %v16440_v42  ;;  %v10955_v39 = vadd.f32 %v10954_v46, %v10874_v47  ;;  %v11116_v8 = vpop.f32.mrf.mxu0  ;;  %v16923_v47 = vand.u32 4294901760, %v24483_v2 }
 0x493   :  { %16682 = vmatpush1.msra.mxu0 %v16432_v52  ;;  %16447 = vmatpush1.msra.mxu1 %v16446_v6  ;;  %v16917_v37 = vand.u32 4294901760, %v24477_v19  ;;  %v17310_v6 = vpop.permute.xlu0 %17309  ;;  %v24523_v28 = vpop.permute.xlu1 %17311 }
 0x494   :  { %16686 = vmatprep.subr.mxu0 %v16438_v7  ;;  %16480 = vmatprep.mubr.f32.mxu1 %v25521_v21  ;;  %v24480_v24 = vpop.f32.mrf.mxu0  ;;  %v24492_v7 = vsub.f32 %v15305_v49, %v24472_v59  ;;  %v17376_v49 = vsel %vm3094_vm0, %v17306_v43, 0  ;;  %v16924_v34 = vsub.f32 %v24483_v2, %v16923_v47 }
 0x495   :  { %25583 = vst [vmem:[#allocation89_spill] sm:$0xff] %v24480_v24  ;;  %16690 = vmatpush1.msra.mxu0 %v16444_v51  ;;  %16482 = vmatmul.mubr.f32.vlgmr.msra.gmra.mxu1 %v24180_v9  ;;  %v11032_v46 = vpop.f32.mrf.mxu1  ;;  %v16918_v43 = vsub.f32 %v24477_v19, %v16917_v37  ;;  %v24516_v24 = vand.u32 4294901760, %v17376_v49 }
 0x496   :  { %16598 = vmatprep.subr.mxu1 %v24381_v16  ;;  %16723 = vmatprep.mubr.f32.mxu0 %v25521_v21  ;;  %v11033_v52 = vadd.f32 %v11032_v46, %v10955_v39  ;;  %v16929_v39 = vand.u32 4294901760, %v24487_v10 }
 0x497   :  { %16836 = vmatprep.subr.mxu0 %v24458_v29  ;;  %16600 = vmatpush1.msra.mxu1 %v24386_v11  ;;  %v24496_v51 = vpop.f32.mrf.mxu1 }
 0x498   :  { %25584 = vst [vmem:[#allocation90_spill] sm:$0xff] %v24496_v51  ;;  %16725 = vmatmul.mubr.f32.vlgmr.msra.gmra.mxu0 %v24180_v9  ;;  %16602 = vmatprep.subr.mxu1 %v24390_v14  ;;  %v11117_v18 = vadd.f32 %v11116_v8, %v11033_v52  ;;  %v11284_v42 = vpop.f32.mrf.mxu0  ;;  %v16935_v8 = vand.u32 4294901760, %v24492_v7 }
 0x499   :  { %16838 = vmatpush1.msra.mxu0 %v24463_v32  ;;  %16604 = vmatpush1.msra.mxu1 %v24393_v25 }
 0x49a   :  { %16840 = vmatprep.subr.mxu0 %v24467_v61  ;;  %16637 = vmatprep.mubr.f32.mxu1 %v25521_v21  ;;  %v24508_v46 = vpop.f32.mrf.mxu0 }
 0x49b   :  { %25585 = vst [vmem:[#allocation91_spill] sm:$0xff] %v24508_v46  ;;  %16842 = vmatpush1.msra.mxu0 %v24472_v59  ;;  %16641 = vmatmul.mubr.f32.vlgmr.msra.gmra.mxu1 %v24223_v63  ;;  %v11192_v52 = vpop.f32.mrf.mxu1 }
 0x49c   :  { %16760 = vmatprep.subr.mxu1 %v24381_v16  ;;  %16875 = vmatprep.mubr.f32.mxu0 %v25521_v21  ;;  %v11193_v51 = vadd.f32 %v11192_v52, %v11117_v18  ;;  %v16930_v16 = vsub.f32 %v24487_v10, %v16929_v39  ;;  %v16936_v52 = vsub.f32 %v24492_v7, %v16935_v8 }
 0x49d   :  { %17009 = vmatprep.subr.mxu0 %v24477_v19  ;;  %16762 = vmatpush1.msra.mxu1 %v24386_v11  ;;  %v24521_v46 = vpop.f32.mrf.mxu1  ;;  %v17352_v11 = vsel %vm142_vm8, %v24469_v50, %v24474_v36  ;;  %v17308_v19 = vpop.permute.xlu0 %17307 }
 0x49e   :  { %25586 = vst [vmem:[#allocation92_spill] sm:$0xff] %v24521_v46  ;;  %16881 = vmatmul.mubr.f32.vlgmr.msra.gmra.mxu0 %v24261_v56  ;;  %16764 = vmatprep.subr.mxu1 %v24390_v14  ;;  %v24529_v22 = vadd.f32 %v11193_v51, %v24167_v15  ;;  %v11457_v18 = vpop.f32.mrf.mxu0  ;;  %v17351_v14 = vsel %vm142_vm8, %v17326_v13, %v24469_v50  ;;  %v16919_v15 = vand.u32 4294901760, %v16918_v43  ;;  %v24550_v50 = vand.u32 4294901760, %v17352_v11 }
 0x49f   :  { %17012 = vmatpush1.msra.mxu0 %v24483_v2  ;;  %16766 = vmatpush1.msra.mxu1 %v24393_v25  ;;  %v24542_v56 = vsub.f32 %v17376_v49, %v24516_v24  ;;  %v17344_v46 = vsel %vm142_vm8, %v17310_v6, %v24523_v28  ;;  %v16925_v25 = vand.u32 4294901760, %v16924_v34  ;;  %v16931_v13 = vand.u32 4294901760, %v16930_v16 }
 0x4a0   :  { %17015 = vmatprep.subr.mxu0 %v24487_v10  ;;  %16799 = vmatprep.mubr.f32.mxu1 %v25521_v21  ;;  %v24544_v51 = vpop.f32.mrf.mxu0  ;;  %v17343_v10 = vsel %vm142_vm8, %v17308_v19, %v17310_v6  ;;  %v24554_v43 = vand.u32 4294901760, %v17351_v14 }
 0x4a1   :  { %25587 = vst [vmem:[#allocation93_spill] sm:$0xff] %v24544_v51  ;;  %17018 = vmatpush1.msra.mxu0 %v24492_v7  ;;  %16801 = vmatmul.mubr.f32.vlgmr.msra.gmra.mxu1 %v24180_v9  ;;  %v11376_v2 = vpop.f32.mrf.mxu1  ;;  %v16937_v51 = vand.u32 4294901760, %v16936_v52  ;;  %v24558_v7 = vand.u32 4294901760, %v17344_v46  ;;  %v24562_v34 = vand.u32 4294901760, %v24542_v56 }
 0x4a2   :  { %16920 = vmatprep.subr.mxu1 %v16919_v15  ;;  %17051 = vmatprep.mubr.f32.mxu0 %v25521_v21  ;;  %v11377_v49 = vadd.f32 %v11376_v2, %v11284_v42  ;;  %v24564_v15 = vand.u32 4294901760, %v17343_v10  ;;  %v17332_v2 = vpop.permute.xlu1 %17331 }
 0x4a3   :  { %17169 = vmatprep.subr.mxu0 %v16917_v37  ;;  %16926 = vmatpush1.msra.mxu1 %v16925_v25  ;;  %v24556_v41 = vpop.f32.mrf.mxu1  ;;  %v24567_v37 = vsub.f32 %v17352_v11, %v24550_v50  ;;  %v24590_v11 = vpop.permute.xlu0 %17333 }
 0x4a4   :  { %25588 = vst [vmem:[#allocation94_spill] sm:$0xff] %v24556_v41  ;;  %17054 = vmatmul.mubr.f32.vlgmr.msra.gmra.mxu0 %v24203_v33  ;;  %16932 = vmatprep.subr.mxu1 %v16931_v13  ;;  %v11458_v6 = vadd.f32 %v11457_v18, %v11377_v49  ;;  %v11619_v19 = vpop.f32.mrf.mxu0  ;;  %v24573_v33 = vsub.f32 %v17351_v14, %v24554_v43 }
 0x4a5   :  { %17173 = vmatpush1.msra.mxu0 %v16923_v47  ;;  %16938 = vmatpush1.msra.mxu1 %v16937_v51  ;;  %v24577_v18 = vsub.f32 %v17344_v46, %v24558_v7  ;;  %v17450_v47 = vsub.f32 %v24542_v56, %v24562_v34  ;;  %v24584_v52 = vsub.f32 %v17343_v10, %v24564_v15  ;;  %v17488_v46 = vand.u32 4294901760, %v24567_v37 }
 0x4a6   :  { %17177 = vmatprep.subr.mxu0 %v16929_v39  ;;  %16971 = vmatprep.mubr.f32.mxu1 %v25521_v21  ;;  %v24570_v42 = vpop.f32.mrf.mxu0  ;;  %v17494_v25 = vand.u32 4294901760, %v24573_v33 }
 0x4a7   :  { %25589 = vst [vmem:[#allocation95_spill] sm:$0xff] %v24570_v42  ;;  %17181 = vmatpush1.msra.mxu0 %v16935_v8  ;;  %16973 = vmatmul.mubr.f32.vlgmr.msra.gmra.mxu1 %v24180_v9  ;;  %v11535_v16 = vpop.f32.mrf.mxu1  ;;  %v24600_v10 = vand.u32 4294901760, %v17450_v47  ;;  %v17500_v13 = vand.u32 4294901760, %v24577_v18 }
 0x4a8   :  { %17089 = vmatprep.subr.mxu1 %v24458_v29  ;;  %17214 = vmatprep.mubr.f32.mxu0 %v25521_v21  ;;  %v11536_v39 = vadd.f32 %v11535_v16, %v11458_v6  ;;  %v17506_v6 = vand.u32 4294901760, %v24584_v52  ;;  %v17489_v16 = vsub.f32 %v24567_v37, %v17488_v46  ;;  %v17495_v47 = vsub.f32 %v24573_v33, %v17494_v25 }
 0x4a9   :  { %17407 = vmatprep.subr.mxu0 %v24550_v50  ;;  %17091 = vmatpush1.msra.mxu1 %v24463_v32  ;;  %v24588_v8 = vpop.f32.mrf.mxu1 }
 0x4aa   :  { %25590 = vst [vmem:[#allocation96_spill] sm:$0xff] %v24588_v8  ;;  %17216 = vmatmul.mubr.f32.vlgmr.msra.gmra.mxu0 %v24180_v9  ;;  %17093 = vmatprep.subr.mxu1 %v24467_v61  ;;  %v11620_v14 = vadd.f32 %v11619_v19, %v11536_v39  ;;  %v11775_v51 = vpop.f32.mrf.mxu0  ;;  %v24614_v8 = vpop.permute.xlu0 %17315  ;;  %v17496_v41 = vand.u32 4294901760, %v17495_v47 }
 0x4ab   :  { %17409 = vmatpush1.msra.mxu0 %v24554_v43  ;;  %17095 = vmatpush1.msra.mxu1 %v24472_v59 }
 0x4ac   :  { %17411 = vmatprep.subr.mxu0 %v24558_v7  ;;  %17128 = vmatprep.mubr.f32.mxu1 %v25521_v21  ;;  %v11777_v49 = vpop.f32.mrf.mxu0 }
 0x4ad   :  { %17413 = vmatpush1.msra.mxu0 %v24564_v15  ;;  %17132 = vmatmul.mubr.f32.vlgmr.msra.gmra.mxu1 %v24223_v63  ;;  %v11695_v19 = vpop.f32.mrf.mxu1  ;;  %v17501_v63 = vsub.f32 %v24577_v18, %v17500_v13 }
 0x4ae   :  { %17251 = vmatprep.subr.mxu1 %v24458_v29  ;;  %17446 = vmatprep.mubr.f32.mxu0 %v25521_v21  ;;  %v11696_v39 = vadd.f32 %v11695_v19, %v11620_v14  ;;  %v17507_v19 = vsub.f32 %v24584_v52, %v17506_v6 }
 0x4af   :  { %17580 = vmatprep.subr.mxu0 %v24567_v37  ;;  %17253 = vmatpush1.msra.mxu1 %v24463_v32  ;;  %v24612_v42 = vpop.f32.mrf.mxu1  ;;  %v17354_v37 = vsel %vm142_vm8, %v17332_v2, %v24590_v11  ;;  %v17314_v32 = vpop.permute.xlu1 %17313 }
 0x4b0   :  { %25591 = vst [vmem:[#allocation97_spill] sm:$0xff] %v24612_v42  ;;  %17452 = vmatmul.mubr.f32.vlgmr.msra.gmra.mxu0 %v24600_v10  ;;  %17255 = vmatprep.subr.mxu1 %v24467_v61  ;;  %v24620_v29 = vadd.f32 %v11696_v39, %v24271_v17  ;;  %v11948_v14 = vpop.f32.mrf.mxu0  ;;  %v17353_v42 = vsel %vm142_vm8, %v24474_v36, %v17332_v2  ;;  %v17490_v17 = vand.u32 4294901760, %v17489_v16  ;;  %v24635_v57 = vand.u32 4294901760, %v17354_v37 }
 0x4b1   :  { %17583 = vmatpush1.msra.mxu0 %v24573_v33  ;;  %17257 = vmatpush1.msra.mxu1 %v24472_v59  ;;  %v17346_v39 = vsel %vm142_vm8, %v17314_v32, %v24614_v8  ;;  %v17345_v59 = vsel %vm142_vm8, %v24523_v28, %v17314_v32  ;;  %v17502_v36 = vand.u32 4294901760, %v17501_v63  ;;  %v24640_v2 = vand.u32 4294901760, %v17353_v42 }
 0x4b2   :  { %17586 = vmatprep.subr.mxu0 %v24577_v18  ;;  %17290 = vmatprep.mubr.f32.mxu1 %v25521_v21  ;;  %v11950_v61 = vpop.f32.mrf.mxu0  ;;  %v17508_v16 = vand.u32 4294901760, %v17507_v19  ;;  %v24642_v48 = vand.u32 4294901760, %v17346_v39  ;;  %v24645_v28 = vand.u32 4294901760, %v17345_v59 }
 0x4b3   :  { %17589 = vmatpush1.msra.mxu0 %v24584_v52  ;;  %17292 = vmatmul.mubr.f32.vlgmr.msra.gmra.mxu1 %v24180_v9  ;;  %v11867_v33 = vpop.f32.mrf.mxu1  ;;  %v24652_v63 = vsub.f32 %v17353_v42, %v24640_v2 }
 0x4b4   :  { %17491 = vmatprep.subr.mxu1 %v17490_v17  ;;  %17622 = vmatprep.mubr.f32.mxu0 %v25521_v21  ;;  %v11868_v18 = vadd.f32 %v11867_v33, %v11775_v51  ;;  %v24648_v51 = vsub.f32 %v17354_v37, %v24635_v57 }
 0x4b5   :  { %17740 = vmatprep.subr.mxu0 %v17488_v46  ;;  %17497 = vmatpush1.msra.mxu1 %v17496_v41  ;;  %v11869_v52 = vpop.f32.mrf.mxu1 }
 0x4b6   :  { %17625 = vmatmul.mubr.f32.vlgmr.msra.gmra.mxu0 %v24542_v56  ;;  %17503 = vmatprep.subr.mxu1 %v17502_v36  ;;  %v11949_v9 = vadd.f32 %v11948_v14, %v11868_v18  ;;  %v11870_v47 = vadd.f32 %v11869_v52, %v11777_v49  ;;  %v12110_v60 = vpop.f32.mrf.mxu0  ;;  %v24656_v14 = vsub.f32 %v17346_v39, %v24642_v48  ;;  %v17979_v19 = vand.u32 4294901760, %v24648_v51  ;;  %v17336_v39 = vpop.permute.xlu1 %17335 }
 0x4b7   :  { %17744 = vmatpush1.msra.mxu0 %v17494_v25  ;;  %17509 = vmatpush1.msra.mxu1 %v17508_v16 }
 0x4b8   :  { %17748 = vmatprep.subr.mxu0 %v17500_v13  ;;  %17542 = vmatprep.mubr.f32.mxu1 %v25521_v21  ;;  %v11951_v41 = vadd.f32 %v11950_v61, %v11870_v47  ;;  %v12112_v46 = vpop.f32.mrf.mxu0  ;;  %v24661_v13 = vsub.f32 %v17345_v59, %v24645_v28  ;;  %v17985_v61 = vand.u32 4294901760, %v24652_v63  ;;  %v17991_v33 = vand.u32 4294901760, %v24656_v14 }
 0x4b9   :  { %17752 = vmatpush1.msra.mxu0 %v17506_v6  ;;  %17544 = vmatmul.mubr.f32.vlgmr.msra.gmra.mxu1 %v24516_v24  ;;  %v12026_v49 = vpop.f32.mrf.mxu1  ;;  %v24665_v6 = vpop.permute.xlu0 %17337  ;;  %v17980_v16 = vsub.f32 %v24648_v51, %v17979_v19 }
 0x4ba   :  { %17660 = vmatprep.subr.mxu1 %v24550_v50  ;;  %17785 = vmatprep.mubr.f32.mxu0 %v25521_v21  ;;  %v12027_v25 = vadd.f32 %v12026_v49, %v11949_v9  ;;  %v17997_v18 = vand.u32 4294901760, %v24661_v13  ;;  %v17986_v9 = vsub.f32 %v24652_v63, %v17985_v61 }
 0x4bb   :  { %17898 = vmatprep.subr.mxu0 %v24635_v57  ;;  %17662 = vmatpush1.msra.mxu1 %v24554_v43  ;;  %v12028_v42 = vpop.f32.mrf.mxu1 }
 0x4bc   :  { %17787 = vmatmul.mubr.f32.vlgmr.msra.gmra.mxu0 %v24516_v24  ;;  %17664 = vmatprep.subr.mxu1 %v24558_v7  ;;  %v12111_v37 = vadd.f32 %v12110_v60, %v12027_v25  ;;  %v12029_v32 = vadd.f32 %v12028_v42, %v11951_v41  ;;  %v12266_v17 = vpop.f32.mrf.mxu0  ;;  %v17998_v42 = vsub.f32 %v24661_v13, %v17997_v18 }
 0x4bd   :  { %17900 = vmatpush1.msra.mxu0 %v24640_v2  ;;  %17666 = vmatpush1.msra.mxu1 %v24564_v15  ;;  %v24685_v41 = vpop.permute.xlu0 %17319 }
 0x4be   :  { %17902 = vmatprep.subr.mxu0 %v24642_v48  ;;  %17699 = vmatprep.mubr.f32.mxu1 %v25521_v21  ;;  %v12113_v59 = vadd.f32 %v12112_v46, %v12029_v32  ;;  %v12268_v36 = vpop.f32.mrf.mxu0 }
 0x4bf   :  { %17904 = vmatpush1.msra.mxu0 %v24645_v28  ;;  %17703 = vmatmul.mubr.f32.vlgmr.msra.gmra.mxu1 %v24562_v34  ;;  %v12186_v60 = vpop.f32.mrf.mxu1 }
 0x4c0   :  { %17822 = vmatprep.subr.mxu1 %v24550_v50  ;;  %17937 = vmatprep.mubr.f32.mxu0 %v25521_v21  ;;  %v12187_v52 = vadd.f32 %v12186_v60, %v12111_v37  ;;  %v17992_v50 = vsub.f32 %v24656_v14, %v17991_v33 }
 0x4c1   :  { %18071 = vmatprep.subr.mxu0 %v24648_v51  ;;  %17824 = vmatpush1.msra.mxu1 %v24554_v43  ;;  %v12188_v47 = vpop.f32.mrf.mxu1  ;;  %v17356_v43 = vsel %vm142_vm8, %v17336_v39, %v24665_v6  ;;  %v17318_v51 = vpop.permute.xlu1 %17317 }
 0x4c2   :  { %17943 = vmatmul.mubr.f32.vlgmr.msra.gmra.mxu0 %v24600_v10  ;;  %17826 = vmatprep.subr.mxu1 %v24558_v7  ;;  %v24691_v46 = vadd.f32 %v12187_v52, %v24364_v20  ;;  %v24693_v49 = vadd.f32 %v12188_v47, %v12113_v59  ;;  %v12439_v25 = vpop.f32.mrf.mxu0  ;;  %v17355_v7 = vsel %vm142_vm8, %v24590_v11, %v17336_v39  ;;  %v17981_v20 = vand.u32 4294901760, %v17980_v16 }
 0x4c3   :  { %18074 = vmatpush1.msra.mxu0 %v24652_v63  ;;  %17828 = vmatpush1.msra.mxu1 %v24564_v15  ;;  %v17348_v32 = vsel %vm142_vm8, %v17318_v51, %v24685_v41  ;;  %v17987_v59 = vand.u32 4294901760, %v17986_v9  ;;  %v24708_v60 = vand.u32 4294901760, %v17356_v43  ;;  %v17347_v15 = vsel %vm142_vm8, %v24614_v8, %v17318_v51  ;;  %v17342_v51 = vpop.permute.xlu0 %17341 }
 0x4c4   :  { %25592 = vst [vmem:[#allocation98_spill] sm:$0xff] %v24691_v46  ;;  %18077 = vmatprep.subr.mxu0 %v24656_v14  ;;  %17861 = vmatprep.mubr.f32.mxu1 %v25521_v21  ;;  %v12441_v37 = vpop.f32.mrf.mxu0  ;;  %v17993_v11 = vand.u32 4294901760, %v17992_v50  ;;  %v24713_v39 = vand.u32 4294901760, %v17355_v7  ;;  %v17999_v16 = vand.u32 4294901760, %v17998_v42  ;;  %v24715_v52 = vand.u32 4294901760, %v17348_v32 }
 0x4c5   :  { %18080 = vmatpush1.msra.mxu0 %v24661_v13  ;;  %17863 = vmatmul.mubr.f32.vlgmr.msra.gmra.mxu1 %v24516_v24  ;;  %v12358_v63 = vpop.f32.mrf.mxu1  ;;  %v24718_v8 = vand.u32 4294901760, %v17347_v15 }
 0x4c6   :  { %17982 = vmatprep.subr.mxu1 %v17981_v20  ;;  %18113 = vmatprep.mubr.f32.mxu0 %v25521_v21  ;;  %v12359_v14 = vadd.f32 %v12358_v63, %v12266_v17  ;;  %v24721_v17 = vsub.f32 %v17356_v43, %v24708_v60  ;;  %v24725_v42 = vsub.f32 %v17355_v7, %v24713_v39  ;;  %v17340_v43 = vpop.permute.xlu1 %17339 }
 0x4c7   :  { %18231 = vmatprep.subr.mxu0 %v17979_v19  ;;  %17988 = vmatpush1.msra.mxu1 %v17987_v59  ;;  %v12360_v13 = vpop.f32.mrf.mxu1 }
 0x4c8   :  { %18116 = vmatmul.mubr.f32.vlgmr.msra.gmra.mxu0 %v24542_v56  ;;  %17994 = vmatprep.subr.mxu1 %v17993_v11  ;;  %v12440_v9 = vadd.f32 %v12439_v25, %v12359_v14  ;;  %v12361_v47 = vadd.f32 %v12360_v13, %v12268_v36  ;;  %v12601_v46 = vpop.f32.mrf.mxu0  ;;  %v24729_v25 = vsub.f32 %v17348_v32, %v24715_v52  ;;  %v18470_v7 = vand.u32 4294901760, %v24721_v17 }
 0x4c9   :  { %18235 = vmatpush1.msra.mxu0 %v17985_v61  ;;  %18000 = vmatpush1.msra.mxu1 %v17999_v16  ;;  %v18476_v59 = vand.u32 4294901760, %v24725_v42 }
 0x4ca   :  { %18239 = vmatprep.subr.mxu0 %v17991_v33  ;;  %18033 = vmatprep.mubr.f32.mxu1 %v25521_v21  ;;  %v12442_v19 = vadd.f32 %v12441_v37, %v12361_v47  ;;  %v12603_v50 = vpop.f32.mrf.mxu0  ;;  %v24734_v33 = vsub.f32 %v17347_v15, %v24718_v8  ;;  %v18482_v63 = vand.u32 4294901760, %v24729_v25  ;;  %v18471_v16 = vsub.f32 %v24721_v17, %v18470_v7  ;;  %v17322_v47 = vpop.permute.xlu1 %17321 }
 0x4cb   :  { %18243 = vmatpush1.msra.mxu0 %v17997_v18  ;;  %18035 = vmatmul.mubr.f32.vlgmr.msra.gmra.mxu1 %v24516_v24  ;;  %v12517_v36 = vpop.f32.mrf.mxu1 }
 0x4cc   :  { %18151 = vmatprep.subr.mxu1 %v24635_v57  ;;  %18276 = vmatprep.mubr.f32.mxu0 %v25521_v21  ;;  %v12518_v61 = vadd.f32 %v12517_v36, %v12440_v9  ;;  %v18488_v14 = vand.u32 4294901760, %v24734_v33  ;;  %v18477_v9 = vsub.f32 %v24725_v42, %v18476_v59 }
 0x4cd   :  { %18389 = vmatprep.subr.mxu0 %v24708_v60  ;;  %18153 = vmatpush1.msra.mxu1 %v24640_v2  ;;  %v12519_v18 = vpop.f32.mrf.mxu1 }
 0x4ce   :  { %18278 = vmatmul.mubr.f32.vlgmr.msra.gmra.mxu0 %v24516_v24  ;;  %18155 = vmatprep.subr.mxu1 %v24642_v48  ;;  %v12602_v20 = vadd.f32 %v12601_v46, %v12518_v61  ;;  %v12520_v37 = vadd.f32 %v12519_v18, %v12442_v19  ;;  %v12757_v32 = vpop.f32.mrf.mxu0 }
 0x4cf   :  { %18391 = vmatpush1.msra.mxu0 %v24713_v39  ;;  %18157 = vmatpush1.msra.mxu1 %v24645_v28 }
 0x4d0   :  { %18393 = vmatprep.subr.mxu0 %v24715_v52  ;;  %18190 = vmatprep.mubr.f32.mxu1 %v25521_v21  ;;  %v12604_v15 = vadd.f32 %v12603_v50, %v12520_v37  ;;  %v12759_v11 = vpop.f32.mrf.mxu0  ;;  %v17324_v50 = vpop.permute.xlu0 %17323 }
 0x4d1   :  { %18395 = vmatpush1.msra.mxu0 %v24718_v8  ;;  %18194 = vmatmul.mubr.f32.vlgmr.msra.gmra.mxu1 %v24562_v34  ;;  %v12677_v46 = vpop.f32.mrf.mxu1  ;;  %v17350_v37 = vsel %vm142_vm8, %v17322_v47, %v17324_v50 }
 0x4d2   :  { %18313 = vmatprep.subr.mxu1 %v24635_v57  ;;  %18428 = vmatprep.mubr.f32.mxu0 %v25521_v21  ;;  %v12678_v13 = vadd.f32 %v12677_v46, %v12602_v20  ;;  %v18483_v57 = vsub.f32 %v24729_v25, %v18482_v63  ;;  %v18489_v20 = vsub.f32 %v24734_v33, %v18488_v14  ;;  %v24782_v46 = vpop.permute.xlu1 %19371 }
 0x4d3   :  { %18562 = vmatprep.subr.mxu0 %v24721_v17  ;;  %18315 = vmatpush1.msra.mxu1 %v24640_v2  ;;  %v12679_v19 = vpop.f32.mrf.mxu1  ;;  %v17358_v17 = vsel %vm142_vm8, %v17340_v43, %v17342_v51  ;;  %v17357_v2 = vsel %vm142_vm8, %v24665_v6, %v17340_v43  ;;  %v18478_v51 = vand.u32 4294901760, %v18477_v9 }
 0x4d4   :  { %18434 = vmatmul.mubr.f32.vlgmr.msra.gmra.mxu0 %v24600_v10  ;;  %18317 = vmatprep.subr.mxu1 %v24642_v48  ;;  %v24760_v36 = vadd.f32 %v12678_v13, %v24443_v44  ;;  %v24762_v61 = vadd.f32 %v12679_v19, %v12604_v15  ;;  %v12930_v18 = vpop.f32.mrf.mxu0  ;;  %v18472_v48 = vand.u32 4294901760, %v18471_v16  ;;  %v18484_v6 = vand.u32 4294901760, %v18483_v57  ;;  %v24789_v50 = vpop.permute.xlu0 %19373 }
 0x4d5   :  { %18565 = vmatpush1.msra.mxu0 %v24725_v42  ;;  %18319 = vmatpush1.msra.mxu1 %v24645_v28  ;;  %v24775_v42 = vand.u32 4294901760, %v17358_v17  ;;  %v17349_v28 = vsel %vm142_vm8, %v24685_v41, %v17322_v47  ;;  %v24780_v43 = vand.u32 4294901760, %v17357_v2  ;;  %v24784_v13 = vand.u32 4294901760, %v17350_v37 }
 0x4d6   :  { %18568 = vmatprep.subr.mxu0 %v24729_v25  ;;  %18352 = vmatprep.mubr.f32.mxu1 %v25521_v21  ;;  %v12932_v44 = vpop.f32.mrf.mxu0  ;;  %v24787_v19 = vand.u32 4294901760, %v17349_v28 }
 0x4d7   :  { %18571 = vmatpush1.msra.mxu0 %v24734_v33  ;;  %18354 = vmatmul.mubr.f32.vlgmr.msra.gmra.mxu1 %v24516_v24  ;;  %v12849_v15 = vpop.f32.mrf.mxu1  ;;  %v18490_v33 = vand.u32 4294901760, %v18489_v20  ;;  %v24796_v20 = vsub.f32 %v17357_v2, %v24780_v43 }
 0x4d8   :  { %18473 = vmatprep.subr.mxu1 %v18472_v48  ;;  %18604 = vmatprep.mubr.f32.mxu0 %v25521_v21  ;;  %v12850_v25 = vadd.f32 %v12849_v15, %v12757_v32  ;;  %v24792_v32 = vsub.f32 %v17358_v17, %v24775_v42  ;;  %v24805_v17 = vsub.f32 %v17349_v28, %v24787_v19  ;;  %v19370_v48 = vpop.permute.xlu1 %19369 }
 0x4d9   :  { %18722 = vmatprep.subr.mxu0 %v18470_v7  ;;  %18479 = vmatpush1.msra.mxu1 %v18478_v51  ;;  %v12851_v16 = vpop.f32.mrf.mxu1  ;;  %v25506_v15 = vand.u32 4294901760, %v24796_v20 }
 0x4da   :  { %18607 = vmatmul.mubr.f32.vlgmr.msra.gmra.mxu0 %v24542_v56  ;;  %18485 = vmatprep.subr.mxu1 %v18484_v6  ;;  %v12931_v9 = vadd.f32 %v12930_v18, %v12850_v25  ;;  %v12852_v41 = vadd.f32 %v12851_v16, %v12759_v11  ;;  %v13092_v47 = vpop.f32.mrf.mxu0  ;;  %v24800_v18 = vsub.f32 %v17350_v37, %v24784_v13  ;;  %v18961_v2 = vand.u32 4294901760, %v24792_v32  ;;  %v19354_v6 = vpop.permute.xlu0 %19353 }
 0x4db   :  { %18726 = vmatpush1.msra.mxu0 %v18476_v59  ;;  %18491 = vmatpush1.msra.mxu1 %v18490_v33  ;;  %v19350_v59 = vld [vmem:[#allocation8 + $0x8] sm:$0x1] }
 0x4dc   :  { %18730 = vmatprep.subr.mxu0 %v18482_v63  ;;  %18524 = vmatprep.mubr.f32.mxu1 %v25521_v21  ;;  %v12933_v7 = vadd.f32 %v12932_v44, %v12852_v41  ;;  %v13094_v57 = vpop.f32.mrf.mxu0  ;;  %v19420_v28 = vsel %vm3094_vm0, %v19350_v59, 0  ;;  %v25505_v25 = vand.u32 4294901760, %v24800_v18  ;;  %v19395_v59 = vsel %vm159_vm9, %v19370_v48, %v24782_v46 }
 0x4dd   :  { %18734 = vmatpush1.msra.mxu0 %v18488_v14  ;;  %18526 = vmatmul.mubr.f32.vlgmr.msra.gmra.mxu1 %v24516_v24  ;;  %v13008_v11 = vpop.f32.mrf.mxu1 }
 0x4de   :  { %18642 = vmatprep.subr.mxu1 %v24708_v60  ;;  %18767 = vmatprep.mubr.f32.mxu0 %v25521_v21  ;;  %v13009_v63 = vadd.f32 %v13008_v11, %v12931_v9  ;;  %v25504_v9 = vand.u32 4294901760, %v24805_v17 }
 0x4df   :  { %18880 = vmatprep.subr.mxu0 %v24775_v42  ;;  %18644 = vmatpush1.msra.mxu1 %v24713_v39  ;;  %v13010_v14 = vpop.f32.mrf.mxu1 }
 0x4e0   :  { %18769 = vmatmul.mubr.f32.vlgmr.msra.gmra.mxu0 %v24516_v24  ;;  %18646 = vmatprep.subr.mxu1 %v24715_v52  ;;  %v13093_v44 = vadd.f32 %v13092_v47, %v13009_v63  ;;  %v13011_v37 = vadd.f32 %v13010_v14, %v12933_v7  ;;  %v13364_v51 = vpop.f32.mrf.mxu0  ;;  %v18962_v47 = vsub.f32 %v24792_v32, %v18961_v2  ;;  %v24825_v7 = vand.u32 4294901760, %v19420_v28  ;;  %v24832_v63 = vpop.permute.xlu1 %19355 }
 0x4e1   :  { %18882 = vmatpush1.msra.mxu0 %v24780_v43  ;;  %18648 = vmatpush1.msra.mxu1 %v24718_v8  ;;  %v18974_v14 = vsub.f32 %v24800_v18, %v25505_v25 }
 0x4e2   :  { %18884 = vmatprep.subr.mxu0 %v24784_v13  ;;  %18681 = vmatprep.mubr.f32.mxu1 %v25521_v21  ;;  %v13095_v33 = vadd.f32 %v13094_v57, %v13011_v37  ;;  %v13366_v16 = vpop.f32.mrf.mxu0  ;;  %v18968_v57 = vsub.f32 %v24796_v20, %v25506_v15 }
 0x4e3   :  { %18886 = vmatpush1.msra.mxu0 %v24787_v19  ;;  %18685 = vmatmul.mubr.f32.vlgmr.msra.gmra.mxu1 %v24562_v34  ;;  %v13168_v41 = vpop.f32.mrf.mxu1 }
 0x4e4   :  { %18804 = vmatprep.subr.mxu1 %v24708_v60  ;;  %18919 = vmatprep.mubr.f32.mxu0 %v25521_v21  ;;  %v13169_v11 = vadd.f32 %v13168_v41, %v13093_v44  ;;  %v24861_v41 = vsub.f32 %v19420_v28, %v24825_v7 }
 0x4e5   :  { %19053 = vmatprep.subr.mxu0 %v24792_v32  ;;  %18806 = vmatpush1.msra.mxu1 %v24713_v39  ;;  %v13170_v60 = vpop.f32.mrf.mxu1  ;;  %v18980_v32 = vsub.f32 %v24805_v17, %v25504_v9  ;;  %v19352_v39 = vpop.permute.xlu0 %19351 }
 0x4e6   :  { %18925 = vmatmul.mubr.f32.vlgmr.msra.gmra.mxu0 %v24600_v10  ;;  %18808 = vmatprep.subr.mxu1 %v24715_v52  ;;  %v24842_v44 = vadd.f32 %v13169_v11, %v24529_v22  ;;  %v24844_v37 = vadd.f32 %v13170_v60, %v13095_v33  ;;  %v13537_v48 = vpop.f32.mrf.mxu0  ;;  %v19396_v10 = vsel %vm159_vm9, %v24782_v46, %v24789_v50  ;;  %v18963_v33 = vand.u32 4294901760, %v18962_v47 }
 0x4e7   :  { %19056 = vmatpush1.msra.mxu0 %v24796_v20  ;;  %18810 = vmatpush1.msra.mxu1 %v24718_v8  ;;  %v3759_v22 = vadd.f32 %v23163_v5, %v23149_v58  ;;  %v19388_v52 = vsel %vm159_vm9, %v19354_v6, %v24832_v63  ;;  %v24863_v11 = vand.u32 4294901760, %v19395_v59  ;;  %v18969_v8 = vand.u32 4294901760, %v18968_v57 }
 0x4e8   :  { %25593 = vst [vmem:[#allocation99_spill] sm:$0xff] %v24842_v44  ;;  %19059 = vmatprep.subr.mxu0 %v24800_v18  ;;  %18843 = vmatprep.mubr.f32.mxu1 %v25521_v21  ;;  %v13539_v46 = vpop.f32.mrf.mxu0  ;;  %v24867_v5 = vand.u32 4294901760, %v19396_v10  ;;  %v19387_v60 = vsel %vm159_vm9, %v19352_v39, %v19354_v6  ;;  %v18975_v47 = vand.u32 4294901760, %v18974_v14  ;;  %v24871_v28 = vand.u32 4294901760, %v19388_v52 }
 0x4e9   :  { %19062 = vmatpush1.msra.mxu0 %v24805_v17  ;;  %18845 = vmatmul.mubr.f32.vlgmr.msra.gmra.mxu1 %v24516_v24  ;;  %v13456_v58 = vpop.f32.mrf.mxu1  ;;  %v18981_v25 = vand.u32 4294901760, %v18980_v32  ;;  %v3840_v44 = vadd.f32 %v23177_v38, %v3759_v22  ;;  %v24876_v57 = vand.u32 4294901760, %v24861_v41  ;;  %v24879_v14 = vsub.f32 %v19395_v59, %v24863_v11 }
 0x4ea   :  { %18964 = vmatprep.subr.mxu1 %v18963_v33  ;;  %19095 = vmatprep.mubr.f32.mxu0 %v25521_v21  ;;  %v13457_v9 = vadd.f32 %v13456_v58, %v13364_v51  ;;  %v24881_v51 = vand.u32 4294901760, %v19387_v60  ;;  %v25594_v32 = vand.u32 4294901760, %v24796_v20  ;;  %v24888_v38 = vsub.f32 %v19396_v10, %v24867_v5  ;;  %v19376_v58 = vpop.permute.xlu1 %19375 }
 0x4eb   :  { %19213 = vmatprep.subr.mxu0 %v18961_v2  ;;  %18970 = vmatpush1.msra.mxu1 %v18969_v8  ;;  %v13458_v15 = vpop.f32.mrf.mxu1  ;;  %v5804_v2 = vadd.f32 %v23550_v3, %v23499_v0  ;;  %v25596_v59 = vand.u32 4294901760, %v24805_v17  ;;  %v3918_v3 = vadd.f32 %v23189_v55, %v3840_v44  ;;  %v19494_v20 = vsub.f32 %v24861_v41, %v24876_v57  ;;  %v24908_v17 = vpop.permute.xlu0 %19377 }
 0x4ec   :  { %19098 = vmatmul.mubr.f32.vlgmr.msra.gmra.mxu0 %v24542_v56  ;;  %18976 = vmatprep.subr.mxu1 %v18975_v47  ;;  %v13538_v6 = vadd.f32 %v13537_v48, %v13457_v9  ;;  %v13459_v39 = vadd.f32 %v13458_v15, %v13366_v16  ;;  %v13699_v33 = vpop.f32.mrf.mxu0  ;;  %v25595_v56 = vand.u32 4294901760, %v24800_v18  ;;  %v24894_v9 = vsub.f32 %v19388_v52, %v24871_v28 }
 0x4ed   :  { %19217 = vmatpush1.msra.mxu0 %v25594_v32  ;;  %18982 = vmatpush1.msra.mxu1 %v18981_v25  ;;  %v19538_v25 = vand.u32 4294901760, %v24879_v14  ;;  %v24906_v48 = vsub.f32 %v19387_v60, %v24881_v51  ;;  %v5885_v10 = vadd.f32 %v23534_v12, %v5804_v2  ;;  %v7849_v44 = vadd.f32 %v23919_v1, %v23857_v62 }
 0x4ee   :  { %19221 = vmatprep.subr.mxu0 %v25595_v56  ;;  %19015 = vmatprep.mubr.f32.mxu1 %v25521_v21  ;;  %v13540_v15 = vadd.f32 %v13539_v46, %v13459_v39  ;;  %v13701_v16 = vpop.f32.mrf.mxu0  ;;  %v19532_v22 = vand.u32 4294901760, %v24888_v38  ;;  %v19544_v12 = vand.u32 4294901760, %v24894_v9  ;;  %v4002_v60 = vadd.f32 %v23203_v30, %v3918_v3 }
 0x4ef   :  { %19225 = vmatpush1.msra.mxu0 %v25596_v59  ;;  %19017 = vmatmul.mubr.f32.vlgmr.msra.gmra.mxu1 %v24516_v24  ;;  %v13615_v0 = vpop.f32.mrf.mxu1  ;;  %v9894_v62 = vadd.f32 %v24305_v27, %v24254_v53  ;;  %v24926_v1 = vand.u32 4294901760, %v19494_v20  ;;  %v4250_v39 = vadd.f32 %v23252_v45, %v23235_v23  ;;  %v19550_v30 = vand.u32 4294901760, %v24906_v48  ;;  %v24947_v56 = vpop.permute.xlu0 %19359 }
 0x4f0   :  { %19133 = vmatprep.subr.mxu1 %v24775_v42  ;;  %19258 = vmatprep.mubr.f32.mxu0 %v25521_v21  ;;  %v13616_v18 = vadd.f32 %v13615_v0, %v13538_v6  ;;  %v5963_v2 = vadd.f32 %v23581_v54, %v5885_v10  ;;  %v7930_v27 = vadd.f32 %v23895_v40, %v7849_v44  ;;  %v19358_v59 = vpop.permute.xlu1 %19357  ;;  %v25598_v44 = vld [vmem:[#allocation78_spill] sm:$0xff] }
 0x4f1   :  { %19451 = vmatprep.subr.mxu0 %v24867_v5  ;;  %19135 = vmatpush1.msra.mxu1 %v24780_v43  ;;  %v13617_v55 = vpop.f32.mrf.mxu1  ;;  %v19533_v23 = vsub.f32 %v24888_v38, %v19532_v22  ;;  %v19397_v32 = vsel %vm159_vm9, %v24789_v50, %v19376_v58  ;;  %v19398_v54 = vsel %vm159_vm9, %v19376_v58, %v24908_v17 }
 0x4f2   :  { %19260 = vmatmul.mubr.f32.vlgmr.msra.gmra.mxu0 %v24516_v24  ;;  %19137 = vmatprep.subr.mxu1 %v24784_v13  ;;  %v13700_v52 = vadd.f32 %v13699_v33, %v13616_v18  ;;  %v13618_v46 = vadd.f32 %v13617_v55, %v13540_v15  ;;  %v13855_v8 = vpop.f32.mrf.mxu0  ;;  %v19539_v33 = vsub.f32 %v24879_v14, %v19538_v25  ;;  %v25597_v18 = vld [vmem:[#allocation21_spill] sm:$0xff]  ;;  %v24977_v55 = vand.u32 4294901760, %v19398_v54 }
 0x4f3   :  { %19453 = vmatpush1.msra.mxu0 %v24863_v11  ;;  %19139 = vmatpush1.msra.mxu1 %v24787_v19  ;;  %v19545_v40 = vsub.f32 %v24894_v9, %v19544_v12  ;;  %v6047_v0 = vadd.f32 %v23563_v4, %v5963_v2  ;;  %v19534_v3 = vand.u32 4294901760, %v19533_v23  ;;  %v4331_v10 = vadd.f32 %v25597_v18, %v4250_v39  ;;  %v25600_v39 = vld [vmem:[#allocation38_spill] sm:$0xff]  ;;  %v25601_v2 = vld [vmem:[#allocation41_spill] sm:$0xff]  ;;  %v25024_v18 = vpop.permute.xlu0 %19381 }
 0x4f4   :  { %19455 = vmatprep.subr.mxu0 %v24871_v28  ;;  %19172 = vmatprep.mubr.f32.mxu1 %v25521_v21  ;;  %v13702_v47 = vadd.f32 %v13701_v16, %v13618_v46  ;;  %v13857_v6 = vpop.f32.mrf.mxu0  ;;  %v24975_v4 = vand.u32 4294901760, %v19397_v32 }
 0x4f5   :  { %19457 = vmatpush1.msra.mxu0 %v24881_v51  ;;  %19176 = vmatmul.mubr.f32.vlgmr.msra.gmra.mxu1 %v24562_v34  ;;  %v13775_v53 = vpop.f32.mrf.mxu1  ;;  %v19546_v46 = vand.u32 4294901760, %v19545_v40  ;;  %v25603_v40 = vld [vmem:[#allocation36_spill] sm:$0xff] }
 0x4f6   :  { %19295 = vmatprep.subr.mxu1 %v24775_v42  ;;  %19490 = vmatprep.mubr.f32.mxu0 %v25521_v21  ;;  %v13776_v45 = vadd.f32 %v13775_v53, %v13700_v52  ;;  %v9975_v42 = vadd.f32 %v24288_v26, %v9894_v62  ;;  %v4078_v26 = vadd.f32 %v23220_v31, %v4002_v60  ;;  %v19540_v31 = vand.u32 4294901760, %v19539_v33  ;;  %v25599_v62 = vld [vmem:[#allocation39_spill] sm:$0xff]  ;;  %v25602_v33 = vld [vmem:[#allocation57_spill] sm:$0xff] }
 0x4f7   :  { %19624 = vmatprep.subr.mxu0 %v24888_v38  ;;  %19297 = vmatpush1.msra.mxu1 %v24780_v43  ;;  %v13777_v34 = vpop.f32.mrf.mxu1  ;;  %v19551_v43 = vsub.f32 %v24906_v48, %v19550_v30  ;;  %v6295_v53 = vadd.f32 %v25601_v2, %v25600_v39  ;;  %v25612_v2 = vld [vmem:[#allocation25_spill] sm:$0xff] }
 0x4f8   :  { %19496 = vmatmul.mubr.f32.vlgmr.msra.gmra.mxu0 %v24926_v1  ;;  %19299 = vmatprep.subr.mxu1 %v24784_v13  ;;  %v24958_v50 = vadd.f32 %v13776_v45, %v24620_v29  ;;  %v24960_v15 = vadd.f32 %v13777_v34, %v13702_v47  ;;  %v14028_v16 = vpop.f32.mrf.mxu0  ;;  %v19390_v29 = vsel %vm159_vm9, %v19358_v59, %v24947_v56 }
 0x4f9   :  { %19627 = vmatpush1.msra.mxu0 %v24879_v14  ;;  %19301 = vmatpush1.msra.mxu1 %v24787_v19  ;;  %v8008_v13 = vadd.f32 %v23948_v35, %v7930_v27  ;;  %v19389_v35 = vsel %vm159_vm9, %v24832_v63, %v19358_v59  ;;  %v10053_v52 = vadd.f32 %v25598_v44, %v9975_v42  ;;  %v24985_v60 = vand.u32 4294901760, %v19390_v29  ;;  %v19380_v44 = vpop.permute.xlu1 %19379 }
 0x4fa   :  { %19630 = vmatprep.subr.mxu0 %v24894_v9  ;;  %19334 = vmatprep.mubr.f32.mxu1 %v25521_v21  ;;  %v14030_v20 = vpop.f32.mrf.mxu0  ;;  %v6123_v47 = vadd.f32 %v25599_v62, %v6047_v0  ;;  %v5065_v34 = vadd.f32 %v4078_v26, %v25603_v40  ;;  %v24996_v42 = vsub.f32 %v19397_v32, %v24975_v4  ;;  %v25001_v38 = vand.u32 4294901760, %v19389_v35  ;;  %v25605_v32 = vld [vmem:[#allocation22_spill] sm:$0xff]  ;;  %v25607_v9 = vld [vmem:[#allocation59_spill] sm:$0xff] }
 0x4fb   :  { %19633 = vmatpush1.msra.mxu0 %v24906_v48  ;;  %19336 = vmatmul.mubr.f32.vlgmr.msra.gmra.mxu1 %v24516_v24  ;;  %v13947_v19 = vpop.f32.mrf.mxu1  ;;  %v19552_v24 = vand.u32 4294901760, %v19551_v43  ;;  %v8092_v27 = vadd.f32 %v25602_v33, %v8008_v13  ;;  %v24999_v59 = vsub.f32 %v19398_v54, %v24977_v55  ;;  %v4409_v0 = vadd.f32 %v25605_v32, %v4331_v10  ;;  %v25608_v48 = vld [vmem:[#allocation58_spill] sm:$0xff] }
 0x4fc   :  { %19535 = vmatprep.subr.mxu1 %v19534_v3  ;;  %19666 = vmatprep.mubr.f32.mxu0 %v25521_v21  ;;  %v13948_v58 = vadd.f32 %v13947_v19, %v13855_v8  ;;  %v25011_v54 = vsub.f32 %v19390_v29, %v24985_v60  ;;  %v7110_v26 = vadd.f32 %v6123_v47, %v5065_v34  ;;  %v25611_v47 = vld [vmem:[#allocation23_spill] sm:$0xff]  ;;  %v25615_v33 = vld [vmem:[#allocation82_spill] sm:$0xff] }
 0x4fd   :  { %19784 = vmatprep.subr.mxu0 %v19532_v22  ;;  %19541 = vmatpush1.msra.mxu1 %v19540_v31  ;;  %v13949_v63 = vpop.f32.mrf.mxu1  ;;  %v25604_v22 = vld [vmem:[#allocation77_spill] sm:$0xff]  ;;  %v25022_v29 = vsub.f32 %v19389_v35, %v25001_v38  ;;  %v20023_v31 = vand.u32 4294901760, %v24999_v59  ;;  %v4493_v39 = vadd.f32 %v25611_v47, %v4409_v0  ;;  %v25055_v0 = vsel %vm159_vm9, %v24908_v17, %v19380_v44  ;;  %v19362_v47 = vpop.permute.xlu1 %19361 }
 0x4fe   :  { %19669 = vmatmul.mubr.f32.vlgmr.msra.gmra.mxu0 %v24861_v41  ;;  %19547 = vmatprep.subr.mxu1 %v19546_v46  ;;  %v14029_v23 = vadd.f32 %v14028_v16, %v13948_v58  ;;  %v13950_v8 = vadd.f32 %v13949_v63, %v13857_v6  ;;  %v14190_v45 = vpop.f32.mrf.mxu0  ;;  %v10137_v43 = vadd.f32 %v25604_v22, %v10053_v52  ;;  %v25610_v52 = vld [vmem:[#allocation80_spill] sm:$0xff]  ;;  %v25614_v63 = vld [vmem:[#allocation79_spill] sm:$0xff] }
 0x4ff   :  { %19788 = vmatpush1.msra.mxu0 %v19538_v25  ;;  %19553 = vmatpush1.msra.mxu1 %v19552_v24  ;;  %v25606_v25 = vld [vmem:[#allocation40_spill] sm:$0xff]  ;;  %v20041_v32 = vand.u32 4294901760, %v25022_v29  ;;  %v19400_v17 = vsel %vm159_vm9, %v19380_v44, %v25024_v18 }
 0x500   :  { %19792 = vmatprep.subr.mxu0 %v19544_v12  ;;  %19586 = vmatprep.mubr.f32.mxu1 %v25521_v21  ;;  %v14031_v6 = vadd.f32 %v14030_v20, %v13950_v8  ;;  %v14192_v16 = vpop.f32.mrf.mxu0  ;;  %v6376_v13 = vadd.f32 %v25606_v25, %v6295_v53  ;;  %v8168_v12 = vadd.f32 %v25607_v9, %v8092_v27  ;;  %v20029_v20 = vand.u32 4294901760, %v24996_v42  ;;  %v25613_v53 = vld [vmem:[#allocation26_spill] sm:$0xff]  ;;  %v25616_v8 = vld [vmem:[#allocation43_spill] sm:$0xff] }
 0x501   :  { %19796 = vmatpush1.msra.mxu0 %v19550_v30  ;;  %19588 = vmatmul.mubr.f32.vlgmr.msra.gmra.mxu1 %v24825_v7  ;;  %v14106_v14 = vpop.f32.mrf.mxu1  ;;  %v25609_v30 = vld [vmem:[#allocation61_spill] sm:$0xff]  ;;  %v10213_v46 = vadd.f32 %v25610_v52, %v10137_v43  ;;  %v4741_v24 = vadd.f32 %v25613_v53, %v25612_v2  ;;  %v10385_v27 = vadd.f32 %v25615_v33, %v25614_v63  ;;  %v25621_v2 = vld [vmem:[#allocation42_spill] sm:$0xff] }
 0x502   :  { %19704 = vmatprep.subr.mxu1 %v24867_v5  ;;  %19829 = vmatprep.mubr.f32.mxu0 %v25521_v21  ;;  %v14107_v3 = vadd.f32 %v14106_v14, %v14029_v23  ;;  %v8340_v10 = vadd.f32 %v25609_v30, %v25608_v48  ;;  %v20035_v23 = vand.u32 4294901760, %v25011_v54  ;;  %v6454_v34 = vadd.f32 %v25616_v8, %v6376_v13  ;;  %v25617_v14 = vld [vmem:[#allocation60_spill] sm:$0xff]  ;;  %v25623_v8 = vld [vmem:[#allocation27_spill] sm:$0xff] }
 0x503   :  { %19942 = vmatprep.subr.mxu0 %v24977_v55  ;;  %19706 = vmatpush1.msra.mxu1 %v24863_v11  ;;  %v14108_v19 = vpop.f32.mrf.mxu1 }
 0x504   :  { %19831 = vmatmul.mubr.f32.vlgmr.msra.gmra.mxu0 %v24825_v7  ;;  %19708 = vmatprep.subr.mxu1 %v24871_v28  ;;  %v14191_v35 = vadd.f32 %v14190_v45, %v14107_v3  ;;  %v14109_v58 = vadd.f32 %v14108_v19, %v14031_v6  ;;  %v25034_v62 = vpop.f32.mrf.mxu0  ;;  %v9155_v45 = vadd.f32 %v8168_v12, %v7110_v26  ;;  %v25067_v12 = vpop.permute.xlu0 %19363  ;;  %v25618_v3 = vld [vmem:[#allocation81_spill] sm:$0xff]  ;;  %v25619_v19 = vld [vmem:[#allocation98_spill] sm:$0xff] }
 0x505   :  { %19944 = vmatpush1.msra.mxu0 %v24975_v4  ;;  %19710 = vmatpush1.msra.mxu1 %v24881_v51  ;;  %v20030_v6 = vsub.f32 %v24996_v42, %v20029_v20  ;;  %v8421_v25 = vadd.f32 %v25617_v14, %v8340_v10  ;;  %v10466_v48 = vadd.f32 %v25618_v3, %v10385_v27  ;;  %v25625_v3 = vld [vmem:[#allocation45_spill] sm:$0xff] }
 0x506   :  { %19946 = vmatprep.subr.mxu0 %v24985_v60  ;;  %19743 = vmatprep.mubr.f32.mxu1 %v25521_v21  ;;  %v14193_v22 = vadd.f32 %v14192_v16, %v14109_v58  ;;  %v25047_v43 = vpop.f32.mrf.mxu0  ;;  %v20024_v16 = vsub.f32 %v24999_v59, %v20023_v31  ;;  %v11200_v13 = vadd.f32 %v10213_v46, %v9155_v45 }
 0x507   :  { %19948 = vmatpush1.msra.mxu0 %v25001_v38  ;;  %19747 = vmatmul.mubr.f32.vlgmr.msra.gmra.mxu1 %v24876_v57  ;;  %v14266_v26 = vpop.f32.mrf.mxu1  ;;  %v20036_v30 = vsub.f32 %v25011_v54, %v20035_v23  ;;  %v6538_v53 = vadd.f32 %v25621_v2, %v6454_v34  ;;  %v4822_v45 = vadd.f32 %v25623_v8, %v4741_v24  ;;  %v25097_v34 = vand.u32 4294901760, %v25055_v0 }
 0x508   :  { %19866 = vmatprep.subr.mxu1 %v24867_v5  ;;  %19981 = vmatprep.mubr.f32.mxu0 %v25521_v21  ;;  %v14267_v9 = vadd.f32 %v14266_v26, %v14191_v35  ;;  %v13176_v5 = vadd.f32 %v24693_v49, %v11200_v13  ;;  %v25620_v35 = vld [vmem:[#allocation24_spill] sm:$0xff]  ;;  %v19392_v49 = vsel %vm159_vm9, %v19362_v47, %v25067_v12 }
 0x509   :  { %20115 = vmatprep.subr.mxu0 %v24999_v59  ;;  %19868 = vmatpush1.msra.mxu1 %v24863_v11  ;;  %v14268_v10 = vpop.f32.mrf.mxu1  ;;  %v4569_v58 = vadd.f32 %v25620_v35, %v4493_v39  ;;  %v20042_v11 = vsub.f32 %v25022_v29, %v20041_v32  ;;  %v20025_v39 = vand.u32 4294901760, %v20024_v16  ;;  %v19391_v14 = vsel %vm159_vm9, %v24947_v56, %v19362_v47  ;;  %v25624_v16 = vld [vmem:[#allocation84_spill] sm:$0xff] }
 0x50a   :  { %19987 = vmatmul.mubr.f32.vlgmr.msra.gmra.mxu0 %v24926_v1  ;;  %19870 = vmatprep.subr.mxu1 %v24871_v28  ;;  %v25079_v44 = vadd.f32 %v14267_v9, %v25619_v19  ;;  %v14269_v52 = vadd.f32 %v14268_v10, %v14193_v22  ;;  %v14519_v46 = vpop.f32.mrf.mxu0  ;;  %v25622_v28 = vld [vmem:[#allocation63_spill] sm:$0xff]  ;;  %v25099_v22 = vand.u32 4294901760, %v19400_v17  ;;  %v20037_v24 = vand.u32 4294901760, %v20036_v30 }
 0x50b   :  { %20118 = vmatpush1.msra.mxu0 %v24996_v42  ;;  %19872 = vmatpush1.msra.mxu1 %v24881_v51  ;;  %v8499_v63 = vadd.f32 %v25622_v28, %v8421_v25  ;;  %v20031_v51 = vand.u32 4294901760, %v20030_v6  ;;  %v10544_v25 = vadd.f32 %v25624_v16, %v10466_v48  ;;  %v25108_v9 = vand.u32 4294901760, %v19392_v49  ;;  %v25627_v19 = vld [vmem:[#allocation47_spill] sm:$0xff]  ;;  %v25628_v48 = vld [vmem:[#allocation62_spill] sm:$0xff]  ;;  %v19386_v16 = vpop.permute.xlu0 %19385 }
 0x50c   :  { %20121 = vmatprep.subr.mxu0 %v25011_v54  ;;  %19905 = vmatprep.mubr.f32.mxu1 %v25521_v21  ;;  %v25093_v33 = vadd.f32 %v14269_v52, %v13176_v5  ;;  %v14521_v27 = vpop.f32.mrf.mxu0  ;;  %v6614_v10 = vadd.f32 %v25625_v3, %v6538_v53  ;;  %v25626_v5 = vld [vmem:[#allocation44_spill] sm:$0xff]  ;;  %v20043_v56 = vand.u32 4294901760, %v20042_v11  ;;  %v5067_v2 = vadd.f32 %v4569_v58, %v25603_v40  ;;  %v25629_v11 = vld [vmem:[#allocation15_spill] sm:$0xff]  ;;  %v25634_v54 = vld [vmem:[#allocation65_spill] sm:$0xff] }
 0x50d   :  { %20124 = vmatpush1.msra.mxu0 %v25022_v29  ;;  %19907 = vmatmul.mubr.f32.vlgmr.msra.gmra.mxu1 %v24825_v7  ;;  %v14438_v26 = vpop.f32.mrf.mxu1  ;;  %v6786_v52 = vadd.f32 %v25627_v19, %v25626_v5  ;;  %v8583_v35 = vadd.f32 %v25628_v48, %v8499_v63  ;;  %v25121_v53 = vsub.f32 %v25055_v0, %v25097_v34  ;;  %v25635_v29 = vld [vmem:[#allocation64_spill] sm:$0xff]  ;;  %v25637_v3 = vld [vmem:[#allocation86_spill] sm:$0xff]  ;;  %v25639_v48 = vld [vmem:[#allocation85_spill] sm:$0xff] }
 0x50e   :  { %20026 = vmatprep.subr.mxu1 %v20025_v39  ;;  %20157 = vmatprep.mubr.f32.mxu0 %v25521_v21  ;;  %v14439_v13 = vadd.f32 %v14438_v26, %v25034_v62  ;;  %v25124_v59 = vsub.f32 %v19400_v17, %v25099_v22  ;;  %v25632_v17 = vld [vmem:[#allocation28_spill] sm:$0xff]  ;;  %v25138_v8 = vsub.f32 %v19392_v49, %v25108_v9 }
 0x50f   :  { %20275 = vmatprep.subr.mxu0 %v20023_v31  ;;  %20032 = vmatpush1.msra.mxu1 %v20031_v51  ;;  %v14440_v6 = vpop.f32.mrf.mxu1  ;;  %v25126_v31 = vand.u32 4294901760, %v19391_v14  ;;  %v4900_v39 = vadd.f32 %v25632_v17, %v4822_v45  ;;  %v7112_v42 = vadd.f32 %v6614_v10, %v5067_v2  ;;  %v25633_v51 = vld [vmem:[#allocation46_spill] sm:$0xff]  ;;  %v20520_v45 = vand.u32 4294901760, %v25121_v53  ;;  %v25641_v2 = vld [vmem:[#allocation29_spill] sm:$0xff] }
 0x510   :  { %20160 = vmatmul.mubr.f32.vlgmr.msra.gmra.mxu0 %v24861_v41  ;;  %20038 = vmatprep.subr.mxu1 %v20037_v24  ;;  %v14520_v30 = vadd.f32 %v14519_v46, %v14439_v13  ;;  %v14441_v62 = vadd.f32 %v14440_v6, %v25047_v43  ;;  %v14681_v47 = vpop.f32.mrf.mxu0  ;;  %v25630_v46 = vld [vmem:[#allocation16_spill] sm:$0xff]  ;;  %v25631_v43 = vld [vmem:[#allocation83_spill] sm:$0xff]  ;;  %v6867_v26 = vadd.f32 %v25633_v51, %v6786_v52  ;;  %v20514_v24 = vand.u32 4294901760, %v25124_v59  ;;  %v25638_v52 = vld [vmem:[#allocation17_spill] sm:$0xff]  ;;  %v19384_v6 = vpop.permute.xlu1 %19383 }
 0x511   :  { %20279 = vmatpush1.msra.mxu0 %v20029_v20  ;;  %20044 = vmatpush1.msra.mxu1 %v20043_v56  ;;  %v3268_v28 = vadd.f32 %v25630_v46, %v25629_v11  ;;  %v10628_v63 = vadd.f32 %v25631_v43, %v10544_v25  ;;  %v25149_v49 = vsub.f32 %v19391_v14, %v25126_v31 }
 0x512   :  { %20283 = vmatprep.subr.mxu0 %v20035_v23  ;;  %20077 = vmatprep.mubr.f32.mxu1 %v25521_v21  ;;  %v14522_v0 = vadd.f32 %v14521_v27, %v14441_v62  ;;  %v14683_v58 = vpop.f32.mrf.mxu0  ;;  %v8659_v23 = vadd.f32 %v25634_v54, %v8583_v35  ;;  %v25640_v35 = vld [vmem:[#allocation88_spill] sm:$0xff]  ;;  %v20526_v62 = vand.u32 4294901760, %v25138_v8  ;;  %v4984_v11 = vadd.f32 %v25641_v2, %v4900_v39  ;;  %v25648_v2 = vld [vmem:[#allocation31_spill] sm:$0xff] }
 0x513   :  { %20287 = vmatpush1.msra.mxu0 %v20041_v32  ;;  %20079 = vmatmul.mubr.f32.vlgmr.msra.gmra.mxu1 %v24825_v7  ;;  %v14597_v20 = vpop.f32.mrf.mxu1  ;;  %v25636_v32 = vld [vmem:[#allocation67_spill] sm:$0xff]  ;;  %v10704_v10 = vadd.f32 %v25637_v3, %v10628_v63  ;;  %v25162_v56 = vadd.f32 %v25638_v52, %v3268_v28  ;;  %v20521_v43 = vsub.f32 %v25121_v53, %v20520_v45  ;;  %v20532_v63 = vand.u32 4294901760, %v25149_v49 }
 0x514   :  { %20195 = vmatprep.subr.mxu1 %v24977_v55  ;;  %20320 = vmatprep.mubr.f32.mxu0 %v25521_v21  ;;  %v14598_v27 = vadd.f32 %v14597_v20, %v14520_v30  ;;  %v8831_v25 = vadd.f32 %v25636_v32, %v25635_v29  ;;  %v10876_v30 = vadd.f32 %v25640_v35, %v25639_v48 }
 0x515   :  { %20433 = vmatprep.subr.mxu0 %v25099_v22  ;;  %20197 = vmatpush1.msra.mxu1 %v24975_v4  ;;  %v14599_v13 = vpop.f32.mrf.mxu1  ;;  %v9157_v46 = vadd.f32 %v8659_v23, %v7112_v42  ;;  %v20515_v39 = vsub.f32 %v25124_v59, %v20514_v24  ;;  %v19402_v23 = vsel %vm159_vm9, %v19384_v6, %v19386_v16 }
 0x516   :  { %20322 = vmatmul.mubr.f32.vlgmr.msra.gmra.mxu0 %v24825_v7  ;;  %20199 = vmatprep.subr.mxu1 %v24985_v60  ;;  %v14682_v5 = vadd.f32 %v14681_v47, %v14598_v27  ;;  %v14600_v14 = vadd.f32 %v14599_v13, %v14522_v0  ;;  %v25159_v19 = vpop.f32.mrf.mxu0  ;;  %v25642_v0 = vld [vmem:[#allocation49_spill] sm:$0xff]  ;;  %v25644_v27 = vld [vmem:[#allocation87_spill] sm:$0xff]  ;;  %v20527_v32 = vsub.f32 %v25138_v8, %v20526_v62 }
 0x517   :  { %20435 = vmatpush1.msra.mxu0 %v25097_v34  ;;  %20201 = vmatpush1.msra.mxu1 %v25001_v38  ;;  %v6945_v17 = vadd.f32 %v25642_v0, %v6867_v26  ;;  %v11202_v51 = vadd.f32 %v10704_v10, %v9157_v46  ;;  %v19368_v26 = vpop.permute.xlu0 %19367  ;;  %v10957_v29 = vadd.f32 %v25644_v27, %v10876_v30  ;;  %v20516_v48 = vand.u32 4294901760, %v20515_v39  ;;  %v25649_v46 = vld [vmem:[#allocation33_spill] sm:$0xff]  ;;  %v25650_v39 = vld [vmem:[#allocation90_spill] sm:$0xff] }
 0x518   :  { %20437 = vmatprep.subr.mxu0 %v25108_v9  ;;  %20234 = vmatprep.mubr.f32.mxu1 %v25521_v21  ;;  %v14684_v47 = vadd.f32 %v14683_v58, %v14600_v14  ;;  %v25172_v28 = vpop.f32.mrf.mxu0  ;;  %v25643_v58 = vld [vmem:[#allocation66_spill] sm:$0xff]  ;;  %v19401_v10 = vsel %vm159_vm9, %v25024_v18, %v19384_v6  ;;  %v25645_v14 = vld [vmem:[#allocation48_spill] sm:$0xff]  ;;  %v25217_v0 = vand.u32 4294901760, %v19402_v23 }
 0x519   :  { %20439 = vmatpush1.msra.mxu0 %v25126_v31  ;;  %20238 = vmatmul.mubr.f32.vlgmr.msra.gmra.mxu1 %v24876_v57  ;;  %v14757_v42 = vpop.f32.mrf.mxu1  ;;  %v8912_v20 = vadd.f32 %v25643_v58, %v8831_v25  ;;  %v7029_v52 = vadd.f32 %v25645_v14, %v6945_v17  ;;  %v25647_v18 = vld [vmem:[#allocation30_spill] sm:$0xff]  ;;  %v11035_v58 = vadd.f32 %v25650_v39, %v10957_v29 }
 0x51a   :  { %20357 = vmatprep.subr.mxu1 %v24977_v55  ;;  %20472 = vmatprep.mubr.f32.mxu0 %v25521_v21  ;;  %v14758_v54 = vadd.f32 %v14757_v42, %v14682_v5  ;;  %v13178_v55 = vadd.f32 %v24762_v61, %v11202_v51  ;;  %v19366_v5 = vpop.permute.xlu1 %19365  ;;  %v5060_v6 = vadd.f32 %v25647_v18, %v4984_v11  ;;  %v20528_v11 = vand.u32 4294901760, %v20527_v32 }
 0x51b   :  { %20606 = vmatprep.subr.mxu0 %v25124_v59  ;;  %20359 = vmatpush1.msra.mxu1 %v24975_v4  ;;  %v14759_v25 = vpop.f32.mrf.mxu1  ;;  %v20533_v4 = vsub.f32 %v25149_v49, %v20532_v63  ;;  %v19394_v61 = vsel %vm159_vm9, %v19366_v5, %v19368_v26  ;;  %v19393_v42 = vsel %vm159_vm9, %v25067_v12, %v19366_v5  ;;  %v25226_v51 = vand.u32 4294901760, %v19401_v10  ;;  %v25651_v26 = vld [vmem:[#allocation51_spill] sm:$0xff] }
 0x51c   :  { %20478 = vmatmul.mubr.f32.vlgmr.msra.gmra.mxu0 %v24926_v1  ;;  %20361 = vmatprep.subr.mxu1 %v24985_v60  ;;  %v25198_v16 = vadd.f32 %v14758_v54, %v24760_v36  ;;  %v14760_v13 = vadd.f32 %v14759_v25, %v14684_v47  ;;  %v15010_v3 = vpop.f32.mrf.mxu0  ;;  %v25646_v36 = vld [vmem:[#allocation69_spill] sm:$0xff]  ;;  %v5313_v47 = vadd.f32 %v25649_v46, %v25648_v2  ;;  %v25228_v54 = vand.u32 4294901760, %v19394_v61  ;;  %v25652_v25 = vld [vmem:[#allocation68_spill] sm:$0xff]  ;;  %v25660_v46 = vld [vmem:[#allocation70_spill] sm:$0xff] }
 0x51d   :  { %20609 = vmatpush1.msra.mxu0 %v25121_v53  ;;  %20363 = vmatpush1.msra.mxu1 %v25001_v38  ;;  %v8990_v60 = vadd.f32 %v25646_v36, %v8912_v20  ;;  %v20522_v38 = vand.u32 4294901760, %v20521_v43  ;;  %v7105_v27 = vadd.f32 %v25651_v26, %v7029_v52  ;;  %v20534_v43 = vand.u32 4294901760, %v20533_v4  ;;  %v25655_v4 = vld [vmem:[#allocation53_spill] sm:$0xff]  ;;  %v25659_v2 = vld [vmem:[#allocation52_spill] sm:$0xff]  ;;  %v25663_v26 = vld [vmem:[#allocation91_spill] sm:$0xff] }
 0x51e   :  { %20612 = vmatprep.subr.mxu0 %v25138_v8  ;;  %20396 = vmatprep.mubr.f32.mxu1 %v25521_v21  ;;  %v25212_v35 = vadd.f32 %v14760_v13, %v13178_v55  ;;  %v15012_v30 = vpop.f32.mrf.mxu0  ;;  %v25653_v13 = vld [vmem:[#allocation18_spill] sm:$0xff]  ;;  %v25239_v14 = vsub.f32 %v19402_v23, %v25217_v0  ;;  %v25241_v59 = vand.u32 4294901760, %v19393_v42  ;;  %v25656_v36 = vld [vmem:[#allocation89_spill] sm:$0xff]  ;;  %v25254_v18 = vsub.f32 %v19401_v10, %v25226_v51 }
 0x51f   :  { %20615 = vmatpush1.msra.mxu0 %v25149_v49  ;;  %20398 = vmatmul.mubr.f32.vlgmr.msra.gmra.mxu1 %v24825_v7  ;;  %v14929_v17 = vpop.f32.mrf.mxu1  ;;  %v9074_v29 = vadd.f32 %v25652_v25, %v8990_v60  ;;  %v3427_v5 = vadd.f32 %v25653_v13, %v25162_v56  ;;  %v25657_v60 = vld [vmem:[#allocation32_spill] sm:$0xff]  ;;  %v25257_v53 = vsub.f32 %v19394_v61, %v25228_v54  ;;  %v25665_v25 = vld [vmem:[#allocation19_spill] sm:$0xff] }
 0x520   :  { %20517 = vmatprep.subr.mxu1 %v20516_v48  ;;  %20648 = vmatprep.mubr.f32.mxu0 %v25521_v21  ;;  %v14930_v20 = vadd.f32 %v14929_v17, %v25159_v19  ;;  %v5394_v48 = vadd.f32 %v25657_v60, %v5313_v47  ;;  %v25266_v10 = vsub.f32 %v19393_v42, %v25241_v59  ;;  %v25661_v47 = vld [vmem:[#allocation73_spill] sm:$0xff]  ;;  %v25662_v17 = vld [vmem:[#allocation92_spill] sm:$0xff]  ;;  %v25666_v13 = vld [vmem:[#allocation35_spill] sm:$0xff] }
 0x521   :  { %20766 = vmatprep.subr.mxu0 %v20514_v24  ;;  %20523 = vmatpush1.msra.mxu1 %v20522_v38  ;;  %v14931_v12 = vpop.f32.mrf.mxu1  ;;  %v25654_v24 = vld [vmem:[#allocation50_spill] sm:$0xff]  ;;  %v9403_v49 = vadd.f32 %v25661_v47, %v25660_v46 }
 0x522   :  { %20651 = vmatmul.mubr.f32.vlgmr.msra.gmra.mxu0 %v24861_v41  ;;  %20529 = vmatprep.subr.mxu1 %v20528_v11  ;;  %v15011_v32 = vadd.f32 %v15010_v3, %v14930_v20  ;;  %v14932_v19 = vadd.f32 %v14931_v12, %v25172_v28  ;;  %v15172_v55 = vpop.f32.mrf.mxu0  ;;  %v7358_v52 = vadd.f32 %v25655_v4, %v25654_v24  ;;  %v21011_v20 = vand.u32 4294901760, %v25254_v18  ;;  %v25671_v47 = vld [vmem:[#allocation34_spill] sm:$0xff] }
 0x523   :  { %20770 = vmatpush1.msra.mxu0 %v20520_v45  ;;  %20535 = vmatpush1.msra.mxu1 %v20534_v43  ;;  %v5069_v3 = vadd.f32 %v5060_v6, %v25603_v40  ;;  %v11119_v28 = vadd.f32 %v25656_v36, %v11035_v58  ;;  %v21017_v12 = vand.u32 4294901760, %v25257_v53  ;;  %v5472_v24 = vadd.f32 %v25666_v13, %v5394_v48  ;;  %v25676_v13 = vld [vmem:[#allocation37_spill] sm:$0xff] }
 0x524   :  { %20774 = vmatprep.subr.mxu0 %v20526_v62  ;;  %20568 = vmatprep.mubr.f32.mxu1 %v25521_v21  ;;  %v15013_v56 = vadd.f32 %v15012_v30, %v14932_v19  ;;  %v15174_v23 = vpop.f32.mrf.mxu0  ;;  %v25658_v62 = vld [vmem:[#allocation71_spill] sm:$0xff]  ;;  %v7439_v61 = vadd.f32 %v25659_v2, %v7358_v52  ;;  %v21023_v4 = vand.u32 4294901760, %v25266_v10  ;;  %v21012_v48 = vsub.f32 %v25254_v18, %v21011_v20 }
 0x525   :  { %20778 = vmatpush1.msra.mxu0 %v20532_v63  ;;  %20570 = vmatmul.mubr.f32.vlgmr.msra.gmra.mxu1 %v24825_v7  ;;  %v15088_v45 = vpop.f32.mrf.mxu1  ;;  %v7114_v8 = vadd.f32 %v7105_v27, %v5069_v3  ;;  %v9150_v6 = vadd.f32 %v25658_v62, %v9074_v29  ;;  %v21005_v63 = vand.u32 4294901760, %v25239_v14  ;;  %v11195_v39 = vadd.f32 %v25662_v17, %v11119_v28  ;;  %v25664_v27 = vld [vmem:[#allocation94_spill] sm:$0xff]  ;;  %v25667_v52 = vld [vmem:[#allocation55_spill] sm:$0xff]  ;;  %v25668_v28 = vld [vmem:[#allocation72_spill] sm:$0xff] }
 0x526   :  { %20686 = vmatprep.subr.mxu1 %v25099_v22  ;;  %20811 = vmatprep.mubr.f32.mxu0 %v25521_v21  ;;  %v15089_v30 = vadd.f32 %v15088_v45, %v15011_v32  ;;  %v11379_v43 = vadd.f32 %v25664_v27, %v25663_v26  ;;  %v3511_v29 = vadd.f32 %v25665_v25, %v3427_v5  ;;  %v25669_v45 = vld [vmem:[#allocation93_spill] sm:$0xff]  ;;  %v21013_v27 = vand.u32 4294901760, %v21012_v48 }
 0x527   :  { %20924 = vmatprep.subr.mxu0 %v25217_v0  ;;  %20688 = vmatpush1.msra.mxu1 %v25097_v34  ;;  %v15090_v38 = vpop.f32.mrf.mxu1  ;;  %v9159_v32 = vadd.f32 %v9150_v6, %v7114_v8  ;;  %v7517_v3 = vadd.f32 %v25667_v52, %v7439_v61  ;;  %v21006_v5 = vsub.f32 %v25239_v14, %v21005_v63 }
 0x528   :  { %20813 = vmatmul.mubr.f32.vlgmr.msra.gmra.mxu0 %v24825_v7  ;;  %20690 = vmatprep.subr.mxu1 %v25108_v9  ;;  %v15173_v42 = vadd.f32 %v15172_v55, %v15089_v30  ;;  %v15091_v58 = vadd.f32 %v15090_v38, %v15013_v56  ;;  %v15409_v11 = vpop.f32.mrf.mxu0  ;;  %v9484_v56 = vadd.f32 %v25668_v28, %v9403_v49  ;;  %v25670_v30 = vld [vmem:[#allocation99_spill] sm:$0xff] }
 0x529   :  { %20926 = vmatpush1.msra.mxu0 %v25226_v51  ;;  %20692 = vmatpush1.msra.mxu1 %v25126_v31  ;;  %v11204_v60 = vadd.f32 %v11195_v39, %v9159_v32  ;;  %v11460_v8 = vadd.f32 %v25669_v45, %v11379_v43  ;;  %v21018_v62 = vsub.f32 %v25257_v53, %v21017_v12  ;;  %v25673_v39 = vld [vmem:[#allocation20_spill] sm:$0xff] }
 0x52a   :  { %20928 = vmatprep.subr.mxu0 %v25228_v54  ;;  %20725 = vmatprep.mubr.f32.mxu1 %v25521_v21  ;;  %v15175_v19 = vadd.f32 %v15174_v23, %v15091_v58  ;;  %v15411_v55 = vpop.f32.mrf.mxu0  ;;  %v5556_v49 = vadd.f32 %v25671_v47, %v5472_v24  ;;  %v25674_v58 = vld [vmem:[#allocation54_spill] sm:$0xff]  ;;  %v25675_v43 = vld [vmem:[#allocation96_spill] sm:$0xff] }
 0x52b   :  { %20930 = vmatpush1.msra.mxu0 %v25241_v59  ;;  %20729 = vmatmul.mubr.f32.vlgmr.msra.gmra.mxu1 %v24876_v57  ;;  %v15248_v36 = vpop.f32.mrf.mxu1  ;;  %v7601_v26 = vadd.f32 %v25674_v58, %v7517_v3  ;;  %v11538_v25 = vadd.f32 %v25675_v43, %v11460_v8  ;;  %v21019_v32 = vand.u32 4294901760, %v21018_v62  ;;  %v25677_v3 = vld [vmem:[#allocation74_spill] sm:$0xff]  ;;  %v25681_v8 = vld [vmem:[#allocation97_spill] sm:$0xff] }
 0x52c   :  { %20848 = vmatprep.subr.mxu1 %v25099_v22  ;;  %20963 = vmatprep.mubr.f32.mxu0 %v25521_v21  ;;  %v15249_v23 = vadd.f32 %v15248_v36, %v15173_v42  ;;  %v13180_v22 = vadd.f32 %v24844_v37, %v11204_v60  ;;  %v21007_v37 = vand.u32 4294901760, %v21006_v5  ;;  %v3587_v42 = vadd.f32 %v25673_v39, %v3511_v29 }
 0x52d   :  { %21097 = vmatprep.subr.mxu0 %v25239_v14  ;;  %20850 = vmatpush1.msra.mxu1 %v25097_v34  ;;  %v15250_v6 = vpop.f32.mrf.mxu1  ;;  %v21024_v34 = vsub.f32 %v25266_v10, %v21023_v4  ;;  %v5632_v24 = vadd.f32 %v25676_v13, %v5556_v49  ;;  %v25679_v14 = vld [vmem:[#allocation95_spill] sm:$0xff] }
 0x52e   :  { %20969 = vmatmul.mubr.f32.vlgmr.msra.gmra.mxu0 %v24926_v1  ;;  %20852 = vmatprep.subr.mxu1 %v25108_v9  ;;  %v25310_v2 = vadd.f32 %v15249_v23, %v25670_v30  ;;  %v15251_v61 = vadd.f32 %v15250_v6, %v15175_v19  ;;  %v15582_v46 = vpop.f32.mrf.mxu0  ;;  %v25672_v1 = vld [vmem:[#allocation75_spill] sm:$0xff]  ;;  %v5063_v60 = vadd.f32 %v3587_v42, %v25603_v40  ;;  %v25678_v23 = vld [vmem:[#allocation56_spill] sm:$0xff] }
 0x52f   :  { %21100 = vmatpush1.msra.mxu0 %v25254_v18  ;;  %20854 = vmatpush1.msra.mxu1 %v25126_v31  ;;  %v9562_v38 = vadd.f32 %v25672_v1, %v9484_v56  ;;  %v21025_v29 = vand.u32 4294901760, %v21024_v34 }
 0x530   :  { %21103 = vmatprep.subr.mxu0 %v25257_v53  ;;  %20887 = vmatprep.mubr.f32.mxu1 %v25521_v21  ;;  %v25321_v9 = vadd.f32 %v15251_v61, %v13180_v22  ;;  %v15584_v17 = vpop.f32.mrf.mxu0  ;;  %v7108_v45 = vadd.f32 %v5632_v24, %v5063_v60 }
 0x531   :  { %21106 = vmatpush1.msra.mxu0 %v25266_v10  ;;  %20889 = vmatmul.mubr.f32.vlgmr.msra.gmra.mxu1 %v24825_v7  ;;  %v15501_v31 = vpop.f32.mrf.mxu1  ;;  %v9646_v5 = vadd.f32 %v25677_v3, %v9562_v38 }
 0x532   :  { %21008 = vmatprep.subr.mxu1 %v21007_v37  ;;  %21139 = vmatprep.mubr.f32.mxu0 %v25521_v21  ;;  %v15502_v19 = vadd.f32 %v15501_v31, %v15409_v11  ;;  %v7677_v11 = vadd.f32 %v25678_v23, %v7601_v26 }
 0x533   :  { %21257 = vmatprep.subr.mxu0 %v21005_v63  ;;  %21014 = vmatpush1.msra.mxu1 %v21013_v27  ;;  %v15503_v52 = vpop.f32.mrf.mxu1  ;;  %v11622_v63 = vadd.f32 %v25679_v14, %v11538_v25 }
 0x534   :  { %21142 = vmatmul.mubr.f32.vlgmr.msra.gmra.mxu0 %v24861_v41  ;;  %21020 = vmatprep.subr.mxu1 %v21019_v32  ;;  %v15583_v36 = vadd.f32 %v15582_v46, %v15502_v19  ;;  %v15504_v28 = vadd.f32 %v15503_v52, %v15411_v55  ;;  %v15744_v56 = vpop.f32.mrf.mxu0  ;;  %v25680_v55 = vld [vmem:[#allocation76_spill] sm:$0xff]  ;;  %v9153_v53 = vadd.f32 %v7677_v11, %v7108_v45 }
 0x535   :  { %21261 = vmatpush1.msra.mxu0 %v21011_v20  ;;  %21026 = vmatpush1.msra.mxu1 %v21025_v29  ;;  %v9722_v18 = vadd.f32 %v25680_v55, %v9646_v5  ;;  %v11698_v62 = vadd.f32 %v25681_v8, %v11622_v63 }
 0x536   :  { %21265 = vmatprep.subr.mxu0 %v21017_v12  ;;  %21059 = vmatprep.mubr.f32.mxu1 %v25521_v21  ;;  %v15585_v41 = vadd.f32 %v15584_v17, %v15504_v28  ;;  %v15746_v48 = vpop.f32.mrf.mxu0 }
 0x537   :  { %21269 = vmatpush1.msra.mxu0 %v21023_v4  ;;  %21061 = vmatmul.mubr.f32.vlgmr.msra.gmra.mxu1 %v24825_v7  ;;  %v15660_v40 = vpop.f32.mrf.mxu1  ;;  %v11198_v22 = vadd.f32 %v9722_v18, %v9153_v53 }
 0x538   :  { %21177 = vmatprep.subr.mxu1 %v25217_v0  ;;  %21216 = vmatprep.mubr.f32.mxu1 %v25521_v21  ;;  %v15661_v20 = vadd.f32 %v15660_v40, %v15583_v36 }
 0x539   :  { %21179 = vmatpush1.msra.mxu1 %v25226_v51  ;;  %21302 = vmatprep.mubr.f32.mxu0 %v25521_v21  ;;  %v15662_v12 = vpop.f32.mrf.mxu1  ;;  %v13174_v47 = vadd.f32 %v11698_v62, %v11198_v22 }
 0x53a   :  { %21181 = vmatprep.subr.mxu1 %v25228_v54  ;;  %21304 = vmatmul.mubr.f32.vlgmr.msra.gmra.mxu0 %v24825_v7  ;;  %v15745_v10 = vadd.f32 %v15744_v56, %v15661_v20  ;;  %v15663_v4 = vadd.f32 %v15662_v12, %v15585_v41  ;;  %v15900_v6 = vpop.f32.mrf.mxu0 }
 0x53b   :  { %21183 = vmatpush1.msra.mxu1 %v25241_v59 }
 0x53c   :  { %21220 = vmatmul.mubr.f32.vlgmr.msra.gmra.mxu1 %v24876_v57  ;;  %21339 = vmatprep.subr.mxu1 %v25217_v0  ;;  %v15747_v30 = vadd.f32 %v15746_v48, %v15663_v4  ;;  %v15902_v61 = vpop.f32.mrf.mxu0  ;;  %v15254_v57 = vadd.f32 %v24960_v15, %v13174_v47 }
 0x53d   :  { %21341 = vmatpush1.msra.mxu1 %v25226_v51  ;;  %21378 = vmatprep.mubr.f32.mxu1 %v25521_v21  ;;  %v15820_v46 = vpop.f32.mrf.mxu1 }
 0x53e   :  { %21343 = vmatprep.subr.mxu1 %v25228_v54  ;;  %v15821_v49 = vadd.f32 %v15820_v46, %v15745_v10 }
 0x53f   :  { %21345 = vmatpush1.msra.mxu1 %v25241_v59  ;;  %v15822_v34 = vpop.f32.mrf.mxu1 }
 0x540   :  { %21380 = vmatmul.mubr.f32.vlgmr.msra.gmra.mxu1 %v24825_v7  ;;  %v25363_v0 = vadd.f32 %v15821_v49, %v24958_v50  ;;  %v15823_v1 = vadd.f32 %v15822_v34, %v15747_v30  ;;  %v16073_v38 = vpop.f32.mrf.mxu0 }
 0x542   :  { %v25365_v51 = vadd.f32 %v15823_v1, %v15254_v57  ;;  %v16075_v21 = vpop.f32.mrf.mxu0 }
 0x543   :  { %v15992_v37 = vpop.f32.mrf.mxu1 }
 0x544   :  { %v15993_v17 = vadd.f32 %v15992_v37, %v15900_v6 }
 0x545   :  { %v15994_v39 = vpop.f32.mrf.mxu1 }
 0x546   :  { %v16074_v54 = vadd.f32 %v16073_v38, %v15993_v17  ;;  %v15995_v42 = vadd.f32 %v15994_v39, %v15902_v61  ;;  %v16235_v58 = vpop.f32.mrf.mxu0 }
 0x548   :  { %v16076_v59 = vadd.f32 %v16075_v21, %v15995_v42  ;;  %v16237_v26 = vpop.f32.mrf.mxu0 }
 0x549   :  { %v16151_v27 = vpop.f32.mrf.mxu1 }
 0x54a   :  { %v16152_v7 = vadd.f32 %v16151_v27, %v16074_v54 }
 0x54b   :  { %v16153_v31 = vpop.f32.mrf.mxu1 }
 0x54c   :  { %v16236_v15 = vadd.f32 %v16235_v58, %v16152_v7  ;;  %v16154_v43 = vadd.f32 %v16153_v31, %v16076_v59  ;;  %v16391_v50 = vpop.f32.mrf.mxu0 }
 0x54e   :  { %v16238_v25 = vadd.f32 %v16237_v26, %v16154_v43  ;;  %v16393_v32 = vpop.f32.mrf.mxu0 }
 0x54f   :  { %v16311_v19 = vpop.f32.mrf.mxu1 }
 0x550   :  { %v16312_v13 = vadd.f32 %v16311_v19, %v16236_v15 }
 0x551   :  { %v16313_v24 = vpop.f32.mrf.mxu1 }
 0x552   :  { %v25368_v29 = vadd.f32 %v16312_v13, %v25079_v44  ;;  %v16314_v52 = vadd.f32 %v16313_v24, %v16238_v25  ;;  %v16564_v3 = vpop.f32.mrf.mxu0 }
 0x554   :  { %v25371_v5 = vadd.f32 %v16314_v52, %v25093_v33  ;;  %v16566_v36 = vpop.f32.mrf.mxu0 }
 0x555   :  { %v16483_v28 = vpop.f32.mrf.mxu1 }
 0x556   :  { %v16484_v56 = vadd.f32 %v16483_v28, %v16391_v50 }
 0x557   :  { %v16485_v60 = vpop.f32.mrf.mxu1 }
 0x558   :  { %v16565_v23 = vadd.f32 %v16564_v3, %v16484_v56  ;;  %v16486_v11 = vadd.f32 %v16485_v60, %v16393_v32  ;;  %v16726_v14 = vpop.f32.mrf.mxu0 }
 0x55a   :  { %v16567_v63 = vadd.f32 %v16566_v36, %v16486_v11  ;;  %v16728_v41 = vpop.f32.mrf.mxu0 }
 0x55b   :  { %v16642_v48 = vpop.f32.mrf.mxu1 }
 0x55c   :  { %v16643_v45 = vadd.f32 %v16642_v48, %v16565_v23 }
 0x55d   :  { %v16644_v40 = vpop.f32.mrf.mxu1 }
 0x55e   :  { %v16727_v55 = vadd.f32 %v16726_v14, %v16643_v45  ;;  %v16645_v44 = vadd.f32 %v16644_v40, %v16567_v63  ;;  %v16882_v18 = vpop.f32.mrf.mxu0 }
 0x560   :  { %v16729_v20 = vadd.f32 %v16728_v41, %v16645_v44  ;;  %v16884_v53 = vpop.f32.mrf.mxu0 }
 0x561   :  { %v16802_v12 = vpop.f32.mrf.mxu1 }
 0x562   :  { %v16803_v33 = vadd.f32 %v16802_v12, %v16727_v55 }
 0x563   :  { %v16804_v8 = vpop.f32.mrf.mxu1 }
 0x564   :  { %v25374_v62 = vadd.f32 %v16803_v33, %v25198_v16  ;;  %v16805_v10 = vadd.f32 %v16804_v8, %v16729_v20  ;;  %v17055_v4 = vpop.f32.mrf.mxu0 }
 0x566   :  { %v25377_v6 = vadd.f32 %v16805_v10, %v25212_v35  ;;  %v17057_v22 = vpop.f32.mrf.mxu0 }
 0x567   :  { %v16974_v30 = vpop.f32.mrf.mxu1 }
 0x568   :  { %v16975_v61 = vadd.f32 %v16974_v30, %v16882_v18 }
 0x569   :  { %v16976_v46 = vpop.f32.mrf.mxu1 }
 0x56a   :  { %v17056_v47 = vadd.f32 %v17055_v4, %v16975_v61  ;;  %v16977_v49 = vadd.f32 %v16976_v46, %v16884_v53  ;;  %v17217_v34 = vpop.f32.mrf.mxu0 }
 0x56c   :  { %v17058_v57 = vadd.f32 %v17057_v22, %v16977_v49  ;;  %v17219_v1 = vpop.f32.mrf.mxu0 }
 0x56d   :  { %v17133_v38 = vpop.f32.mrf.mxu1 }
 0x56e   :  { %v17134_v21 = vadd.f32 %v17133_v38, %v17056_v47 }
 0x56f   :  { %v17135_v37 = vpop.f32.mrf.mxu1 }
 0x570   :  { %v17218_v17 = vadd.f32 %v17217_v34, %v17134_v21  ;;  %v17136_v16 = vadd.f32 %v17135_v37, %v17058_v57  ;;  %v17453_v39 = vpop.f32.mrf.mxu0 }
 0x572   :  { %v17220_v54 = vadd.f32 %v17219_v1, %v17136_v16  ;;  %v17455_v42 = vpop.f32.mrf.mxu0 }
 0x573   :  { %v17293_v58 = vpop.f32.mrf.mxu1 }
 0x574   :  { %v17294_v35 = vadd.f32 %v17293_v58, %v17218_v17 }
 0x575   :  { %v17295_v59 = vpop.f32.mrf.mxu1 }
 0x576   :  { %v25380_v26 = vadd.f32 %v17294_v35, %v25310_v2  ;;  %v17296_v27 = vadd.f32 %v17295_v59, %v17220_v54  ;;  %v17626_v7 = vpop.f32.mrf.mxu0 }
 0x578   :  { %v25383_v31 = vadd.f32 %v17296_v27, %v25321_v9  ;;  %v17628_v15 = vpop.f32.mrf.mxu0 }
 0x579   :  { %v17545_v43 = vpop.f32.mrf.mxu1 }
 0x57a   :  { %v17546_v50 = vadd.f32 %v17545_v43, %v17453_v39 }
 0x57b   :  { %v17547_v25 = vpop.f32.mrf.mxu1 }
 0x57c   :  { %v17627_v32 = vadd.f32 %v17626_v7, %v17546_v50  ;;  %v17548_v19 = vadd.f32 %v17547_v25, %v17455_v42  ;;  %v17788_v13 = vpop.f32.mrf.mxu0 }
 0x57e   :  { %v17629_v24 = vadd.f32 %v17628_v15, %v17548_v19  ;;  %v17790_v52 = vpop.f32.mrf.mxu0 }
 0x57f   :  { %v17704_v3 = vpop.f32.mrf.mxu1 }
 0x580   :  { %v17705_v36 = vadd.f32 %v17704_v3, %v17627_v32 }
 0x581   :  { %v17706_v28 = vpop.f32.mrf.mxu1 }
 0x582   :  { %v17789_v56 = vadd.f32 %v17788_v13, %v17705_v36  ;;  %v17707_v2 = vadd.f32 %v17706_v28, %v17629_v24  ;;  %v17944_v60 = vpop.f32.mrf.mxu0 }
 0x584   :  { %v17791_v23 = vadd.f32 %v17790_v52, %v17707_v2  ;;  %v17946_v11 = vpop.f32.mrf.mxu0 }
 0x585   :  { %v17864_v14 = vpop.f32.mrf.mxu1 }
 0x586   :  { %v17865_v9 = vadd.f32 %v17864_v14, %v17789_v56 }
 0x587   :  { %v17866_v63 = vpop.f32.mrf.mxu1 }
 0x588   :  { %v25386_v41 = vadd.f32 %v17865_v9, %v25363_v0  ;;  %v17867_v48 = vadd.f32 %v17866_v63, %v17791_v23  ;;  %v18117_v45 = vpop.f32.mrf.mxu0 }
 0x58a   :  { %v25389_v40 = vadd.f32 %v17867_v48, %v25365_v51  ;;  %v18119_v55 = vpop.f32.mrf.mxu0 }
 0x58b   :  { %v18036_v44 = vpop.f32.mrf.mxu1 }
 0x58c   :  { %v18037_v18 = vadd.f32 %v18036_v44, %v17944_v60 }
 0x58d   :  { %v18038_v20 = vpop.f32.mrf.mxu1 }
 0x58e   :  { %v18118_v53 = vadd.f32 %v18117_v45, %v18037_v18  ;;  %v18039_v12 = vadd.f32 %v18038_v20, %v17946_v11  ;;  %v18279_v33 = vpop.f32.mrf.mxu0 }
 0x590   :  { %v18120_v8 = vadd.f32 %v18119_v55, %v18039_v12  ;;  %v18281_v10 = vpop.f32.mrf.mxu0 }
 0x591   :  { %v18195_v4 = vpop.f32.mrf.mxu1 }
 0x592   :  { %v18196_v22 = vadd.f32 %v18195_v4, %v18118_v53 }
 0x593   :  { %v18197_v30 = vpop.f32.mrf.mxu1 }
 0x594   :  { %v18280_v61 = vadd.f32 %v18279_v33, %v18196_v22  ;;  %v18198_v0 = vadd.f32 %v18197_v30, %v18120_v8  ;;  %v25391_v46 = vpop.f32.mrf.mxu0 }
 0x596   :  { %v18282_v47 = vadd.f32 %v18281_v10, %v18198_v0  ;;  %v25393_v49 = vpop.f32.mrf.mxu0 }
 0x597   :  { %v18355_v51 = vpop.f32.mrf.mxu1 }
 0x598   :  { %v18356_v34 = vadd.f32 %v18355_v51, %v18280_v61 }
 0x599   :  { %v18357_v57 = vpop.f32.mrf.mxu1 }
 0x59a   :  { %v25396_v1 = vadd.f32 %v18356_v34, %v25368_v29  ;;  %v18358_v38 = vadd.f32 %v18357_v57, %v18282_v47  ;;  %v25398_v21 = vpop.f32.mrf.mxu0 }
 0x59c   :  { %v25401_v37 = vadd.f32 %v18358_v38, %v25371_v5  ;;  %v25403_v17 = vpop.f32.mrf.mxu0 }
 0x59d   :  { %v25405_v16 = vpop.f32.mrf.mxu1 }
 0x59f   :  { %v25407_v39 = vpop.f32.mrf.mxu1 }
 0x5a0   :  { %v25409_v54 = vpop.f32.mrf.mxu0 }
 0x5a2   :  { %v25411_v42 = vpop.f32.mrf.mxu0 }
 0x5a3   :  { %v25413_v58 = vpop.f32.mrf.mxu1 }
 0x5a5   :  { %v25415_v29 = vpop.f32.mrf.mxu1 }
 0x5a6   :  { %v25417_v35 = vpop.f32.mrf.mxu0 }
 0x5a8   :  { %v25419_v59 = vpop.f32.mrf.mxu0 }
 0x5a9   :  { %v25421_v5 = vpop.f32.mrf.mxu1 }
 0x5ab   :  { %v25423_v27 = vpop.f32.mrf.mxu1 }
 0x5ac   :  { %v25425_v7 = vpop.f32.mrf.mxu0 }
 0x5ae   :  { %v25427_v15 = vpop.f32.mrf.mxu0 }
 0x5af   :  { %v25429_v43 = vpop.f32.mrf.mxu1 }
 0x5b1   :  { %v25431_v50 = vpop.f32.mrf.mxu1 }
 0x5b2   :  { %v25433_v25 = vpop.f32.mrf.mxu0 }
 0x5b4   :  { %v25435_v32 = vpop.f32.mrf.mxu0 }
 0x5b5   :  { %v25437_v19 = vpop.f32.mrf.mxu1 }
 0x5b7   :  { %v25439_v13 = vpop.f32.mrf.mxu1 }
 0x5b8   :  { %v19497_v24 = vpop.f32.mrf.mxu0 }
 0x5ba   :  { %v19499_v52 = vpop.f32.mrf.mxu0 }
 0x5bb   :  { %v25441_v3 = vpop.f32.mrf.mxu1 }
 0x5bd   :  { %v25443_v36 = vpop.f32.mrf.mxu1 }
 0x5be   :  { %v19670_v28 = vpop.f32.mrf.mxu0 }
 0x5c0   :  { %v19672_v56 = vpop.f32.mrf.mxu0 }
 0x5c1   :  { %v19589_v2 = vpop.f32.mrf.mxu1 }
 0x5c2   :  { %v19590_v60 = vadd.f32 %v19589_v2, %v19497_v24 }
 0x5c3   :  { %v19591_v23 = vpop.f32.mrf.mxu1 }
 0x5c4   :  { %v19671_v11 = vadd.f32 %v19670_v28, %v19590_v60  ;;  %v19592_v14 = vadd.f32 %v19591_v23, %v19499_v52  ;;  %v19832_v9 = vpop.f32.mrf.mxu0 }
 0x5c6   :  { %v19673_v63 = vadd.f32 %v19672_v56, %v19592_v14  ;;  %v19834_v48 = vpop.f32.mrf.mxu0 }
 0x5c7   :  { %v19748_v45 = vpop.f32.mrf.mxu1 }
 0x5c8   :  { %v19749_v55 = vadd.f32 %v19748_v45, %v19671_v11  ;;  %v21617_v45 = vmov 1966171168  }
 0x5c9   :  { %v19750_v44 = vpop.f32.mrf.mxu1 }
 0x5ca   :  { %v19833_v18 = vadd.f32 %v19832_v9, %v19749_v55  ;;  %v19751_v20 = vadd.f32 %v19750_v44, %v19673_v63  ;;  %v19988_v53 = vpop.f32.mrf.mxu0  ;;  %v18528_v55 = vadd.f32 %v25405_v16, %v25391_v46  ;;  %v25682_v16 = vld [vmem:[#allocation14_spill] sm:$0xff] }
 0x5cc   :  { %v19835_v12 = vadd.f32 %v19834_v48, %v19751_v20  ;;  %v19990_v33 = vpop.f32.mrf.mxu0 }
 0x5cd   :  { %v19908_v8 = vpop.f32.mrf.mxu1 }
 0x5ce   :  { %v19909_v10 = vadd.f32 %v19908_v8, %v19833_v18 }
 0x5cf   :  { %v19910_v4 = vpop.f32.mrf.mxu1 }
 0x5d0   :  { %v21386_v22 = vadd.f32 %v19909_v10, %v25386_v41  ;;  %v19911_v30 = vadd.f32 %v19910_v4, %v19835_v12  ;;  %v20161_v61 = vpop.f32.mrf.mxu0  ;;  %v18609_v10 = vadd.f32 %v25398_v21, %v18528_v55 }
 0x5d2   :  { %v21387_v0 = vadd.f32 %v19911_v30, %v25389_v40  ;;  %v20163_v47 = vpop.f32.mrf.mxu0  ;;  %v21394_v34 = vmax.f32 %v21386_v22, 0.0  ;;  %v21415_v40 = vunpack.c.l.s4 %v21617_v45 }
 0x5d3   :  { %v20080_v51 = vpop.f32.mrf.mxu1 }
 0x5d4   :  { %v21395_v57 = vmax.f32 %v21387_v0, 0.0  ;;  %v20081_v38 = vadd.f32 %v20080_v51, %v19988_v53  ;;  %v18530_v53 = vadd.f32 %v25407_v39, %v25393_v49  ;;  %v18687_v49 = vadd.f32 %v25413_v58, %v18609_v10 }
 0x5d5   :  { %v20082_v24 = vpop.f32.mrf.mxu1 }
 0x5d6   :  { %v21410_v52 = vcombine.low %v21394_v34, %v21395_v57  ;;  %v20162_v28 = vadd.f32 %v20161_v61, %v20081_v38  ;;  %v20083_v56 = vadd.f32 %v20082_v24, %v19990_v33  ;;  %v20323_v2 = vpop.f32.mrf.mxu0  ;;  %v21416_v33 = vunpack.c.0.s8 %v21415_v40 }
 0x5d7   :  { %v18611_v61 = vadd.f32 %v25403_v17, %v18530_v53  ;;  %v18771_v17 = vadd.f32 %v25409_v54, %v18687_v49 }
 0x5d8   :  { %v20164_v60 = vadd.f32 %v20163_v47, %v20083_v56  ;;  %v20325_v23 = vpop.f32.mrf.mxu0  ;;  %v25456_v47 = vsub.s32 %v21416_v33, %v25682_v16 }
 0x5d9   :  { %v20239_v11 = vpop.f32.mrf.mxu1  ;;  %v18689_v21 = vadd.f32 %v25415_v29, %v18611_v61  ;;  %v19019_v29 = vadd.f32 %v25429_v43, %v25417_v35 }
 0x5da   :  { %v20240_v14 = vadd.f32 %v20239_v11, %v20162_v28 }
 0x5db   :  { %v20241_v9 = vpop.f32.mrf.mxu1  ;;  %v18773_v58 = vadd.f32 %v25411_v42, %v18689_v21  ;;  %v19100_v42 = vadd.f32 %v25425_v7, %v19019_v29 }
 0x5dc   :  { %v20324_v41 = vadd.f32 %v20323_v2, %v20240_v14  ;;  %v20242_v63 = vadd.f32 %v20241_v9, %v20164_v60  ;;  %v20479_v48 = vpop.f32.mrf.mxu0 }
 0x5dd   :  { %v18849_v40 = vadd.f32 %v25423_v27, %v18773_v58 }
 0x5de   :  { %v20326_v44 = vadd.f32 %v20325_v23, %v20242_v63  ;;  %v20481_v18 = vpop.f32.mrf.mxu0  ;;  %v18847_v63 = vadd.f32 %v25421_v5, %v18771_v17 }
 0x5df   :  { %v20399_v20 = vpop.f32.mrf.mxu1  ;;  %v19347_v5 = vadd.f32 %v18849_v40, %v25377_v6 }
 0x5e0   :  { %v20400_v12 = vadd.f32 %v20399_v20, %v20324_v41  ;;  %v19346_v20 = vadd.f32 %v18847_v63, %v25374_v62 }
 0x5e1   :  { %v20401_v8 = vpop.f32.mrf.mxu1 }
 0x5e2   :  { %v21388_v4 = vadd.f32 %v20400_v12, %v25396_v1  ;;  %v20402_v22 = vadd.f32 %v20401_v8, %v20326_v44  ;;  %v20652_v30 = vpop.f32.mrf.mxu0 }
 0x5e4   :  { %v21389_v0 = vadd.f32 %v20402_v22, %v25401_v37  ;;  %v20654_v46 = vpop.f32.mrf.mxu0  ;;  %v21396_v39 = vmax.f32 %v21388_v4, 0.0  ;;  %v21420_v37 = vrot.slane %v21410_v52, %v25456_v47  ;;  %v19021_v52 = vadd.f32 %v25431_v50, %v25419_v59 }
 0x5e5   :  { %v20571_v51 = vpop.f32.mrf.mxu1  ;;  %v19178_v59 = vadd.f32 %v25437_v19, %v19100_v42 }
 0x5e6   :  { %v21397_v34 = vmax.f32 %v21389_v0, 0.0  ;;  %v20572_v57 = vadd.f32 %v20571_v51, %v20479_v48  ;;  %v19102_v35 = vadd.f32 %v25427_v15, %v19021_v52 }
 0x5e7   :  { %v20573_v38 = vpop.f32.mrf.mxu1  ;;  %v19262_v62 = vadd.f32 %v25433_v25, %v19178_v59 }
 0x5e8   :  { %v21411_v1 = vcombine.low %v21396_v39, %v21397_v34  ;;  %v20653_v24 = vadd.f32 %v20652_v30, %v20572_v57  ;;  %v20574_v28 = vadd.f32 %v20573_v38, %v20481_v18  ;;  %v20814_v56 = vpop.f32.mrf.mxu0  ;;  %v19180_v27 = vadd.f32 %v25439_v13, %v19102_v35 }
 0x5e9   :  { %v19338_v19 = vadd.f32 %v25441_v3, %v19262_v62 }
 0x5ea   :  { %v21427_v2 = vrot.slane %v21411_v1, %v25456_v47  ;;  %v20655_v60 = vadd.f32 %v20654_v46, %v20574_v28  ;;  %v20816_v23 = vpop.f32.mrf.mxu0  ;;  %v19264_v6 = vadd.f32 %v25435_v32, %v19180_v27 }
 0x5eb   :  { %v20730_v11 = vpop.f32.mrf.mxu1  ;;  %v19348_v25 = vadd.f32 %v19338_v19, %v25380_v26 }
 0x5ec   :  { %v20731_v14 = vadd.f32 %v20730_v11, %v20653_v24  ;;  %v25464_v9 = vcombine.low %v21420_v37, %v21427_v2  ;;  %v19340_v34 = vadd.f32 %v25443_v36, %v19264_v6 }
 0x5ed   :  { %v20732_v41 = vpop.f32.mrf.mxu1 }
 0x5ee   :  { %v20815_v48 = vadd.f32 %v20814_v56, %v20731_v14  ;;  %v20733_v54 = vadd.f32 %v20732_v41, %v20655_v60  ;;  %v20970_v45 = vpop.f32.mrf.mxu0  ;;  %v19349_v32 = vadd.f32 %v19340_v34, %v25383_v31  ;;  %v21450_v26 = vrot.slane %v25464_v9, %v25456_v47 }
 0x5f0   :  { %v20817_v55 = vadd.f32 %v20816_v23, %v20733_v54  ;;  %v20972_v44 = vpop.f32.mrf.mxu0 }
 0x5f1   :  { %v20890_v18 = vpop.f32.mrf.mxu1 }
 0x5f2   :  { %v20891_v53 = vadd.f32 %v20890_v18, %v20815_v48 }
 0x5f3   :  { %v20892_v43 = vpop.f32.mrf.mxu1 }
 0x5f4   :  { %v21390_v12 = vadd.f32 %v20891_v53, %v19346_v20  ;;  %v20893_v33 = vadd.f32 %v20892_v43, %v20817_v55  ;;  %v21143_v8 = vpop.f32.mrf.mxu0 }
 0x5f6   :  { %v21391_v50 = vadd.f32 %v20893_v33, %v19347_v5  ;;  %v21398_v4 = vmax.f32 %v21390_v12, 0.0  ;;  %v21145_v30 = vpop.f32.mrf.mxu0 }
 0x5f7   :  { %v21062_v10 = vpop.f32.mrf.mxu1 }
 0x5f8   :  { %v21399_v7 = vmax.f32 %v21391_v50, 0.0  ;;  %v21063_v22 = vadd.f32 %v21062_v10, %v20970_v45 }
 0x5f9   :  { %v21064_v61 = vpop.f32.mrf.mxu1 }
 0x5fa   :  { %v21412_v15 = vcombine.low %v21398_v4, %v21399_v7  ;;  %v21144_v0 = vadd.f32 %v21143_v8, %v21063_v22  ;;  %v21065_v46 = vadd.f32 %v21064_v61, %v20972_v44  ;;  %v21305_v49 = vpop.f32.mrf.mxu0 }
 0x5fc   :  { %v21146_v16 = vadd.f32 %v21145_v30, %v21065_v46  ;;  %v21221_v51 = vpop.f32.mrf.mxu1  ;;  %v21307_v21 = vpop.f32.mrf.mxu0  ;;  %v21434_v11 = vrot.slane %v21412_v15, %v25456_v47 }
 0x5fd   :  { %v21222_v39 = vadd.f32 %v21221_v51, %v21144_v0 }
 0x5fe   :  { %v21223_v13 = vpop.f32.mrf.mxu1 }
 0x5ff   :  { %v21306_v57 = vadd.f32 %v21305_v49, %v21222_v39  ;;  %v21224_v38 = vadd.f32 %v21223_v13, %v21146_v16 }
 0x600   :  { %v21381_v1 = vpop.f32.mrf.mxu1 }
 0x601   :  { %v21308_v24 = vadd.f32 %v21307_v21, %v21224_v38  ;;  %v21382_v28 = vadd.f32 %v21381_v1, %v21306_v57 }
 0x602   :  { %v21383_v56 = vpop.f32.mrf.mxu1 }
 0x603   :  { %v21392_v17 = vadd.f32 %v21382_v28, %v19348_v25  ;;  %v21384_v37 = vadd.f32 %v21383_v56, %v21308_v24 }
 0x605   :  { %v21393_v2 = vadd.f32 %v21384_v37, %v19349_v32  ;;  %v21400_v60 = vmax.f32 %v21392_v17, 0.0 }
 0x607   :  { %v21401_v3 = vmax.f32 %v21393_v2, 0.0 }
 0x609   :  { %v21413_v23 = vcombine.low %v21400_v60, %v21401_v3 }
 0x60b   :  { %v21441_v36 = vrot.slane %v21413_v23, %v25456_v47 }
 0x60d   :  { %v21443_v58 = vcombine.low %v21434_v11, %v21441_v36 }
 0x60f   :  { %v21457_v14 = vrot.slane %v21443_v58, %v25456_v47 }
 0x611   :  { %v21458_v29 = vcombine.low %v21450_v26, %v21457_v14 }
 0x613   :  { %21460 = vst [vmem:[#allocation10] sm:$0xff] %v21458_v29 }
 0x614   :  { %21567 = shalt.err (!%p21564_p0)
}
 0x615   :  { %21470 = dma.vmem_to_hbm [thread:$0]  %s21468_s20, 128, %s25498_s6, [#allocation7]  }
 0x616   :  { %21580 = dma.done.wait [#allocation7], 128  }
 0x617   :  { %21581 = vsyncadd [#allocation7], 4294967168 }
 0x618   :  { %21474 = vsyncpa [#allocation6], 1 }
 0x619   :  { %21475 = vsyncpa [#allocation9], 1 }
 0x61a   :  { %21476 = vsyncpa [#allocation7], 1 }

</bundles_post_ra>
